<compile_context>
chip_gen: v7x
topology: tpu7x:2x2x1
jax: 0.10.0
libtpu: 0.0.40
codegen_flags: <defaults>
</compile_context>

<pallas_src>
import jax
import jax.numpy as jnp
from jax.experimental import pallas as pl
from jax.experimental.pallas import tpu as pltpu

NUM_CLASSES = 10
FC_PAD = 128                     # fc2 output padded to a full lane width

# ------------------------- static network geometry ---------------------------
H1 = W1 = 32                     # conv1 input spatial size
C1, F1, K1 = 3, 32, 3            # conv1 in/out channels, kernel
OW1 = W1 - K1 + 1                # 30   conv1 output height == width
L1 = (OW1 - 1) * W1 + OW1        # 958  flat conv1 slab length (row stride W1)
P1 = OW1 // 2                    # 15   pooled1 height == width
S1 = 16                          # padded row stride of pooled1 map

K2, F2 = 4, 32                   # conv2 kernel / out channels
OW2 = P1 - K2 + 1                # 12   conv2 output height == width
L2 = (OW2 - 1) * S1 + OW2        # 188  flat conv2 slab length (row stride S1)
P2 = OW2 // 2                    # 6    pooled2 height == width
S2 = 8                           # padded row stride of pooled2 map
FEAT = P2 * S2 * F2              # 1536 flattened (zero-padded) feature length


# -------------- fused conv1+pool1+conv2+pool2 kernel (per batch block) --------

def _make_conv_kernel(B):
    def kernel(x_ref, w1_ref, b1_ref, w2_ref, b2_ref, o_ref):
        # x_ref: (B, 1024, 3) bf16   w1_ref: (9, 3, 32) bf16   b1_ref: (1, 32) f32
        # w2_ref: (16, 32, 32) bf16  b2_ref: (1, 32) f32       o_ref: (B, 48, 32) bf16

        # bf16 one-hot column-selection matrices for the 2:1 horizontal pool;
        # rows beyond the valid pooled width select nothing (all-zero rows).
        def make_sel(rows, cols, off):
            r = jax.lax.broadcasted_iota(jnp.int32, (rows, cols), 0)
            c = jax.lax.broadcasted_iota(jnp.int32, (rows, cols), 1)
            return (c == 2 * r + off).astype(jnp.bfloat16)

        sel1e, sel1o = make_sel(S1, OW1, 0), make_sel(S1, OW1, 1)
        sel2e, sel2o = make_sel(S2, OW2, 0), make_sel(S2, OW2, 1)

        w1k = [w1_ref[k] for k in range(K1 * K1)]      # each (3, 32) bf16
        w2k = [w2_ref[k] for k in range(K2 * K2)]      # each (32, 32) bf16
        b1 = b1_ref[...]                               # (1, 32) f32
        b2 = b2_ref[...]                               # (1, 32) f32

        for b in range(B):
            # ---- conv1: 9 hoisted full-image tap matmuls into a flat slab ----
            y1 = None
            for i in range(K1):
                for j in range(K1):
                    s = i * W1 + j
                    t = jnp.dot(x_ref[b, s:s + L1, :], w1k[i * K1 + j],
                                preferred_element_type=jnp.float32)
                    y1 = t if y1 is None else y1 + t
            y1 = jnp.maximum(y1 + b1, 0.0)             # (958, 32), stride-32 rows
            # wrap-around columns (ow >= 30) are garbage but never pooled.

            # ---- pool1: slab vertical max + bf16 one-hot column selection ----
            v1 = jnp.maximum(y1[:L1 - W1, :], y1[W1:, :])        # (926, 32)
            pieces = []
            for r in range(P1):
                row = v1[2 * r * W1: 2 * r * W1 + OW1, :].astype(jnp.bfloat16)
                piece = jnp.maximum(
                    jnp.dot(sel1e, row, preferred_element_type=jnp.float32),
                    jnp.dot(sel1o, row, preferred_element_type=jnp.float32))
                pieces.append(piece.astype(jnp.bfloat16))        # (16, 32)
            p1 = jnp.concatenate(pieces, axis=0)                 # (240, 32) bf16
            # p1 is the 15x15 pooled map with row stride 16 (col 15 = zero pad).

            # ---- conv2: 16 hoisted tap matmuls on the stride-16 pooled map ----
            y2 = None
            for i in range(K2):
                for j in range(K2):
                    s = i * S1 + j
                    t = jnp.dot(p1[s:s + L2, :], w2k[i * K2 + j],
                                preferred_element_type=jnp.float32)
                    y2 = t if y2 is None else y2 + t
            y2 = jnp.maximum(y2 + b2, 0.0)             # (188, 32), stride-16 rows

            # ---- pool2 ----
            v2 = jnp.maximum(y2[:L2 - S1, :], y2[S1:, :])        # (172, 32)
            pieces2 = []
            for r in range(P2):
                row = v2[2 * r * S1: 2 * r * S1 + OW2, :].astype(jnp.bfloat16)
                piece = jnp.maximum(
                    jnp.dot(sel2e, row, preferred_element_type=jnp.float32),
                    jnp.dot(sel2o, row, preferred_element_type=jnp.float32))
                pieces2.append(piece)                            # (8, 32) f32
            p2 = jnp.concatenate(pieces2, axis=0)                # (48, 32)
            o_ref[b, :, :] = p2.astype(o_ref.dtype)              # one store/image

    return kernel


def conv_stage(x, w1, b1, w2, b2, *, block_b):
    """x: (Np, 1024, 3) bf16 -> pooled features (Np, 48, 32) bf16."""
    Np = x.shape[0]
    return pl.pallas_call(
        _make_conv_kernel(block_b),
        out_shape=jax.ShapeDtypeStruct((Np, P2 * S2, F2), jnp.bfloat16),
        grid=(Np // block_b,),
        in_specs=[
            pl.BlockSpec((block_b, H1 * W1, C1), lambda n: (n, 0, 0)),
            pl.BlockSpec((K1 * K1, C1, F1), lambda n: (0, 0, 0)),
            pl.BlockSpec((1, F1), lambda n: (0, 0)),
            pl.BlockSpec((K2 * K2, F1, F2), lambda n: (0, 0, 0)),
            pl.BlockSpec((1, F2), lambda n: (0, 0)),
        ],
        out_specs=pl.BlockSpec((block_b, P2 * S2, F2), lambda n: (n, 0, 0)),
        compiler_params=pltpu.CompilerParams(
            dimension_semantics=("parallel",),
            vmem_limit_bytes=32 * 1024 * 1024),
    )(x, w1, b1, w2, b2)


# ---------------- fused fc1 + ReLU + fc2 + log-softmax (tail) ----------------

def _fc_head_kernel(x_ref, w1_ref, b1_ref, w2_ref, b2_ref, o_ref):
    h = jnp.dot(x_ref[...], w1_ref[...], preferred_element_type=jnp.float32)
    h = jnp.maximum(h + b1_ref[...], 0.0)
    logits = jnp.dot(h.astype(w2_ref.dtype), w2_ref[...],
                     preferred_element_type=jnp.float32) + b2_ref[...]
    m = jnp.max(logits, axis=-1, keepdims=True)
    z = logits - m
    lse = jnp.log(jnp.sum(jnp.exp(z), axis=-1, keepdims=True))
    o_ref[...] = z - lse


def fc_head(x, w1, b1, w2, b2, *, tm):
    """x: (M, 1536) bf16 (M a multiple of tm) -> (M, 128) f32 padded log-probs."""
    M, K = x.shape
    Hd = w1.shape[1]
    NO = w2.shape[1]
    return pl.pallas_call(
        _fc_head_kernel,
        out_shape=jax.ShapeDtypeStruct((M, NO), jnp.float32),
        grid=(M // tm,),
        in_specs=[
            pl.BlockSpec((tm, K), lambda i: (i, 0)),
            pl.BlockSpec((K, Hd), lambda i: (0, 0)),
            pl.BlockSpec((1, Hd), lambda i: (0, 0)),
            pl.BlockSpec((Hd, NO), lambda i: (0, 0)),
            pl.BlockSpec((1, NO), lambda i: (0, 0)),
        ],
        out_specs=pl.BlockSpec((tm, NO), lambda i: (i, 0)),
        compiler_params=pltpu.CompilerParams(
            dimension_semantics=("parallel",),
            vmem_limit_bytes=32 * 1024 * 1024),
    )(x, w1, b1, w2, b2)


# ------------------------------ parameters -----------------------------------

def init_params(key):
    ks = jax.random.split(key, 8)
    scale = 0.05
    return {
        "conv1_w": scale * jax.random.normal(ks[0], (32, 3, 3, 3), jnp.float32),
        "conv1_b": scale * jax.random.normal(ks[1], (32,), jnp.float32),
        "conv2_w": scale * jax.random.normal(ks[2], (32, 32, 4, 4), jnp.float32),
        "conv2_b": scale * jax.random.normal(ks[3], (32,), jnp.float32),
        "fc1_w": scale * jax.random.normal(ks[4], (512, 32 * 6 * 6), jnp.float32),
        "fc1_b": scale * jax.random.normal(ks[5], (512,), jnp.float32),
        "fc2_w": scale * jax.random.normal(ks[6], (10, 512), jnp.float32),
        "fc2_b": scale * jax.random.normal(ks[7], (10,), jnp.float32),
    }


def prepare_params(p):
    """One-time weight permute/pad/cast, done OUTSIDE the jitted forward."""
    def conv_pack(w):  # torch (O, C, KH, KW) -> (KH*KW, C, O) bf16
        O, C, KH, KW = w.shape
        return jnp.transpose(w, (2, 3, 1, 0)).reshape(KH * KW, C, O).astype(jnp.bfloat16)

    # fc1: torch flattens (c, h, w); the kernel's features are (h, w padded 6->8, c).
    w1 = p["fc1_w"].reshape(512, 32, 6, 6)                     # (o, c, h, w)
    w1 = jnp.transpose(w1, (0, 2, 3, 1))                       # (o, h, w, c)
    w1 = jnp.pad(w1, ((0, 0), (0, 0), (0, S2 - P2), (0, 0)))   # pad w: 6 -> 8
    w1 = w1.reshape(512, FEAT).T                               # (1536, 512)

    # fc2: pre-transpose and pad 10 -> 128 output lanes; padded columns get zero
    # weights and a -1e30 bias (safe: logits/softmax stay in f32) so they vanish.
    w2 = jnp.pad(p["fc2_w"].T, ((0, 0), (0, FC_PAD - NUM_CLASSES)))
    b2 = jnp.pad(p["fc2_b"], (0, FC_PAD - NUM_CLASSES), constant_values=-1e30)

    return {
        "c1_w": conv_pack(p["conv1_w"]),
        "c1_b": p["conv1_b"].reshape(1, -1).astype(jnp.float32),
        "c2_w": conv_pack(p["conv2_w"]),
        "c2_b": p["conv2_b"].reshape(1, -1).astype(jnp.float32),
        "fc1_w": w1.astype(jnp.bfloat16),
        "fc1_b": p["fc1_b"].reshape(1, -1).astype(jnp.float32),
        "fc2_w": w2.astype(jnp.bfloat16),
        "fc2_b": b2.reshape(1, -1).astype(jnp.float32),
    }


# ------------------------------- forward --------------------------------------

def _round_up(x, m):
    return -(-x // m) * m


def net_forward(prep, x_nchw):
    N = x_nchw.shape[0]
    # single entry transpose NCHW -> channel-last flat (h*W + w, c)
    x = jnp.transpose(x_nchw, (0, 2, 3, 1)).reshape(N, H1 * W1, C1).astype(jnp.bfloat16)

    # conv batch block: amortize per-step overhead, keep >=2 grid steps (v7x).
    if N >= 16:
        bb = 8
    elif N >= 8:
        bb = 4
    elif N >= 4:
        bb = 2
    else:
        bb = 1
    n_pad = _round_up(N, bb)
    if n_pad != N:
        x = jnp.pad(x, ((0, n_pad - N), (0, 0), (0, 0)))

    feats = conv_stage(x, prep["c1_w"], prep["c1_b"],
                       prep["c2_w"], prep["c2_b"], block_b=bb)   # (n_pad, 48, 32)
    feats = feats.reshape(n_pad, FEAT)[:N]                       # free flatten

    # fc M-tiling: fixed 128-row tiles for big batches; >=2 steps for small ones.
    m0 = max(16, _round_up(N, 8))
    if m0 <= 256:
        tm = _round_up(m0 // 2, 8)
        m_pad = 2 * tm
    else:
        tm = 128
        m_pad = _round_up(m0, 128)
    feats = jnp.pad(feats, ((0, m_pad - N), (0, 0)))
    out = fc_head(feats, prep["fc1_w"], prep["fc1_b"],
                  prep["fc2_w"], prep["fc2_b"], tm=tm)           # (m_pad, 128) f32
    return out[:N, :NUM_CLASSES]


# ---------------------- pure-JAX reference (f32, for checking) ----------------

def _reference_forward(params, x):
    def conv(x, w, b):
        y = jax.lax.conv_general_dilated(
            x, w, (1, 1), "VALID", dimension_numbers=("NCHW", "OIHW", "NCHW"))
        return jax.nn.relu(y + b[None, :, None, None])

    def pool(x):
        return jax.lax.reduce_window(x, -jnp.inf, jax.lax.max,
                                     (1, 1, 2, 2), (1, 1, 2, 2), "VALID")

    x = pool(conv(x, params["conv1_w"], params["conv1_b"]))
    x = pool(conv(x, params["conv2_w"], params["conv2_b"]))
    x = x.reshape(x.shape[0], -1)
    x = jax.nn.relu(x @ params["fc1_w"].T + params["fc1_b"])
    x = x @ params["fc2_w"].T + params["fc2_b"]
    return jax.nn.log_softmax(x, axis=1)


if __name__ == "__main__":
    key = jax.random.PRNGKey(0)
    pkey, xkey = jax.random.split(key)
    params = init_params(pkey)
    prep = prepare_params(params)                    # outside the jitted forward
    # CIFAR-10 sized input (32x32 required by fc1's 32*6*6 input dimension).
    x = jax.random.normal(xkey, (2, 3, 32, 32), jnp.float32)

    fwd = jax.jit(net_forward)
    out = jax.block_until_ready(fwd(prep, x))

    assert out.shape == (2, NUM_CLASSES)
    # log-softmax rows should exponentiate-sum to ~1
    assert jnp.allclose(jnp.sum(jnp.exp(out), axis=1), 1.0, atol=1e-3)
    # cross-check against a pure-JAX f32 reference of the PyTorch module
    ref = _reference_forward(params, x)
    assert float(jnp.max(jnp.abs(out - ref))) < 1e-1
    print("KERNEL_OK")
</pallas_src>

<mosaic_0001>
module attributes {stable_mosaic.version = 11 : i64} {
  func.func @kernel(%arg0: i32, %arg1: memref<1x1024x3xbf16, #tpu.memory_space<vmem>>, %arg2: memref<9x3x32xbf16, #tpu.memory_space<vmem>>, %arg3: memref<1x32xf32, #tpu.memory_space<vmem>>, %arg4: memref<16x32x32xbf16, #tpu.memory_space<vmem>>, %arg5: memref<1x32xf32, #tpu.memory_space<vmem>>, %arg6: memref<1x48x32xbf16, #tpu.memory_space<vmem>>) attributes {dimension_semantics = [#tpu.dimension_semantics<parallel>], iteration_bounds = array<i64: 2>, scalar_prefetch = 0 : i64, scratch_operands = 0 : i64, tpu.core_type = #tpu.core_type<tc>, window_params = [{transform_indices = @transform_0, window_bounds = array<i64: 1, 1024, 3>}, {pipeline_mode = #tpu.pipeline_mode<synchronous>, transform_indices = @transform_1, window_bounds = array<i64: 9, 3, 32>}, {pipeline_mode = #tpu.pipeline_mode<synchronous>, transform_indices = @transform_2, window_bounds = array<i64: 1, 32>}, {pipeline_mode = #tpu.pipeline_mode<synchronous>, transform_indices = @transform_3, window_bounds = array<i64: 16, 32, 32>}, {pipeline_mode = #tpu.pipeline_mode<synchronous>, transform_indices = @transform_4, window_bounds = array<i64: 1, 32>}, {transform_indices = @transform_5, window_bounds = array<i64: 1, 48, 32>}]} {
    %0 = tpu.iota {dimensions = array<i32: 0>} : vector<16x30xi32>
    %1 = tpu.iota {dimensions = array<i32: 1>} : vector<16x30xi32>
    %c2_i32 = arith.constant 2 : i32
    %2 = vector.broadcast %c2_i32 : i32 to vector<16x30xi32>
    %3 = arith.muli %2, %0 : vector<16x30xi32>
    %c0_i32 = arith.constant 0 : i32
    %4 = vector.broadcast %c0_i32 : i32 to vector<16x30xi32>
    %5 = arith.addi %3, %4 : vector<16x30xi32>
    %6 = arith.cmpi eq, %1, %5 : vector<16x30xi32>
    %7 = arith.extui %6 : vector<16x30xi1> to vector<16x30xi32>
    %8 = arith.sitofp %7 : vector<16x30xi32> to vector<16x30xf32>
    %9 = arith.truncf %8 : vector<16x30xf32> to vector<16x30xbf16>
    %10 = tpu.iota {dimensions = array<i32: 0>} : vector<16x30xi32>
    %11 = tpu.iota {dimensions = array<i32: 1>} : vector<16x30xi32>
    %c2_i32_0 = arith.constant 2 : i32
    %12 = vector.broadcast %c2_i32_0 : i32 to vector<16x30xi32>
    %13 = arith.muli %12, %10 : vector<16x30xi32>
    %c1_i32 = arith.constant 1 : i32
    %14 = vector.broadcast %c1_i32 : i32 to vector<16x30xi32>
    %15 = arith.addi %13, %14 : vector<16x30xi32>
    %16 = arith.cmpi eq, %11, %15 : vector<16x30xi32>
    %17 = arith.extui %16 : vector<16x30xi1> to vector<16x30xi32>
    %18 = arith.sitofp %17 : vector<16x30xi32> to vector<16x30xf32>
    %19 = arith.truncf %18 : vector<16x30xf32> to vector<16x30xbf16>
    %20 = tpu.iota {dimensions = array<i32: 0>} : vector<8x12xi32>
    %21 = tpu.iota {dimensions = array<i32: 1>} : vector<8x12xi32>
    %c2_i32_1 = arith.constant 2 : i32
    %22 = vector.broadcast %c2_i32_1 : i32 to vector<8x12xi32>
    %23 = arith.muli %22, %20 : vector<8x12xi32>
    %c0_i32_2 = arith.constant 0 : i32
    %24 = vector.broadcast %c0_i32_2 : i32 to vector<8x12xi32>
    %25 = arith.addi %23, %24 : vector<8x12xi32>
    %26 = arith.cmpi eq, %21, %25 : vector<8x12xi32>
    %27 = arith.extui %26 : vector<8x12xi1> to vector<8x12xi32>
    %28 = arith.sitofp %27 : vector<8x12xi32> to vector<8x12xf32>
    %29 = arith.truncf %28 : vector<8x12xf32> to vector<8x12xbf16>
    %30 = tpu.iota {dimensions = array<i32: 0>} : vector<8x12xi32>
    %31 = tpu.iota {dimensions = array<i32: 1>} : vector<8x12xi32>
    %c2_i32_3 = arith.constant 2 : i32
    %32 = vector.broadcast %c2_i32_3 : i32 to vector<8x12xi32>
    %33 = arith.muli %32, %30 : vector<8x12xi32>
    %c1_i32_4 = arith.constant 1 : i32
    %34 = vector.broadcast %c1_i32_4 : i32 to vector<8x12xi32>
    %35 = arith.addi %33, %34 : vector<8x12xi32>
    %36 = arith.cmpi eq, %31, %35 : vector<8x12xi32>
    %37 = arith.extui %36 : vector<8x12xi1> to vector<8x12xi32>
    %38 = arith.sitofp %37 : vector<8x12xi32> to vector<8x12xf32>
    %39 = arith.truncf %38 : vector<8x12xf32> to vector<8x12xbf16>
    %c0 = arith.constant 0 : index
    %c0_5 = arith.constant 0 : index
    %c0_6 = arith.constant 0 : index
    %40 = vector.load %arg2[%c0, %c0_5, %c0_6] : memref<9x3x32xbf16, #tpu.memory_space<vmem>>, vector<1x3x32xbf16>
    %41 = vector.shape_cast %40 : vector<1x3x32xbf16> to vector<3x32xbf16>
    %c1 = arith.constant 1 : index
    %c0_7 = arith.constant 0 : index
    %c0_8 = arith.constant 0 : index
    %42 = vector.load %arg2[%c1, %c0_7, %c0_8] : memref<9x3x32xbf16, #tpu.memory_space<vmem>>, vector<1x3x32xbf16>
    %43 = vector.shape_cast %42 : vector<1x3x32xbf16> to vector<3x32xbf16>
    %c2 = arith.constant 2 : index
    %c0_9 = arith.constant 0 : index
    %c0_10 = arith.constant 0 : index
    %44 = vector.load %arg2[%c2, %c0_9, %c0_10] : memref<9x3x32xbf16, #tpu.memory_space<vmem>>, vector<1x3x32xbf16>
    %45 = vector.shape_cast %44 : vector<1x3x32xbf16> to vector<3x32xbf16>
    %c3 = arith.constant 3 : index
    %c0_11 = arith.constant 0 : index
    %c0_12 = arith.constant 0 : index
    %46 = vector.load %arg2[%c3, %c0_11, %c0_12] : memref<9x3x32xbf16, #tpu.memory_space<vmem>>, vector<1x3x32xbf16>
    %47 = vector.shape_cast %46 : vector<1x3x32xbf16> to vector<3x32xbf16>
    %c4 = arith.constant 4 : index
    %c0_13 = arith.constant 0 : index
    %c0_14 = arith.constant 0 : index
    %48 = vector.load %arg2[%c4, %c0_13, %c0_14] : memref<9x3x32xbf16, #tpu.memory_space<vmem>>, vector<1x3x32xbf16>
    %49 = vector.shape_cast %48 : vector<1x3x32xbf16> to vector<3x32xbf16>
    %c5 = arith.constant 5 : index
    %c0_15 = arith.constant 0 : index
    %c0_16 = arith.constant 0 : index
    %50 = vector.load %arg2[%c5, %c0_15, %c0_16] : memref<9x3x32xbf16, #tpu.memory_space<vmem>>, vector<1x3x32xbf16>
    %51 = vector.shape_cast %50 : vector<1x3x32xbf16> to vector<3x32xbf16>
    %c6 = arith.constant 6 : index
    %c0_17 = arith.constant 0 : index
    %c0_18 = arith.constant 0 : index
    %52 = vector.load %arg2[%c6, %c0_17, %c0_18] : memref<9x3x32xbf16, #tpu.memory_space<vmem>>, vector<1x3x32xbf16>
    %53 = vector.shape_cast %52 : vector<1x3x32xbf16> to vector<3x32xbf16>
    %c7 = arith.constant 7 : index
    %c0_19 = arith.constant 0 : index
    %c0_20 = arith.constant 0 : index
    %54 = vector.load %arg2[%c7, %c0_19, %c0_20] : memref<9x3x32xbf16, #tpu.memory_space<vmem>>, vector<1x3x32xbf16>
    %55 = vector.shape_cast %54 : vector<1x3x32xbf16> to vector<3x32xbf16>
    %c8 = arith.constant 8 : index
    %c0_21 = arith.constant 0 : index
    %c0_22 = arith.constant 0 : index
    %56 = vector.load %arg2[%c8, %c0_21, %c0_22] : memref<9x3x32xbf16, #tpu.memory_space<vmem>>, vector<1x3x32xbf16>
    %57 = vector.shape_cast %56 : vector<1x3x32xbf16> to vector<3x32xbf16>
    %c0_23 = arith.constant 0 : index
    %c0_24 = arith.constant 0 : index
    %c0_25 = arith.constant 0 : index
    %58 = vector.load %arg4[%c0_23, %c0_24, %c0_25] : memref<16x32x32xbf16, #tpu.memory_space<vmem>>, vector<1x32x32xbf16>
    %59 = vector.shape_cast %58 : vector<1x32x32xbf16> to vector<32x32xbf16>
    %c1_26 = arith.constant 1 : index
    %c0_27 = arith.constant 0 : index
    %c0_28 = arith.constant 0 : index
    %60 = vector.load %arg4[%c1_26, %c0_27, %c0_28] : memref<16x32x32xbf16, #tpu.memory_space<vmem>>, vector<1x32x32xbf16>
    %61 = vector.shape_cast %60 : vector<1x32x32xbf16> to vector<32x32xbf16>
    %c2_29 = arith.constant 2 : index
    %c0_30 = arith.constant 0 : index
    %c0_31 = arith.constant 0 : index
    %62 = vector.load %arg4[%c2_29, %c0_30, %c0_31] : memref<16x32x32xbf16, #tpu.memory_space<vmem>>, vector<1x32x32xbf16>
    %63 = vector.shape_cast %62 : vector<1x32x32xbf16> to vector<32x32xbf16>
    %c3_32 = arith.constant 3 : index
    %c0_33 = arith.constant 0 : index
    %c0_34 = arith.constant 0 : index
    %64 = vector.load %arg4[%c3_32, %c0_33, %c0_34] : memref<16x32x32xbf16, #tpu.memory_space<vmem>>, vector<1x32x32xbf16>
    %65 = vector.shape_cast %64 : vector<1x32x32xbf16> to vector<32x32xbf16>
    %c4_35 = arith.constant 4 : index
    %c0_36 = arith.constant 0 : index
    %c0_37 = arith.constant 0 : index
    %66 = vector.load %arg4[%c4_35, %c0_36, %c0_37] : memref<16x32x32xbf16, #tpu.memory_space<vmem>>, vector<1x32x32xbf16>
    %67 = vector.shape_cast %66 : vector<1x32x32xbf16> to vector<32x32xbf16>
    %c5_38 = arith.constant 5 : index
    %c0_39 = arith.constant 0 : index
    %c0_40 = arith.constant 0 : index
    %68 = vector.load %arg4[%c5_38, %c0_39, %c0_40] : memref<16x32x32xbf16, #tpu.memory_space<vmem>>, vector<1x32x32xbf16>
    %69 = vector.shape_cast %68 : vector<1x32x32xbf16> to vector<32x32xbf16>
    %c6_41 = arith.constant 6 : index
    %c0_42 = arith.constant 0 : index
    %c0_43 = arith.constant 0 : index
    %70 = vector.load %arg4[%c6_41, %c0_42, %c0_43] : memref<16x32x32xbf16, #tpu.memory_space<vmem>>, vector<1x32x32xbf16>
    %71 = vector.shape_cast %70 : vector<1x32x32xbf16> to vector<32x32xbf16>
    %c7_44 = arith.constant 7 : index
    %c0_45 = arith.constant 0 : index
    %c0_46 = arith.constant 0 : index
    %72 = vector.load %arg4[%c7_44, %c0_45, %c0_46] : memref<16x32x32xbf16, #tpu.memory_space<vmem>>, vector<1x32x32xbf16>
    %73 = vector.shape_cast %72 : vector<1x32x32xbf16> to vector<32x32xbf16>
    %c8_47 = arith.constant 8 : index
    %c0_48 = arith.constant 0 : index
    %c0_49 = arith.constant 0 : index
    %74 = vector.load %arg4[%c8_47, %c0_48, %c0_49] : memref<16x32x32xbf16, #tpu.memory_space<vmem>>, vector<1x32x32xbf16>
    %75 = vector.shape_cast %74 : vector<1x32x32xbf16> to vector<32x32xbf16>
    %c9 = arith.constant 9 : index
    %c0_50 = arith.constant 0 : index
    %c0_51 = arith.constant 0 : index
    %76 = vector.load %arg4[%c9, %c0_50, %c0_51] : memref<16x32x32xbf16, #tpu.memory_space<vmem>>, vector<1x32x32xbf16>
    %77 = vector.shape_cast %76 : vector<1x32x32xbf16> to vector<32x32xbf16>
    %c10 = arith.constant 10 : index
    %c0_52 = arith.constant 0 : index
    %c0_53 = arith.constant 0 : index
    %78 = vector.load %arg4[%c10, %c0_52, %c0_53] : memref<16x32x32xbf16, #tpu.memory_space<vmem>>, vector<1x32x32xbf16>
    %79 = vector.shape_cast %78 : vector<1x32x32xbf16> to vector<32x32xbf16>
    %c11 = arith.constant 11 : index
    %c0_54 = arith.constant 0 : index
    %c0_55 = arith.constant 0 : index
    %80 = vector.load %arg4[%c11, %c0_54, %c0_55] : memref<16x32x32xbf16, #tpu.memory_space<vmem>>, vector<1x32x32xbf16>
    %81 = vector.shape_cast %80 : vector<1x32x32xbf16> to vector<32x32xbf16>
    %c12 = arith.constant 12 : index
    %c0_56 = arith.constant 0 : index
    %c0_57 = arith.constant 0 : index
    %82 = vector.load %arg4[%c12, %c0_56, %c0_57] : memref<16x32x32xbf16, #tpu.memory_space<vmem>>, vector<1x32x32xbf16>
    %83 = vector.shape_cast %82 : vector<1x32x32xbf16> to vector<32x32xbf16>
    %c13 = arith.constant 13 : index
    %c0_58 = arith.constant 0 : index
    %c0_59 = arith.constant 0 : index
    %84 = vector.load %arg4[%c13, %c0_58, %c0_59] : memref<16x32x32xbf16, #tpu.memory_space<vmem>>, vector<1x32x32xbf16>
    %85 = vector.shape_cast %84 : vector<1x32x32xbf16> to vector<32x32xbf16>
    %c14 = arith.constant 14 : index
    %c0_60 = arith.constant 0 : index
    %c0_61 = arith.constant 0 : index
    %86 = vector.load %arg4[%c14, %c0_60, %c0_61] : memref<16x32x32xbf16, #tpu.memory_space<vmem>>, vector<1x32x32xbf16>
    %87 = vector.shape_cast %86 : vector<1x32x32xbf16> to vector<32x32xbf16>
    %c15 = arith.constant 15 : index
    %c0_62 = arith.constant 0 : index
    %c0_63 = arith.constant 0 : index
    %88 = vector.load %arg4[%c15, %c0_62, %c0_63] : memref<16x32x32xbf16, #tpu.memory_space<vmem>>, vector<1x32x32xbf16>
    %89 = vector.shape_cast %88 : vector<1x32x32xbf16> to vector<32x32xbf16>
    %c0_64 = arith.constant 0 : index
    %c0_65 = arith.constant 0 : index
    %90 = vector.load %arg3[%c0_64, %c0_65] : memref<1x32xf32, #tpu.memory_space<vmem>>, vector<1x32xf32>
    %c0_66 = arith.constant 0 : index
    %c0_67 = arith.constant 0 : index
    %91 = vector.load %arg5[%c0_66, %c0_67] : memref<1x32xf32, #tpu.memory_space<vmem>>, vector<1x32xf32>
    %c0_68 = arith.constant 0 : index
    %c0_69 = arith.constant 0 : index
    %c0_70 = arith.constant 0 : index
    %92 = vector.load %arg1[%c0_68, %c0_69, %c0_70] : memref<1x1024x3xbf16, #tpu.memory_space<vmem>>, vector<1x958x3xbf16>
    %93 = vector.shape_cast %92 : vector<1x958x3xbf16> to vector<958x3xbf16>
    %cst = arith.constant dense<0.000000e+00> : vector<958x32xf32>
    %94 = tpu.matmul %93, %41, %cst {dimension_numbers = #tpu.dot_dimension_numbers<[1], [0], [0], [1], [0, 0, 1, 1], [], []>} : vector<958x3xbf16>, vector<3x32xbf16>, vector<958x32xf32> -> vector<958x32xf32>
    %c0_71 = arith.constant 0 : index
    %c1_72 = arith.constant 1 : index
    %c0_73 = arith.constant 0 : index
    %95 = vector.load %arg1[%c0_71, %c1_72, %c0_73] : memref<1x1024x3xbf16, #tpu.memory_space<vmem>>, vector<1x958x3xbf16>
    %96 = vector.shape_cast %95 : vector<1x958x3xbf16> to vector<958x3xbf16>
    %cst_74 = arith.constant dense<0.000000e+00> : vector<958x32xf32>
    %97 = tpu.matmul %96, %43, %cst_74 {dimension_numbers = #tpu.dot_dimension_numbers<[1], [0], [0], [1], [0, 0, 1, 1], [], []>} : vector<958x3xbf16>, vector<3x32xbf16>, vector<958x32xf32> -> vector<958x32xf32>
    %98 = arith.addf %94, %97 : vector<958x32xf32>
    %c0_75 = arith.constant 0 : index
    %c2_76 = arith.constant 2 : index
    %c0_77 = arith.constant 0 : index
    %99 = vector.load %arg1[%c0_75, %c2_76, %c0_77] : memref<1x1024x3xbf16, #tpu.memory_space<vmem>>, vector<1x958x3xbf16>
    %100 = vector.shape_cast %99 : vector<1x958x3xbf16> to vector<958x3xbf16>
    %cst_78 = arith.constant dense<0.000000e+00> : vector<958x32xf32>
    %101 = tpu.matmul %100, %45, %cst_78 {dimension_numbers = #tpu.dot_dimension_numbers<[1], [0], [0], [1], [0, 0, 1, 1], [], []>} : vector<958x3xbf16>, vector<3x32xbf16>, vector<958x32xf32> -> vector<958x32xf32>
    %102 = arith.addf %98, %101 : vector<958x32xf32>
    %c0_79 = arith.constant 0 : index
    %c32 = arith.constant 32 : index
    %c0_80 = arith.constant 0 : index
    %103 = vector.load %arg1[%c0_79, %c32, %c0_80] : memref<1x1024x3xbf16, #tpu.memory_space<vmem>>, vector<1x958x3xbf16>
    %104 = vector.shape_cast %103 : vector<1x958x3xbf16> to vector<958x3xbf16>
    %cst_81 = arith.constant dense<0.000000e+00> : vector<958x32xf32>
    %105 = tpu.matmul %104, %47, %cst_81 {dimension_numbers = #tpu.dot_dimension_numbers<[1], [0], [0], [1], [0, 0, 1, 1], [], []>} : vector<958x3xbf16>, vector<3x32xbf16>, vector<958x32xf32> -> vector<958x32xf32>
    %106 = arith.addf %102, %105 : vector<958x32xf32>
    %c0_82 = arith.constant 0 : index
    %c33 = arith.constant 33 : index
    %c0_83 = arith.constant 0 : index
    %107 = vector.load %arg1[%c0_82, %c33, %c0_83] : memref<1x1024x3xbf16, #tpu.memory_space<vmem>>, vector<1x958x3xbf16>
    %108 = vector.shape_cast %107 : vector<1x958x3xbf16> to vector<958x3xbf16>
    %cst_84 = arith.constant dense<0.000000e+00> : vector<958x32xf32>
    %109 = tpu.matmul %108, %49, %cst_84 {dimension_numbers = #tpu.dot_dimension_numbers<[1], [0], [0], [1], [0, 0, 1, 1], [], []>} : vector<958x3xbf16>, vector<3x32xbf16>, vector<958x32xf32> -> vector<958x32xf32>
    %110 = arith.addf %106, %109 : vector<958x32xf32>
    %c0_85 = arith.constant 0 : index
    %c34 = arith.constant 34 : index
    %c0_86 = arith.constant 0 : index
    %111 = vector.load %arg1[%c0_85, %c34, %c0_86] : memref<1x1024x3xbf16, #tpu.memory_space<vmem>>, vector<1x958x3xbf16>
    %112 = vector.shape_cast %111 : vector<1x958x3xbf16> to vector<958x3xbf16>
    %cst_87 = arith.constant dense<0.000000e+00> : vector<958x32xf32>
    %113 = tpu.matmul %112, %51, %cst_87 {dimension_numbers = #tpu.dot_dimension_numbers<[1], [0], [0], [1], [0, 0, 1, 1], [], []>} : vector<958x3xbf16>, vector<3x32xbf16>, vector<958x32xf32> -> vector<958x32xf32>
    %114 = arith.addf %110, %113 : vector<958x32xf32>
    %c0_88 = arith.constant 0 : index
    %c64 = arith.constant 64 : index
    %c0_89 = arith.constant 0 : index
    %115 = vector.load %arg1[%c0_88, %c64, %c0_89] : memref<1x1024x3xbf16, #tpu.memory_space<vmem>>, vector<1x958x3xbf16>
    %116 = vector.shape_cast %115 : vector<1x958x3xbf16> to vector<958x3xbf16>
    %cst_90 = arith.constant dense<0.000000e+00> : vector<958x32xf32>
    %117 = tpu.matmul %116, %53, %cst_90 {dimension_numbers = #tpu.dot_dimension_numbers<[1], [0], [0], [1], [0, 0, 1, 1], [], []>} : vector<958x3xbf16>, vector<3x32xbf16>, vector<958x32xf32> -> vector<958x32xf32>
    %118 = arith.addf %114, %117 : vector<958x32xf32>
    %c0_91 = arith.constant 0 : index
    %c65 = arith.constant 65 : index
    %c0_92 = arith.constant 0 : index
    %119 = vector.load %arg1[%c0_91, %c65, %c0_92] : memref<1x1024x3xbf16, #tpu.memory_space<vmem>>, vector<1x958x3xbf16>
    %120 = vector.shape_cast %119 : vector<1x958x3xbf16> to vector<958x3xbf16>
    %cst_93 = arith.constant dense<0.000000e+00> : vector<958x32xf32>
    %121 = tpu.matmul %120, %55, %cst_93 {dimension_numbers = #tpu.dot_dimension_numbers<[1], [0], [0], [1], [0, 0, 1, 1], [], []>} : vector<958x3xbf16>, vector<3x32xbf16>, vector<958x32xf32> -> vector<958x32xf32>
    %122 = arith.addf %118, %121 : vector<958x32xf32>
    %c0_94 = arith.constant 0 : index
    %c66 = arith.constant 66 : index
    %c0_95 = arith.constant 0 : index
    %123 = vector.load %arg1[%c0_94, %c66, %c0_95] : memref<1x1024x3xbf16, #tpu.memory_space<vmem>>, vector<1x958x3xbf16>
    %124 = vector.shape_cast %123 : vector<1x958x3xbf16> to vector<958x3xbf16>
    %cst_96 = arith.constant dense<0.000000e+00> : vector<958x32xf32>
    %125 = tpu.matmul %124, %57, %cst_96 {dimension_numbers = #tpu.dot_dimension_numbers<[1], [0], [0], [1], [0, 0, 1, 1], [], []>} : vector<958x3xbf16>, vector<3x32xbf16>, vector<958x32xf32> -> vector<958x32xf32>
    %126 = arith.addf %122, %125 : vector<958x32xf32>
    %127 = vector.broadcast %90 : vector<1x32xf32> to vector<958x32xf32>
    %128 = arith.addf %126, %127 : vector<958x32xf32>
    %cst_97 = arith.constant 0.000000e+00 : f32
    %129 = vector.broadcast %cst_97 : f32 to vector<958x32xf32>
    %130 = arith.maximumf %128, %129 : vector<958x32xf32>
    %131 = vector.extract_strided_slice %130 {offsets = [0, 0], sizes = [926, 32], strides = [1, 1]} : vector<958x32xf32> to vector<926x32xf32>
    %132 = vector.extract_strided_slice %130 {offsets = [32, 0], sizes = [926, 32], strides = [1, 1]} : vector<958x32xf32> to vector<926x32xf32>
    %133 = arith.maximumf %131, %132 : vector<926x32xf32>
    %134 = vector.extract_strided_slice %133 {offsets = [0, 0], sizes = [30, 32], strides = [1, 1]} : vector<926x32xf32> to vector<30x32xf32>
    %135 = arith.truncf %134 : vector<30x32xf32> to vector<30x32xbf16>
    %cst_98 = arith.constant dense<0.000000e+00> : vector<16x32xf32>
    %136 = tpu.matmul %9, %135, %cst_98 {dimension_numbers = #tpu.dot_dimension_numbers<[1], [0], [0], [1], [0, 0, 1, 1], [], []>} : vector<16x30xbf16>, vector<30x32xbf16>, vector<16x32xf32> -> vector<16x32xf32>
    %cst_99 = arith.constant dense<0.000000e+00> : vector<16x32xf32>
    %137 = tpu.matmul %19, %135, %cst_99 {dimension_numbers = #tpu.dot_dimension_numbers<[1], [0], [0], [1], [0, 0, 1, 1], [], []>} : vector<16x30xbf16>, vector<30x32xbf16>, vector<16x32xf32> -> vector<16x32xf32>
    %138 = arith.maximumf %136, %137 : vector<16x32xf32>
    %139 = arith.truncf %138 : vector<16x32xf32> to vector<16x32xbf16>
    %140 = vector.extract_strided_slice %133 {offsets = [64, 0], sizes = [30, 32], strides = [1, 1]} : vector<926x32xf32> to vector<30x32xf32>
    %141 = arith.truncf %140 : vector<30x32xf32> to vector<30x32xbf16>
    %cst_100 = arith.constant dense<0.000000e+00> : vector<16x32xf32>
    %142 = tpu.matmul %9, %141, %cst_100 {dimension_numbers = #tpu.dot_dimension_numbers<[1], [0], [0], [1], [0, 0, 1, 1], [], []>} : vector<16x30xbf16>, vector<30x32xbf16>, vector<16x32xf32> -> vector<16x32xf32>
    %cst_101 = arith.constant dense<0.000000e+00> : vector<16x32xf32>
    %143 = tpu.matmul %19, %141, %cst_101 {dimension_numbers = #tpu.dot_dimension_numbers<[1], [0], [0], [1], [0, 0, 1, 1], [], []>} : vector<16x30xbf16>, vector<30x32xbf16>, vector<16x32xf32> -> vector<16x32xf32>
    %144 = arith.maximumf %142, %143 : vector<16x32xf32>
    %145 = arith.truncf %144 : vector<16x32xf32> to vector<16x32xbf16>
    %146 = vector.extract_strided_slice %133 {offsets = [128, 0], sizes = [30, 32], strides = [1, 1]} : vector<926x32xf32> to vector<30x32xf32>
    %147 = arith.truncf %146 : vector<30x32xf32> to vector<30x32xbf16>
    %cst_102 = arith.constant dense<0.000000e+00> : vector<16x32xf32>
    %148 = tpu.matmul %9, %147, %cst_102 {dimension_numbers = #tpu.dot_dimension_numbers<[1], [0], [0], [1], [0, 0, 1, 1], [], []>} : vector<16x30xbf16>, vector<30x32xbf16>, vector<16x32xf32> -> vector<16x32xf32>
    %cst_103 = arith.constant dense<0.000000e+00> : vector<16x32xf32>
    %149 = tpu.matmul %19, %147, %cst_103 {dimension_numbers = #tpu.dot_dimension_numbers<[1], [0], [0], [1], [0, 0, 1, 1], [], []>} : vector<16x30xbf16>, vector<30x32xbf16>, vector<16x32xf32> -> vector<16x32xf32>
    %150 = arith.maximumf %148, %149 : vector<16x32xf32>
    %151 = arith.truncf %150 : vector<16x32xf32> to vector<16x32xbf16>
    %152 = vector.extract_strided_slice %133 {offsets = [192, 0], sizes = [30, 32], strides = [1, 1]} : vector<926x32xf32> to vector<30x32xf32>
    %153 = arith.truncf %152 : vector<30x32xf32> to vector<30x32xbf16>
    %cst_104 = arith.constant dense<0.000000e+00> : vector<16x32xf32>
    %154 = tpu.matmul %9, %153, %cst_104 {dimension_numbers = #tpu.dot_dimension_numbers<[1], [0], [0], [1], [0, 0, 1, 1], [], []>} : vector<16x30xbf16>, vector<30x32xbf16>, vector<16x32xf32> -> vector<16x32xf32>
    %cst_105 = arith.constant dense<0.000000e+00> : vector<16x32xf32>
    %155 = tpu.matmul %19, %153, %cst_105 {dimension_numbers = #tpu.dot_dimension_numbers<[1], [0], [0], [1], [0, 0, 1, 1], [], []>} : vector<16x30xbf16>, vector<30x32xbf16>, vector<16x32xf32> -> vector<16x32xf32>
    %156 = arith.maximumf %154, %155 : vector<16x32xf32>
    %157 = arith.truncf %156 : vector<16x32xf32> to vector<16x32xbf16>
    %158 = vector.extract_strided_slice %133 {offsets = [256, 0], sizes = [30, 32], strides = [1, 1]} : vector<926x32xf32> to vector<30x32xf32>
    %159 = arith.truncf %158 : vector<30x32xf32> to vector<30x32xbf16>
    %cst_106 = arith.constant dense<0.000000e+00> : vector<16x32xf32>
    %160 = tpu.matmul %9, %159, %cst_106 {dimension_numbers = #tpu.dot_dimension_numbers<[1], [0], [0], [1], [0, 0, 1, 1], [], []>} : vector<16x30xbf16>, vector<30x32xbf16>, vector<16x32xf32> -> vector<16x32xf32>
    %cst_107 = arith.constant dense<0.000000e+00> : vector<16x32xf32>
    %161 = tpu.matmul %19, %159, %cst_107 {dimension_numbers = #tpu.dot_dimension_numbers<[1], [0], [0], [1], [0, 0, 1, 1], [], []>} : vector<16x30xbf16>, vector<30x32xbf16>, vector<16x32xf32> -> vector<16x32xf32>
    %162 = arith.maximumf %160, %161 : vector<16x32xf32>
    %163 = arith.truncf %162 : vector<16x32xf32> to vector<16x32xbf16>
    %164 = vector.extract_strided_slice %133 {offsets = [320, 0], sizes = [30, 32], strides = [1, 1]} : vector<926x32xf32> to vector<30x32xf32>
    %165 = arith.truncf %164 : vector<30x32xf32> to vector<30x32xbf16>
    %cst_108 = arith.constant dense<0.000000e+00> : vector<16x32xf32>
    %166 = tpu.matmul %9, %165, %cst_108 {dimension_numbers = #tpu.dot_dimension_numbers<[1], [0], [0], [1], [0, 0, 1, 1], [], []>} : vector<16x30xbf16>, vector<30x32xbf16>, vector<16x32xf32> -> vector<16x32xf32>
    %cst_109 = arith.constant dense<0.000000e+00> : vector<16x32xf32>
    %167 = tpu.matmul %19, %165, %cst_109 {dimension_numbers = #tpu.dot_dimension_numbers<[1], [0], [0], [1], [0, 0, 1, 1], [], []>} : vector<16x30xbf16>, vector<30x32xbf16>, vector<16x32xf32> -> vector<16x32xf32>
    %168 = arith.maximumf %166, %167 : vector<16x32xf32>
    %169 = arith.truncf %168 : vector<16x32xf32> to vector<16x32xbf16>
    %170 = vector.extract_strided_slice %133 {offsets = [384, 0], sizes = [30, 32], strides = [1, 1]} : vector<926x32xf32> to vector<30x32xf32>
    %171 = arith.truncf %170 : vector<30x32xf32> to vector<30x32xbf16>
    %cst_110 = arith.constant dense<0.000000e+00> : vector<16x32xf32>
    %172 = tpu.matmul %9, %171, %cst_110 {dimension_numbers = #tpu.dot_dimension_numbers<[1], [0], [0], [1], [0, 0, 1, 1], [], []>} : vector<16x30xbf16>, vector<30x32xbf16>, vector<16x32xf32> -> vector<16x32xf32>
    %cst_111 = arith.constant dense<0.000000e+00> : vector<16x32xf32>
    %173 = tpu.matmul %19, %171, %cst_111 {dimension_numbers = #tpu.dot_dimension_numbers<[1], [0], [0], [1], [0, 0, 1, 1], [], []>} : vector<16x30xbf16>, vector<30x32xbf16>, vector<16x32xf32> -> vector<16x32xf32>
    %174 = arith.maximumf %172, %173 : vector<16x32xf32>
    %175 = arith.truncf %174 : vector<16x32xf32> to vector<16x32xbf16>
    %176 = vector.extract_strided_slice %133 {offsets = [448, 0], sizes = [30, 32], strides = [1, 1]} : vector<926x32xf32> to vector<30x32xf32>
    %177 = arith.truncf %176 : vector<30x32xf32> to vector<30x32xbf16>
    %cst_112 = arith.constant dense<0.000000e+00> : vector<16x32xf32>
    %178 = tpu.matmul %9, %177, %cst_112 {dimension_numbers = #tpu.dot_dimension_numbers<[1], [0], [0], [1], [0, 0, 1, 1], [], []>} : vector<16x30xbf16>, vector<30x32xbf16>, vector<16x32xf32> -> vector<16x32xf32>
    %cst_113 = arith.constant dense<0.000000e+00> : vector<16x32xf32>
    %179 = tpu.matmul %19, %177, %cst_113 {dimension_numbers = #tpu.dot_dimension_numbers<[1], [0], [0], [1], [0, 0, 1, 1], [], []>} : vector<16x30xbf16>, vector<30x32xbf16>, vector<16x32xf32> -> vector<16x32xf32>
    %180 = arith.maximumf %178, %179 : vector<16x32xf32>
    %181 = arith.truncf %180 : vector<16x32xf32> to vector<16x32xbf16>
    %182 = vector.extract_strided_slice %133 {offsets = [512, 0], sizes = [30, 32], strides = [1, 1]} : vector<926x32xf32> to vector<30x32xf32>
    %183 = arith.truncf %182 : vector<30x32xf32> to vector<30x32xbf16>
    %cst_114 = arith.constant dense<0.000000e+00> : vector<16x32xf32>
    %184 = tpu.matmul %9, %183, %cst_114 {dimension_numbers = #tpu.dot_dimension_numbers<[1], [0], [0], [1], [0, 0, 1, 1], [], []>} : vector<16x30xbf16>, vector<30x32xbf16>, vector<16x32xf32> -> vector<16x32xf32>
    %cst_115 = arith.constant dense<0.000000e+00> : vector<16x32xf32>
    %185 = tpu.matmul %19, %183, %cst_115 {dimension_numbers = #tpu.dot_dimension_numbers<[1], [0], [0], [1], [0, 0, 1, 1], [], []>} : vector<16x30xbf16>, vector<30x32xbf16>, vector<16x32xf32> -> vector<16x32xf32>
    %186 = arith.maximumf %184, %185 : vector<16x32xf32>
    %187 = arith.truncf %186 : vector<16x32xf32> to vector<16x32xbf16>
    %188 = vector.extract_strided_slice %133 {offsets = [576, 0], sizes = [30, 32], strides = [1, 1]} : vector<926x32xf32> to vector<30x32xf32>
    %189 = arith.truncf %188 : vector<30x32xf32> to vector<30x32xbf16>
    %cst_116 = arith.constant dense<0.000000e+00> : vector<16x32xf32>
    %190 = tpu.matmul %9, %189, %cst_116 {dimension_numbers = #tpu.dot_dimension_numbers<[1], [0], [0], [1], [0, 0, 1, 1], [], []>} : vector<16x30xbf16>, vector<30x32xbf16>, vector<16x32xf32> -> vector<16x32xf32>
    %cst_117 = arith.constant dense<0.000000e+00> : vector<16x32xf32>
    %191 = tpu.matmul %19, %189, %cst_117 {dimension_numbers = #tpu.dot_dimension_numbers<[1], [0], [0], [1], [0, 0, 1, 1], [], []>} : vector<16x30xbf16>, vector<30x32xbf16>, vector<16x32xf32> -> vector<16x32xf32>
    %192 = arith.maximumf %190, %191 : vector<16x32xf32>
    %193 = arith.truncf %192 : vector<16x32xf32> to vector<16x32xbf16>
    %194 = vector.extract_strided_slice %133 {offsets = [640, 0], sizes = [30, 32], strides = [1, 1]} : vector<926x32xf32> to vector<30x32xf32>
    %195 = arith.truncf %194 : vector<30x32xf32> to vector<30x32xbf16>
    %cst_118 = arith.constant dense<0.000000e+00> : vector<16x32xf32>
    %196 = tpu.matmul %9, %195, %cst_118 {dimension_numbers = #tpu.dot_dimension_numbers<[1], [0], [0], [1], [0, 0, 1, 1], [], []>} : vector<16x30xbf16>, vector<30x32xbf16>, vector<16x32xf32> -> vector<16x32xf32>
    %cst_119 = arith.constant dense<0.000000e+00> : vector<16x32xf32>
    %197 = tpu.matmul %19, %195, %cst_119 {dimension_numbers = #tpu.dot_dimension_numbers<[1], [0], [0], [1], [0, 0, 1, 1], [], []>} : vector<16x30xbf16>, vector<30x32xbf16>, vector<16x32xf32> -> vector<16x32xf32>
    %198 = arith.maximumf %196, %197 : vector<16x32xf32>
    %199 = arith.truncf %198 : vector<16x32xf32> to vector<16x32xbf16>
    %200 = vector.extract_strided_slice %133 {offsets = [704, 0], sizes = [30, 32], strides = [1, 1]} : vector<926x32xf32> to vector<30x32xf32>
    %201 = arith.truncf %200 : vector<30x32xf32> to vector<30x32xbf16>
    %cst_120 = arith.constant dense<0.000000e+00> : vector<16x32xf32>
    %202 = tpu.matmul %9, %201, %cst_120 {dimension_numbers = #tpu.dot_dimension_numbers<[1], [0], [0], [1], [0, 0, 1, 1], [], []>} : vector<16x30xbf16>, vector<30x32xbf16>, vector<16x32xf32> -> vector<16x32xf32>
    %cst_121 = arith.constant dense<0.000000e+00> : vector<16x32xf32>
    %203 = tpu.matmul %19, %201, %cst_121 {dimension_numbers = #tpu.dot_dimension_numbers<[1], [0], [0], [1], [0, 0, 1, 1], [], []>} : vector<16x30xbf16>, vector<30x32xbf16>, vector<16x32xf32> -> vector<16x32xf32>
    %204 = arith.maximumf %202, %203 : vector<16x32xf32>
    %205 = arith.truncf %204 : vector<16x32xf32> to vector<16x32xbf16>
    %206 = vector.extract_strided_slice %133 {offsets = [768, 0], sizes = [30, 32], strides = [1, 1]} : vector<926x32xf32> to vector<30x32xf32>
    %207 = arith.truncf %206 : vector<30x32xf32> to vector<30x32xbf16>
    %cst_122 = arith.constant dense<0.000000e+00> : vector<16x32xf32>
    %208 = tpu.matmul %9, %207, %cst_122 {dimension_numbers = #tpu.dot_dimension_numbers<[1], [0], [0], [1], [0, 0, 1, 1], [], []>} : vector<16x30xbf16>, vector<30x32xbf16>, vector<16x32xf32> -> vector<16x32xf32>
    %cst_123 = arith.constant dense<0.000000e+00> : vector<16x32xf32>
    %209 = tpu.matmul %19, %207, %cst_123 {dimension_numbers = #tpu.dot_dimension_numbers<[1], [0], [0], [1], [0, 0, 1, 1], [], []>} : vector<16x30xbf16>, vector<30x32xbf16>, vector<16x32xf32> -> vector<16x32xf32>
    %210 = arith.maximumf %208, %209 : vector<16x32xf32>
    %211 = arith.truncf %210 : vector<16x32xf32> to vector<16x32xbf16>
    %212 = vector.extract_strided_slice %133 {offsets = [832, 0], sizes = [30, 32], strides = [1, 1]} : vector<926x32xf32> to vector<30x32xf32>
    %213 = arith.truncf %212 : vector<30x32xf32> to vector<30x32xbf16>
    %cst_124 = arith.constant dense<0.000000e+00> : vector<16x32xf32>
    %214 = tpu.matmul %9, %213, %cst_124 {dimension_numbers = #tpu.dot_dimension_numbers<[1], [0], [0], [1], [0, 0, 1, 1], [], []>} : vector<16x30xbf16>, vector<30x32xbf16>, vector<16x32xf32> -> vector<16x32xf32>
    %cst_125 = arith.constant dense<0.000000e+00> : vector<16x32xf32>
    %215 = tpu.matmul %19, %213, %cst_125 {dimension_numbers = #tpu.dot_dimension_numbers<[1], [0], [0], [1], [0, 0, 1, 1], [], []>} : vector<16x30xbf16>, vector<30x32xbf16>, vector<16x32xf32> -> vector<16x32xf32>
    %216 = arith.maximumf %214, %215 : vector<16x32xf32>
    %217 = arith.truncf %216 : vector<16x32xf32> to vector<16x32xbf16>
    %218 = vector.extract_strided_slice %133 {offsets = [896, 0], sizes = [30, 32], strides = [1, 1]} : vector<926x32xf32> to vector<30x32xf32>
    %219 = arith.truncf %218 : vector<30x32xf32> to vector<30x32xbf16>
    %cst_126 = arith.constant dense<0.000000e+00> : vector<16x32xf32>
    %220 = tpu.matmul %9, %219, %cst_126 {dimension_numbers = #tpu.dot_dimension_numbers<[1], [0], [0], [1], [0, 0, 1, 1], [], []>} : vector<16x30xbf16>, vector<30x32xbf16>, vector<16x32xf32> -> vector<16x32xf32>
    %cst_127 = arith.constant dense<0.000000e+00> : vector<16x32xf32>
    %221 = tpu.matmul %19, %219, %cst_127 {dimension_numbers = #tpu.dot_dimension_numbers<[1], [0], [0], [1], [0, 0, 1, 1], [], []>} : vector<16x30xbf16>, vector<30x32xbf16>, vector<16x32xf32> -> vector<16x32xf32>
    %222 = arith.maximumf %220, %221 : vector<16x32xf32>
    %223 = arith.truncf %222 : vector<16x32xf32> to vector<16x32xbf16>
    %224 = tpu.concatenate %139, %145, %151, %157, %163, %169, %175, %181, %187, %193, %199, %205, %211, %217, %223 in 0 : vector<16x32xbf16>, vector<16x32xbf16>, vector<16x32xbf16>, vector<16x32xbf16>, vector<16x32xbf16>, vector<16x32xbf16>, vector<16x32xbf16>, vector<16x32xbf16>, vector<16x32xbf16>, vector<16x32xbf16>, vector<16x32xbf16>, vector<16x32xbf16>, vector<16x32xbf16>, vector<16x32xbf16>, vector<16x32xbf16> -> vector<240x32xbf16>
    %225 = vector.extract_strided_slice %224 {offsets = [0, 0], sizes = [188, 32], strides = [1, 1]} : vector<240x32xbf16> to vector<188x32xbf16>
    %cst_128 = arith.constant dense<0.000000e+00> : vector<188x32xf32>
    %226 = tpu.matmul %225, %59, %cst_128 {dimension_numbers = #tpu.dot_dimension_numbers<[1], [0], [0], [1], [0, 0, 1, 1], [], []>} : vector<188x32xbf16>, vector<32x32xbf16>, vector<188x32xf32> -> vector<188x32xf32>
    %227 = vector.extract_strided_slice %224 {offsets = [1, 0], sizes = [188, 32], strides = [1, 1]} : vector<240x32xbf16> to vector<188x32xbf16>
    %cst_129 = arith.constant dense<0.000000e+00> : vector<188x32xf32>
    %228 = tpu.matmul %227, %61, %cst_129 {dimension_numbers = #tpu.dot_dimension_numbers<[1], [0], [0], [1], [0, 0, 1, 1], [], []>} : vector<188x32xbf16>, vector<32x32xbf16>, vector<188x32xf32> -> vector<188x32xf32>
    %229 = arith.addf %226, %228 : vector<188x32xf32>
    %230 = vector.extract_strided_slice %224 {offsets = [2, 0], sizes = [188, 32], strides = [1, 1]} : vector<240x32xbf16> to vector<188x32xbf16>
    %cst_130 = arith.constant dense<0.000000e+00> : vector<188x32xf32>
    %231 = tpu.matmul %230, %63, %cst_130 {dimension_numbers = #tpu.dot_dimension_numbers<[1], [0], [0], [1], [0, 0, 1, 1], [], []>} : vector<188x32xbf16>, vector<32x32xbf16>, vector<188x32xf32> -> vector<188x32xf32>
    %232 = arith.addf %229, %231 : vector<188x32xf32>
    %233 = vector.extract_strided_slice %224 {offsets = [3, 0], sizes = [188, 32], strides = [1, 1]} : vector<240x32xbf16> to vector<188x32xbf16>
    %cst_131 = arith.constant dense<0.000000e+00> : vector<188x32xf32>
    %234 = tpu.matmul %233, %65, %cst_131 {dimension_numbers = #tpu.dot_dimension_numbers<[1], [0], [0], [1], [0, 0, 1, 1], [], []>} : vector<188x32xbf16>, vector<32x32xbf16>, vector<188x32xf32> -> vector<188x32xf32>
    %235 = arith.addf %232, %234 : vector<188x32xf32>
    %236 = vector.extract_strided_slice %224 {offsets = [16, 0], sizes = [188, 32], strides = [1, 1]} : vector<240x32xbf16> to vector<188x32xbf16>
    %cst_132 = arith.constant dense<0.000000e+00> : vector<188x32xf32>
    %237 = tpu.matmul %236, %67, %cst_132 {dimension_numbers = #tpu.dot_dimension_numbers<[1], [0], [0], [1], [0, 0, 1, 1], [], []>} : vector<188x32xbf16>, vector<32x32xbf16>, vector<188x32xf32> -> vector<188x32xf32>
    %238 = arith.addf %235, %237 : vector<188x32xf32>
    %239 = vector.extract_strided_slice %224 {offsets = [17, 0], sizes = [188, 32], strides = [1, 1]} : vector<240x32xbf16> to vector<188x32xbf16>
    %cst_133 = arith.constant dense<0.000000e+00> : vector<188x32xf32>
    %240 = tpu.matmul %239, %69, %cst_133 {dimension_numbers = #tpu.dot_dimension_numbers<[1], [0], [0], [1], [0, 0, 1, 1], [], []>} : vector<188x32xbf16>, vector<32x32xbf16>, vector<188x32xf32> -> vector<188x32xf32>
    %241 = arith.addf %238, %240 : vector<188x32xf32>
    %242 = vector.extract_strided_slice %224 {offsets = [18, 0], sizes = [188, 32], strides = [1, 1]} : vector<240x32xbf16> to vector<188x32xbf16>
    %cst_134 = arith.constant dense<0.000000e+00> : vector<188x32xf32>
    %243 = tpu.matmul %242, %71, %cst_134 {dimension_numbers = #tpu.dot_dimension_numbers<[1], [0], [0], [1], [0, 0, 1, 1], [], []>} : vector<188x32xbf16>, vector<32x32xbf16>, vector<188x32xf32> -> vector<188x32xf32>
    %244 = arith.addf %241, %243 : vector<188x32xf32>
    %245 = vector.extract_strided_slice %224 {offsets = [19, 0], sizes = [188, 32], strides = [1, 1]} : vector<240x32xbf16> to vector<188x32xbf16>
    %cst_135 = arith.constant dense<0.000000e+00> : vector<188x32xf32>
    %246 = tpu.matmul %245, %73, %cst_135 {dimension_numbers = #tpu.dot_dimension_numbers<[1], [0], [0], [1], [0, 0, 1, 1], [], []>} : vector<188x32xbf16>, vector<32x32xbf16>, vector<188x32xf32> -> vector<188x32xf32>
    %247 = arith.addf %244, %246 : vector<188x32xf32>
    %248 = vector.extract_strided_slice %224 {offsets = [32, 0], sizes = [188, 32], strides = [1, 1]} : vector<240x32xbf16> to vector<188x32xbf16>
    %cst_136 = arith.constant dense<0.000000e+00> : vector<188x32xf32>
    %249 = tpu.matmul %248, %75, %cst_136 {dimension_numbers = #tpu.dot_dimension_numbers<[1], [0], [0], [1], [0, 0, 1, 1], [], []>} : vector<188x32xbf16>, vector<32x32xbf16>, vector<188x32xf32> -> vector<188x32xf32>
    %250 = arith.addf %247, %249 : vector<188x32xf32>
    %251 = vector.extract_strided_slice %224 {offsets = [33, 0], sizes = [188, 32], strides = [1, 1]} : vector<240x32xbf16> to vector<188x32xbf16>
    %cst_137 = arith.constant dense<0.000000e+00> : vector<188x32xf32>
    %252 = tpu.matmul %251, %77, %cst_137 {dimension_numbers = #tpu.dot_dimension_numbers<[1], [0], [0], [1], [0, 0, 1, 1], [], []>} : vector<188x32xbf16>, vector<32x32xbf16>, vector<188x32xf32> -> vector<188x32xf32>
    %253 = arith.addf %250, %252 : vector<188x32xf32>
    %254 = vector.extract_strided_slice %224 {offsets = [34, 0], sizes = [188, 32], strides = [1, 1]} : vector<240x32xbf16> to vector<188x32xbf16>
    %cst_138 = arith.constant dense<0.000000e+00> : vector<188x32xf32>
    %255 = tpu.matmul %254, %79, %cst_138 {dimension_numbers = #tpu.dot_dimension_numbers<[1], [0], [0], [1], [0, 0, 1, 1], [], []>} : vector<188x32xbf16>, vector<32x32xbf16>, vector<188x32xf32> -> vector<188x32xf32>
    %256 = arith.addf %253, %255 : vector<188x32xf32>
    %257 = vector.extract_strided_slice %224 {offsets = [35, 0], sizes = [188, 32], strides = [1, 1]} : vector<240x32xbf16> to vector<188x32xbf16>
    %cst_139 = arith.constant dense<0.000000e+00> : vector<188x32xf32>
    %258 = tpu.matmul %257, %81, %cst_139 {dimension_numbers = #tpu.dot_dimension_numbers<[1], [0], [0], [1], [0, 0, 1, 1], [], []>} : vector<188x32xbf16>, vector<32x32xbf16>, vector<188x32xf32> -> vector<188x32xf32>
    %259 = arith.addf %256, %258 : vector<188x32xf32>
    %260 = vector.extract_strided_slice %224 {offsets = [48, 0], sizes = [188, 32], strides = [1, 1]} : vector<240x32xbf16> to vector<188x32xbf16>
    %cst_140 = arith.constant dense<0.000000e+00> : vector<188x32xf32>
    %261 = tpu.matmul %260, %83, %cst_140 {dimension_numbers = #tpu.dot_dimension_numbers<[1], [0], [0], [1], [0, 0, 1, 1], [], []>} : vector<188x32xbf16>, vector<32x32xbf16>, vector<188x32xf32> -> vector<188x32xf32>
    %262 = arith.addf %259, %261 : vector<188x32xf32>
    %263 = vector.extract_strided_slice %224 {offsets = [49, 0], sizes = [188, 32], strides = [1, 1]} : vector<240x32xbf16> to vector<188x32xbf16>
    %cst_141 = arith.constant dense<0.000000e+00> : vector<188x32xf32>
    %264 = tpu.matmul %263, %85, %cst_141 {dimension_numbers = #tpu.dot_dimension_numbers<[1], [0], [0], [1], [0, 0, 1, 1], [], []>} : vector<188x32xbf16>, vector<32x32xbf16>, vector<188x32xf32> -> vector<188x32xf32>
    %265 = arith.addf %262, %264 : vector<188x32xf32>
    %266 = vector.extract_strided_slice %224 {offsets = [50, 0], sizes = [188, 32], strides = [1, 1]} : vector<240x32xbf16> to vector<188x32xbf16>
    %cst_142 = arith.constant dense<0.000000e+00> : vector<188x32xf32>
    %267 = tpu.matmul %266, %87, %cst_142 {dimension_numbers = #tpu.dot_dimension_numbers<[1], [0], [0], [1], [0, 0, 1, 1], [], []>} : vector<188x32xbf16>, vector<32x32xbf16>, vector<188x32xf32> -> vector<188x32xf32>
    %268 = arith.addf %265, %267 : vector<188x32xf32>
    %269 = vector.extract_strided_slice %224 {offsets = [51, 0], sizes = [188, 32], strides = [1, 1]} : vector<240x32xbf16> to vector<188x32xbf16>
    %cst_143 = arith.constant dense<0.000000e+00> : vector<188x32xf32>
    %270 = tpu.matmul %269, %89, %cst_143 {dimension_numbers = #tpu.dot_dimension_numbers<[1], [0], [0], [1], [0, 0, 1, 1], [], []>} : vector<188x32xbf16>, vector<32x32xbf16>, vector<188x32xf32> -> vector<188x32xf32>
    %271 = arith.addf %268, %270 : vector<188x32xf32>
    %272 = vector.broadcast %91 : vector<1x32xf32> to vector<188x32xf32>
    %273 = arith.addf %271, %272 : vector<188x32xf32>
    %cst_144 = arith.constant 0.000000e+00 : f32
    %274 = vector.broadcast %cst_144 : f32 to vector<188x32xf32>
    %275 = arith.maximumf %273, %274 : vector<188x32xf32>
    %276 = vector.extract_strided_slice %275 {offsets = [0, 0], sizes = [172, 32], strides = [1, 1]} : vector<188x32xf32> to vector<172x32xf32>
    %277 = vector.extract_strided_slice %275 {offsets = [16, 0], sizes = [172, 32], strides = [1, 1]} : vector<188x32xf32> to vector<172x32xf32>
    %278 = arith.maximumf %276, %277 : vector<172x32xf32>
    %279 = vector.extract_strided_slice %278 {offsets = [0, 0], sizes = [12, 32], strides = [1, 1]} : vector<172x32xf32> to vector<12x32xf32>
    %280 = arith.truncf %279 : vector<12x32xf32> to vector<12x32xbf16>
    %cst_145 = arith.constant dense<0.000000e+00> : vector<8x32xf32>
    %281 = tpu.matmul %29, %280, %cst_145 {dimension_numbers = #tpu.dot_dimension_numbers<[1], [0], [0], [1], [0, 0, 1, 1], [], []>} : vector<8x12xbf16>, vector<12x32xbf16>, vector<8x32xf32> -> vector<8x32xf32>
    %cst_146 = arith.constant dense<0.000000e+00> : vector<8x32xf32>
    %282 = tpu.matmul %39, %280, %cst_146 {dimension_numbers = #tpu.dot_dimension_numbers<[1], [0], [0], [1], [0, 0, 1, 1], [], []>} : vector<8x12xbf16>, vector<12x32xbf16>, vector<8x32xf32> -> vector<8x32xf32>
    %283 = arith.maximumf %281, %282 : vector<8x32xf32>
    %284 = vector.extract_strided_slice %278 {offsets = [32, 0], sizes = [12, 32], strides = [1, 1]} : vector<172x32xf32> to vector<12x32xf32>
    %285 = arith.truncf %284 : vector<12x32xf32> to vector<12x32xbf16>
    %cst_147 = arith.constant dense<0.000000e+00> : vector<8x32xf32>
    %286 = tpu.matmul %29, %285, %cst_147 {dimension_numbers = #tpu.dot_dimension_numbers<[1], [0], [0], [1], [0, 0, 1, 1], [], []>} : vector<8x12xbf16>, vector<12x32xbf16>, vector<8x32xf32> -> vector<8x32xf32>
    %cst_148 = arith.constant dense<0.000000e+00> : vector<8x32xf32>
    %287 = tpu.matmul %39, %285, %cst_148 {dimension_numbers = #tpu.dot_dimension_numbers<[1], [0], [0], [1], [0, 0, 1, 1], [], []>} : vector<8x12xbf16>, vector<12x32xbf16>, vector<8x32xf32> -> vector<8x32xf32>
    %288 = arith.maximumf %286, %287 : vector<8x32xf32>
    %289 = vector.extract_strided_slice %278 {offsets = [64, 0], sizes = [12, 32], strides = [1, 1]} : vector<172x32xf32> to vector<12x32xf32>
    %290 = arith.truncf %289 : vector<12x32xf32> to vector<12x32xbf16>
    %cst_149 = arith.constant dense<0.000000e+00> : vector<8x32xf32>
    %291 = tpu.matmul %29, %290, %cst_149 {dimension_numbers = #tpu.dot_dimension_numbers<[1], [0], [0], [1], [0, 0, 1, 1], [], []>} : vector<8x12xbf16>, vector<12x32xbf16>, vector<8x32xf32> -> vector<8x32xf32>
    %cst_150 = arith.constant dense<0.000000e+00> : vector<8x32xf32>
    %292 = tpu.matmul %39, %290, %cst_150 {dimension_numbers = #tpu.dot_dimension_numbers<[1], [0], [0], [1], [0, 0, 1, 1], [], []>} : vector<8x12xbf16>, vector<12x32xbf16>, vector<8x32xf32> -> vector<8x32xf32>
    %293 = arith.maximumf %291, %292 : vector<8x32xf32>
    %294 = vector.extract_strided_slice %278 {offsets = [96, 0], sizes = [12, 32], strides = [1, 1]} : vector<172x32xf32> to vector<12x32xf32>
    %295 = arith.truncf %294 : vector<12x32xf32> to vector<12x32xbf16>
    %cst_151 = arith.constant dense<0.000000e+00> : vector<8x32xf32>
    %296 = tpu.matmul %29, %295, %cst_151 {dimension_numbers = #tpu.dot_dimension_numbers<[1], [0], [0], [1], [0, 0, 1, 1], [], []>} : vector<8x12xbf16>, vector<12x32xbf16>, vector<8x32xf32> -> vector<8x32xf32>
    %cst_152 = arith.constant dense<0.000000e+00> : vector<8x32xf32>
    %297 = tpu.matmul %39, %295, %cst_152 {dimension_numbers = #tpu.dot_dimension_numbers<[1], [0], [0], [1], [0, 0, 1, 1], [], []>} : vector<8x12xbf16>, vector<12x32xbf16>, vector<8x32xf32> -> vector<8x32xf32>
    %298 = arith.maximumf %296, %297 : vector<8x32xf32>
    %299 = vector.extract_strided_slice %278 {offsets = [128, 0], sizes = [12, 32], strides = [1, 1]} : vector<172x32xf32> to vector<12x32xf32>
    %300 = arith.truncf %299 : vector<12x32xf32> to vector<12x32xbf16>
    %cst_153 = arith.constant dense<0.000000e+00> : vector<8x32xf32>
    %301 = tpu.matmul %29, %300, %cst_153 {dimension_numbers = #tpu.dot_dimension_numbers<[1], [0], [0], [1], [0, 0, 1, 1], [], []>} : vector<8x12xbf16>, vector<12x32xbf16>, vector<8x32xf32> -> vector<8x32xf32>
    %cst_154 = arith.constant dense<0.000000e+00> : vector<8x32xf32>
    %302 = tpu.matmul %39, %300, %cst_154 {dimension_numbers = #tpu.dot_dimension_numbers<[1], [0], [0], [1], [0, 0, 1, 1], [], []>} : vector<8x12xbf16>, vector<12x32xbf16>, vector<8x32xf32> -> vector<8x32xf32>
    %303 = arith.maximumf %301, %302 : vector<8x32xf32>
    %304 = vector.extract_strided_slice %278 {offsets = [160, 0], sizes = [12, 32], strides = [1, 1]} : vector<172x32xf32> to vector<12x32xf32>
    %305 = arith.truncf %304 : vector<12x32xf32> to vector<12x32xbf16>
    %cst_155 = arith.constant dense<0.000000e+00> : vector<8x32xf32>
    %306 = tpu.matmul %29, %305, %cst_155 {dimension_numbers = #tpu.dot_dimension_numbers<[1], [0], [0], [1], [0, 0, 1, 1], [], []>} : vector<8x12xbf16>, vector<12x32xbf16>, vector<8x32xf32> -> vector<8x32xf32>
    %cst_156 = arith.constant dense<0.000000e+00> : vector<8x32xf32>
    %307 = tpu.matmul %39, %305, %cst_156 {dimension_numbers = #tpu.dot_dimension_numbers<[1], [0], [0], [1], [0, 0, 1, 1], [], []>} : vector<8x12xbf16>, vector<12x32xbf16>, vector<8x32xf32> -> vector<8x32xf32>
    %308 = arith.maximumf %306, %307 : vector<8x32xf32>
    %309 = tpu.concatenate %283, %288, %293, %298, %303, %308 in 0 : vector<8x32xf32>, vector<8x32xf32>, vector<8x32xf32>, vector<8x32xf32>, vector<8x32xf32>, vector<8x32xf32> -> vector<48x32xf32>
    %310 = arith.truncf %309 : vector<48x32xf32> to vector<48x32xbf16>
    %c0_157 = arith.constant 0 : index
    %c0_158 = arith.constant 0 : index
    %c0_159 = arith.constant 0 : index
    %311 = vector.load %arg6[%c0_157, %c0_158, %c0_159] : memref<1x48x32xbf16, #tpu.memory_space<vmem>>, vector<1x48x32xbf16>
    %312 = vector.shape_cast %311 : vector<1x48x32xbf16> to vector<48x32xbf16>
    %313 = vector.shape_cast %310 : vector<48x32xbf16> to vector<1x48x32xbf16>
    tpu.vector_store %arg6[%c0_157, %c0_158, %c0_159], %313 {strides = array<i32>} : memref<1x48x32xbf16, #tpu.memory_space<vmem>>, vector<1x48x32xbf16>,
    return
  }
  func.func @transform_0(%arg0: i32) -> (i32, i32, i32) {
    %c0_i32 = arith.constant 0 : i32
    %c0_i32_0 = arith.constant 0 : i32
    %c0_i32_1 = arith.constant 0 : i32
    return %arg0, %c0_i32, %c0_i32_0 : i32, i32, i32
  }
  func.func @transform_1(%arg0: i32) -> (i32, i32, i32) {
    %c0_i32 = arith.constant 0 : i32
    %c0_i32_0 = arith.constant 0 : i32
    %c0_i32_1 = arith.constant 0 : i32
    %c0_i32_2 = arith.constant 0 : i32
    return %c0_i32, %c0_i32_0, %c0_i32_1 : i32, i32, i32
  }
  func.func @transform_2(%arg0: i32) -> (i32, i32) {
    %c0_i32 = arith.constant 0 : i32
    %c0_i32_0 = arith.constant 0 : i32
    %c0_i32_1 = arith.constant 0 : i32
    return %c0_i32, %c0_i32_0 : i32, i32
  }
  func.func @transform_3(%arg0: i32) -> (i32, i32, i32) {
    %c0_i32 = arith.constant 0 : i32
    %c0_i32_0 = arith.constant 0 : i32
    %c0_i32_1 = arith.constant 0 : i32
    %c0_i32_2 = arith.constant 0 : i32
    return %c0_i32, %c0_i32_0, %c0_i32_1 : i32, i32, i32
  }
  func.func @transform_4(%arg0: i32) -> (i32, i32) {
    %c0_i32 = arith.constant 0 : i32
    %c0_i32_0 = arith.constant 0 : i32
    %c0_i32_1 = arith.constant 0 : i32
    return %c0_i32, %c0_i32_0 : i32, i32
  }
  func.func @transform_5(%arg0: i32) -> (i32, i32, i32) {
    %c0_i32 = arith.constant 0 : i32
    %c0_i32_0 = arith.constant 0 : i32
    %c0_i32_1 = arith.constant 0 : i32
    return %arg0, %c0_i32, %c0_i32_0 : i32, i32, i32
  }
}

module attributes {stable_mosaic.version = 11 : i64} {
  func.func @_fc_head_kernel(%arg0: i32, %arg1: memref<8x1536xbf16, #tpu.memory_space<vmem>>, %arg2: memref<1536x512xbf16, #tpu.memory_space<vmem>>, %arg3: memref<1x512xf32, #tpu.memory_space<vmem>>, %arg4: memref<512x128xbf16, #tpu.memory_space<vmem>>, %arg5: memref<1x128xf32, #tpu.memory_space<vmem>>, %arg6: memref<8x128xf32, #tpu.memory_space<vmem>>) attributes {dimension_semantics = [#tpu.dimension_semantics<parallel>], iteration_bounds = array<i64: 2>, scalar_prefetch = 0 : i64, scratch_operands = 0 : i64, tpu.core_type = #tpu.core_type<tc>, window_params = [{transform_indices = @transform_0, window_bounds = array<i64: 8, 1536>}, {pipeline_mode = #tpu.pipeline_mode<synchronous>, transform_indices = @transform_1, window_bounds = array<i64: 1536, 512>}, {pipeline_mode = #tpu.pipeline_mode<synchronous>, transform_indices = @transform_2, window_bounds = array<i64: 1, 512>}, {pipeline_mode = #tpu.pipeline_mode<synchronous>, transform_indices = @transform_3, window_bounds = array<i64: 512, 128>}, {pipeline_mode = #tpu.pipeline_mode<synchronous>, transform_indices = @transform_4, window_bounds = array<i64: 1, 128>}, {transform_indices = @transform_5, window_bounds = array<i64: 8, 128>}]} {
    %c0 = arith.constant 0 : index
    %c0_0 = arith.constant 0 : index
    %0 = vector.load %arg1[%c0, %c0_0] : memref<8x1536xbf16, #tpu.memory_space<vmem>>, vector<8x1536xbf16>
    %c0_1 = arith.constant 0 : index
    %c0_2 = arith.constant 0 : index
    %1 = vector.load %arg2[%c0_1, %c0_2] : memref<1536x512xbf16, #tpu.memory_space<vmem>>, vector<1536x512xbf16>
    %cst = arith.constant dense<0.000000e+00> : vector<8x512xf32>
    %2 = tpu.matmul %0, %1, %cst {dimension_numbers = #tpu.dot_dimension_numbers<[1], [0], [0], [1], [0, 0, 1, 1], [], []>} : vector<8x1536xbf16>, vector<1536x512xbf16>, vector<8x512xf32> -> vector<8x512xf32>
    %c0_3 = arith.constant 0 : index
    %c0_4 = arith.constant 0 : index
    %3 = vector.load %arg3[%c0_3, %c0_4] : memref<1x512xf32, #tpu.memory_space<vmem>>, vector<1x512xf32>
    %4 = vector.broadcast %3 : vector<1x512xf32> to vector<8x512xf32>
    %5 = arith.addf %2, %4 : vector<8x512xf32>
    %cst_5 = arith.constant 0.000000e+00 : f32
    %6 = vector.broadcast %cst_5 : f32 to vector<8x512xf32>
    %7 = arith.maximumf %5, %6 : vector<8x512xf32>
    %8 = arith.truncf %7 : vector<8x512xf32> to vector<8x512xbf16>
    %c0_6 = arith.constant 0 : index
    %c0_7 = arith.constant 0 : index
    %9 = vector.load %arg4[%c0_6, %c0_7] : memref<512x128xbf16, #tpu.memory_space<vmem>>, vector<512x128xbf16>
    %cst_8 = arith.constant dense<0.000000e+00> : vector<8x128xf32>
    %10 = tpu.matmul %8, %9, %cst_8 {dimension_numbers = #tpu.dot_dimension_numbers<[1], [0], [0], [1], [0, 0, 1, 1], [], []>} : vector<8x512xbf16>, vector<512x128xbf16>, vector<8x128xf32> -> vector<8x128xf32>
    %c0_9 = arith.constant 0 : index
    %c0_10 = arith.constant 0 : index
    %11 = vector.load %arg5[%c0_9, %c0_10] : memref<1x128xf32, #tpu.memory_space<vmem>>, vector<1x128xf32>
    %12 = vector.broadcast %11 : vector<1x128xf32> to vector<8x128xf32>
    %13 = arith.addf %10, %12 : vector<8x128xf32>
    %cst_11 = arith.constant dense<0xFF800000> : vector<8xf32>
    %14 = vector.multi_reduction <maximumf>, %13, %cst_11 [1] : vector<8x128xf32> to vector<8xf32>
    %15 = vector.shape_cast %14 : vector<8xf32> to vector<8x1xf32>
    %16 = vector.broadcast %15 : vector<8x1xf32> to vector<8x128xf32>
    %17 = arith.subf %13, %16 : vector<8x128xf32>
    %18 = math.exp %17 : vector<8x128xf32>
    %cst_12 = arith.constant dense<0.000000e+00> : vector<8xf32>
    %19 = vector.multi_reduction <add>, %18, %cst_12 [1] : vector<8x128xf32> to vector<8xf32>
    %20 = vector.shape_cast %19 : vector<8xf32> to vector<8x1xf32>
    %21 = math.log %20 : vector<8x1xf32>
    %22 = vector.broadcast %21 : vector<8x1xf32> to vector<8x128xf32>
    %23 = arith.subf %17, %22 : vector<8x128xf32>
    %c0_13 = arith.constant 0 : index
    %c0_14 = arith.constant 0 : index
    %24 = vector.load %arg6[%c0_13, %c0_14] : memref<8x128xf32, #tpu.memory_space<vmem>>, vector<8x128xf32>
    tpu.vector_store %arg6[%c0_13, %c0_14], %23 {strides = array<i32>} : memref<8x128xf32, #tpu.memory_space<vmem>>, vector<8x128xf32>,
    return
  }
  func.func @transform_0(%arg0: i32) -> (i32, i32) {
    %c0_i32 = arith.constant 0 : i32
    %c0_i32_0 = arith.constant 0 : i32
    return %arg0, %c0_i32 : i32, i32
  }
  func.func @transform_1(%arg0: i32) -> (i32, i32) {
    %c0_i32 = arith.constant 0 : i32
    %c0_i32_0 = arith.constant 0 : i32
    %c0_i32_1 = arith.constant 0 : i32
    return %c0_i32, %c0_i32_0 : i32, i32
  }
  func.func @transform_2(%arg0: i32) -> (i32, i32) {
    %c0_i32 = arith.constant 0 : i32
    %c0_i32_0 = arith.constant 0 : i32
    %c0_i32_1 = arith.constant 0 : i32
    return %c0_i32, %c0_i32_0 : i32, i32
  }
  func.func @transform_3(%arg0: i32) -> (i32, i32) {
    %c0_i32 = arith.constant 0 : i32
    %c0_i32_0 = arith.constant 0 : i32
    %c0_i32_1 = arith.constant 0 : i32
    return %c0_i32, %c0_i32_0 : i32, i32
  }
  func.func @transform_4(%arg0: i32) -> (i32, i32) {
    %c0_i32 = arith.constant 0 : i32
    %c0_i32_0 = arith.constant 0 : i32
    %c0_i32_1 = arith.constant 0 : i32
    return %c0_i32, %c0_i32_0 : i32, i32
  }
  func.func @transform_5(%arg0: i32) -> (i32, i32) {
    %c0_i32 = arith.constant 0 : i32
    %c0_i32_0 = arith.constant 0 : i32
    return %arg0, %c0_i32 : i32, i32
  }
}

</mosaic_0001>

<bundles_post_ra>
// kernel: net_forward.3
= control target key start
LH: loop header
LB: loop body
LE: loop exit
PB: predicated region body
PF: predicated region fallthrough
CT: control target
= control target key end

     0   :  { %10 = vsyncpa [#allocation3], 0  ;;  %s5166_s0 = inlined_call_operand.vmem [shape: bf16[16,1536], index: 0, kind: input, shape index: {}]   ;;  %s5167_s1 = inlined_call_operand.hbm [shape: bf16[1536,512], index: 1, kind: input, shape index: {}]   ;;  %s5168_s2 = inlined_call_operand.hbm [shape: f32[1,512], index: 2, kind: input, shape index: {}]   ;;  %s5169_s3 = inlined_call_operand.vmem [shape: bf16[512,128], index: 3, kind: input, shape index: {}]   ;;  %s5170_s4 = inlined_call_operand.hbm [shape: f32[1,128], index: 4, kind: input, shape index: {}]   ;;  %s5171_s5 = inlined_call_operand.vmem [shape: f32[16,128], index: 5, kind: output, shape index: {}]  }
   0x1   :  { %11 = vsyncpa [#allocation5], 0  ;;  %s4909_s18 = smov 0  }
   0x2 LB: > { %s4874_s19 = smov [#allocation4]   ;;  %s4915_s21 = sadd.s32 4294967295, %s4872_s18   ;;  %s4872_s18 = sphi %s4909_s18, %s17_s18  }
   0x3   : > { %s184_s20 = sshll.u32 %s4874_s19, 4  ;;  %p3578_p0 = scmp.ge.s32.totalorder %s4872_s18, 1  ;;  %s185_s20 = int_to_ptr.vmem [resolvable:$true] %s184_s20 }
   0x4   : > { %p158_p1 = scmp.lt.s32.totalorder %s4872_s18, 3  ;;  %p5172_p2 = scmp.eq.s32.totalorder %s4915_s21, 0 }
   0x5   : > { %s4875_s23 = smov [#allocation2]   ;;  %s4876_s26 = smov [#allocation6]  }
   0x6   : > { %p4920_p3 = pnand %p3578_p0, %p158_p1  ;;  %s170_s24 = sshll.u32 %s4875_s23, 4  ;;  %s4932_s24 = int_to_ptr.vmem [resolvable:$true] %s170_s24 }
   0x7   : > { %s198_s27 = sshll.u32 %s4876_s26, 4  ;;  %s4774_s30 = scalar_lea.hbm %s5168_s2, 64  ;;  %s4934_s27 = int_to_ptr.vmem [resolvable:$true] %s198_s27 }
   0x8   : > { %s5174_s22 = scalar_select %p4920_p3, 1, 0 }
   0x9   : > { %p4121_p4 = pneg %p4920_p3  ;;  %p4775_p6 = scmp.ne.s32.totalorder %s5168_s2, %s4774_s30 }
   0xa   : > { %p4781_p10 = scmp.lt.u32.totalorder %s4774_s30, %s5168_s2 }
   0xb   : > { %p4928_p5 = pnand %p5172_p2, %p4121_p4 }
   0xd   : > { %p4944_p7 = pneg %p4928_p5 }
   0xf   : > { %p4777_p8 = pnand %p4944_p7, %p4775_p6 }
  0x11   : > { %p4778_p9 = pneg %p4777_p8 }
  0x13   : > { %p4783_p11 = pnand %p4781_p10, %p4778_p9 }
  0x15   : > { %4786 = shalt.err (!%p4783_p11)
}
  0x16   : > { %s4787_s11 = scalar_lea.vmem %s185_s20, 64  ;;  %p4795_p1 = scmp.lt.s32.totalorder %s185_s20, %s185_s20 }
  0x17   : > { %p4788_p12 = scmp.ne.s32.totalorder %s185_s20, %s4787_s11  ;;  %p4796_p4 = scmp.lt.s32.totalorder %s4787_s11, %s4787_s11 }
  0x19   : > { %p4790_p13 = pnand %p4788_p12, %p4944_p7  ;;  %p4797_p2 = por %p4796_p4, %p4795_p1 }
  0x1b   : > { %p4791_p0 = pneg %p4790_p13 }
  0x1d   : > { %p4798_p3 = pnand %p4797_p2, %p4791_p0 }
  0x1f   : > { %4801 = shalt.err (!%p4798_p3)
}
  0x20   : > { %4127 = dma.hbm_to_vmem [thread:$0]  (!%p4928_p5), %s5168_s2, 64, %s185_s20, [#allocation5]  }
  0x21   : > { %s4802_s16 = scalar_lea.hbm %s5167_s1, 49152 }
  0x22   : > { %p4803_p6 = scmp.ne.s32.totalorder %s5167_s1, %s4802_s16  ;;  %p4809_p2 = scmp.lt.u32.totalorder %s4802_s16, %s5167_s1 }
  0x24   : > { %p4805_p8 = pnand %p4803_p6, %p4944_p7 }
  0x26   : > { %p4806_p9 = pneg %p4805_p8 }
  0x28   : > { %p4811_p3 = pnand %p4809_p2, %p4806_p9 }
  0x2a   : > { %4814 = shalt.err (!%p4811_p3)
}
  0x2b   : > { %s4815_s20 = scalar_lea.vmem %s4932_s24, 49152  ;;  %p4823_p13 = scmp.lt.s32.totalorder %s4932_s24, %s4932_s24 }
  0x2c   : > { %p4816_p10 = scmp.ne.s32.totalorder %s4932_s24, %s4815_s20  ;;  %p4824_p0 = scmp.lt.s32.totalorder %s4815_s20, %s4815_s20 }
  0x2e   : > { %p4818_p11 = pnand %p4816_p10, %p4944_p7  ;;  %p4825_p1 = por %p4824_p0, %p4823_p13 }
  0x30   : > { %p4819_p12 = pneg %p4818_p11 }
  0x32   : > { %p4826_p4 = pnand %p4825_p1, %p4819_p12 }
  0x34   : > { %4829 = shalt.err (!%p4826_p4)
}
  0x35   : > { %s4877_s28 = smov 256   ;;  %s4878_s29 = smov 16  }
  0x36   : > { %4124 = dma.hbm_to_vmem [thread:$0]  (!%p4928_p5), %s5167_s1, 49152, %s4932_s24, [#allocation3], %s4877_s28, %s4877_s28, %s4878_s29  }
  0x37   : > { %s4830_s10 = scalar_lea.hbm %s5170_s4, 16 }
  0x38   : > { %p4831_p6 = scmp.ne.s32.totalorder %s5170_s4, %s4830_s10  ;;  %p4837_p2 = scmp.lt.u32.totalorder %s4830_s10, %s5170_s4 }
  0x3a   : > { %p4833_p8 = pnand %p4831_p6, %p4944_p7 }
  0x3c   : > { %p4834_p9 = pneg %p4833_p8 }
  0x3e   : > { %p4839_p3 = pnand %p4837_p2, %p4834_p9 }
  0x40   : > { %4842 = shalt.err (!%p4839_p3)
}
  0x41   : > { %s4843_s24 = scalar_lea.vmem %s4934_s27, 16  ;;  %s4850_s15 = scalar_lea.vmem %s4934_s27, 32 }
  0x42   : > { %p4844_p10 = scmp.ne.s32.totalorder %s4934_s27, %s4843_s24  ;;  %p4851_p13 = scmp.lt.s32.totalorder %s4934_s27, %s4934_s27 }
  0x43   : > { %p4852_p0 = scmp.lt.s32.totalorder %s4850_s15, %s4843_s24 }
  0x44   : > { %p4846_p11 = pnand %p4844_p10, %p4944_p7 }
  0x45   : > { %p4853_p1 = por %p4852_p0, %p4851_p13 }
  0x46   : > { %p4847_p12 = pneg %p4846_p11 }
  0x48   : > { %p4854_p4 = pnand %p4853_p1, %p4847_p12 }
  0x4a   : > { %4857 = shalt.err (!%p4854_p4)
}
  0x4b   : > { %4130 = dma.hbm_to_vmem [thread:$0]  (!%p4928_p5), %s5170_s4, 16, %s4934_s27, [#allocation5]  }
  0x4c   : > { %p5177_p6 = scmp.ne.s32.totalorder %s5174_s22, 0 }
  0x4d   : > { %p5178_p7 = scmp.eq.s32.totalorder (!%p5177_p6), %s4915_s21, 0 }
  0x4e   : > { %219 = sbr.rel (%p5177_p6) target bundleno = 1228 (0x4cc), region = 40 }
  0x55   : > { %4863 = dma.done.wait (%p5178_p7), [#allocation3], 49152   ;;  %p5179_p8 = pmov %p5178_p7 }
  0x56   : > { %p5180_p9 = pmov %p5178_p7 }
  0x57   : > { %4865 = vsyncadd (%p5179_p8), [#allocation3], 4294918144 }
  0x58   : > { %4867 = dma.done.wait (%p5180_p9), [#allocation5], 80   ;;  %p5181_p2 = pmov %p5178_p7 }
  0x59   : > { %v4150_v0 = vld [vmem:[#allocation2 + $0x4] ss:$16 sps:$4 sm:$0xff]   ;;  %v4152_v1 = vld [vmem:[#allocation2 + $0xc] ss:$16 sps:$4 sm:$0xff]   ;;  %v4154_v2 = vld [vmem:[#allocation2] ss:$16 sps:$4 sm:$0xff]  }
  0x5a   : > { %4869 = vsyncadd (%p5181_p2), [#allocation5], 4294967216  ;;  %2638 = vmatprep.subr.bf16.mxu0 %v4150_v0  ;;  %v4155_v3 = vld [vmem:[#allocation2 + $0x8] ss:$16 sps:$4 sm:$0xff]   ;;  %2884 = vmatprep.subr.bf16.mxu1 %v4152_v1  ;;  %v4156_v4 = vld [vmem:[#allocation2 + $0x24] ss:$16 sps:$4 sm:$0xff]  }
  0x5b   : > { %2639 = vmatpush1.bf16.msra.mxu0 %v4154_v2  ;;  %2885 = vmatpush1.bf16.msra.mxu1 %v4155_v3  ;;  %v4158_v5 = vld [vmem:[#allocation2 + $0x2c] ss:$16 sps:$4 sm:$0xff]   ;;  %v4160_v6 = vld [vmem:[#allocation2 + $0x20] ss:$16 sps:$4 sm:$0xff]   ;;  %v4161_v7 = vld [vmem:[#allocation2 + $0x28] ss:$16 sps:$4 sm:$0xff]  }
  0x5c   : > { %2640 = vmatprep.subr.bf16.mxu0 %v4156_v4  ;;  %2886 = vmatprep.subr.bf16.mxu1 %v4158_v5  ;;  %v4162_v8 = vld [vmem:[#allocation2 + $0x44] ss:$16 sps:$4 sm:$0xff]   ;;  %v4164_v9 = vld [vmem:[#allocation2 + $0x4c] ss:$16 sps:$4 sm:$0xff]   ;;  %v4166_v10 = vld [vmem:[#allocation2 + $0x40] ss:$16 sps:$4 sm:$0xff]  }
  0x5d   : > { %v4167_v11 = vld [vmem:[#allocation2 + $0x48] ss:$16 sps:$4 sm:$0xff]   ;;  %v4168_v12 = vld [vmem:[#allocation2 + $0x64] ss:$16 sps:$4 sm:$0xff]   ;;  %v4170_v13 = vld [vmem:[#allocation2 + $0x6c] ss:$16 sps:$4 sm:$0xff]  }
  0x5e   : > { %v4172_v14 = vld [vmem:[#allocation2 + $0x60] ss:$16 sps:$4 sm:$0xff]   ;;  %v4173_v15 = vld [vmem:[#allocation2 + $0x68] ss:$16 sps:$4 sm:$0xff]   ;;  %v4174_v16 = vld [vmem:[#allocation2 + $0x84] ss:$16 sps:$4 sm:$0xff]  }
  0x5f   : > { %2641 = vmatpush1.bf16.msra.mxu0 %v4160_v6  ;;  %2887 = vmatpush1.bf16.msra.mxu1 %v4161_v7  ;;  %v4176_v17 = vld [vmem:[#allocation2 + $0x8c] ss:$16 sps:$4 sm:$0xff]   ;;  %v4178_v18 = vld [vmem:[#allocation2 + $0x80] ss:$16 sps:$4 sm:$0xff]   ;;  %v4179_v19 = vld [vmem:[#allocation2 + $0x88] ss:$16 sps:$4 sm:$0xff]  }
  0x60   : > { %2642 = vmatprep.subr.bf16.mxu0 %v4162_v8  ;;  %2888 = vmatprep.subr.bf16.mxu1 %v4164_v9  ;;  %v4180_v20 = vld [vmem:[#allocation2 + $0xa4] ss:$16 sps:$4 sm:$0xff]   ;;  %v4182_v21 = vld [vmem:[#allocation2 + $0xac] ss:$16 sps:$4 sm:$0xff]   ;;  %v4184_v22 = vld [vmem:[#allocation2 + $0xa0] ss:$16 sps:$4 sm:$0xff]  }
  0x61   : > { %v4185_v23 = vld [vmem:[#allocation2 + $0xa8] ss:$16 sps:$4 sm:$0xff]   ;;  %v4186_v24 = vld [vmem:[#allocation2 + $0xc4] ss:$16 sps:$4 sm:$0xff]   ;;  %v4188_v25 = vld [vmem:[#allocation2 + $0xcc] ss:$16 sps:$4 sm:$0xff]  }
  0x62   : > { %v4190_v26 = vld [vmem:[#allocation2 + $0xc0] ss:$16 sps:$4 sm:$0xff]   ;;  %v4191_v27 = vld [vmem:[#allocation2 + $0xc8] ss:$16 sps:$4 sm:$0xff]   ;;  %v4192_v28 = vld [vmem:[#allocation2 + $0xe4] ss:$16 sps:$4 sm:$0xff]  }
  0x63   : > { %2643 = vmatpush1.bf16.msra.mxu0 %v4166_v10  ;;  %2889 = vmatpush1.bf16.msra.mxu1 %v4167_v11  ;;  %v4194_v29 = vld [vmem:[#allocation2 + $0xec] ss:$16 sps:$4 sm:$0xff]   ;;  %v4196_v30 = vld [vmem:[#allocation2 + $0xe0] ss:$16 sps:$4 sm:$0xff]   ;;  %p254_p5 = scmp.lt.s32.totalorder %s4915_s21, 1 }
  0x64   : > { %2644 = vmatprep.subr.bf16.mxu0 %v4168_v12  ;;  %2890 = vmatprep.subr.bf16.mxu1 %v4170_v13  ;;  %v4197_v31 = vld [vmem:[#allocation2 + $0xe8] ss:$16 sps:$4 sm:$0xff]   ;;  %v4198_v32 = vld [vmem:[#allocation2 + $0x104] ss:$16 sps:$4 sm:$0xff]   ;;  %v4200_v33 = vld [vmem:[#allocation2 + $0x10c] ss:$16 sps:$4 sm:$0xff]  }
  0x65   : > { %v4202_v34 = vld [vmem:[#allocation2 + $0x100] ss:$16 sps:$4 sm:$0xff]   ;;  %v4203_v35 = vld [vmem:[#allocation2 + $0x108] ss:$16 sps:$4 sm:$0xff]   ;;  %s5183_s21 = smov (!%p254_p5, %s4915_s21), 1 }
  0x66   : > { %v4204_v36 = vld [vmem:[#allocation2 + $0x124] ss:$16 sps:$4 sm:$0xff]   ;;  %v4206_v37 = vld [vmem:[#allocation2 + $0x12c] ss:$16 sps:$4 sm:$0xff]   ;;  %v4208_v38 = vld [vmem:[#allocation2 + $0x120] ss:$16 sps:$4 sm:$0xff]  }
  0x67   : > { %2645 = vmatpush1.bf16.msra.mxu0 %v4172_v14  ;;  %2891 = vmatpush1.bf16.msra.mxu1 %v4173_v15  ;;  %s4108_s22 = smul.u32 48, %s5183_s21  ;;  %v4209_v39 = vld [vmem:[#allocation2 + $0x128] ss:$16 sps:$4 sm:$0xff]   ;;  %v4210_v40 = vld [vmem:[#allocation2 + $0x144] ss:$16 sps:$4 sm:$0xff]   ;;  %s3588_s17 = sshll.u32 %s5183_s21, 3 }
  0x68   : > { %2646 = vmatprep.subr.bf16.mxu0 %v4174_v16  ;;  %2892 = vmatprep.subr.bf16.mxu1 %v4176_v17  ;;  %v4212_v41 = vld [vmem:[#allocation2 + $0x14c] ss:$16 sps:$4 sm:$0xff]   ;;  %v4214_v42 = vld [vmem:[#allocation2 + $0x140] ss:$16 sps:$4 sm:$0xff]   ;;  %v4215_v43 = vld [vmem:[#allocation2 + $0x148] ss:$16 sps:$4 sm:$0xff]   ;;  %s262_s27 = scalar_lea.vmem %s5171_s5, %s3588_s17 }
  0x69   : > { %s5025_s8 = scalar_lea.vmem %s5166_s0, %s4108_s22  ;;  %v4216_v44 = vld [vmem:[#allocation2 + $0x164] ss:$16 sps:$4 sm:$0xff]   ;;  %v4218_v45 = vld [vmem:[#allocation2 + $0x16c] ss:$16 sps:$4 sm:$0xff]   ;;  %v4220_v47 = vld [vmem:[#allocation2 + $0x160] ss:$16 sps:$4 sm:$0xff]  }
  0x6a   : > { %v264_v46 = vld [vmem:[%s5025_s8] sm:$0xff]  ;;  %v4221_v49 = vld [vmem:[#allocation2 + $0x168] ss:$16 sps:$4 sm:$0xff]   ;;  %v4224_v51 = vld [vmem:[#allocation2 + $0x18c] ss:$16 sps:$4 sm:$0xff]  }
  0x6b   : > { %2647 = vmatpush1.bf16.msra.mxu0 %v4178_v18  ;;  %2893 = vmatpush1.bf16.msra.mxu1 %v4179_v19  ;;  %v3590_v48 = vcombine.high %v264_v46, %v264_v46  ;;  %v4222_v50 = vld [vmem:[#allocation2 + $0x184] ss:$16 sps:$4 sm:$0xff]   ;;  %v4226_v52 = vld [vmem:[#allocation2 + $0x180] ss:$16 sps:$4 sm:$0xff]   ;;  %v4227_v53 = vld [vmem:[#allocation2 + $0x188] ss:$16 sps:$4 sm:$0xff]   ;;  %v3589_v4 = vcombine.low %v264_v46, %v264_v46 }
  0x6c   : > { %2648 = vmatprep.subr.bf16.mxu0 %v4180_v20  ;;  %2894 = vmatprep.subr.bf16.mxu1 %v4182_v21  ;;  %v4228_v54 = vld [vmem:[#allocation2 + $0x1a4] ss:$16 sps:$4 sm:$0xff]   ;;  %v4230_v55 = vld [vmem:[#allocation2 + $0x1ac] ss:$16 sps:$4 sm:$0xff]   ;;  %v4232_v56 = vld [vmem:[#allocation2 + $0x1a0] ss:$16 sps:$4 sm:$0xff]  }
  0x6d   : > { %2670 = vmatprep.mubr.bf16.mxu0 %v3590_v48  ;;  %2916 = vmatprep.mubr.bf16.mxu1 %v3590_v48  ;;  %v4233_v57 = vld [vmem:[#allocation2 + $0x1a8] ss:$16 sps:$4 sm:$0xff]   ;;  %v4234_v58 = vld [vmem:[#allocation2 + $0x1c4] ss:$16 sps:$4 sm:$0xff]   ;;  %v4236_v59 = vld [vmem:[#allocation2 + $0x1cc] ss:$16 sps:$4 sm:$0xff]  }
  0x6e   : > { %v4238_v60 = vld [vmem:[#allocation2 + $0x1c0] ss:$16 sps:$4 sm:$0xff]   ;;  %v4239_v61 = vld [vmem:[#allocation2 + $0x1c8] ss:$16 sps:$4 sm:$0xff]   ;;  %v4240_v62 = vld [vmem:[#allocation2 + $0x1e4] ss:$16 sps:$4 sm:$0xff]  }
  0x6f   : > { %2649 = vmatpush1.bf16.msra.mxu0 %v4184_v22  ;;  %2895 = vmatpush1.bf16.msra.mxu1 %v4185_v23  ;;  %v4242_v63 = vld [vmem:[#allocation2 + $0x1ec] ss:$16 sps:$4 sm:$0xff]   ;;  %v4244_v0 = vld [vmem:[#allocation2 + $0x1e0] ss:$16 sps:$4 sm:$0xff]   ;;  %v4245_v1 = vld [vmem:[#allocation2 + $0x1e8] ss:$16 sps:$4 sm:$0xff]  }
  0x70   : > { %2650 = vmatprep.subr.bf16.mxu0 %v4186_v24  ;;  %2896 = vmatprep.subr.bf16.mxu1 %v4188_v25  ;;  %v4250_v2 = vld [vmem:[#allocation2 + $0x204] ss:$16 sps:$4 sm:$0xff]   ;;  %v4253_v3 = vld [vmem:[#allocation2 + $0x20c] ss:$16 sps:$4 sm:$0xff]   ;;  %v4248_v5 = vld [vmem:[#allocation2 + $0x200] ss:$16 sps:$4 sm:$0xff]  }
  0x71   : > { %v4251_v6 = vld [vmem:[#allocation2 + $0x208] ss:$16 sps:$4 sm:$0xff]   ;;  %v4256_v7 = vld [vmem:[#allocation2 + $0x224] ss:$16 sps:$4 sm:$0xff]   ;;  %v4259_v8 = vld [vmem:[#allocation2 + $0x22c] ss:$16 sps:$4 sm:$0xff]  }
  0x72   : > { %v4254_v9 = vld [vmem:[#allocation2 + $0x220] ss:$16 sps:$4 sm:$0xff]   ;;  %v4257_v10 = vld [vmem:[#allocation2 + $0x228] ss:$16 sps:$4 sm:$0xff]   ;;  %v4262_v11 = vld [vmem:[#allocation2 + $0x244] ss:$16 sps:$4 sm:$0xff]  }
  0x73   : > { %2651 = vmatpush1.bf16.msra.mxu0 %v4190_v26  ;;  %2897 = vmatpush1.bf16.msra.mxu1 %v4191_v27  ;;  %v4265_v12 = vld [vmem:[#allocation2 + $0x24c] ss:$16 sps:$4 sm:$0xff]   ;;  %v4260_v13 = vld [vmem:[#allocation2 + $0x240] ss:$16 sps:$4 sm:$0xff]   ;;  %v4263_v14 = vld [vmem:[#allocation2 + $0x248] ss:$16 sps:$4 sm:$0xff]  }
  0x74   : > { %2652 = vmatprep.subr.bf16.mxu0 %v4192_v28  ;;  %2898 = vmatprep.subr.bf16.mxu1 %v4194_v29  ;;  %v4268_v15 = vld [vmem:[#allocation2 + $0x264] ss:$16 sps:$4 sm:$0xff]   ;;  %v4271_v16 = vld [vmem:[#allocation2 + $0x26c] ss:$16 sps:$4 sm:$0xff]   ;;  %v4266_v17 = vld [vmem:[#allocation2 + $0x260] ss:$16 sps:$4 sm:$0xff]  }
  0x75   : > { %v4269_v18 = vld [vmem:[#allocation2 + $0x268] ss:$16 sps:$4 sm:$0xff]   ;;  %v4274_v19 = vld [vmem:[#allocation2 + $0x284] ss:$16 sps:$4 sm:$0xff]   ;;  %v4277_v20 = vld [vmem:[#allocation2 + $0x28c] ss:$16 sps:$4 sm:$0xff]  }
  0x76   : > { %v4272_v21 = vld [vmem:[#allocation2 + $0x280] ss:$16 sps:$4 sm:$0xff]   ;;  %v4275_v22 = vld [vmem:[#allocation2 + $0x288] ss:$16 sps:$4 sm:$0xff]   ;;  %v4280_v23 = vld [vmem:[#allocation2 + $0x2a4] ss:$16 sps:$4 sm:$0xff]  }
  0x77   : > { %2653 = vmatpush1.bf16.msra.mxu0 %v4196_v30  ;;  %2899 = vmatpush1.bf16.msra.mxu1 %v4197_v31  ;;  %v4283_v24 = vld [vmem:[#allocation2 + $0x2ac] ss:$16 sps:$4 sm:$0xff]   ;;  %v4278_v25 = vld [vmem:[#allocation2 + $0x2a0] ss:$16 sps:$4 sm:$0xff]   ;;  %v4281_v26 = vld [vmem:[#allocation2 + $0x2a8] ss:$16 sps:$4 sm:$0xff]  }
  0x78   : > { %2654 = vmatprep.subr.bf16.mxu0 %v4198_v32  ;;  %2900 = vmatprep.subr.bf16.mxu1 %v4200_v33  ;;  %v4286_v27 = vld [vmem:[#allocation2 + $0x2c4] ss:$16 sps:$4 sm:$0xff]   ;;  %v4289_v28 = vld [vmem:[#allocation2 + $0x2cc] ss:$16 sps:$4 sm:$0xff]   ;;  %v4284_v31 = vld [vmem:[#allocation2 + $0x2c0] ss:$16 sps:$4 sm:$0xff]  }
  0x79   : > { %v5029_v29 = vld [vmem:[%s5025_s8 + $0x8] sm:$0xff]  ;;  %v4292_v33 = vld [vmem:[#allocation2 + $0x2e4] ss:$16 sps:$4 sm:$0xff]  }
  0x7a   : > { %v3592_v30 = vcombine.high %v5029_v29, %v5029_v29  ;;  %v4287_v32 = vld [vmem:[#allocation2 + $0x2c8] ss:$16 sps:$4 sm:$0xff]   ;;  %v4313_v46 = vld [vmem:[#allocation2 + $0x34c] ss:$16 sps:$4 sm:$0xff]  }
  0x7b   : > { %2655 = vmatpush1.bf16.msra.mxu0 %v4202_v34  ;;  %2901 = vmatpush1.bf16.msra.mxu1 %v4203_v35  ;;  %v4295_v34 = vld [vmem:[#allocation2 + $0x2ec] ss:$16 sps:$4 sm:$0xff]   ;;  %v4290_v35 = vld [vmem:[#allocation2 + $0x2e0] ss:$16 sps:$4 sm:$0xff]   ;;  %v4311_v48 = vld [vmem:[#allocation2 + $0x348] ss:$16 sps:$4 sm:$0xff]  }
  0x7c   : > { %2656 = vmatprep.subr.bf16.mxu0 %v4204_v36  ;;  %2902 = vmatprep.subr.bf16.mxu1 %v4206_v37  ;;  %v4293_v36 = vld [vmem:[#allocation2 + $0x2e8] ss:$16 sps:$4 sm:$0xff]   ;;  %v4298_v37 = vld [vmem:[#allocation2 + $0x304] ss:$16 sps:$4 sm:$0xff]  }
  0x7f   : > { %2657 = vmatpush1.bf16.msra.mxu0 %v4208_v38  ;;  %2903 = vmatpush1.bf16.msra.mxu1 %v4209_v39  ;;  %v4301_v38 = vld [vmem:[#allocation2 + $0x30c] ss:$16 sps:$4 sm:$0xff]   ;;  %v4296_v39 = vld [vmem:[#allocation2 + $0x300] ss:$16 sps:$4 sm:$0xff]  }
  0x80   : > { %2658 = vmatprep.subr.bf16.mxu0 %v4210_v40  ;;  %2904 = vmatprep.subr.bf16.mxu1 %v4212_v41  ;;  %v4299_v40 = vld [vmem:[#allocation2 + $0x308] ss:$16 sps:$4 sm:$0xff]   ;;  %v4304_v41 = vld [vmem:[#allocation2 + $0x324] ss:$16 sps:$4 sm:$0xff]  }
  0x83   : > { %2659 = vmatpush1.bf16.msra.mxu0 %v4214_v42  ;;  %2905 = vmatpush1.bf16.msra.mxu1 %v4215_v43  ;;  %v4307_v42 = vld [vmem:[#allocation2 + $0x32c] ss:$16 sps:$4 sm:$0xff]   ;;  %v4302_v43 = vld [vmem:[#allocation2 + $0x320] ss:$16 sps:$4 sm:$0xff]  }
  0x84   : > { %2660 = vmatprep.subr.bf16.mxu0 %v4216_v44  ;;  %2906 = vmatprep.subr.bf16.mxu1 %v4218_v45  ;;  %v4305_v44 = vld [vmem:[#allocation2 + $0x328] ss:$16 sps:$4 sm:$0xff]   ;;  %v4310_v45 = vld [vmem:[#allocation2 + $0x344] ss:$16 sps:$4 sm:$0xff]  }
  0x87   : > { %2661 = vmatpush1.bf16.msra.mxu0 %v4220_v47  ;;  %2907 = vmatpush1.bf16.msra.mxu1 %v4221_v49  ;;  %v4308_v47 = vld [vmem:[#allocation2 + $0x340] ss:$16 sps:$4 sm:$0xff]   ;;  %v4316_v49 = vld [vmem:[#allocation2 + $0x364] ss:$16 sps:$4 sm:$0xff]  }
  0x88   : > { %2662 = vmatprep.subr.bf16.mxu0 %v4222_v50  ;;  %2908 = vmatprep.subr.bf16.mxu1 %v4224_v51  ;;  %v4319_v50 = vld [vmem:[#allocation2 + $0x36c] ss:$16 sps:$4 sm:$0xff]   ;;  %v4314_v51 = vld [vmem:[#allocation2 + $0x360] ss:$16 sps:$4 sm:$0xff]  }
  0x8b   : > { %2663 = vmatpush1.bf16.msra.mxu0 %v4226_v52  ;;  %2909 = vmatpush1.bf16.msra.mxu1 %v4227_v53  ;;  %v4317_v52 = vld [vmem:[#allocation2 + $0x368] ss:$16 sps:$4 sm:$0xff]   ;;  %v4322_v53 = vld [vmem:[#allocation2 + $0x384] ss:$16 sps:$4 sm:$0xff]  }
  0x8c   : > { %2664 = vmatprep.subr.bf16.mxu0 %v4228_v54  ;;  %2910 = vmatprep.subr.bf16.mxu1 %v4230_v55  ;;  %v4325_v54 = vld [vmem:[#allocation2 + $0x38c] ss:$16 sps:$4 sm:$0xff]   ;;  %v4320_v55 = vld [vmem:[#allocation2 + $0x380] ss:$16 sps:$4 sm:$0xff]  }
  0x8f   : > { %2665 = vmatpush1.bf16.msra.mxu0 %v4232_v56  ;;  %2911 = vmatpush1.bf16.msra.mxu1 %v4233_v57  ;;  %v4323_v56 = vld [vmem:[#allocation2 + $0x388] ss:$16 sps:$4 sm:$0xff]   ;;  %v4328_v57 = vld [vmem:[#allocation2 + $0x3a4] ss:$16 sps:$4 sm:$0xff]  }
  0x90   : > { %2666 = vmatprep.subr.bf16.mxu0 %v4234_v58  ;;  %2912 = vmatprep.subr.bf16.mxu1 %v4236_v59  ;;  %v4331_v58 = vld [vmem:[#allocation2 + $0x3ac] ss:$16 sps:$4 sm:$0xff]   ;;  %v4326_v59 = vld [vmem:[#allocation2 + $0x3a0] ss:$16 sps:$4 sm:$0xff]  }
  0x93   : > { %2667 = vmatpush1.bf16.msra.mxu0 %v4238_v60  ;;  %2913 = vmatpush1.bf16.msra.mxu1 %v4239_v61  ;;  %v4329_v60 = vld [vmem:[#allocation2 + $0x3a8] ss:$16 sps:$4 sm:$0xff]   ;;  %v4334_v61 = vld [vmem:[#allocation2 + $0x3c4] ss:$16 sps:$4 sm:$0xff]  }
  0x94   : > { %2668 = vmatprep.subr.bf16.mxu0 %v4240_v62  ;;  %2914 = vmatprep.subr.bf16.mxu1 %v4242_v63  ;;  %v4337_v62 = vld [vmem:[#allocation2 + $0x3cc] ss:$16 sps:$4 sm:$0xff]   ;;  %v4332_v63 = vld [vmem:[#allocation2 + $0x3c0] ss:$16 sps:$4 sm:$0xff]  }
  0x97   : > { %2669 = vmatpush1.bf16.msra.mxu0 %v4244_v0  ;;  %2915 = vmatpush1.bf16.msra.mxu1 %v4245_v1  ;;  %v4335_v0 = vld [vmem:[#allocation2 + $0x3c8] ss:$16 sps:$4 sm:$0xff]   ;;  %v4340_v1 = vld [vmem:[#allocation2 + $0x3e4] ss:$16 sps:$4 sm:$0xff]  }
  0x98   : > { %2679 = vmatprep.subr.bf16.mxu0 %v4250_v2  ;;  %2925 = vmatprep.subr.bf16.mxu1 %v4253_v3  ;;  %v4343_v2 = vld [vmem:[#allocation2 + $0x3ec] ss:$16 sps:$4 sm:$0xff]   ;;  %v4338_v3 = vld [vmem:[#allocation2 + $0x3e0] ss:$16 sps:$4 sm:$0xff]  }
  0x9a   : > { %2671 = vmatmul.mubr.bf16.vlgmr.msra.gmra.mrb[0].mxu0 %v3589_v4  ;;  %2917 = vmatmul.mubr.bf16.vlgmr.msra.gmra.mrb[0].mxu1 %v3589_v4  ;;  %v4341_v4 = vld [vmem:[#allocation2 + $0x3e8] ss:$16 sps:$4 sm:$0xff]  }
  0x9b   : > { %2680 = vmatpush1.bf16.msra.mxu0 %v4248_v5  ;;  %2926 = vmatpush1.bf16.msra.mxu1 %v4251_v6  ;;  %v4348_v5 = vld [vmem:[#allocation2 + $0x404] ss:$16 sps:$4 sm:$0xff]   ;;  %v4351_v6 = vld [vmem:[#allocation2 + $0x40c] ss:$16 sps:$4 sm:$0xff]  }
  0x9c   : > { %2681 = vmatprep.subr.bf16.mxu0 %v4256_v7  ;;  %2927 = vmatprep.subr.bf16.mxu1 %v4259_v8  ;;  %v3591_v7 = vcombine.low %v5029_v29, %v5029_v29  ;;  %v4346_v8 = vld [vmem:[#allocation2 + $0x400] ss:$16 sps:$4 sm:$0xff]   ;;  %v4381_v29 = vld [vmem:[#allocation2 + $0x4ac] ss:$16 sps:$4 sm:$0xff]  }
  0x9d   : > { %2711 = vmatprep.mubr.bf16.mxu0 %v3592_v30  ;;  %2957 = vmatprep.mubr.bf16.mxu1 %v3592_v30  ;;  %v4376_v30 = vld [vmem:[#allocation2 + $0x4a0] ss:$16 sps:$4 sm:$0xff]  }
  0x9f   : > { %2682 = vmatpush1.bf16.msra.mxu0 %v4254_v9  ;;  %2928 = vmatpush1.bf16.msra.mxu1 %v4257_v10  ;;  %v4349_v9 = vld [vmem:[#allocation2 + $0x408] ss:$16 sps:$4 sm:$0xff]   ;;  %v4354_v10 = vld [vmem:[#allocation2 + $0x424] ss:$16 sps:$4 sm:$0xff]  }
  0xa0   : > { %2683 = vmatprep.subr.bf16.mxu0 %v4262_v11  ;;  %2929 = vmatprep.subr.bf16.mxu1 %v4265_v12  ;;  %v5036_v11 = vld [vmem:[%s5025_s8 + $0x10] sm:$0xff]  ;;  %v4357_v12 = vld [vmem:[#allocation2 + $0x42c] ss:$16 sps:$4 sm:$0xff]  }
  0xa3   : > { %2684 = vmatpush1.bf16.msra.mxu0 %v4260_v13  ;;  %2930 = vmatpush1.bf16.msra.mxu1 %v4263_v14  ;;  %v3594_v13 = vcombine.high %v5036_v11, %v5036_v11  ;;  %v4352_v14 = vld [vmem:[#allocation2 + $0x420] ss:$16 sps:$4 sm:$0xff]  }
  0xa4   : > { %2685 = vmatprep.subr.bf16.mxu0 %v4268_v15  ;;  %2931 = vmatprep.subr.bf16.mxu1 %v4271_v16  ;;  %v4355_v15 = vld [vmem:[#allocation2 + $0x428] ss:$16 sps:$4 sm:$0xff]   ;;  %v4360_v16 = vld [vmem:[#allocation2 + $0x444] ss:$16 sps:$4 sm:$0xff]  }
  0xa7   : > { %2686 = vmatpush1.bf16.msra.mxu0 %v4266_v17  ;;  %2932 = vmatpush1.bf16.msra.mxu1 %v4269_v18  ;;  %v4363_v17 = vld [vmem:[#allocation2 + $0x44c] ss:$16 sps:$4 sm:$0xff]   ;;  %v4358_v18 = vld [vmem:[#allocation2 + $0x440] ss:$16 sps:$4 sm:$0xff]  }
  0xa8   : > { %2687 = vmatprep.subr.bf16.mxu0 %v4274_v19  ;;  %2933 = vmatprep.subr.bf16.mxu1 %v4277_v20  ;;  %v4361_v19 = vld [vmem:[#allocation2 + $0x448] ss:$16 sps:$4 sm:$0xff]   ;;  %v4366_v20 = vld [vmem:[#allocation2 + $0x464] ss:$16 sps:$4 sm:$0xff]  }
  0xab   : > { %2688 = vmatpush1.bf16.msra.mxu0 %v4272_v21  ;;  %2934 = vmatpush1.bf16.msra.mxu1 %v4275_v22  ;;  %v4369_v21 = vld [vmem:[#allocation2 + $0x46c] ss:$16 sps:$4 sm:$0xff]   ;;  %v4364_v22 = vld [vmem:[#allocation2 + $0x460] ss:$16 sps:$4 sm:$0xff]  }
  0xac   : > { %2689 = vmatprep.subr.bf16.mxu0 %v4280_v23  ;;  %2935 = vmatprep.subr.bf16.mxu1 %v4283_v24  ;;  %v4367_v23 = vld [vmem:[#allocation2 + $0x468] ss:$16 sps:$4 sm:$0xff]   ;;  %v4372_v24 = vld [vmem:[#allocation2 + $0x484] ss:$16 sps:$4 sm:$0xff]  }
  0xaf   : > { %2690 = vmatpush1.bf16.msra.mxu0 %v4278_v25  ;;  %2936 = vmatpush1.bf16.msra.mxu1 %v4281_v26  ;;  %v4375_v25 = vld [vmem:[#allocation2 + $0x48c] ss:$16 sps:$4 sm:$0xff]   ;;  %v4370_v26 = vld [vmem:[#allocation2 + $0x480] ss:$16 sps:$4 sm:$0xff]  }
  0xb0   : > { %2691 = vmatprep.subr.bf16.mxu0 %v4286_v27  ;;  %2937 = vmatprep.subr.bf16.mxu1 %v4289_v28  ;;  %v4373_v27 = vld [vmem:[#allocation2 + $0x488] ss:$16 sps:$4 sm:$0xff]   ;;  %v4378_v28 = vld [vmem:[#allocation2 + $0x4a4] ss:$16 sps:$4 sm:$0xff]  }
  0xb3   : > { %2692 = vmatpush1.bf16.msra.mxu0 %v4284_v31  ;;  %2938 = vmatpush1.bf16.msra.mxu1 %v4287_v32  ;;  %v4379_v31 = vld [vmem:[#allocation2 + $0x4a8] ss:$16 sps:$4 sm:$0xff]   ;;  %v4384_v32 = vld [vmem:[#allocation2 + $0x4c4] ss:$16 sps:$4 sm:$0xff]  }
  0xb4   : > { %2693 = vmatprep.subr.bf16.mxu0 %v4292_v33  ;;  %2939 = vmatprep.subr.bf16.mxu1 %v4295_v34  ;;  %v4387_v33 = vld [vmem:[#allocation2 + $0x4cc] ss:$16 sps:$4 sm:$0xff]   ;;  %v4382_v34 = vld [vmem:[#allocation2 + $0x4c0] ss:$16 sps:$4 sm:$0xff]  }
  0xb7   : > { %2694 = vmatpush1.bf16.msra.mxu0 %v4290_v35  ;;  %2940 = vmatpush1.bf16.msra.mxu1 %v4293_v36  ;;  %v4385_v35 = vld [vmem:[#allocation2 + $0x4c8] ss:$16 sps:$4 sm:$0xff]   ;;  %v4390_v36 = vld [vmem:[#allocation2 + $0x4e4] ss:$16 sps:$4 sm:$0xff]  }
  0xb8   : > { %2695 = vmatprep.subr.bf16.mxu0 %v4298_v37  ;;  %2941 = vmatprep.subr.bf16.mxu1 %v4301_v38  ;;  %v4393_v37 = vld [vmem:[#allocation2 + $0x4ec] ss:$16 sps:$4 sm:$0xff]   ;;  %v4388_v38 = vld [vmem:[#allocation2 + $0x4e0] ss:$16 sps:$4 sm:$0xff]  }
  0xbb   : > { %2696 = vmatpush1.bf16.msra.mxu0 %v4296_v39  ;;  %2942 = vmatpush1.bf16.msra.mxu1 %v4299_v40  ;;  %v4391_v39 = vld [vmem:[#allocation2 + $0x4e8] ss:$16 sps:$4 sm:$0xff]   ;;  %v4396_v40 = vld [vmem:[#allocation2 + $0x504] ss:$16 sps:$4 sm:$0xff]  }
  0xbc   : > { %2697 = vmatprep.subr.bf16.mxu0 %v4304_v41  ;;  %2943 = vmatprep.subr.bf16.mxu1 %v4307_v42  ;;  %v4399_v41 = vld [vmem:[#allocation2 + $0x50c] ss:$16 sps:$4 sm:$0xff]   ;;  %v4394_v42 = vld [vmem:[#allocation2 + $0x500] ss:$16 sps:$4 sm:$0xff]  }
  0xbf   : > { %2698 = vmatpush1.bf16.msra.mxu0 %v4302_v43  ;;  %2944 = vmatpush1.bf16.msra.mxu1 %v4305_v44  ;;  %v4397_v43 = vld [vmem:[#allocation2 + $0x508] ss:$16 sps:$4 sm:$0xff]   ;;  %v4402_v44 = vld [vmem:[#allocation2 + $0x524] ss:$16 sps:$4 sm:$0xff]  }
  0xc0   : > { %2699 = vmatprep.subr.bf16.mxu0 %v4310_v45  ;;  %2945 = vmatprep.subr.bf16.mxu1 %v4313_v46  ;;  %v4405_v45 = vld [vmem:[#allocation2 + $0x52c] ss:$16 sps:$4 sm:$0xff]   ;;  %v4400_v46 = vld [vmem:[#allocation2 + $0x520] ss:$16 sps:$4 sm:$0xff]  }
  0xc3   : > { %2700 = vmatpush1.bf16.msra.mxu0 %v4308_v47  ;;  %2946 = vmatpush1.bf16.msra.mxu1 %v4311_v48  ;;  %v4403_v47 = vld [vmem:[#allocation2 + $0x528] ss:$16 sps:$4 sm:$0xff]   ;;  %v4408_v48 = vld [vmem:[#allocation2 + $0x544] ss:$16 sps:$4 sm:$0xff]  }
  0xc4   : > { %2701 = vmatprep.subr.bf16.mxu0 %v4316_v49  ;;  %2947 = vmatprep.subr.bf16.mxu1 %v4319_v50  ;;  %v4411_v49 = vld [vmem:[#allocation2 + $0x54c] ss:$16 sps:$4 sm:$0xff]   ;;  %v4406_v50 = vld [vmem:[#allocation2 + $0x540] ss:$16 sps:$4 sm:$0xff]  }
  0xc7   : > { %2702 = vmatpush1.bf16.msra.mxu0 %v4314_v51  ;;  %2948 = vmatpush1.bf16.msra.mxu1 %v4317_v52  ;;  %v4409_v51 = vld [vmem:[#allocation2 + $0x548] ss:$16 sps:$4 sm:$0xff]   ;;  %v4414_v52 = vld [vmem:[#allocation2 + $0x564] ss:$16 sps:$4 sm:$0xff]  }
  0xc8   : > { %2703 = vmatprep.subr.bf16.mxu0 %v4322_v53  ;;  %2949 = vmatprep.subr.bf16.mxu1 %v4325_v54  ;;  %v4417_v53 = vld [vmem:[#allocation2 + $0x56c] ss:$16 sps:$4 sm:$0xff]   ;;  %v4412_v54 = vld [vmem:[#allocation2 + $0x560] ss:$16 sps:$4 sm:$0xff]  }
  0xcb   : > { %2704 = vmatpush1.bf16.msra.mxu0 %v4320_v55  ;;  %2950 = vmatpush1.bf16.msra.mxu1 %v4323_v56  ;;  %v4415_v55 = vld [vmem:[#allocation2 + $0x568] ss:$16 sps:$4 sm:$0xff]   ;;  %v4420_v56 = vld [vmem:[#allocation2 + $0x584] ss:$16 sps:$4 sm:$0xff]  }
  0xcc   : > { %2705 = vmatprep.subr.bf16.mxu0 %v4328_v57  ;;  %2951 = vmatprep.subr.bf16.mxu1 %v4331_v58  ;;  %v4423_v57 = vld [vmem:[#allocation2 + $0x58c] ss:$16 sps:$4 sm:$0xff]   ;;  %v4418_v58 = vld [vmem:[#allocation2 + $0x580] ss:$16 sps:$4 sm:$0xff]  }
  0xcf   : > { %2706 = vmatpush1.bf16.msra.mxu0 %v4326_v59  ;;  %2952 = vmatpush1.bf16.msra.mxu1 %v4329_v60  ;;  %v4421_v59 = vld [vmem:[#allocation2 + $0x588] ss:$16 sps:$4 sm:$0xff]   ;;  %v4426_v60 = vld [vmem:[#allocation2 + $0x5a4] ss:$16 sps:$4 sm:$0xff]  }
  0xd0   : > { %2707 = vmatprep.subr.bf16.mxu0 %v4334_v61  ;;  %2953 = vmatprep.subr.bf16.mxu1 %v4337_v62  ;;  %v4429_v61 = vld [vmem:[#allocation2 + $0x5ac] ss:$16 sps:$4 sm:$0xff]   ;;  %v4424_v62 = vld [vmem:[#allocation2 + $0x5a0] ss:$16 sps:$4 sm:$0xff]  }
  0xd3   : > { %2708 = vmatpush1.bf16.msra.mxu0 %v4332_v63  ;;  %2954 = vmatpush1.bf16.msra.mxu1 %v4335_v0  ;;  %v4427_v63 = vld [vmem:[#allocation2 + $0x5a8] ss:$16 sps:$4 sm:$0xff]   ;;  %v4432_v0 = vld [vmem:[#allocation2 + $0x5c4] ss:$16 sps:$4 sm:$0xff]  }
  0xd4   : > { %2709 = vmatprep.subr.bf16.mxu0 %v4340_v1  ;;  %2955 = vmatprep.subr.bf16.mxu1 %v4343_v2  ;;  %v4435_v1 = vld [vmem:[#allocation2 + $0x5cc] ss:$16 sps:$4 sm:$0xff]   ;;  %v4430_v2 = vld [vmem:[#allocation2 + $0x5c0] ss:$16 sps:$4 sm:$0xff]  }
  0xd7   : > { %2710 = vmatpush1.bf16.msra.mxu0 %v4338_v3  ;;  %2956 = vmatpush1.bf16.msra.mxu1 %v4341_v4  ;;  %v4433_v3 = vld [vmem:[#allocation2 + $0x5c8] ss:$16 sps:$4 sm:$0xff]   ;;  %v4438_v4 = vld [vmem:[#allocation2 + $0x5e4] ss:$16 sps:$4 sm:$0xff]  }
  0xd8   : > { %2720 = vmatprep.subr.bf16.mxu0 %v4348_v5  ;;  %2966 = vmatprep.subr.bf16.mxu1 %v4351_v6  ;;  %v4441_v5 = vld [vmem:[#allocation2 + $0x5ec] ss:$16 sps:$4 sm:$0xff]   ;;  %v4436_v6 = vld [vmem:[#allocation2 + $0x5e0] ss:$16 sps:$4 sm:$0xff]  }
  0xda   : > { %2712 = vmatmul.mubr.bf16.vlgmr.msra.gmra.mrb[0].mxu0 %v3591_v7  ;;  %2958 = vmatmul.mubr.bf16.vlgmr.msra.gmra.mrb[0].mxu1 %v3591_v7  ;;  %v4439_v7 = vld [vmem:[#allocation2 + $0x5e8] ss:$16 sps:$4 sm:$0xff]  }
  0xdb   : > { %2721 = vmatpush1.bf16.msra.mxu0 %v4346_v8  ;;  %2967 = vmatpush1.bf16.msra.mxu1 %v4349_v9  ;;  %v4446_v8 = vld [vmem:[#allocation2 + $0x604] ss:$16 sps:$4 sm:$0xff]   ;;  %v4449_v9 = vld [vmem:[#allocation2 + $0x60c] ss:$16 sps:$4 sm:$0xff]  }
  0xdc   : > { %2722 = vmatprep.subr.bf16.mxu0 %v4354_v10  ;;  %2968 = vmatprep.subr.bf16.mxu1 %v4357_v12  ;;  %v4444_v10 = vld [vmem:[#allocation2 + $0x600] ss:$16 sps:$4 sm:$0xff]   ;;  %v3593_v12 = vcombine.low %v5036_v11, %v5036_v11  ;;  %v4461_v11 = vld [vmem:[#allocation2 + $0x64c] ss:$16 sps:$4 sm:$0xff]  }
  0xdd   : > { %2752 = vmatprep.mubr.bf16.mxu0 %v3594_v13  ;;  %2998 = vmatprep.mubr.bf16.mxu1 %v3594_v13  ;;  %v4447_v13 = vld [vmem:[#allocation2 + $0x608] ss:$16 sps:$4 sm:$0xff]  }
  0xdf   : > { %2723 = vmatpush1.bf16.msra.mxu0 %v4352_v14  ;;  %2969 = vmatpush1.bf16.msra.mxu1 %v4355_v15  ;;  %v5043_v14 = vld [vmem:[%s5025_s8 + $0x18] sm:$0xff]  ;;  %v4452_v15 = vld [vmem:[#allocation2 + $0x624] ss:$16 sps:$4 sm:$0xff]  }
  0xe0   : > { %2724 = vmatprep.subr.bf16.mxu0 %v4360_v16  ;;  %2970 = vmatprep.subr.bf16.mxu1 %v4363_v17  ;;  %v4455_v16 = vld [vmem:[#allocation2 + $0x62c] ss:$16 sps:$4 sm:$0xff]   ;;  %v3596_v17 = vcombine.high %v5043_v14, %v5043_v14 }
  0xe3   : > { %2725 = vmatpush1.bf16.msra.mxu0 %v4358_v18  ;;  %2971 = vmatpush1.bf16.msra.mxu1 %v4361_v19  ;;  %v4450_v18 = vld [vmem:[#allocation2 + $0x620] ss:$16 sps:$4 sm:$0xff]   ;;  %v4453_v19 = vld [vmem:[#allocation2 + $0x628] ss:$16 sps:$4 sm:$0xff]  }
  0xe4   : > { %2726 = vmatprep.subr.bf16.mxu0 %v4366_v20  ;;  %2972 = vmatprep.subr.bf16.mxu1 %v4369_v21  ;;  %v4458_v20 = vld [vmem:[#allocation2 + $0x644] ss:$16 sps:$4 sm:$0xff]   ;;  %v4456_v21 = vld [vmem:[#allocation2 + $0x640] ss:$16 sps:$4 sm:$0xff]  }
  0xe7   : > { %2727 = vmatpush1.bf16.msra.mxu0 %v4364_v22  ;;  %2973 = vmatpush1.bf16.msra.mxu1 %v4367_v23  ;;  %v4459_v22 = vld [vmem:[#allocation2 + $0x648] ss:$16 sps:$4 sm:$0xff]   ;;  %v4464_v23 = vld [vmem:[#allocation2 + $0x664] ss:$16 sps:$4 sm:$0xff]  }
  0xe8   : > { %2728 = vmatprep.subr.bf16.mxu0 %v4372_v24  ;;  %2974 = vmatprep.subr.bf16.mxu1 %v4375_v25  ;;  %v4467_v24 = vld [vmem:[#allocation2 + $0x66c] ss:$16 sps:$4 sm:$0xff]   ;;  %v4462_v25 = vld [vmem:[#allocation2 + $0x660] ss:$16 sps:$4 sm:$0xff]  }
  0xeb   : > { %2729 = vmatpush1.bf16.msra.mxu0 %v4370_v26  ;;  %2975 = vmatpush1.bf16.msra.mxu1 %v4373_v27  ;;  %v4465_v26 = vld [vmem:[#allocation2 + $0x668] ss:$16 sps:$4 sm:$0xff]   ;;  %v4470_v27 = vld [vmem:[#allocation2 + $0x684] ss:$16 sps:$4 sm:$0xff]  }
  0xec   : > { %2730 = vmatprep.subr.bf16.mxu0 %v4378_v28  ;;  %2976 = vmatprep.subr.bf16.mxu1 %v4381_v29  ;;  %v4473_v28 = vld [vmem:[#allocation2 + $0x68c] ss:$16 sps:$4 sm:$0xff]   ;;  %v4468_v29 = vld [vmem:[#allocation2 + $0x680] ss:$16 sps:$4 sm:$0xff]  }
  0xef   : > { %2731 = vmatpush1.bf16.msra.mxu0 %v4376_v30  ;;  %2977 = vmatpush1.bf16.msra.mxu1 %v4379_v31  ;;  %v4471_v30 = vld [vmem:[#allocation2 + $0x688] ss:$16 sps:$4 sm:$0xff]   ;;  %v4476_v31 = vld [vmem:[#allocation2 + $0x6a4] ss:$16 sps:$4 sm:$0xff]  }
  0xf0   : > { %2732 = vmatprep.subr.bf16.mxu0 %v4384_v32  ;;  %2978 = vmatprep.subr.bf16.mxu1 %v4387_v33  ;;  %v4479_v32 = vld [vmem:[#allocation2 + $0x6ac] ss:$16 sps:$4 sm:$0xff]   ;;  %v4474_v33 = vld [vmem:[#allocation2 + $0x6a0] ss:$16 sps:$4 sm:$0xff]  }
  0xf3   : > { %2733 = vmatpush1.bf16.msra.mxu0 %v4382_v34  ;;  %2979 = vmatpush1.bf16.msra.mxu1 %v4385_v35  ;;  %v4477_v34 = vld [vmem:[#allocation2 + $0x6a8] ss:$16 sps:$4 sm:$0xff]   ;;  %v4482_v35 = vld [vmem:[#allocation2 + $0x6c4] ss:$16 sps:$4 sm:$0xff]  }
  0xf4   : > { %2734 = vmatprep.subr.bf16.mxu0 %v4390_v36  ;;  %2980 = vmatprep.subr.bf16.mxu1 %v4393_v37  ;;  %v4485_v36 = vld [vmem:[#allocation2 + $0x6cc] ss:$16 sps:$4 sm:$0xff]   ;;  %v4480_v37 = vld [vmem:[#allocation2 + $0x6c0] ss:$16 sps:$4 sm:$0xff]  }
  0xf7   : > { %2735 = vmatpush1.bf16.msra.mxu0 %v4388_v38  ;;  %2981 = vmatpush1.bf16.msra.mxu1 %v4391_v39  ;;  %v4483_v38 = vld [vmem:[#allocation2 + $0x6c8] ss:$16 sps:$4 sm:$0xff]   ;;  %v4488_v39 = vld [vmem:[#allocation2 + $0x6e4] ss:$16 sps:$4 sm:$0xff]  }
  0xf8   : > { %2736 = vmatprep.subr.bf16.mxu0 %v4396_v40  ;;  %2982 = vmatprep.subr.bf16.mxu1 %v4399_v41  ;;  %v4491_v40 = vld [vmem:[#allocation2 + $0x6ec] ss:$16 sps:$4 sm:$0xff]   ;;  %v4486_v41 = vld [vmem:[#allocation2 + $0x6e0] ss:$16 sps:$4 sm:$0xff]  }
  0xfb   : > { %2737 = vmatpush1.bf16.msra.mxu0 %v4394_v42  ;;  %2983 = vmatpush1.bf16.msra.mxu1 %v4397_v43  ;;  %v4489_v42 = vld [vmem:[#allocation2 + $0x6e8] ss:$16 sps:$4 sm:$0xff]   ;;  %v4494_v43 = vld [vmem:[#allocation2 + $0x704] ss:$16 sps:$4 sm:$0xff]  }
  0xfc   : > { %2738 = vmatprep.subr.bf16.mxu0 %v4402_v44  ;;  %2984 = vmatprep.subr.bf16.mxu1 %v4405_v45  ;;  %v4497_v44 = vld [vmem:[#allocation2 + $0x70c] ss:$16 sps:$4 sm:$0xff]   ;;  %v4492_v45 = vld [vmem:[#allocation2 + $0x700] ss:$16 sps:$4 sm:$0xff]  }
  0xff   : > { %2739 = vmatpush1.bf16.msra.mxu0 %v4400_v46  ;;  %2985 = vmatpush1.bf16.msra.mxu1 %v4403_v47  ;;  %v4495_v46 = vld [vmem:[#allocation2 + $0x708] ss:$16 sps:$4 sm:$0xff]   ;;  %v4500_v47 = vld [vmem:[#allocation2 + $0x724] ss:$16 sps:$4 sm:$0xff]  }
 0x100   : > { %2740 = vmatprep.subr.bf16.mxu0 %v4408_v48  ;;  %2986 = vmatprep.subr.bf16.mxu1 %v4411_v49  ;;  %v4503_v48 = vld [vmem:[#allocation2 + $0x72c] ss:$16 sps:$4 sm:$0xff]   ;;  %v4498_v49 = vld [vmem:[#allocation2 + $0x720] ss:$16 sps:$4 sm:$0xff]  }
 0x103   : > { %2741 = vmatpush1.bf16.msra.mxu0 %v4406_v50  ;;  %2987 = vmatpush1.bf16.msra.mxu1 %v4409_v51  ;;  %v4501_v50 = vld [vmem:[#allocation2 + $0x728] ss:$16 sps:$4 sm:$0xff]   ;;  %v4506_v51 = vld [vmem:[#allocation2 + $0x744] ss:$16 sps:$4 sm:$0xff]  }
 0x104   : > { %2742 = vmatprep.subr.bf16.mxu0 %v4414_v52  ;;  %2988 = vmatprep.subr.bf16.mxu1 %v4417_v53  ;;  %v4509_v52 = vld [vmem:[#allocation2 + $0x74c] ss:$16 sps:$4 sm:$0xff]   ;;  %v4504_v53 = vld [vmem:[#allocation2 + $0x740] ss:$16 sps:$4 sm:$0xff]  }
 0x107   : > { %2743 = vmatpush1.bf16.msra.mxu0 %v4412_v54  ;;  %2989 = vmatpush1.bf16.msra.mxu1 %v4415_v55  ;;  %v4507_v54 = vld [vmem:[#allocation2 + $0x748] ss:$16 sps:$4 sm:$0xff]   ;;  %v4512_v55 = vld [vmem:[#allocation2 + $0x764] ss:$16 sps:$4 sm:$0xff]  }
 0x108   : > { %2744 = vmatprep.subr.bf16.mxu0 %v4420_v56  ;;  %2990 = vmatprep.subr.bf16.mxu1 %v4423_v57  ;;  %v4515_v56 = vld [vmem:[#allocation2 + $0x76c] ss:$16 sps:$4 sm:$0xff]   ;;  %v4510_v57 = vld [vmem:[#allocation2 + $0x760] ss:$16 sps:$4 sm:$0xff]  }
 0x10b   : > { %2745 = vmatpush1.bf16.msra.mxu0 %v4418_v58  ;;  %2991 = vmatpush1.bf16.msra.mxu1 %v4421_v59  ;;  %v4513_v58 = vld [vmem:[#allocation2 + $0x768] ss:$16 sps:$4 sm:$0xff]   ;;  %v4518_v59 = vld [vmem:[#allocation2 + $0x784] ss:$16 sps:$4 sm:$0xff]  }
 0x10c   : > { %2746 = vmatprep.subr.bf16.mxu0 %v4426_v60  ;;  %2992 = vmatprep.subr.bf16.mxu1 %v4429_v61  ;;  %v4521_v60 = vld [vmem:[#allocation2 + $0x78c] ss:$16 sps:$4 sm:$0xff]   ;;  %v4516_v61 = vld [vmem:[#allocation2 + $0x780] ss:$16 sps:$4 sm:$0xff]  }
 0x10f   : > { %2747 = vmatpush1.bf16.msra.mxu0 %v4424_v62  ;;  %2993 = vmatpush1.bf16.msra.mxu1 %v4427_v63  ;;  %v4519_v62 = vld [vmem:[#allocation2 + $0x788] ss:$16 sps:$4 sm:$0xff]   ;;  %v4524_v63 = vld [vmem:[#allocation2 + $0x7a4] ss:$16 sps:$4 sm:$0xff]  }
 0x110   : > { %2748 = vmatprep.subr.bf16.mxu0 %v4432_v0  ;;  %2994 = vmatprep.subr.bf16.mxu1 %v4435_v1  ;;  %v4527_v0 = vld [vmem:[#allocation2 + $0x7ac] ss:$16 sps:$4 sm:$0xff]   ;;  %v4522_v1 = vld [vmem:[#allocation2 + $0x7a0] ss:$16 sps:$4 sm:$0xff]  }
 0x113   : > { %2749 = vmatpush1.bf16.msra.mxu0 %v4430_v2  ;;  %2995 = vmatpush1.bf16.msra.mxu1 %v4433_v3  ;;  %v4525_v2 = vld [vmem:[#allocation2 + $0x7a8] ss:$16 sps:$4 sm:$0xff]   ;;  %v4530_v3 = vld [vmem:[#allocation2 + $0x7c4] ss:$16 sps:$4 sm:$0xff]  }
 0x114   : > { %2750 = vmatprep.subr.bf16.mxu0 %v4438_v4  ;;  %2996 = vmatprep.subr.bf16.mxu1 %v4441_v5  ;;  %v4533_v4 = vld [vmem:[#allocation2 + $0x7cc] ss:$16 sps:$4 sm:$0xff]   ;;  %v4528_v5 = vld [vmem:[#allocation2 + $0x7c0] ss:$16 sps:$4 sm:$0xff]  }
 0x117   : > { %2751 = vmatpush1.bf16.msra.mxu0 %v4436_v6  ;;  %2997 = vmatpush1.bf16.msra.mxu1 %v4439_v7  ;;  %v4531_v6 = vld [vmem:[#allocation2 + $0x7c8] ss:$16 sps:$4 sm:$0xff]   ;;  %v4536_v7 = vld [vmem:[#allocation2 + $0x7e4] ss:$16 sps:$4 sm:$0xff]  }
 0x118   : > { %2761 = vmatprep.subr.bf16.mxu0 %v4446_v8  ;;  %3007 = vmatprep.subr.bf16.mxu1 %v4449_v9  ;;  %v4539_v8 = vld [vmem:[#allocation2 + $0x7ec] ss:$16 sps:$4 sm:$0xff]   ;;  %v4534_v9 = vld [vmem:[#allocation2 + $0x7e0] ss:$16 sps:$4 sm:$0xff]  }
 0x11a   : > { %2753 = vmatmul.mubr.bf16.vlgmr.msra.gmra.mrb[0].mxu0 %v3593_v12  ;;  %2999 = vmatmul.mubr.bf16.vlgmr.msra.gmra.mrb[0].mxu1 %v3593_v12  ;;  %v4544_v12 = vld [vmem:[#allocation2 + $0x804] ss:$16 sps:$4 sm:$0xff]  }
 0x11b   : > { %2762 = vmatpush1.bf16.msra.mxu0 %v4444_v10  ;;  %3008 = vmatpush1.bf16.msra.mxu1 %v4447_v13  ;;  %v4537_v10 = vld [vmem:[#allocation2 + $0x7e8] ss:$16 sps:$4 sm:$0xff]   ;;  %v4547_v13 = vld [vmem:[#allocation2 + $0x80c] ss:$16 sps:$4 sm:$0xff]  }
 0x11c   : > { %2763 = vmatprep.subr.bf16.mxu0 %v4452_v15  ;;  %3009 = vmatprep.subr.bf16.mxu1 %v4455_v16  ;;  %v4542_v15 = vld [vmem:[#allocation2 + $0x800] ss:$16 sps:$4 sm:$0xff]   ;;  %v3595_v16 = vcombine.low %v5043_v14, %v5043_v14  ;;  %v4559_v14 = vld [vmem:[#allocation2 + $0x84c] ss:$16 sps:$4 sm:$0xff]  }
 0x11d   : > { %2793 = vmatprep.mubr.bf16.mxu0 %v3596_v17  ;;  %3039 = vmatprep.mubr.bf16.mxu1 %v3596_v17  ;;  %v5050_v17 = vld [vmem:[%s5025_s8 + $0x20] sm:$0xff] }
 0x11f   : > { %2764 = vmatpush1.bf16.msra.mxu0 %v4450_v18  ;;  %3010 = vmatpush1.bf16.msra.mxu1 %v4453_v19  ;;  %v4545_v18 = vld [vmem:[#allocation2 + $0x808] ss:$16 sps:$4 sm:$0xff]   ;;  %v4550_v19 = vld [vmem:[#allocation2 + $0x824] ss:$16 sps:$4 sm:$0xff]  }
 0x120   : > { %2765 = vmatprep.subr.bf16.mxu0 %v4458_v20  ;;  %3011 = vmatprep.subr.bf16.mxu1 %v4461_v11  ;;  %v4553_v20 = vld [vmem:[#allocation2 + $0x82c] ss:$16 sps:$4 sm:$0xff]   ;;  %v3598_v11 = vcombine.high %v5050_v17, %v5050_v17 }
 0x123   : > { %2766 = vmatpush1.bf16.msra.mxu0 %v4456_v21  ;;  %3012 = vmatpush1.bf16.msra.mxu1 %v4459_v22  ;;  %v4548_v21 = vld [vmem:[#allocation2 + $0x820] ss:$16 sps:$4 sm:$0xff]   ;;  %v4551_v22 = vld [vmem:[#allocation2 + $0x828] ss:$16 sps:$4 sm:$0xff]  }
 0x124   : > { %2767 = vmatprep.subr.bf16.mxu0 %v4464_v23  ;;  %3013 = vmatprep.subr.bf16.mxu1 %v4467_v24  ;;  %v4556_v23 = vld [vmem:[#allocation2 + $0x844] ss:$16 sps:$4 sm:$0xff]   ;;  %v4554_v24 = vld [vmem:[#allocation2 + $0x840] ss:$16 sps:$4 sm:$0xff]  }
 0x127   : > { %2768 = vmatpush1.bf16.msra.mxu0 %v4462_v25  ;;  %3014 = vmatpush1.bf16.msra.mxu1 %v4465_v26  ;;  %v4557_v25 = vld [vmem:[#allocation2 + $0x848] ss:$16 sps:$4 sm:$0xff]   ;;  %v4562_v26 = vld [vmem:[#allocation2 + $0x864] ss:$16 sps:$4 sm:$0xff]  }
 0x128   : > { %2769 = vmatprep.subr.bf16.mxu0 %v4470_v27  ;;  %3015 = vmatprep.subr.bf16.mxu1 %v4473_v28  ;;  %v4565_v27 = vld [vmem:[#allocation2 + $0x86c] ss:$16 sps:$4 sm:$0xff]   ;;  %v4560_v28 = vld [vmem:[#allocation2 + $0x860] ss:$16 sps:$4 sm:$0xff]  }
 0x12b   : > { %2770 = vmatpush1.bf16.msra.mxu0 %v4468_v29  ;;  %3016 = vmatpush1.bf16.msra.mxu1 %v4471_v30  ;;  %v4563_v29 = vld [vmem:[#allocation2 + $0x868] ss:$16 sps:$4 sm:$0xff]   ;;  %v4568_v30 = vld [vmem:[#allocation2 + $0x884] ss:$16 sps:$4 sm:$0xff]  }
 0x12c   : > { %2771 = vmatprep.subr.bf16.mxu0 %v4476_v31  ;;  %3017 = vmatprep.subr.bf16.mxu1 %v4479_v32  ;;  %v4571_v31 = vld [vmem:[#allocation2 + $0x88c] ss:$16 sps:$4 sm:$0xff]   ;;  %v4566_v32 = vld [vmem:[#allocation2 + $0x880] ss:$16 sps:$4 sm:$0xff]  }
 0x12f   : > { %2772 = vmatpush1.bf16.msra.mxu0 %v4474_v33  ;;  %3018 = vmatpush1.bf16.msra.mxu1 %v4477_v34  ;;  %v4569_v33 = vld [vmem:[#allocation2 + $0x888] ss:$16 sps:$4 sm:$0xff]   ;;  %v4574_v34 = vld [vmem:[#allocation2 + $0x8a4] ss:$16 sps:$4 sm:$0xff]  }
 0x130   : > { %2773 = vmatprep.subr.bf16.mxu0 %v4482_v35  ;;  %3019 = vmatprep.subr.bf16.mxu1 %v4485_v36  ;;  %v4577_v35 = vld [vmem:[#allocation2 + $0x8ac] ss:$16 sps:$4 sm:$0xff]   ;;  %v4572_v36 = vld [vmem:[#allocation2 + $0x8a0] ss:$16 sps:$4 sm:$0xff]  }
 0x133   : > { %2774 = vmatpush1.bf16.msra.mxu0 %v4480_v37  ;;  %3020 = vmatpush1.bf16.msra.mxu1 %v4483_v38  ;;  %v4575_v37 = vld [vmem:[#allocation2 + $0x8a8] ss:$16 sps:$4 sm:$0xff]   ;;  %v4580_v38 = vld [vmem:[#allocation2 + $0x8c4] ss:$16 sps:$4 sm:$0xff]  }
 0x134   : > { %2775 = vmatprep.subr.bf16.mxu0 %v4488_v39  ;;  %3021 = vmatprep.subr.bf16.mxu1 %v4491_v40  ;;  %v4583_v39 = vld [vmem:[#allocation2 + $0x8cc] ss:$16 sps:$4 sm:$0xff]   ;;  %v4578_v40 = vld [vmem:[#allocation2 + $0x8c0] ss:$16 sps:$4 sm:$0xff]  }
 0x137   : > { %2776 = vmatpush1.bf16.msra.mxu0 %v4486_v41  ;;  %3022 = vmatpush1.bf16.msra.mxu1 %v4489_v42  ;;  %v4581_v41 = vld [vmem:[#allocation2 + $0x8c8] ss:$16 sps:$4 sm:$0xff]   ;;  %v4586_v42 = vld [vmem:[#allocation2 + $0x8e4] ss:$16 sps:$4 sm:$0xff]  }
 0x138   : > { %2777 = vmatprep.subr.bf16.mxu0 %v4494_v43  ;;  %3023 = vmatprep.subr.bf16.mxu1 %v4497_v44  ;;  %v4589_v43 = vld [vmem:[#allocation2 + $0x8ec] ss:$16 sps:$4 sm:$0xff]   ;;  %v4584_v44 = vld [vmem:[#allocation2 + $0x8e0] ss:$16 sps:$4 sm:$0xff]  }
 0x13b   : > { %2778 = vmatpush1.bf16.msra.mxu0 %v4492_v45  ;;  %3024 = vmatpush1.bf16.msra.mxu1 %v4495_v46  ;;  %v4587_v45 = vld [vmem:[#allocation2 + $0x8e8] ss:$16 sps:$4 sm:$0xff]   ;;  %v4592_v46 = vld [vmem:[#allocation2 + $0x904] ss:$16 sps:$4 sm:$0xff]  }
 0x13c   : > { %2779 = vmatprep.subr.bf16.mxu0 %v4500_v47  ;;  %3025 = vmatprep.subr.bf16.mxu1 %v4503_v48  ;;  %v4595_v47 = vld [vmem:[#allocation2 + $0x90c] ss:$16 sps:$4 sm:$0xff]   ;;  %v4590_v48 = vld [vmem:[#allocation2 + $0x900] ss:$16 sps:$4 sm:$0xff]  }
 0x13f   : > { %2780 = vmatpush1.bf16.msra.mxu0 %v4498_v49  ;;  %3026 = vmatpush1.bf16.msra.mxu1 %v4501_v50  ;;  %v4593_v49 = vld [vmem:[#allocation2 + $0x908] ss:$16 sps:$4 sm:$0xff]   ;;  %v4598_v50 = vld [vmem:[#allocation2 + $0x924] ss:$16 sps:$4 sm:$0xff]  }
 0x140   : > { %2781 = vmatprep.subr.bf16.mxu0 %v4506_v51  ;;  %3027 = vmatprep.subr.bf16.mxu1 %v4509_v52  ;;  %v4601_v51 = vld [vmem:[#allocation2 + $0x92c] ss:$16 sps:$4 sm:$0xff]   ;;  %v4596_v52 = vld [vmem:[#allocation2 + $0x920] ss:$16 sps:$4 sm:$0xff]  }
 0x143   : > { %2782 = vmatpush1.bf16.msra.mxu0 %v4504_v53  ;;  %3028 = vmatpush1.bf16.msra.mxu1 %v4507_v54  ;;  %v4599_v53 = vld [vmem:[#allocation2 + $0x928] ss:$16 sps:$4 sm:$0xff]   ;;  %v4604_v54 = vld [vmem:[#allocation2 + $0x944] ss:$16 sps:$4 sm:$0xff]  }
 0x144   : > { %2783 = vmatprep.subr.bf16.mxu0 %v4512_v55  ;;  %3029 = vmatprep.subr.bf16.mxu1 %v4515_v56  ;;  %v4607_v55 = vld [vmem:[#allocation2 + $0x94c] ss:$16 sps:$4 sm:$0xff]   ;;  %v4602_v56 = vld [vmem:[#allocation2 + $0x940] ss:$16 sps:$4 sm:$0xff]  }
 0x147   : > { %2784 = vmatpush1.bf16.msra.mxu0 %v4510_v57  ;;  %3030 = vmatpush1.bf16.msra.mxu1 %v4513_v58  ;;  %v4605_v57 = vld [vmem:[#allocation2 + $0x948] ss:$16 sps:$4 sm:$0xff]   ;;  %v4610_v58 = vld [vmem:[#allocation2 + $0x964] ss:$16 sps:$4 sm:$0xff]  }
 0x148   : > { %2785 = vmatprep.subr.bf16.mxu0 %v4518_v59  ;;  %3031 = vmatprep.subr.bf16.mxu1 %v4521_v60  ;;  %v4613_v59 = vld [vmem:[#allocation2 + $0x96c] ss:$16 sps:$4 sm:$0xff]   ;;  %v4608_v60 = vld [vmem:[#allocation2 + $0x960] ss:$16 sps:$4 sm:$0xff]  }
 0x14b   : > { %2786 = vmatpush1.bf16.msra.mxu0 %v4516_v61  ;;  %3032 = vmatpush1.bf16.msra.mxu1 %v4519_v62  ;;  %v4611_v61 = vld [vmem:[#allocation2 + $0x968] ss:$16 sps:$4 sm:$0xff]   ;;  %v4616_v62 = vld [vmem:[#allocation2 + $0x984] ss:$16 sps:$4 sm:$0xff]  }
 0x14c   : > { %2787 = vmatprep.subr.bf16.mxu0 %v4524_v63  ;;  %3033 = vmatprep.subr.bf16.mxu1 %v4527_v0  ;;  %v4619_v63 = vld [vmem:[#allocation2 + $0x98c] ss:$16 sps:$4 sm:$0xff]   ;;  %v4614_v0 = vld [vmem:[#allocation2 + $0x980] ss:$16 sps:$4 sm:$0xff]  }
 0x14f   : > { %2788 = vmatpush1.bf16.msra.mxu0 %v4522_v1  ;;  %3034 = vmatpush1.bf16.msra.mxu1 %v4525_v2  ;;  %v4617_v1 = vld [vmem:[#allocation2 + $0x988] ss:$16 sps:$4 sm:$0xff]   ;;  %v4622_v2 = vld [vmem:[#allocation2 + $0x9a4] ss:$16 sps:$4 sm:$0xff]  }
 0x150   : > { %2789 = vmatprep.subr.bf16.mxu0 %v4530_v3  ;;  %3035 = vmatprep.subr.bf16.mxu1 %v4533_v4  ;;  %v4625_v3 = vld [vmem:[#allocation2 + $0x9ac] ss:$16 sps:$4 sm:$0xff]   ;;  %v4620_v4 = vld [vmem:[#allocation2 + $0x9a0] ss:$16 sps:$4 sm:$0xff]  }
 0x153   : > { %2790 = vmatpush1.bf16.msra.mxu0 %v4528_v5  ;;  %3036 = vmatpush1.bf16.msra.mxu1 %v4531_v6  ;;  %v4623_v5 = vld [vmem:[#allocation2 + $0x9a8] ss:$16 sps:$4 sm:$0xff]   ;;  %v4628_v6 = vld [vmem:[#allocation2 + $0x9c4] ss:$16 sps:$4 sm:$0xff]  }
 0x154   : > { %2791 = vmatprep.subr.bf16.mxu0 %v4536_v7  ;;  %3037 = vmatprep.subr.bf16.mxu1 %v4539_v8  ;;  %v4631_v7 = vld [vmem:[#allocation2 + $0x9cc] ss:$16 sps:$4 sm:$0xff]   ;;  %v4626_v8 = vld [vmem:[#allocation2 + $0x9c0] ss:$16 sps:$4 sm:$0xff]  }
 0x157   : > { %2792 = vmatpush1.bf16.msra.mxu0 %v4534_v9  ;;  %3038 = vmatpush1.bf16.msra.mxu1 %v4537_v10  ;;  %v4629_v9 = vld [vmem:[#allocation2 + $0x9c8] ss:$16 sps:$4 sm:$0xff]   ;;  %v4634_v10 = vld [vmem:[#allocation2 + $0x9e4] ss:$16 sps:$4 sm:$0xff]  }
 0x158   : > { %2802 = vmatprep.subr.bf16.mxu0 %v4544_v12  ;;  %3048 = vmatprep.subr.bf16.mxu1 %v4547_v13  ;;  %v4637_v12 = vld [vmem:[#allocation2 + $0x9ec] ss:$16 sps:$4 sm:$0xff]   ;;  %v4632_v13 = vld [vmem:[#allocation2 + $0x9e0] ss:$16 sps:$4 sm:$0xff]  }
 0x15a   : > { %2794 = vmatmul.mubr.bf16.vlgmr.msra.gmra.mrb[0].mxu0 %v3595_v16  ;;  %3040 = vmatmul.mubr.bf16.vlgmr.msra.gmra.mrb[0].mxu1 %v3595_v16  ;;  %v4642_v16 = vld [vmem:[#allocation2 + $0xa04] ss:$16 sps:$4 sm:$0xff]  }
 0x15b   : > { %2803 = vmatpush1.bf16.msra.mxu0 %v4542_v15  ;;  %3049 = vmatpush1.bf16.msra.mxu1 %v4545_v18  ;;  %v4635_v15 = vld [vmem:[#allocation2 + $0x9e8] ss:$16 sps:$4 sm:$0xff]   ;;  %v4645_v18 = vld [vmem:[#allocation2 + $0xa0c] ss:$16 sps:$4 sm:$0xff]  }
 0x15c   : > { %2804 = vmatprep.subr.bf16.mxu0 %v4550_v19  ;;  %3050 = vmatprep.subr.bf16.mxu1 %v4553_v20  ;;  %v3597_v19 = vcombine.low %v5050_v17, %v5050_v17  ;;  %v5057_v20 = vld [vmem:[%s5025_s8 + $0x28] sm:$0xff]  ;;  %v4654_v17 = vld [vmem:[#allocation2 + $0xa44] ss:$16 sps:$4 sm:$0xff]  }
 0x15d   : > { %2834 = vmatprep.mubr.bf16.mxu0 %v3598_v11  ;;  %3080 = vmatprep.mubr.bf16.mxu1 %v3598_v11  ;;  %v4640_v11 = vld [vmem:[#allocation2 + $0xa00] ss:$16 sps:$4 sm:$0xff]  }
 0x15f   : > { %2805 = vmatpush1.bf16.msra.mxu0 %v4548_v21  ;;  %3051 = vmatpush1.bf16.msra.mxu1 %v4551_v22  ;;  %v4643_v21 = vld [vmem:[#allocation2 + $0xa08] ss:$16 sps:$4 sm:$0xff]   ;;  %v4648_v22 = vld [vmem:[#allocation2 + $0xa24] ss:$16 sps:$4 sm:$0xff]  }
 0x160   : > { %2806 = vmatprep.subr.bf16.mxu0 %v4556_v23  ;;  %3052 = vmatprep.subr.bf16.mxu1 %v4559_v14  ;;  %v4651_v23 = vld [vmem:[#allocation2 + $0xa2c] ss:$16 sps:$4 sm:$0xff]   ;;  %v3600_v14 = vcombine.high %v5057_v20, %v5057_v20 }
 0x163   : > { %2807 = vmatpush1.bf16.msra.mxu0 %v4554_v24  ;;  %3053 = vmatpush1.bf16.msra.mxu1 %v4557_v25  ;;  %v4646_v24 = vld [vmem:[#allocation2 + $0xa20] ss:$16 sps:$4 sm:$0xff]   ;;  %v4649_v25 = vld [vmem:[#allocation2 + $0xa28] ss:$16 sps:$4 sm:$0xff]  }
 0x164   : > { %2808 = vmatprep.subr.bf16.mxu0 %v4562_v26  ;;  %3054 = vmatprep.subr.bf16.mxu1 %v4565_v27  ;;  %v4657_v26 = vld [vmem:[#allocation2 + $0xa4c] ss:$16 sps:$4 sm:$0xff]   ;;  %v4652_v27 = vld [vmem:[#allocation2 + $0xa40] ss:$16 sps:$4 sm:$0xff]  }
 0x167   : > { %2809 = vmatpush1.bf16.msra.mxu0 %v4560_v28  ;;  %3055 = vmatpush1.bf16.msra.mxu1 %v4563_v29  ;;  %v4655_v28 = vld [vmem:[#allocation2 + $0xa48] ss:$16 sps:$4 sm:$0xff]   ;;  %v4660_v29 = vld [vmem:[#allocation2 + $0xa64] ss:$16 sps:$4 sm:$0xff]  }
 0x168   : > { %2810 = vmatprep.subr.bf16.mxu0 %v4568_v30  ;;  %3056 = vmatprep.subr.bf16.mxu1 %v4571_v31  ;;  %v4663_v30 = vld [vmem:[#allocation2 + $0xa6c] ss:$16 sps:$4 sm:$0xff]   ;;  %v4658_v31 = vld [vmem:[#allocation2 + $0xa60] ss:$16 sps:$4 sm:$0xff]  }
 0x16b   : > { %2811 = vmatpush1.bf16.msra.mxu0 %v4566_v32  ;;  %3057 = vmatpush1.bf16.msra.mxu1 %v4569_v33  ;;  %v4661_v32 = vld [vmem:[#allocation2 + $0xa68] ss:$16 sps:$4 sm:$0xff]   ;;  %v4666_v33 = vld [vmem:[#allocation2 + $0xa84] ss:$16 sps:$4 sm:$0xff]  }
 0x16c   : > { %2812 = vmatprep.subr.bf16.mxu0 %v4574_v34  ;;  %3058 = vmatprep.subr.bf16.mxu1 %v4577_v35  ;;  %v4669_v34 = vld [vmem:[#allocation2 + $0xa8c] ss:$16 sps:$4 sm:$0xff]   ;;  %v4664_v35 = vld [vmem:[#allocation2 + $0xa80] ss:$16 sps:$4 sm:$0xff]  }
 0x16f   : > { %2813 = vmatpush1.bf16.msra.mxu0 %v4572_v36  ;;  %3059 = vmatpush1.bf16.msra.mxu1 %v4575_v37  ;;  %v4667_v36 = vld [vmem:[#allocation2 + $0xa88] ss:$16 sps:$4 sm:$0xff]   ;;  %v4672_v37 = vld [vmem:[#allocation2 + $0xaa4] ss:$16 sps:$4 sm:$0xff]  }
 0x170   : > { %2814 = vmatprep.subr.bf16.mxu0 %v4580_v38  ;;  %3060 = vmatprep.subr.bf16.mxu1 %v4583_v39  ;;  %v4675_v38 = vld [vmem:[#allocation2 + $0xaac] ss:$16 sps:$4 sm:$0xff]   ;;  %v4670_v39 = vld [vmem:[#allocation2 + $0xaa0] ss:$16 sps:$4 sm:$0xff]  }
 0x173   : > { %2815 = vmatpush1.bf16.msra.mxu0 %v4578_v40  ;;  %3061 = vmatpush1.bf16.msra.mxu1 %v4581_v41  ;;  %v4673_v40 = vld [vmem:[#allocation2 + $0xaa8] ss:$16 sps:$4 sm:$0xff]   ;;  %v4678_v41 = vld [vmem:[#allocation2 + $0xac4] ss:$16 sps:$4 sm:$0xff]  }
 0x174   : > { %2816 = vmatprep.subr.bf16.mxu0 %v4586_v42  ;;  %3062 = vmatprep.subr.bf16.mxu1 %v4589_v43  ;;  %v4681_v42 = vld [vmem:[#allocation2 + $0xacc] ss:$16 sps:$4 sm:$0xff]   ;;  %v4676_v43 = vld [vmem:[#allocation2 + $0xac0] ss:$16 sps:$4 sm:$0xff]  }
 0x177   : > { %2817 = vmatpush1.bf16.msra.mxu0 %v4584_v44  ;;  %3063 = vmatpush1.bf16.msra.mxu1 %v4587_v45  ;;  %v4679_v44 = vld [vmem:[#allocation2 + $0xac8] ss:$16 sps:$4 sm:$0xff]   ;;  %v4684_v45 = vld [vmem:[#allocation2 + $0xae4] ss:$16 sps:$4 sm:$0xff]  }
 0x178   : > { %2818 = vmatprep.subr.bf16.mxu0 %v4592_v46  ;;  %3064 = vmatprep.subr.bf16.mxu1 %v4595_v47  ;;  %v4687_v46 = vld [vmem:[#allocation2 + $0xaec] ss:$16 sps:$4 sm:$0xff]   ;;  %v4682_v47 = vld [vmem:[#allocation2 + $0xae0] ss:$16 sps:$4 sm:$0xff]  }
 0x17b   : > { %2819 = vmatpush1.bf16.msra.mxu0 %v4590_v48  ;;  %3065 = vmatpush1.bf16.msra.mxu1 %v4593_v49  ;;  %v4685_v48 = vld [vmem:[#allocation2 + $0xae8] ss:$16 sps:$4 sm:$0xff]   ;;  %v4690_v49 = vld [vmem:[#allocation2 + $0xb04] ss:$16 sps:$4 sm:$0xff]  }
 0x17c   : > { %2820 = vmatprep.subr.bf16.mxu0 %v4598_v50  ;;  %3066 = vmatprep.subr.bf16.mxu1 %v4601_v51  ;;  %v4693_v50 = vld [vmem:[#allocation2 + $0xb0c] ss:$16 sps:$4 sm:$0xff]   ;;  %v4688_v51 = vld [vmem:[#allocation2 + $0xb00] ss:$16 sps:$4 sm:$0xff]  }
 0x17f   : > { %2821 = vmatpush1.bf16.msra.mxu0 %v4596_v52  ;;  %3067 = vmatpush1.bf16.msra.mxu1 %v4599_v53  ;;  %v4691_v52 = vld [vmem:[#allocation2 + $0xb08] ss:$16 sps:$4 sm:$0xff]   ;;  %v4696_v53 = vld [vmem:[#allocation2 + $0xb24] ss:$16 sps:$4 sm:$0xff]  }
 0x180   : > { %2822 = vmatprep.subr.bf16.mxu0 %v4604_v54  ;;  %3068 = vmatprep.subr.bf16.mxu1 %v4607_v55  ;;  %v4699_v54 = vld [vmem:[#allocation2 + $0xb2c] ss:$16 sps:$4 sm:$0xff]   ;;  %v4694_v55 = vld [vmem:[#allocation2 + $0xb20] ss:$16 sps:$4 sm:$0xff]  }
 0x183   : > { %2823 = vmatpush1.bf16.msra.mxu0 %v4602_v56  ;;  %3069 = vmatpush1.bf16.msra.mxu1 %v4605_v57  ;;  %v4697_v56 = vld [vmem:[#allocation2 + $0xb28] ss:$16 sps:$4 sm:$0xff]   ;;  %v4702_v57 = vld [vmem:[#allocation2 + $0xb44] ss:$16 sps:$4 sm:$0xff]  }
 0x184   : > { %2824 = vmatprep.subr.bf16.mxu0 %v4610_v58  ;;  %3070 = vmatprep.subr.bf16.mxu1 %v4613_v59  ;;  %v4705_v58 = vld [vmem:[#allocation2 + $0xb4c] ss:$16 sps:$4 sm:$0xff]   ;;  %v4700_v59 = vld [vmem:[#allocation2 + $0xb40] ss:$16 sps:$4 sm:$0xff]  }
 0x187   : > { %2825 = vmatpush1.bf16.msra.mxu0 %v4608_v60  ;;  %3071 = vmatpush1.bf16.msra.mxu1 %v4611_v61  ;;  %v4703_v60 = vld [vmem:[#allocation2 + $0xb48] ss:$16 sps:$4 sm:$0xff]   ;;  %v4708_v61 = vld [vmem:[#allocation2 + $0xb64] ss:$16 sps:$4 sm:$0xff]  }
 0x188   : > { %2826 = vmatprep.subr.bf16.mxu0 %v4616_v62  ;;  %3072 = vmatprep.subr.bf16.mxu1 %v4619_v63  ;;  %v4711_v62 = vld [vmem:[#allocation2 + $0xb6c] ss:$16 sps:$4 sm:$0xff]   ;;  %v4706_v63 = vld [vmem:[#allocation2 + $0xb60] ss:$16 sps:$4 sm:$0xff]  }
 0x18b   : > { %2827 = vmatpush1.bf16.msra.mxu0 %v4614_v0  ;;  %3073 = vmatpush1.bf16.msra.mxu1 %v4617_v1  ;;  %v4709_v0 = vld [vmem:[#allocation2 + $0xb68] ss:$16 sps:$4 sm:$0xff]   ;;  %v4714_v1 = vld [vmem:[#allocation2 + $0xb84] ss:$16 sps:$4 sm:$0xff]  }
 0x18c   : > { %2828 = vmatprep.subr.bf16.mxu0 %v4622_v2  ;;  %3074 = vmatprep.subr.bf16.mxu1 %v4625_v3  ;;  %v4717_v2 = vld [vmem:[#allocation2 + $0xb8c] ss:$16 sps:$4 sm:$0xff]   ;;  %v4712_v3 = vld [vmem:[#allocation2 + $0xb80] ss:$16 sps:$4 sm:$0xff]  }
 0x18f   : > { %2829 = vmatpush1.bf16.msra.mxu0 %v4620_v4  ;;  %3075 = vmatpush1.bf16.msra.mxu1 %v4623_v5  ;;  %v4715_v4 = vld [vmem:[#allocation2 + $0xb88] ss:$16 sps:$4 sm:$0xff]   ;;  %v4720_v5 = vld [vmem:[#allocation2 + $0xba4] ss:$16 sps:$4 sm:$0xff]  }
 0x190   : > { %2830 = vmatprep.subr.bf16.mxu0 %v4628_v6  ;;  %3076 = vmatprep.subr.bf16.mxu1 %v4631_v7  ;;  %v4723_v6 = vld [vmem:[#allocation2 + $0xbac] ss:$16 sps:$4 sm:$0xff]   ;;  %v4718_v7 = vld [vmem:[#allocation2 + $0xba0] ss:$16 sps:$4 sm:$0xff]  }
 0x193   : > { %2831 = vmatpush1.bf16.msra.mxu0 %v4626_v8  ;;  %3077 = vmatpush1.bf16.msra.mxu1 %v4629_v9  ;;  %v4721_v8 = vld [vmem:[#allocation2 + $0xba8] ss:$16 sps:$4 sm:$0xff]   ;;  %v4726_v9 = vld [vmem:[#allocation2 + $0xbc4] ss:$16 sps:$4 sm:$0xff]  }
 0x194   : > { %2832 = vmatprep.subr.bf16.mxu0 %v4634_v10  ;;  %3078 = vmatprep.subr.bf16.mxu1 %v4637_v12  ;;  %v4729_v10 = vld [vmem:[#allocation2 + $0xbcc] ss:$16 sps:$4 sm:$0xff]   ;;  %v4724_v12 = vld [vmem:[#allocation2 + $0xbc0] ss:$16 sps:$4 sm:$0xff]  }
 0x197   : > { %2833 = vmatpush1.bf16.msra.mxu0 %v4632_v13  ;;  %3079 = vmatpush1.bf16.msra.mxu1 %v4635_v15  ;;  %v4727_v13 = vld [vmem:[#allocation2 + $0xbc8] ss:$16 sps:$4 sm:$0xff]   ;;  %v4732_v15 = vld [vmem:[#allocation2 + $0xbe4] ss:$16 sps:$4 sm:$0xff]  }
 0x198   : > { %2843 = vmatprep.subr.bf16.mxu0 %v4642_v16  ;;  %3089 = vmatprep.subr.bf16.mxu1 %v4645_v18  ;;  %v4735_v16 = vld [vmem:[#allocation2 + $0xbec] ss:$16 sps:$4 sm:$0xff]   ;;  %v4730_v18 = vld [vmem:[#allocation2 + $0xbe0] ss:$16 sps:$4 sm:$0xff]  }
 0x19a   : > { %2835 = vmatmul.mubr.bf16.vlgmr.msra.gmra.mrb[0].mxu0 %v3597_v19  ;;  %3081 = vmatmul.mubr.bf16.vlgmr.msra.gmra.mrb[0].mxu1 %v3597_v19  ;;  %v4733_v19 = vld [vmem:[#allocation2 + $0xbe8] ss:$16 sps:$4 sm:$0xff]  }
 0x19b   : > { %2844 = vmatpush1.bf16.msra.mxu0 %v4640_v11  ;;  %3090 = vmatpush1.bf16.msra.mxu1 %v4643_v21  ;;  %v4738_v11 = vld [vmem:[%s5169_s3 + $0x40] sm:$0xff]  }
 0x19c   : > { %2845 = vmatprep.subr.bf16.mxu0 %v4648_v22  ;;  %3091 = vmatprep.subr.bf16.mxu1 %v4651_v23  ;;  %v4739_v21 = vld [vmem:[%s5169_s3 + $0xc0] sm:$0xff]   ;;  %v3599_v22 = vcombine.low %v5057_v20, %v5057_v20  ;;  %v4743_v20 = vld [vmem:[%s5169_s3 + $0xc8] sm:$0xff]  }
 0x19d   : > { %2875 = vmatprep.mubr.bf16.mxu0 %v3600_v14  ;;  %3121 = vmatprep.mubr.bf16.mxu1 %v3600_v14  ;;  %v4740_v23 = vld [vmem:[%s5169_s3] sm:$0xff]  }
 0x19e   : > { %v4741_v14 = vld [vmem:[%s5169_s3 + $0x80] sm:$0xff]  }
 0x19f   : > { %2846 = vmatpush1.bf16.msra.mxu0 %v4646_v24  ;;  %3092 = vmatpush1.bf16.msra.mxu1 %v4649_v25  ;;  %v4742_v24 = vld [vmem:[%s5169_s3 + $0x48] sm:$0xff]  }
 0x1a0   : > { %2847 = vmatprep.subr.bf16.mxu0 %v4654_v17  ;;  %3093 = vmatprep.subr.bf16.mxu1 %v4657_v26  ;;  %v4744_v25 = vld [vmem:[%s5169_s3 + $0x8] sm:$0xff]   ;;  %v4746_v26 = vld [vmem:[%s5169_s3 + $0x50] sm:$0xff]  }
 0x1a1   : > { %v4745_v17 = vld [vmem:[%s5169_s3 + $0x88] sm:$0xff]  }
 0x1a3   : > { %2848 = vmatpush1.bf16.msra.mxu0 %v4652_v27  ;;  %3094 = vmatpush1.bf16.msra.mxu1 %v4655_v28  ;;  %v4747_v27 = vld [vmem:[%s5169_s3 + $0xd0] sm:$0xff]  }
 0x1a4   : > { %2849 = vmatprep.subr.bf16.mxu0 %v4660_v29  ;;  %3095 = vmatprep.subr.bf16.mxu1 %v4663_v30  ;;  %v4748_v28 = vld [vmem:[%s5169_s3 + $0x10] sm:$0xff]   ;;  %v4750_v30 = vld [vmem:[%s5169_s3 + $0x58] sm:$0xff]  }
 0x1a5   : > { %v4749_v29 = vld [vmem:[%s5169_s3 + $0x90] sm:$0xff]  }
 0x1a7   : > { %2850 = vmatpush1.bf16.msra.mxu0 %v4658_v31  ;;  %3096 = vmatpush1.bf16.msra.mxu1 %v4661_v32  ;;  %v4751_v31 = vld [vmem:[%s5169_s3 + $0xd8] sm:$0xff]  }
 0x1a8   : > { %2851 = vmatprep.subr.bf16.mxu0 %v4666_v33  ;;  %3097 = vmatprep.subr.bf16.mxu1 %v4669_v34  ;;  %v4752_v32 = vld [vmem:[%s5169_s3 + $0x18] sm:$0xff]   ;;  %v4754_v34 = vld [vmem:[%s5169_s3 + $0x60] sm:$0xff]  }
 0x1a9   : > { %v4753_v33 = vld [vmem:[%s5169_s3 + $0x98] sm:$0xff]  }
 0x1ab   : > { %2852 = vmatpush1.bf16.msra.mxu0 %v4664_v35  ;;  %3098 = vmatpush1.bf16.msra.mxu1 %v4667_v36  ;;  %v4755_v35 = vld [vmem:[%s5169_s3 + $0xe0] sm:$0xff]  }
 0x1ac   : > { %2853 = vmatprep.subr.bf16.mxu0 %v4672_v37  ;;  %3099 = vmatprep.subr.bf16.mxu1 %v4675_v38  ;;  %v4756_v36 = vld [vmem:[%s5169_s3 + $0x20] sm:$0xff]   ;;  %v4758_v38 = vld [vmem:[%s5169_s3 + $0x68] sm:$0xff]  }
 0x1ad   : > { %v4757_v37 = vld [vmem:[%s5169_s3 + $0xa0] sm:$0xff]  }
 0x1af   : > { %2854 = vmatpush1.bf16.msra.mxu0 %v4670_v39  ;;  %3100 = vmatpush1.bf16.msra.mxu1 %v4673_v40  ;;  %v4759_v39 = vld [vmem:[%s5169_s3 + $0xe8] sm:$0xff]  }
 0x1b0   : > { %2855 = vmatprep.subr.bf16.mxu0 %v4678_v41  ;;  %3101 = vmatprep.subr.bf16.mxu1 %v4681_v42  ;;  %v4760_v40 = vld [vmem:[%s5169_s3 + $0x28] sm:$0xff]   ;;  %v4762_v42 = vld [vmem:[%s5169_s3 + $0x70] sm:$0xff]  }
 0x1b1   : > { %v4761_v41 = vld [vmem:[%s5169_s3 + $0xa8] sm:$0xff]  }
 0x1b3   : > { %2856 = vmatpush1.bf16.msra.mxu0 %v4676_v43  ;;  %3102 = vmatpush1.bf16.msra.mxu1 %v4679_v44  ;;  %v4763_v43 = vld [vmem:[%s5169_s3 + $0xf0] sm:$0xff]  }
 0x1b4   : > { %2857 = vmatprep.subr.bf16.mxu0 %v4684_v45  ;;  %3103 = vmatprep.subr.bf16.mxu1 %v4687_v46  ;;  %v4764_v44 = vld [vmem:[%s5169_s3 + $0x30] sm:$0xff]   ;;  %v4766_v46 = vld [vmem:[%s5169_s3 + $0x78] sm:$0xff]  }
 0x1b5   : > { %v4765_v45 = vld [vmem:[%s5169_s3 + $0xb0] sm:$0xff]  }
 0x1b7   : > { %2858 = vmatpush1.bf16.msra.mxu0 %v4682_v47  ;;  %3104 = vmatpush1.bf16.msra.mxu1 %v4685_v48  ;;  %v4767_v47 = vld [vmem:[%s5169_s3 + $0xf8] sm:$0xff]  }
 0x1b8   : > { %2859 = vmatprep.subr.bf16.mxu0 %v4690_v49  ;;  %3105 = vmatprep.subr.bf16.mxu1 %v4693_v50  ;;  %v4768_v48 = vld [vmem:[%s5169_s3 + $0x38] sm:$0xff]   ;;  %v656_v50 = vlaneseq }
 0x1b9   : > { %v4769_v49 = vld [vmem:[%s5169_s3 + $0xb8] sm:$0xff]  }
 0x1bb   : > { %2860 = vmatpush1.bf16.msra.mxu0 %v4688_v51  ;;  %3106 = vmatpush1.bf16.msra.mxu1 %v4691_v52  ;;  %v657_v51 = vshrl.u32 %v656_v50, 7 }
 0x1bc   : > { %2861 = vmatprep.subr.bf16.mxu0 %v4696_v53  ;;  %3107 = vmatprep.subr.bf16.mxu1 %v4699_v54  ;;  %v654_v54 = vld [vmem:[#allocation4] sm:$0xf] }
 0x1bd   : > { %v658_v52 = vsub.s32 0, %v657_v51  ;;  %v666_v53 = vsub.s32 2, %v657_v51 }
 0x1bf   : > { %2862 = vmatpush1.bf16.msra.mxu0 %v4694_v55  ;;  %3108 = vmatpush1.bf16.msra.mxu1 %v4697_v56  ;;  %v662_v55 = vsub.s32 1, %v657_v51  ;;  %v670_v56 = vsub.s32 3, %v657_v51 }
 0x1c0   : > { %2863 = vmatprep.subr.bf16.mxu0 %v4702_v57  ;;  %3109 = vmatprep.subr.bf16.mxu1 %v4705_v58  ;;  %v659_v57 = vrot.slane %v654_v54, %v658_v52  ;;  %v667_v58 = vrot.slane %v654_v54, %v666_v53 }
 0x1c3   : > { %2864 = vmatpush1.bf16.msra.mxu0 %v4700_v59  ;;  %3110 = vmatpush1.bf16.msra.mxu1 %v4703_v60  ;;  %v663_v59 = vrot.slane %v654_v54, %v662_v55  ;;  %v671_v60 = vrot.slane %v654_v54, %v670_v56 }
 0x1c4   : > { %2865 = vmatprep.subr.bf16.mxu0 %v4708_v61  ;;  %3111 = vmatprep.subr.bf16.mxu1 %v4711_v62 }
 0x1c7   : > { %2866 = vmatpush1.bf16.msra.mxu0 %v4706_v63  ;;  %3112 = vmatpush1.bf16.msra.mxu1 %v4709_v0 }
 0x1c8   : > { %2867 = vmatprep.subr.bf16.mxu0 %v4714_v1  ;;  %3113 = vmatprep.subr.bf16.mxu1 %v4717_v2 }
 0x1cb   : > { %2868 = vmatpush1.bf16.msra.mxu0 %v4712_v3  ;;  %3114 = vmatpush1.bf16.msra.mxu1 %v4715_v4 }
 0x1cc   : > { %2869 = vmatprep.subr.bf16.mxu0 %v4720_v5  ;;  %3115 = vmatprep.subr.bf16.mxu1 %v4723_v6 }
 0x1cf   : > { %2870 = vmatpush1.bf16.msra.mxu0 %v4718_v7  ;;  %3116 = vmatpush1.bf16.msra.mxu1 %v4721_v8 }
 0x1d0   : > { %2871 = vmatprep.subr.bf16.mxu0 %v4726_v9  ;;  %3117 = vmatprep.subr.bf16.mxu1 %v4729_v10 }
 0x1d3   : > { %2872 = vmatpush1.bf16.msra.mxu0 %v4724_v12  ;;  %3118 = vmatpush1.bf16.msra.mxu1 %v4727_v13 }
 0x1d4   : > { %2873 = vmatprep.subr.bf16.mxu0 %v4732_v15  ;;  %3119 = vmatprep.subr.bf16.mxu1 %v4735_v16 }
 0x1d7   : > { %2874 = vmatpush1.bf16.msra.mxu0 %v4730_v18  ;;  %3120 = vmatpush1.bf16.msra.mxu1 %v4733_v19 }
 0x1d8   : > { %4020 = vmatprep.subr.bf16.mxu0 %v4738_v11  ;;  %4042 = vmatprep.subr.bf16.mxu1 %v4739_v21 }
 0x1da   : > { %2876 = vmatmul.mubr.bf16.vlgmr.msra.gmra.mrb[0].mxu0 %v3599_v22  ;;  %3122 = vmatmul.mubr.bf16.vlgmr.msra.gmra.mrb[0].mxu1 %v3599_v22  ;;  %v3985_v22 = vld [vmem:[#allocation6] ss:$0 sm:$0xff] }
 0x1db   : > { %4021 = vmatpush3.bf16.msra.mxu0 %v4740_v23  ;;  %4043 = vmatpush3.bf16.msra.mxu1 %v4741_v14 }
 0x1dc   : > { %4022 = vmatprep.subr.bf16.mxu0 %v4742_v24  ;;  %4044 = vmatprep.subr.bf16.mxu1 %v4743_v20 }
 0x1df   : > { %4023 = vmatpush3.bf16.msra.mxu0 %v4744_v25  ;;  %4045 = vmatpush3.bf16.msra.mxu1 %v4745_v17 }
 0x1e0   : > { %4024 = vmatprep.subr.bf16.mxu0 %v4746_v26  ;;  %4046 = vmatprep.subr.bf16.mxu1 %v4747_v27 }
 0x1e3   : > { %4025 = vmatpush3.bf16.msra.mxu0 %v4748_v28  ;;  %4047 = vmatpush3.bf16.msra.mxu1 %v4749_v29 }
 0x1e4   : > { %4026 = vmatprep.subr.bf16.mxu0 %v4750_v30  ;;  %4048 = vmatprep.subr.bf16.mxu1 %v4751_v31 }
 0x1e7   : > { %4027 = vmatpush3.bf16.msra.mxu0 %v4752_v32  ;;  %4049 = vmatpush3.bf16.msra.mxu1 %v4753_v33 }
 0x1e8   : > { %4028 = vmatprep.subr.bf16.mxu0 %v4754_v34  ;;  %4050 = vmatprep.subr.bf16.mxu1 %v4755_v35 }
 0x1eb   : > { %4029 = vmatpush3.bf16.msra.mxu0 %v4756_v36  ;;  %4051 = vmatpush3.bf16.msra.mxu1 %v4757_v37 }
 0x1ec   : > { %4030 = vmatprep.subr.bf16.mxu0 %v4758_v38  ;;  %4052 = vmatprep.subr.bf16.mxu1 %v4759_v39 }
 0x1ef   : > { %4031 = vmatpush3.bf16.msra.mxu0 %v4760_v40  ;;  %4053 = vmatpush3.bf16.msra.mxu1 %v4761_v41 }
 0x1f0   : > { %4032 = vmatprep.subr.bf16.mxu0 %v4762_v42  ;;  %4054 = vmatprep.subr.bf16.mxu1 %v4763_v43 }
 0x1f3   : > { %4033 = vmatpush3.bf16.msra.mxu0 %v4764_v44  ;;  %4055 = vmatpush3.bf16.msra.mxu1 %v4765_v45 }
 0x1f4   : > { %4034 = vmatprep.subr.bf16.mxu0 %v4766_v46  ;;  %4056 = vmatprep.subr.bf16.mxu1 %v4767_v47 }
 0x1f7   : > { %4035 = vmatpush3.bf16.msra.mxu0 %v4768_v48  ;;  %4057 = vmatpush3.bf16.msra.mxu1 %v4769_v49 }
 0x2ad   : > { %v2877_v61 = vpop.f32.mrb[0].mxu0  ;;  %v3123_v62 = vpop.f32.mrb[0].mxu1 }
 0x2ae   : > { %v4064_v63 = vadd.f32 %v2877_v61, %v659_v57  ;;  %v4066_v0 = vadd.f32 %v3123_v62, %v667_v58  ;;  %v2879_v1 = vpop.f32.mrb[1].mxu0  ;;  %v3125_v2 = vpop.f32.mrb[1].mxu1 }
 0x2af   : > { %v4065_v3 = vadd.f32 %v2879_v1, %v663_v59  ;;  %v4067_v4 = vadd.f32 %v3125_v2, %v671_v60  ;;  %v2881_v5 = vpop.f32.mrb[2].mxu0  ;;  %v3127_v6 = vpop.f32.mrb[2].mxu1 }
 0x2b0   : > { %v3130_v7 = vmax.f32 %v4064_v63, 0.0  ;;  %v3132_v8 = vmax.f32 %v4066_v0, 0.0  ;;  %v2882_v9 = vpop.f32.mrb[3].mxu0  ;;  %v3128_v10 = vpop.f32.mrb[3].mxu1 }
 0x2b1   : > { %v3131_v12 = vmax.f32 %v4065_v3, 0.0  ;;  %v3133_v13 = vmax.f32 %v4067_v4, 0.0 }
 0x2b2   : > { %v3134_v18 = vpack.c.bf16 %v3130_v7, %v3130_v7  ;;  %v3136_v19 = vpack.c.bf16 %v3132_v8, %v3132_v8 }
 0x2b3   : > { %v3135_v15 = vpack.c.bf16 %v3131_v12, %v3131_v12  ;;  %v3137_v16 = vpack.c.bf16 %v3133_v13, %v3133_v13 }
 0x2b5   : > { %3433 = vmatprep.mubr.bf16.mxu0 %v3135_v15  ;;  %3473 = vmatprep.mubr.bf16.mxu1 %v3137_v16 }
 0x2b6   : > { %3434 = vmatmul.mubr.bf16.vlgmr.msra.gmra.mrb[4].mxu0 %v3134_v18  ;;  %3474 = vmatmul.mubr.bf16.vlgmr.msra.gmra.mrb[4].mxu1 %v3136_v19 }
 0x389   : > { %v4036_v11 = vpop.f32.mrb[4].mxu0  ;;  %v4058_v21 = vpop.f32.mrb[4].mxu1 }
 0x38a   : > { %v4037_v23 = vpop.f32.mrb[5].mxu0  ;;  %v4059_v14 = vpop.f32.mrb[5].mxu1 }
 0x38b   : > { %v4038_v24 = vadd.f32 %v4037_v23, %v4036_v11  ;;  %v4060_v20 = vadd.f32 %v4059_v14, %v4058_v21  ;;  %v4039_v25 = vpop.f32.mrb[6].mxu0  ;;  %v4061_v17 = vpop.f32.mrb[6].mxu1 }
 0x38c   : > { %v4040_v26 = vpop.f32.mrb[7].mxu0  ;;  %v4062_v27 = vpop.f32.mrb[7].mxu1 }
 0x38d   : > { %v3436_v28 = vadd.f32 %v4038_v24, %v3985_v22 }
 0x38f   : > { %v3476_v29 = vadd.f32 %v4060_v20, %v3436_v28 }
 0x391   : > { %3481 = vmax.xlane.f32.xlu0 %v3476_v29 }
 0x41e   : > { %v3482_v30 = vpop.xlane.xlu0 %3481 }
 0x41f   : > { %v3483_v31 = vsub.f32 %v3476_v29, %v3482_v30 }
 0x421   : > { %v3484_v32 = vmul.f32 1.442695, %v3483_v31 }
 0x423   : > { %4770 = vpow2.f32 %v3484_v32 }
 0x42d   : > { %v4771_v33 = vpop.eup %4770 }
 0x42e   : > { %3486 = vadd.xlane.f32.xlu0 %v4771_v33 }
 0x4bb   : > { %v3487_v34 = vpop.xlane.xlu0 %3486 }
 0x4bc   : > { %4772 = vlog2.f32 %v3487_v34 }
 0x4c6   : > { %v4773_v35 = vpop.eup %4772 }
 0x4c7   : > { %v3489_v36 = vmul.f32 0.6931472, %v4773_v35 }
 0x4c9   : > { %v3490_v37 = vsub.f32 %v3483_v31, %v3489_v36 }
 0x4cb   : > { %3491 = vst [vmem:[%s262_s27] sm:$0xff] %v3490_v37 }
 0x4cc PF: > { %s17_s18 = sadd.s32 1, %s4872_s18  }
 0x4cd   : > { %p14_p3 = scmp.ge.s32.totalorder %s17_s18, 4  }
 0x4cf   :  { %16 = sbr.rel (!%p14_p3) target bundleno = 2 (0x2), region = 83 }
 0x4d6   :  { %3511 = vsyncpa [#allocation3], 1 }
 0x4d7   :  { %3513 = vsyncpa [#allocation3 + $0x1], 1 }
 0x4d8   :  { %3514 = vsyncpa [#allocation5], 1 }

// kernel: net_forward.2
= control target key start
LH: loop header
LB: loop body
LE: loop exit
PB: predicated region body
PF: predicated region fallthrough
CT: control target
= control target key end

     0   :  { %10 = vsyncpa [#allocation3], 0  ;;  %s25293_s0 = inlined_call_operand.vmem [shape: bf16[2,1024,3], index: 0, kind: input, shape index: {}]   ;;  %s25294_s1 = inlined_call_operand.hbm [shape: bf16[9,3,32], index: 1, kind: input, shape index: {}]   ;;  %s25295_s2 = inlined_call_operand.hbm [shape: f32[1,32], index: 2, kind: input, shape index: {}]   ;;  %s25296_s3 = inlined_call_operand.hbm [shape: bf16[16,32,32], index: 3, kind: input, shape index: {}]   ;;  %s25297_s4 = inlined_call_operand.hbm [shape: f32[1,32], index: 4, kind: input, shape index: {}]   ;;  %s25298_s5 = inlined_call_operand.vmem [shape: bf16[2,48,32], index: 5, kind: output, shape index: {}]  }
   0x1   :  { %11 = vsyncpa [#allocation5], 0 }
   0x2   :  { %12 = vsyncpa [#allocation8], 0  ;;  %s21512_s18 = smov 0  }
   0x3 LB: > { %s21471_s19 = smov [#allocation4]   ;;  %s21518_s21 = sadd.s32 4294967295, %s21469_s18   ;;  %s21469_s18 = sphi %s21512_s18, %s18_s18  }
   0x4   : > { %s185_s20 = sshll.u32 %s21471_s19, 4  ;;  %p15801_p0 = scmp.ge.s32.totalorder %s21469_s18, 1  ;;  %s186_s20 = int_to_ptr.vmem [resolvable:$true] %s185_s20 }
   0x5   : > { %p159_p1 = scmp.lt.s32.totalorder %s21469_s18, 3  ;;  %p25299_p2 = scmp.eq.s32.totalorder %s21518_s21, 0 }
   0x6   : > { %s21472_s23 = smov [#allocation2]   ;;  %s21473_s26 = smov [#allocation6]  }
   0x7   : > { %p21523_p3 = pnand %p15801_p0, %p159_p1  ;;  %s171_s24 = sshll.u32 %s21472_s23, 4  ;;  %s21529_s24 = int_to_ptr.vmem [resolvable:$true] %s171_s24 }
   0x8   : > { %s195_s27 = sshll.u32 %s21473_s26, 4  ;;  %s21339_s30 = scalar_lea.hbm %s25295_s2, 16  ;;  %s21537_s27 = int_to_ptr.vmem [resolvable:$true] %s195_s27 }
   0x9   : > { %s25379_s22 = scalar_select %p21523_p3, 1, 0 }
   0xa   : > { %p20912_p4 = pneg %p21523_p3  ;;  %p21340_p6 = scmp.ne.s32.totalorder %s25295_s2, %s21339_s30 }
   0xb   : > { %p21346_p10 = scmp.lt.u32.totalorder %s21339_s30, %s25295_s2 }
   0xc   : > { %p21533_p5 = pnand %p25299_p2, %p20912_p4 }
   0xe   : > { %p21547_p7 = pneg %p21533_p5 }
  0x10   : > { %p21342_p8 = pnand %p21547_p7, %p21340_p6 }
  0x12   : > { %p21343_p9 = pneg %p21342_p8 }
  0x14   : > { %p21348_p11 = pnand %p21346_p10, %p21343_p9 }
  0x16   : > { %21351 = shalt.err (!%p21348_p11)
}
  0x17   : > { %s21352_s11 = scalar_lea.vmem %s186_s20, 16  ;;  %s21359_s12 = scalar_lea.vmem %s186_s20, 32 }
  0x18   : > { %p21353_p12 = scmp.ne.s32.totalorder %s186_s20, %s21352_s11  ;;  %p21360_p1 = scmp.lt.s32.totalorder %s186_s20, %s186_s20 }
  0x19   : > { %p21361_p4 = scmp.lt.s32.totalorder %s21359_s12, %s21352_s11 }
  0x1a   : > { %p21355_p13 = pnand %p21353_p12, %p21547_p7 }
  0x1b   : > { %p21362_p2 = por %p21361_p4, %p21360_p1 }
  0x1c   : > { %p21356_p0 = pneg %p21355_p13 }
  0x1e   : > { %p21363_p3 = pnand %p21362_p2, %p21356_p0 }
  0x20   : > { %21366 = shalt.err (!%p21363_p3)
}
  0x21   : > { %20918 = dma.hbm_to_vmem [thread:$0]  (!%p21533_p5), %s25295_s2, 16, %s186_s20, [#allocation5]  }
  0x22   : > { %s21367_s17 = scalar_lea.hbm %s25294_s1, 288 }
  0x23   : > { %p21368_p6 = scmp.ne.s32.totalorder %s25294_s1, %s21367_s17  ;;  %p21374_p2 = scmp.lt.u32.totalorder %s21367_s17, %s25294_s1 }
  0x25   : > { %p21370_p8 = pnand %p21368_p6, %p21547_p7 }
  0x27   : > { %p21371_p9 = pneg %p21370_p8 }
  0x29   : > { %p21376_p3 = pnand %p21374_p2, %p21371_p9 }
  0x2b   : > { %21379 = shalt.err (!%p21376_p3)
}
  0x2c   : > { %s21380_s20 = scalar_lea.vmem %s21529_s24, 288  ;;  %p21388_p13 = scmp.lt.s32.totalorder %s21529_s24, %s21529_s24 }
  0x2d   : > { %p21381_p10 = scmp.ne.s32.totalorder %s21529_s24, %s21380_s20  ;;  %p21389_p0 = scmp.lt.s32.totalorder %s21380_s20, %s21380_s20 }
  0x2f   : > { %p21383_p11 = pnand %p21381_p10, %p21547_p7  ;;  %p21390_p1 = por %p21389_p0, %p21388_p13 }
  0x31   : > { %p21384_p12 = pneg %p21383_p11 }
  0x33   : > { %p21391_p4 = pnand %p21390_p1, %p21384_p12 }
  0x35   : > { %21394 = shalt.err (!%p21391_p4)
}
  0x36   : > { %s21474_s29 = smov 32   ;;  %s21475_s30 = smov 2  }
  0x37   : > { %20915 = dma.hbm_to_vmem [thread:$0]  (!%p21533_p5), %s25294_s1, 288, %s21529_s24, [#allocation3], %s21474_s29, %s21474_s29, %s21475_s30  }
  0x38   : > { %s21395_s11 = scalar_lea.hbm %s25296_s3, 4096 }
  0x39   : > { %p21396_p6 = scmp.ne.s32.totalorder %s25296_s3, %s21395_s11  ;;  %p21402_p2 = scmp.lt.u32.totalorder %s21395_s11, %s25296_s3 }
  0x3b   : > { %p21398_p8 = pnand %p21396_p6, %p21547_p7 }
  0x3d   : > { %p21399_p9 = pneg %p21398_p8 }
  0x3f   : > { %p21404_p3 = pnand %p21402_p2, %p21399_p9 }
  0x41   : > { %21407 = shalt.err (!%p21404_p3)
}
  0x42   : > { %s21408_s24 = scalar_lea.vmem %s21537_s27, 4096  ;;  %p21416_p13 = scmp.lt.s32.totalorder %s21537_s27, %s21537_s27 }
  0x43   : > { %p21409_p10 = scmp.ne.s32.totalorder %s21537_s27, %s21408_s24  ;;  %p21417_p0 = scmp.lt.s32.totalorder %s21408_s24, %s21408_s24 }
  0x45   : > { %p21411_p11 = pnand %p21409_p10, %p21547_p7  ;;  %p21418_p1 = por %p21417_p0, %p21416_p13 }
  0x47   : > { %p21412_p12 = pneg %p21411_p11 }
  0x49   : > { %p21419_p4 = pnand %p21418_p1, %p21412_p12 }
  0x4b   : > { %21422 = shalt.err (!%p21419_p4)
}
  0x4c   : > { %s21476_s16 = smov 64   ;;  %s21477_s17 = smov 4  }
  0x4d   : > { %20921 = dma.hbm_to_vmem [thread:$0]  (!%p21533_p5), %s25296_s3, 4096, %s21537_s27, [#allocation5], %s21476_s16, %s21476_s16, %s21477_s17  }
  0x4e   : > { %s21478_s26 = smov [#allocation7]   ;;  %s21423_s30 = scalar_lea.hbm %s25297_s4, 16 }
  0x4f   : > { %s209_s28 = sshll.u32 %s21478_s26, 4  ;;  %p21424_p6 = scmp.ne.s32.totalorder %s25297_s4, %s21423_s30  ;;  %s210_s28 = int_to_ptr.vmem [resolvable:$true] %s209_s28 }
  0x50   : > { %p21430_p2 = scmp.lt.u32.totalorder %s21423_s30, %s25297_s4 }
  0x51   : > { %p21426_p8 = pnand %p21424_p6, %p21547_p7 }
  0x53   : > { %p21427_p9 = pneg %p21426_p8 }
  0x55   : > { %p21432_p3 = pnand %p21430_p2, %p21427_p9 }
  0x57   : > { %21435 = shalt.err (!%p21432_p3)
}
  0x58   : > { %s21436_s27 = scalar_lea.vmem %s210_s28, 16  ;;  %s21443_s11 = scalar_lea.vmem %s210_s28, 32 }
  0x59   : > { %p21437_p10 = scmp.ne.s32.totalorder %s210_s28, %s21436_s27  ;;  %p21444_p13 = scmp.lt.s32.totalorder %s210_s28, %s210_s28 }
  0x5a   : > { %p21445_p0 = scmp.lt.s32.totalorder %s21443_s11, %s21436_s27 }
  0x5b   : > { %p21439_p11 = pnand %p21437_p10, %p21547_p7 }
  0x5c   : > { %p21446_p1 = por %p21445_p0, %p21444_p13 }
  0x5d   : > { %p21440_p12 = pneg %p21439_p11 }
  0x5f   : > { %p21447_p4 = pnand %p21446_p1, %p21440_p12 }
  0x61   : > { %21450 = shalt.err (!%p21447_p4)
}
  0x62   : > { %20924 = dma.hbm_to_vmem [thread:$0]  (!%p21533_p5), %s25297_s4, 16, %s210_s28, [#allocation8]  }
  0x63   : > { %p25382_p6 = scmp.ne.s32.totalorder %s25379_s22, 0 }
  0x65   : > { %230 = sbr.rel (%p25382_p6) target bundleno = 3382 (0xd36), region = 40 }
  0x6c   : > { %p25383_p8 = scmp.eq.s32.totalorder %s21518_s21, 0 }
  0x6e   : > { %21456 = dma.done.wait (%p25383_p8), [#allocation3], 288   ;;  %p25384_p7 = pmov %p25383_p8 }
  0x70   : > { %21458 = vsyncadd (%p25384_p7), [#allocation3], 4294967008  ;;  %p25385_p9 = pmov %p25384_p7 }
  0x71   : > { %p25386_p2 = pmov %p25384_p7 }
  0x72   : > { %21460 = dma.done.wait (%p25385_p9), [#allocation5], 4112  }
  0x73   : > { %21462 = vsyncadd (%p25386_p2), [#allocation5], 4294963184  ;;  %p25387_p3 = pmov %p25386_p2 }
  0x74   : > { %p25388_p5 = pmov %p25386_p2 }
  0x75   : > { %21464 = dma.done.wait (%p25387_p3), [#allocation8], 16  }
  0x76   : > { %21466 = vsyncadd (%p25388_p5), [#allocation8], 4294967280  ;;  %vm1486_vm0 = vcmask 1040384   ;;  %p270_p10 = scmp.lt.s32.totalorder %s21518_s21, 1  ;;  %vm1487_vm1 = vcmask 1041408   ;;  %v21479_v0 = vmov 65535  }
  0x77   : > { %v1488_v1 = vsel %vm1486_vm0, 4294967295, %v21479_v0  ;;  %v310_v3 = vld [vmem:[#allocation2 + $0x4] sm:$0x3]  ;;  %vm2650_vm2 = vcmask 1046528   ;;  %vm1305_vm3 = vcmask 23552   ;;  %vm21481_vm5 = vmmov 0  }
  0x78   : > { %s25630_s21 = smov (!%p270_p10, %s21518_s21), 1  ;;  %v21646_v2 = vsel %vm1487_vm1, %v1488_v1, 0  ;;  %v312_v22 = vld [vmem:[#allocation2 + $0x6] sm:$0x3]  ;;  %vm825_vm4 = vsmask.f32 7424 }
  0x79   : > { %s16821_s22 = sshll.u32 %s25630_s21, 9  ;;  %v21655_v5 = vand.u32 %v21646_v2, %v310_v3  ;;  %v4187_v25 = vand.u32 %v21646_v2, %v312_v22  ;;  %vm10724_vm8 = vcmask 244736   ;;  %vm12187_vm11 = vcmask 261120   ;;  %s20895_s15 = smul.u32 24, %s25630_s21 }
  0x7a   : > { %s21651_s14 = scalar_lea.vmem %s25293_s0, %s16821_s22  ;;  %vm12754_vm12 = vsmask.f32 6400  ;;  %vm15159_vm13 = vcmask 1045504   ;;  %vm15155_vm14 = vcmask 97280   ;;  %vm15696_vm15 = vcmask 257024  }
  0x7b   : > { %v405_v4 = vld [vmem:[%s21651_s14 + $0x4] sm:$0xf]  ;;  %25389 = vst [vmem:[#allocation12_spill] sm:$0xff] %v21655_v5  ;;  %v20953_v6 = vld [vmem:[%s21651_s14 + $0x8] sm:$0xff]   ;;  %v2646_v7 = vld [vmem:[%s21651_s14] sm:$0xe]  ;;  %17959 = vmatprep.subr.bf16.mxu0 %v21655_v5  ;;  %s25276_s17 = scalar_lea.vmem %s25298_s5, %s20895_s15 }
  0x7c   : > { %v16000_v8 = vcombine.low %v2646_v7, %v405_v4  ;;  %v2652_v9 = vrot.slane %v20953_v6, 1  ;;  %v20955_v10 = vld [vmem:[%s21651_s14 + $0x10] sm:$0xff]   ;;  %17960 = vmatpush3.bf16.msra.mxu0 %v21655_v5  ;;  %v20956_v11 = vld [vmem:[%s21651_s14 + $0x18] sm:$0xff]   ;;  %v20957_v15 = vld [vmem:[%s21651_s14 + $0x20] sm:$0xff]  }
  0x7d   : > { %v2654_v13 = vrot.slane %v20955_v10, 1  ;;  %v2656_v14 = vrot.slane %v20956_v11, 1  ;;  %v20958_v18 = vld [vmem:[%s21651_s14 + $0x28] sm:$0xff]   ;;  %v2658_v20 = vrot.slane %v20957_v15, 1  ;;  %v20959_v24 = vld [vmem:[%s21651_s14 + $0x30] sm:$0xff]   ;;  %v20960_v27 = vld [vmem:[%s21651_s14 + $0x38] sm:$0xff]   ;;  %18081 = vmatprep.subr.bf16.mxu0 %v4187_v25 }
  0x7e   : > { %v2651_v12 = vrot.slane %v16000_v8, 1  ;;  %v2660_v21 = vrot.slane %v20958_v18, 1  ;;  %v2662_v28 = vrot.slane %v20959_v24, 1  ;;  %v2664_v29 = vrot.slane %v20960_v27, 1  ;;  %v20961_v31 = vld [vmem:[%s21651_s14 + $0x40] sm:$0xff]   ;;  %v20962_v33 = vld [vmem:[%s21651_s14 + $0x48] sm:$0xff]  }
  0x7f   : > { %v2655_v17 = vsel %vm2650_vm2, %v2652_v9, %v2654_v13  ;;  %v2657_v19 = vsel %vm2650_vm2, %v2654_v13, %v2656_v14  ;;  %v2659_v23 = vsel %vm2650_vm2, %v2656_v14, %v2658_v20  ;;  %v2666_v34 = vrot.slane %v20961_v31, 1  ;;  %v20963_v37 = vld [vmem:[%s21651_s14 + $0x50] sm:$0xff]   ;;  %v20964_v39 = vld [vmem:[%s21651_s14 + $0x58] sm:$0xff]   ;;  %v20965_v43 = vld [vmem:[%s21651_s14 + $0x60] sm:$0xff]  }
  0x80   : > { %v2653_v16 = vsel %vm2650_vm2, %v2651_v12, %v2652_v9  ;;  %v2661_v26 = vsel %vm2650_vm2, %v2658_v20, %v2660_v21  ;;  %v2663_v30 = vsel %vm2650_vm2, %v2660_v21, %v2662_v28  ;;  %v2665_v32 = vsel %vm2650_vm2, %v2662_v28, %v2664_v29  ;;  %v20966_v45 = vld [vmem:[%s21651_s14 + $0x68] sm:$0xff]   ;;  %v20967_v49 = vld [vmem:[%s21651_s14 + $0x70] sm:$0xff]   ;;  %v20968_v51 = vld [vmem:[%s21651_s14 + $0x78] sm:$0xff]  }
  0x81   : > { %17961 = vmatprep.mubr.msk.bf16.mxu0 %vm1305_vm3, %v2653_v16  ;;  %v2668_v35 = vrot.slane %v20962_v33, 1  ;;  %v2667_v36 = vsel %vm2650_vm2, %v2664_v29, %v2666_v34  ;;  %v2670_v40 = vrot.slane %v20963_v37, 1  ;;  %v2672_v41 = vrot.slane %v20964_v39, 1  ;;  %v20969_v54 = vld [vmem:[%s21651_s14 + $0x80] sm:$0xff]   ;;  %v20970_v55 = vld [vmem:[%s21651_s14 + $0x88] sm:$0xff]   ;;  %v20971_v60 = vld [vmem:[%s21651_s14 + $0x90] sm:$0xff]  }
  0x82   : > { %17962 = vmatmul.mubr.msk.bf16.vlgmr.msra.gmra.mrb[0].mxu0 %vm1305_vm3, %v2655_v17  ;;  %v2674_v46 = vrot.slane %v20965_v43, 1  ;;  %v2676_v47 = vrot.slane %v20966_v45, 1  ;;  %v2678_v52 = vrot.slane %v20967_v49, 1  ;;  %v2680_v53 = vrot.slane %v20968_v51, 1  ;;  %v20972_v61 = vld [vmem:[%s21651_s14 + $0x98] sm:$0xff]   ;;  %v20973_v3 = vld [vmem:[%s21651_s14 + $0xa0] sm:$0xff]  }
  0x83   : > { %17965 = vmatprep.mubr.msk.bf16.mxu0 %vm1305_vm3, %v2657_v19  ;;  %18082 = vmatpush3.bf16.msra.mxu0 %v4187_v25  ;;  %v2669_v38 = vsel %vm2650_vm2, %v2666_v34, %v2668_v35  ;;  %v2671_v42 = vsel %vm2650_vm2, %v2668_v35, %v2670_v40  ;;  %v2673_v44 = vsel %vm2650_vm2, %v2670_v40, %v2672_v41  ;;  %v2682_v58 = vrot.slane %v20969_v54, 1  ;;  %v20974_v4 = vld [vmem:[%s21651_s14 + $0xa8] sm:$0xff]   ;;  %v20975_v10 = vld [vmem:[%s21651_s14 + $0xb0] sm:$0xff]   ;;  %v20976_v11 = vld [vmem:[%s21651_s14 + $0xb8] sm:$0xff]  }
  0x84   : > { %v2675_v48 = vsel %vm2650_vm2, %v2672_v41, %v2674_v46  ;;  %v2677_v50 = vsel %vm2650_vm2, %v2674_v46, %v2676_v47  ;;  %v2679_v56 = vsel %vm2650_vm2, %v2676_v47, %v2678_v52  ;;  %v2681_v57 = vsel %vm2650_vm2, %v2678_v52, %v2680_v53  ;;  %v20977_v16 = vld [vmem:[%s21651_s14 + $0xc0] sm:$0xff]   ;;  %v20978_v17 = vld [vmem:[%s21651_s14 + $0xc8] sm:$0xff]   ;;  %v20979_v22 = vld [vmem:[%s21651_s14 + $0xd0] sm:$0xff]  }
  0x85   : > { %v2684_v59 = vrot.slane %v20970_v55, 1  ;;  %v2683_v62 = vsel %vm2650_vm2, %v2680_v53, %v2682_v58  ;;  %v2686_v0 = vrot.slane %v20971_v60, 1  ;;  %v2688_v1 = vrot.slane %v20972_v61, 1  ;;  %v20981_v28 = vld [vmem:[%s21651_s14 + $0xe0] sm:$0xff]   ;;  %v20982_v29 = vld [vmem:[%s21651_s14 + $0xe8] sm:$0xff]   ;;  %v20983_v34 = vld [vmem:[%s21651_s14 + $0xf0] sm:$0xff]  }
  0x86   : > { %v2690_v8 = vrot.slane %v20973_v3, 1  ;;  %v2692_v9 = vrot.slane %v20974_v4, 1  ;;  %v2694_v14 = vrot.slane %v20975_v10, 1  ;;  %v2696_v15 = vrot.slane %v20976_v11, 1  ;;  %v20984_v35 = vld [vmem:[%s21651_s14 + $0xf8] sm:$0xff]   ;;  %v20986_v43 = vld [vmem:[%s21651_s14 + $0x108] sm:$0xff]  }
  0x87   : > { %v2685_v63 = vsel %vm2650_vm2, %v2682_v58, %v2684_v59  ;;  %v2687_v6 = vsel %vm2650_vm2, %v2684_v59, %v2686_v0  ;;  %v2689_v7 = vsel %vm2650_vm2, %v2686_v0, %v2688_v1  ;;  %v2698_v20 = vrot.slane %v20977_v16, 1  ;;  %v20988_v49 = vld [vmem:[%s21651_s14 + $0x118] sm:$0xff]   ;;  %v20989_v54 = vld [vmem:[%s21651_s14 + $0x120] sm:$0xff]   ;;  %v20990_v55 = vld [vmem:[%s21651_s14 + $0x128] sm:$0xff]  }
  0x88   : > { %v2691_v12 = vsel %vm2650_vm2, %v2688_v1, %v2690_v8  ;;  %v2693_v13 = vsel %vm2650_vm2, %v2690_v8, %v2692_v9  ;;  %v2695_v18 = vsel %vm2650_vm2, %v2692_v9, %v2694_v14  ;;  %v2697_v19 = vsel %vm2650_vm2, %v2694_v14, %v2696_v15  ;;  %v20991_v60 = vld [vmem:[%s21651_s14 + $0x130] sm:$0xff]   ;;  %v20992_v61 = vld [vmem:[%s21651_s14 + $0x138] sm:$0xff]   ;;  %v20993_v3 = vld [vmem:[%s21651_s14 + $0x140] sm:$0xff]  }
  0x89   : > { %v2700_v21 = vrot.slane %v20978_v17, 1  ;;  %v2699_v24 = vsel %vm2650_vm2, %v2696_v15, %v2698_v20  ;;  %v2708_v33 = vrot.slane %v20982_v29, 1  ;;  %v2710_v39 = vrot.slane %v20983_v34, 1  ;;  %v20994_v4 = vld [vmem:[%s21651_s14 + $0x148] sm:$0xff]   ;;  %v20995_v10 = vld [vmem:[%s21651_s14 + $0x150] sm:$0xff]   ;;  %v20996_v11 = vld [vmem:[%s21651_s14 + $0x158] sm:$0xff]  }
  0x8a   : > { %17966 = vmatmul.mubr.msk.bf16.gmra.mrb[4].mxu0 %vm1305_vm3, %v2659_v23  ;;  %v20980_v23 = vld [vmem:[%s21651_s14 + $0xd8] sm:$0xff]   ;;  %v2712_v40 = vrot.slane %v20984_v35, 1  ;;  %v2716_v47 = vrot.slane %v20986_v43, 1  ;;  %v2720_v53 = vrot.slane %v20988_v49, 1  ;;  %v2722_v58 = vrot.slane %v20989_v54, 1  ;;  %v20997_v17 = vld [vmem:[%s21651_s14 + $0x160] sm:$0xff]  }
  0x8b   : > { %17969 = vmatprep.mubr.msk.bf16.mxu0 %vm1305_vm3, %v2661_v26  ;;  %v2701_v25 = vsel %vm2650_vm2, %v2698_v20, %v2700_v21  ;;  %v2702_v26 = vrot.slane %v20979_v22, 1  ;;  %v2704_v27 = vrot.slane %v20980_v23, 1  ;;  %v2724_v59 = vrot.slane %v20990_v55, 1  ;;  %v20999_v23 = vld [vmem:[%s21651_s14 + $0x170] sm:$0xff]   ;;  %v21804_v29 = vld [vmem:[%s21651_s14 + $0x180] sm:$0xff]   ;;  %v21915_v54 = vld [vmem:[%s21651_s14 + $0xa8] sm:$0xff]  }
  0x8c   : > { %v2713_v45 = vsel %vm2650_vm2, %v2710_v39, %v2712_v40  ;;  %v2726_v0 = vrot.slane %v20991_v60, 1  ;;  %v2728_v1 = vrot.slane %v20992_v61, 1  ;;  %v2730_v8 = vrot.slane %v20993_v3, 1  ;;  %25390 = vst [vmem:[#allocation13_spill] sm:$0xff] %v21804_v29  ;;  %v21858_v43 = vld [vmem:[%s21651_s14 + $0x50] sm:$0xff]   ;;  %v21888_v49 = vld [vmem:[%s21651_s14 + $0x80] sm:$0xff]  }
  0x8d   : > { %v2705_v31 = vsel %vm2650_vm2, %v2702_v26, %v2704_v27  ;;  %v2732_v9 = vrot.slane %v20994_v4, 1  ;;  %v2734_v14 = vrot.slane %v20995_v10, 1  ;;  %v2736_v15 = vrot.slane %v20996_v11, 1  ;;  %v21918_v55 = vld [vmem:[%s21651_s14 + $0xb0] sm:$0xff]   ;;  %v21945_v60 = vld [vmem:[%s21651_s14 + $0xd8] sm:$0xff]   ;;  %v21948_v61 = vld [vmem:[%s21651_s14 + $0xe0] sm:$0xff]  }
  0x8e   : > { %v2738_v20 = vrot.slane %v20997_v17, 1  ;;  %v21975_v3 = vld [vmem:[%s21651_s14 + $0x108] sm:$0xff]   ;;  %v21978_v4 = vld [vmem:[%s21651_s14 + $0x110] sm:$0xff]   ;;  %v22005_v10 = vld [vmem:[%s21651_s14 + $0x138] sm:$0xff]  }
  0x8f   : > { %v2735_v16 = vsel %vm2650_vm2, %v2732_v9, %v2734_v14  ;;  %v22008_v11 = vld [vmem:[%s21651_s14 + $0x140] sm:$0xff]  }
  0x90   : > { %v2739_v22 = vsel %vm2650_vm2, %v2736_v15, %v2738_v20  ;;  %v22032_v17 = vld [vmem:[%s21651_s14 + $0x160] sm:$0xff]  }
  0x92   : > { %17970 = vmatmul.mubr.msk.bf16.gmra.mrb[8].mxu0 %vm1305_vm3, %v2663_v30  ;;  %v2703_v30 = vsel %vm2650_vm2, %v2700_v21, %v2702_v26  ;;  %v2742_v26 = vrot.slane %v20999_v23, 1  ;;  %v22062_v23 = vld [vmem:[%s21651_s14 + $0x190] sm:$0xff]  }
  0x93   : > { %17973 = vmatprep.mubr.msk.bf16.mxu0 %vm1305_vm3, %v2665_v32  ;;  %v2706_v32 = vrot.slane %v20981_v28, 1  ;;  %25394 = vst [vmem:[#allocation17_spill] sm:$0xff] %v22062_v23 }
  0x95   : > { %v2709_v37 = vsel %vm2650_vm2, %v2706_v32, %v2708_v33 }
  0x9a   : > { %17974 = vmatmul.mubr.msk.bf16.gmra.mrb[12].mxu0 %vm1305_vm3, %v2667_v36  ;;  %v2707_v36 = vsel %vm2650_vm2, %v2704_v27, %v2706_v32  ;;  %v3586_v32 = vld [vmem:[%s21651_s14 + $0x10] sm:$0xf] }
  0x9b   : > { %17977 = vmatprep.mubr.msk.bf16.mxu0 %vm1305_vm3, %v2669_v38  ;;  %v314_v38 = vld [vmem:[#allocation2 + $0x8] sm:$0x3] }
  0x9c   : > { %v21751_v41 = vand.u32 %v21646_v2, %v314_v38  ;;  %v21835_v38 = vld [vmem:[%s21651_s14 + $0x28] sm:$0xff]  }
  0x9e   : > { %18203 = vmatprep.subr.bf16.mxu0 %v21751_v41 }
  0xa2   : > { %17978 = vmatmul.mubr.msk.bf16.gmra.mrb[16].mxu0 %vm1305_vm3, %v2671_v42  ;;  %v20985_v42 = vld [vmem:[%s21651_s14 + $0x100] sm:$0xff]  }
  0xa3   : > { %17981 = vmatprep.mubr.msk.bf16.mxu0 %vm1305_vm3, %v2673_v44  ;;  %v2711_v44 = vsel %vm2650_vm2, %v2708_v33, %v2710_v39  ;;  %v2714_v46 = vrot.slane %v20985_v42, 1  ;;  %v21812_v33 = vld [vmem:[%s21651_s14 + $0x14] sm:$0xf]  ;;  %v21848_v42 = vld [vmem:[%s21651_s14 + $0x40] sm:$0xff]  }
  0xa4   : > { %25391 = vst [vmem:[#allocation14_spill] sm:$0xff] %v21812_v33  ;;  %v21818_v35 = vcombine.low %v3586_v32, %v21812_v33  ;;  %v21838_v39 = vld [vmem:[%s21651_s14 + $0x30] sm:$0xff]   ;;  %v22099_v32 = vld [vmem:[%s21651_s14 + $0x1c8] sm:$0xff]  }
  0xa5   : > { %v2717_v51 = vsel %vm2650_vm2, %v2714_v46, %v2716_v47  ;;  %25401 = vst [vmem:[#allocation24_spill] sm:$0xff] %v22099_v32 }
  0xa6   : > { %v4826_v5 = vshrl.u32 %v21818_v35, 16 }
  0xaa   : > { %17982 = vmatmul.mubr.msk.bf16.gmra.mrb[20].mxu0 %vm1305_vm3, %v2675_v48  ;;  %v20987_v48 = vld [vmem:[%s21651_s14 + $0x110] sm:$0xff]  }
  0xab   : > { %17985 = vmatprep.mubr.msk.bf16.mxu0 %vm1305_vm3, %v2677_v50  ;;  %v2715_v50 = vsel %vm2650_vm2, %v2712_v40, %v2714_v46  ;;  %v2718_v52 = vrot.slane %v20987_v48, 1  ;;  %v21845_v40 = vld [vmem:[%s21651_s14 + $0x38] sm:$0xff]   ;;  %v21875_v46 = vld [vmem:[%s21651_s14 + $0x68] sm:$0xff]  }
  0xac   : > { %v21885_v48 = vld [vmem:[%s21651_s14 + $0x78] sm:$0xff]  }
  0xb2   : > { %17986 = vmatmul.mubr.msk.bf16.gmra.mrb[24].mxu0 %vm1305_vm3, %v2679_v56  ;;  %v2719_v56 = vsel %vm2650_vm2, %v2716_v47, %v2718_v52  ;;  %v21878_v47 = vld [vmem:[%s21651_s14 + $0x70] sm:$0xff]  }
  0xb3   : > { %17989 = vmatprep.mubr.msk.bf16.mxu0 %vm1305_vm3, %v2681_v57  ;;  %v2721_v57 = vsel %vm2650_vm2, %v2718_v52, %v2720_v53  ;;  %v21905_v52 = vld [vmem:[%s21651_s14 + $0x98] sm:$0xff]  }
  0xba   : > { %17990 = vmatmul.mubr.msk.bf16.gmra.mrb[28].mxu0 %vm1305_vm3, %v2683_v62  ;;  %v2723_v62 = vsel %vm2650_vm2, %v2720_v53, %v2722_v58  ;;  %v21908_v53 = vld [vmem:[%s21651_s14 + $0xa0] sm:$0xff]  }
  0xbb   : > { %17993 = vmatprep.mubr.msk.bf16.mxu0 %vm1305_vm3, %v2685_v63  ;;  %v2725_v63 = vsel %vm2650_vm2, %v2722_v58, %v2724_v59  ;;  %v21935_v58 = vld [vmem:[%s21651_s14 + $0xc8] sm:$0xff]  }
  0xc2   : > { %17994 = vmatmul.mubr.msk.bf16.gmra.mrb[32].mxu0 %vm1305_vm3, %v2687_v6  ;;  %v2727_v6 = vsel %vm2650_vm2, %v2724_v59, %v2726_v0  ;;  %v21938_v59 = vld [vmem:[%s21651_s14 + $0xd0] sm:$0xff]  }
  0xc3   : > { %17997 = vmatprep.mubr.msk.bf16.mxu0 %vm1305_vm3, %v2689_v7  ;;  %v2729_v7 = vsel %vm2650_vm2, %v2726_v0, %v2728_v1  ;;  %v21965_v0 = vld [vmem:[%s21651_s14 + $0xf8] sm:$0xff]  }
  0xca   : > { %17998 = vmatmul.mubr.msk.bf16.gmra.mrb[36].mxu0 %vm1305_vm3, %v2691_v12  ;;  %v2731_v12 = vsel %vm2650_vm2, %v2728_v1, %v2730_v8  ;;  %v21968_v1 = vld [vmem:[%s21651_s14 + $0x100] sm:$0xff]  }
  0xcb   : > { %18001 = vmatprep.mubr.msk.bf16.mxu0 %vm1305_vm3, %v2693_v13  ;;  %v2733_v13 = vsel %vm2650_vm2, %v2730_v8, %v2732_v9  ;;  %v21995_v8 = vld [vmem:[%s21651_s14 + $0x128] sm:$0xff]   ;;  %v21998_v9 = vld [vmem:[%s21651_s14 + $0x130] sm:$0xff]  }
  0xd2   : > { %18002 = vmatmul.mubr.msk.bf16.gmra.mrb[40].mxu0 %vm1305_vm3, %v2695_v18  ;;  %v2737_v18 = vsel %vm2650_vm2, %v2734_v14, %v2736_v15  ;;  %v316_v14 = vld [vmem:[#allocation2 + $0xa] sm:$0x3] }
  0xd3   : > { %18005 = vmatprep.mubr.msk.bf16.mxu0 %vm1305_vm3, %v2697_v19  ;;  %v20998_v19 = vld [vmem:[%s21651_s14 + $0x168] sm:$0xff]   ;;  %v22025_v15 = vand.u32 %v21646_v2, %v316_v14  ;;  %v4828_v14 = vshll.u32 %v21818_v35, 16 }
  0xd4   : > { %v2740_v21 = vrot.slane %v20998_v19, 1  ;;  %v22042_v19 = vld [vmem:[%s21651_s14 + $0x170] sm:$0xff]  }
  0xd5   : > { %v4830_v33 = vrot.slane %v4828_v14, 1 }
  0xd6   : > { %v2743_v28 = vsel %vm2650_vm2, %v2740_v21, %v2742_v26 }
  0xda   : > { %18006 = vmatmul.mubr.msk.bf16.gmra.mrb[44].mxu0 %vm1305_vm3, %v2699_v24  ;;  %v2741_v24 = vsel %vm2650_vm2, %v2738_v20, %v2740_v21  ;;  %v22049_v20 = vld [vmem:[%s21651_s14 + $0x178] sm:$0xff]   ;;  %v22052_v21 = vld [vmem:[%s21651_s14 + $0x180] sm:$0xff]  }
  0xdb   : > { %18009 = vmatprep.mubr.msk.bf16.mxu0 %vm1305_vm3, %v2701_v25  ;;  %v21000_v25 = vld [vmem:[%s21651_s14 + $0x178] sm:$0xff]  }
  0xdc   : > { %v2744_v27 = vrot.slane %v21000_v25, 1  ;;  %v22072_v25 = vld [vmem:[%s21651_s14 + $0x1a0] sm:$0xff]  }
  0xdd   : > { %25396 = vst [vmem:[#allocation19_spill] sm:$0xff] %v22072_v25 }
  0xe2   : > { %18010 = vmatmul.mubr.msk.bf16.gmra.mrb[48].mxu0 %vm1305_vm3, %v2703_v30  ;;  %v2745_v30 = vsel %vm2650_vm2, %v2742_v26, %v2744_v27  ;;  %v22079_v26 = vld [vmem:[%s21651_s14 + $0x1a8] sm:$0xff]  }
  0xe3   : > { %18013 = vmatprep.mubr.msk.bf16.mxu0 %vm1305_vm3, %v2705_v31  ;;  %v25301_v31 = vrot.slane %v21804_v29, 1  ;;  %25397 = vst [vmem:[#allocation20_spill] sm:$0xff] %v22079_v26  ;;  %v22113_v29 = vld [vmem:[%s21651_s14 + $0x1e0] sm:$0xff]  }
  0xe4   : > { %25404 = vst [vmem:[#allocation27_spill] sm:$0xff] %v22113_v29 }
  0xe5   : > { %v2747_v34 = vsel %vm2650_vm2, %v2744_v27, %v25301_v31  ;;  %v22082_v27 = vld [vmem:[%s21651_s14 + $0x1b0] sm:$0xff]   ;;  %v22110_v31 = vld [vmem:[%s21651_s14 + $0x1d8] sm:$0xff]  }
  0xe6   : > { %25398 = vst [vmem:[#allocation21_spill] sm:$0xff] %v22082_v27  ;;  %25403 = vst [vmem:[#allocation26_spill] sm:$0xff] %v22110_v31 }
  0xea   : > { %18014 = vmatmul.mubr.msk.bf16.gmra.mrb[52].mxu0 %vm1305_vm3, %v2707_v36  ;;  %v21824_v36 = vld [vmem:[%s21651_s14 + $0x18] sm:$0xff]  }
  0xeb   : > { %18017 = vmatprep.mubr.msk.bf16.mxu0 %vm1305_vm3, %v2709_v37  ;;  %25392 = vst [vmem:[#allocation15_spill] sm:$0xff] %v21824_v36  ;;  %v21827_v37 = vld [vmem:[%s21651_s14 + $0x20] sm:$0xff]  }
  0xec   : > { %25393 = vst [vmem:[#allocation16_spill] sm:$0xff] %v21827_v37 }
  0xf2   : > { %18018 = vmatmul.mubr.msk.bf16.gmra.mrb[56].mxu0 %vm1305_vm3, %v2711_v44  ;;  %v21865_v44 = vld [vmem:[%s21651_s14 + $0x58] sm:$0xff]  }
  0xf3   : > { %18021 = vmatprep.mubr.msk.bf16.mxu0 %vm1305_vm3, %v2713_v45  ;;  %v21868_v45 = vld [vmem:[%s21651_s14 + $0x60] sm:$0xff]  }
  0xfa   : > { %18022 = vmatmul.mubr.msk.bf16.gmra.mrb[60].mxu0 %vm1305_vm3, %v2715_v50  ;;  %v21895_v50 = vld [vmem:[%s21651_s14 + $0x88] sm:$0xff]  }
  0xfb   : > { %18025 = vmatprep.mubr.msk.bf16.mxu0 %vm1305_vm3, %v2717_v51  ;;  %v21898_v51 = vld [vmem:[%s21651_s14 + $0x90] sm:$0xff]  }
 0x102   : > { %18026 = vmatmul.mubr.msk.bf16.gmra.mrb[64].mxu0 %vm1305_vm3, %v2719_v56  ;;  %v21925_v56 = vld [vmem:[%s21651_s14 + $0xb8] sm:$0xff]  }
 0x103   : > { %18029 = vmatprep.mubr.msk.bf16.mxu0 %vm1305_vm3, %v2721_v57  ;;  %v21928_v57 = vld [vmem:[%s21651_s14 + $0xc0] sm:$0xff]  }
 0x10a   : > { %18030 = vmatmul.mubr.msk.bf16.gmra.mrb[68].mxu0 %vm1305_vm3, %v2723_v62  ;;  %v21955_v62 = vld [vmem:[%s21651_s14 + $0xe8] sm:$0xff]  }
 0x10b   : > { %18033 = vmatprep.mubr.msk.bf16.mxu0 %vm1305_vm3, %v2725_v63  ;;  %v21958_v63 = vld [vmem:[%s21651_s14 + $0xf0] sm:$0xff]  }
 0x112   : > { %18034 = vmatmul.mubr.msk.bf16.gmra.mrb[72].mxu0 %vm1305_vm3, %v2727_v6  ;;  %v21985_v6 = vld [vmem:[%s21651_s14 + $0x118] sm:$0xff]  }
 0x113   : > { %18037 = vmatprep.mubr.msk.bf16.mxu0 %vm1305_vm3, %v2729_v7  ;;  %v21988_v7 = vld [vmem:[%s21651_s14 + $0x120] sm:$0xff]  }
 0x11a   : > { %18038 = vmatmul.mubr.msk.bf16.gmra.mrb[76].mxu0 %vm1305_vm3, %v2731_v12  ;;  %v22015_v12 = vld [vmem:[%s21651_s14 + $0x148] sm:$0xff]  }
 0x11b   : > { %18041 = vmatprep.mubr.msk.bf16.mxu0 %vm1305_vm3, %v2733_v13  ;;  %v22018_v13 = vld [vmem:[%s21651_s14 + $0x150] sm:$0xff]  }
 0x122   : > { %18042 = vmatmul.mubr.msk.bf16.gmra.mrb[80].mxu0 %vm1305_vm3, %v2735_v16  ;;  %v22029_v16 = vld [vmem:[%s21651_s14 + $0x158] sm:$0xff]  }
 0x123   : > { %18045 = vmatprep.mubr.msk.bf16.mxu0 %vm1305_vm3, %v2737_v18  ;;  %v22039_v18 = vld [vmem:[%s21651_s14 + $0x168] sm:$0xff]  }
 0x12a   : > { %18046 = vmatmul.mubr.msk.bf16.gmra.mrb[84].mxu0 %vm1305_vm3, %v2739_v22  ;;  %v22059_v22 = vld [vmem:[%s21651_s14 + $0x188] sm:$0xff]  }
 0x12b   : > { %18049 = vmatprep.mubr.msk.bf16.mxu0 %vm1305_vm3, %v2741_v24  ;;  %v22069_v24 = vld [vmem:[%s21651_s14 + $0x198] sm:$0xff]  }
 0x12c   : > { %25395 = vst [vmem:[#allocation18_spill] sm:$0xff] %v22069_v24 }
 0x132   : > { %18050 = vmatmul.mubr.msk.bf16.gmra.mrb[88].mxu0 %vm1305_vm3, %v2743_v28  ;;  %v22089_v28 = vld [vmem:[%s21651_s14 + $0x1b8] sm:$0xff]  }
 0x133   : > { %18053 = vmatprep.mubr.msk.bf16.mxu0 %vm1305_vm3, %v2745_v30  ;;  %25399 = vst [vmem:[#allocation22_spill] sm:$0xff] %v22089_v28  ;;  %v22092_v30 = vld [vmem:[%s21651_s14 + $0x1c0] sm:$0xff]  }
 0x134   : > { %25400 = vst [vmem:[#allocation23_spill] sm:$0xff] %v22092_v30 }
 0x13a   : > { %18054 = vmatmul.mubr.msk.bf16.gmra.mrb[92].mxu0 %vm1305_vm3, %v2747_v34  ;;  %v22102_v34 = vld [vmem:[%s21651_s14 + $0x1d0] sm:$0xff]  }
 0x13b   : > { %18083 = vmatprep.mubr.msk.bf16.mxu0 %vm1305_vm3, %v21818_v35  ;;  %25402 = vst [vmem:[#allocation25_spill] sm:$0xff] %v22102_v34  ;;  %v4836_v35 = vshrl.u32 %v21824_v36, 16 }
 0x142   : > { %18084 = vmatmul.mubr.msk.bf16.vlgmr.msra.gmra.mrb[0].mxu0 %vm1305_vm3, %v21824_v36 }
 0x143   : > { %18087 = vmatprep.mubr.msk.bf16.mxu0 %vm1305_vm3, %v21827_v37  ;;  %18204 = vmatpush3.bf16.msra.mxu0 %v21751_v41  ;;  %v21855_v41 = vld [vmem:[%s21651_s14 + $0x48] sm:$0xff]  }
 0x144   : > { %18325 = vmatprep.subr.bf16.mxu0 %v22025_v15 }
 0x14a   : > { %18088 = vmatmul.mubr.msk.bf16.gmra.mrb[4].mxu0 %vm1305_vm3, %v21835_v38 }
 0x14b   : > { %18091 = vmatprep.mubr.msk.bf16.mxu0 %vm1305_vm3, %v21838_v39 }
 0x152   : > { %18092 = vmatmul.mubr.msk.bf16.gmra.mrb[8].mxu0 %vm1305_vm3, %v21845_v40 }
 0x153   : > { %18095 = vmatprep.mubr.msk.bf16.mxu0 %vm1305_vm3, %v21848_v42 }
 0x15a   : > { %18096 = vmatmul.mubr.msk.bf16.gmra.mrb[12].mxu0 %vm1305_vm3, %v21855_v41 }
 0x15b   : > { %18099 = vmatprep.mubr.msk.bf16.mxu0 %vm1305_vm3, %v21858_v43 }
 0x162   : > { %18100 = vmatmul.mubr.msk.bf16.gmra.mrb[16].mxu0 %vm1305_vm3, %v21865_v44 }
 0x163   : > { %18103 = vmatprep.mubr.msk.bf16.mxu0 %vm1305_vm3, %v21868_v45 }
 0x16a   : > { %18104 = vmatmul.mubr.msk.bf16.gmra.mrb[20].mxu0 %vm1305_vm3, %v21875_v46 }
 0x16b   : > { %18107 = vmatprep.mubr.msk.bf16.mxu0 %vm1305_vm3, %v21878_v47 }
 0x172   : > { %18108 = vmatmul.mubr.msk.bf16.gmra.mrb[24].mxu0 %vm1305_vm3, %v21885_v48 }
 0x173   : > { %18111 = vmatprep.mubr.msk.bf16.mxu0 %vm1305_vm3, %v21888_v49 }
 0x17a   : > { %18112 = vmatmul.mubr.msk.bf16.gmra.mrb[28].mxu0 %vm1305_vm3, %v21895_v50 }
 0x17b   : > { %18115 = vmatprep.mubr.msk.bf16.mxu0 %vm1305_vm3, %v21898_v51 }
 0x182   : > { %18116 = vmatmul.mubr.msk.bf16.gmra.mrb[32].mxu0 %vm1305_vm3, %v21905_v52 }
 0x183   : > { %18119 = vmatprep.mubr.msk.bf16.mxu0 %vm1305_vm3, %v21908_v53 }
 0x18a   : > { %18120 = vmatmul.mubr.msk.bf16.gmra.mrb[36].mxu0 %vm1305_vm3, %v21915_v54 }
 0x18b   : > { %18123 = vmatprep.mubr.msk.bf16.mxu0 %vm1305_vm3, %v21918_v55 }
 0x192   : > { %18124 = vmatmul.mubr.msk.bf16.gmra.mrb[40].mxu0 %vm1305_vm3, %v21925_v56 }
 0x193   : > { %18127 = vmatprep.mubr.msk.bf16.mxu0 %vm1305_vm3, %v21928_v57 }
 0x19a   : > { %18128 = vmatmul.mubr.msk.bf16.gmra.mrb[44].mxu0 %vm1305_vm3, %v21935_v58 }
 0x19b   : > { %18131 = vmatprep.mubr.msk.bf16.mxu0 %vm1305_vm3, %v21938_v59 }
 0x1a2   : > { %18132 = vmatmul.mubr.msk.bf16.gmra.mrb[48].mxu0 %vm1305_vm3, %v21945_v60 }
 0x1a3   : > { %18135 = vmatprep.mubr.msk.bf16.mxu0 %vm1305_vm3, %v21948_v61 }
 0x1aa   : > { %18136 = vmatmul.mubr.msk.bf16.gmra.mrb[52].mxu0 %vm1305_vm3, %v21955_v62 }
 0x1ab   : > { %18139 = vmatprep.mubr.msk.bf16.mxu0 %vm1305_vm3, %v21958_v63 }
 0x1b2   : > { %18140 = vmatmul.mubr.msk.bf16.gmra.mrb[56].mxu0 %vm1305_vm3, %v21965_v0 }
 0x1b3   : > { %18143 = vmatprep.mubr.msk.bf16.mxu0 %vm1305_vm3, %v21968_v1 }
 0x1ba   : > { %18144 = vmatmul.mubr.msk.bf16.gmra.mrb[60].mxu0 %vm1305_vm3, %v21975_v3 }
 0x1bb   : > { %18147 = vmatprep.mubr.msk.bf16.mxu0 %vm1305_vm3, %v21978_v4 }
 0x1c2   : > { %18148 = vmatmul.mubr.msk.bf16.gmra.mrb[64].mxu0 %vm1305_vm3, %v21985_v6 }
 0x1c3   : > { %18151 = vmatprep.mubr.msk.bf16.mxu0 %vm1305_vm3, %v21988_v7 }
 0x1ca   : > { %18152 = vmatmul.mubr.msk.bf16.gmra.mrb[68].mxu0 %vm1305_vm3, %v21995_v8 }
 0x1cb   : > { %18155 = vmatprep.mubr.msk.bf16.mxu0 %vm1305_vm3, %v21998_v9 }
 0x1d2   : > { %18156 = vmatmul.mubr.msk.bf16.gmra.mrb[72].mxu0 %vm1305_vm3, %v22005_v10 }
 0x1d3   : > { %18159 = vmatprep.mubr.msk.bf16.mxu0 %vm1305_vm3, %v22008_v11 }
 0x1da   : > { %18160 = vmatmul.mubr.msk.bf16.gmra.mrb[76].mxu0 %vm1305_vm3, %v22015_v12 }
 0x1db   : > { %18163 = vmatprep.mubr.msk.bf16.mxu0 %vm1305_vm3, %v22018_v13 }
 0x1e2   : > { %18164 = vmatmul.mubr.msk.bf16.gmra.mrb[80].mxu0 %vm1305_vm3, %v22029_v16 }
 0x1e3   : > { %18167 = vmatprep.mubr.msk.bf16.mxu0 %vm1305_vm3, %v22032_v17 }
 0x1ea   : > { %18168 = vmatmul.mubr.msk.bf16.gmra.mrb[84].mxu0 %vm1305_vm3, %v22039_v18 }
 0x1eb   : > { %18171 = vmatprep.mubr.msk.bf16.mxu0 %vm1305_vm3, %v22042_v19 }
 0x1f2   : > { %18172 = vmatmul.mubr.msk.bf16.gmra.mrb[88].mxu0 %vm1305_vm3, %v22049_v20 }
 0x1f3   : > { %18175 = vmatprep.mubr.msk.bf16.mxu0 %vm1305_vm3, %v22052_v21 }
 0x1fa   : > { %18176 = vmatmul.mubr.msk.bf16.gmra.mrb[92].mxu0 %vm1305_vm3, %v22059_v22 }
 0x1fb   : > { %18179 = vmatprep.mubr.msk.bf16.mxu0 %vm1305_vm3, %v22062_v23 }
 0x202   : > { %18180 = vmatmul.mubr.msk.bf16.gmra.mrb[96].mxu0 %vm1305_vm3, %v22069_v24  ;;  %v4843_v24 = vshrl.u32 %v21827_v37, 16 }
 0x203   : > { %18183 = vmatprep.mubr.msk.bf16.mxu0 %vm1305_vm3, %v22072_v25  ;;  %v4839_v25 = vshll.u32 %v21827_v37, 16  ;;  %v4857_v37 = vshrl.u32 %v21838_v39, 16 }
 0x20a   : > { %18184 = vmatmul.mubr.msk.bf16.gmra.mrb[100].mxu0 %vm1305_vm3, %v22079_v26 }
 0x20b   : > { %18187 = vmatprep.mubr.msk.bf16.mxu0 %vm1305_vm3, %v22082_v27 }
 0x212   : > { %18188 = vmatmul.mubr.msk.bf16.gmra.mrb[104].mxu0 %vm1305_vm3, %v22089_v28  ;;  %v4831_v28 = vor.u32 %v4830_v33, %v4826_v5 }
 0x213   : > { %18191 = vmatprep.mubr.msk.bf16.mxu0 %vm1305_vm3, %v22092_v30  ;;  %v4832_v30 = vshll.u32 %v21824_v36, 16  ;;  %v4850_v36 = vshrl.u32 %v21835_v38, 16 }
 0x215   : > { %v4834_v27 = vrot.slane %v4832_v30, 1  ;;  %v4853_v30 = vshll.u32 %v21838_v39, 16 }
 0x217   : > { %v4835_v14 = vsel %vm825_vm4, %v4831_v28, %v4834_v27  ;;  %v4838_v23 = vor.u32 %v4836_v35, %v4834_v27  ;;  %v4864_v27 = vshrl.u32 %v21845_v40, 16 }
 0x21a   : > { %18192 = vmatmul.mubr.msk.bf16.gmra.mrb[108].mxu0 %vm1305_vm3, %v22099_v32  ;;  %v22122_v32 = vld [vmem:[%s21651_s14 + $0x1e8] sm:$0xf] }
 0x21b   : > { %18195 = vmatprep.mubr.msk.bf16.mxu0 %vm1305_vm3, %v22102_v34  ;;  %25405 = vst [vmem:[#allocation28_spill] sm:$0xff] %v22122_v32  ;;  %v3705_v34 = vld [vmem:[%s21651_s14 + $0x1ec] sm:$0x7] }
 0x21c   : > { %v16120_v26 = vcombine.low %v22122_v32, %v3705_v34  ;;  %v4860_v32 = vshll.u32 %v21845_v40, 16 }
 0x222   : > { %18196 = vmatmul.mubr.msk.bf16.gmra.mrb[112].mxu0 %vm1305_vm3, %v22110_v31  ;;  %v4846_v31 = vshll.u32 %v21835_v38, 16 }
 0x223   : > { %18199 = vmatprep.mubr.msk.bf16.mxu0 %vm1305_vm3, %v22113_v29  ;;  %v4841_v29 = vrot.slane %v4839_v25, 1  ;;  %v4855_v25 = vrot.slane %v4853_v30, 1 }
 0x224   : > { %v4848_v33 = vrot.slane %v4846_v31, 1 }
 0x225   : > { %v4845_v5 = vor.u32 %v4843_v24, %v4841_v29  ;;  %v4842_v34 = vsel %vm825_vm4, %v4838_v23, %v4841_v29  ;;  %v4859_v31 = vor.u32 %v4857_v37, %v4855_v25  ;;  %v4862_v24 = vrot.slane %v4860_v32, 1 }
 0x226   : > { %v4867_v29 = vshll.u32 %v21848_v42, 16  ;;  %v4881_v32 = vshll.u32 %v21858_v43, 16 }
 0x227   : > { %v4849_v28 = vsel %vm825_vm4, %v4845_v5, %v4848_v33  ;;  %v4863_v35 = vsel %vm825_vm4, %v4859_v31, %v4862_v24  ;;  %v4874_v5 = vshll.u32 %v21855_v41, 16 }
 0x228   : > { %v4869_v30 = vrot.slane %v4867_v29, 1  ;;  %v4883_v31 = vrot.slane %v4881_v32, 1 }
 0x22a   : > { %18200 = vmatmul.mubr.msk.bf16.gmra.mrb[116].mxu0 %vm1305_vm3, %v16120_v26  ;;  %v4852_v26 = vor.u32 %v4850_v36, %v4848_v33  ;;  %v4866_v36 = vor.u32 %v4864_v27, %v4862_v24  ;;  %v4895_v27 = vshll.u32 %v21868_v45, 16 }
 0x22b   : > { %18205 = vmatprep.mubr.msk.bf16.mxu0 %vm1305_vm3, %v4835_v14  ;;  %v4871_v14 = vshrl.u32 %v21848_v42, 16 }
 0x22c   : > { %v4856_v23 = vsel %vm825_vm4, %v4852_v26, %v4855_v25  ;;  %v4870_v33 = vsel %vm825_vm4, %v4866_v36, %v4869_v30  ;;  %v4885_v25 = vshrl.u32 %v21858_v43, 16  ;;  %v4888_v26 = vshll.u32 %v21865_v44, 16 }
 0x22d   : > { %v4873_v37 = vor.u32 %v4871_v14, %v4869_v30  ;;  %v4892_v14 = vshrl.u32 %v21865_v44, 16  ;;  %v4899_v43 = vshrl.u32 %v21868_v45, 16  ;;  %v4902_v30 = vshll.u32 %v21875_v46, 16 }
 0x22e   : > { %v4887_v29 = vor.u32 %v4885_v25, %v4883_v31  ;;  %v4897_v36 = vrot.slane %v4895_v27, 1  ;;  %v4906_v44 = vshrl.u32 %v21875_v46, 16  ;;  %v4913_v45 = vshrl.u32 %v21878_v47, 16 }
 0x22f   : > { %v4904_v32 = vrot.slane %v4902_v30, 1  ;;  %v4916_v25 = vshll.u32 %v21885_v48, 16  ;;  %v4920_v46 = vshrl.u32 %v21885_v48, 16  ;;  %v4934_v48 = vshrl.u32 %v21895_v50, 16 }
 0x232   : > { %18206 = vmatmul.mubr.msk.bf16.vlgmr.msra.gmra.mrb[0].mxu0 %vm1305_vm3, %v4842_v34  ;;  %v4878_v34 = vshrl.u32 %v21855_v41, 16 }
 0x233   : > { %18209 = vmatprep.mubr.msk.bf16.mxu0 %vm1305_vm3, %v4849_v28  ;;  %18326 = vmatpush3.bf16.msra.mxu0 %v22025_v15  ;;  %v4876_v15 = vrot.slane %v4874_v5, 1 }
 0x235   : > { %v4877_v28 = vsel %vm825_vm4, %v4873_v37, %v4876_v15  ;;  %v4880_v24 = vor.u32 %v4878_v34, %v4876_v15  ;;  %v4901_v15 = vor.u32 %v4899_v43, %v4897_v36 }
 0x23a   : > { %18210 = vmatmul.mubr.msk.bf16.gmra.mrb[4].mxu0 %vm1305_vm3, %v4856_v23  ;;  %v4890_v23 = vrot.slane %v4888_v26, 1 }
 0x23b   : > { %18213 = vmatprep.mubr.msk.bf16.mxu0 %vm1305_vm3, %v4863_v35  ;;  %v4884_v35 = vsel %vm825_vm4, %v4880_v24, %v4883_v31  ;;  %v4908_v31 = vor.u32 %v4906_v44, %v4904_v32 }
 0x23c   : > { %v4891_v5 = vsel %vm825_vm4, %v4887_v29, %v4890_v23  ;;  %v4894_v37 = vor.u32 %v4892_v14, %v4890_v23  ;;  %v4918_v29 = vrot.slane %v4916_v25, 1  ;;  %v4923_v23 = vshll.u32 %v21888_v49, 16 }
 0x23d   : > { %v4930_v14 = vshll.u32 %v21895_v50, 16  ;;  %v4951_v25 = vshll.u32 %v21908_v53, 16  ;;  %v4948_v50 = vshrl.u32 %v21905_v52, 16 }
 0x23e   : > { %v4898_v34 = vsel %vm825_vm4, %v4894_v37, %v4897_v36  ;;  %v4922_v43 = vor.u32 %v4920_v46, %v4918_v29  ;;  %v4937_v37 = vshll.u32 %v21898_v51, 16 }
 0x23f   : > { %v4932_v36 = vrot.slane %v4930_v14, 1 }
 0x241   : > { %v4936_v44 = vor.u32 %v4934_v48, %v4932_v36 }
 0x242   : > { %18214 = vmatmul.mubr.msk.bf16.gmra.mrb[8].mxu0 %vm1305_vm3, %v4870_v33  ;;  %v4909_v33 = vshll.u32 %v21878_v47, 16  ;;  %v4927_v47 = vshrl.u32 %v21888_v49, 16  ;;  %v4941_v49 = vshrl.u32 %v21898_v51, 16  ;;  %v4955_v51 = vshrl.u32 %v21908_v53, 16 }
 0x243   : > { %18217 = vmatprep.mubr.msk.bf16.mxu0 %vm1305_vm3, %v4877_v28  ;;  %v4905_v28 = vsel %vm825_vm4, %v4901_v15, %v4904_v32  ;;  %v4969_v53 = vshrl.u32 %v21918_v55, 16 }
 0x244   : > { %v4911_v26 = vrot.slane %v4909_v33, 1  ;;  %v4944_v33 = vshll.u32 %v21905_v52, 16  ;;  %v4962_v52 = vshrl.u32 %v21915_v54, 16 }
 0x246   : > { %v4915_v24 = vor.u32 %v4913_v45, %v4911_v26  ;;  %v4912_v27 = vsel %vm825_vm4, %v4908_v31, %v4911_v26  ;;  %v4946_v45 = vrot.slane %v4944_v33, 1 }
 0x24a   : > { %18218 = vmatmul.mubr.msk.bf16.gmra.mrb[12].mxu0 %vm1305_vm3, %v4884_v35  ;;  %v4919_v35 = vsel %vm825_vm4, %v4915_v24, %v4918_v29  ;;  %v4958_v24 = vshll.u32 %v21915_v54, 16  ;;  %v4953_v29 = vrot.slane %v4951_v25, 1  ;;  %v4976_v54 = vshrl.u32 %v21925_v56, 16 }
 0x24b   : > { %18221 = vmatprep.mubr.msk.bf16.mxu0 %vm1305_vm3, %v4891_v5  ;;  %v4925_v5 = vrot.slane %v4923_v23, 1  ;;  %v4950_v23 = vor.u32 %v4948_v50, %v4946_v45  ;;  %v5000_v50 = vshll.u32 %v21945_v60, 16 }
 0x24c   : > { %v4960_v46 = vrot.slane %v4958_v24, 1 }
 0x24d   : > { %v4929_v30 = vor.u32 %v4927_v47, %v4925_v5  ;;  %v4926_v15 = vsel %vm825_vm4, %v4922_v43, %v4925_v5  ;;  %v4954_v47 = vsel %vm825_vm4, %v4950_v23, %v4953_v29  ;;  %v4972_v5 = vshll.u32 %v21925_v56, 16 }
 0x24e   : > { %v4990_v56 = vshrl.u32 %v21935_v58, 16  ;;  %v5007_v23 = vshll.u32 %v21948_v61, 16 }
 0x24f   : > { %v4933_v32 = vsel %vm825_vm4, %v4929_v30, %v4932_v36  ;;  %v4964_v30 = vor.u32 %v4962_v52, %v4960_v46 }
 0x252   : > { %18222 = vmatmul.mubr.msk.bf16.gmra.mrb[16].mxu0 %vm1305_vm3, %v4898_v34  ;;  %v4939_v34 = vrot.slane %v4937_v37, 1  ;;  %v4974_v37 = vrot.slane %v4972_v5, 1  ;;  %v5021_v5 = vshll.u32 %v21958_v63, 16 }
 0x253   : > { %18225 = vmatprep.mubr.msk.bf16.mxu0 %vm1305_vm3, %v4905_v28 }
 0x254   : > { %v4943_v28 = vor.u32 %v4941_v49, %v4939_v34  ;;  %v4940_v26 = vsel %vm825_vm4, %v4936_v44, %v4939_v34  ;;  %v4986_v49 = vshll.u32 %v21935_v58, 16  ;;  %v4978_v34 = vor.u32 %v4976_v54, %v4974_v37 }
 0x255   : > { %v5004_v58 = vshrl.u32 %v21945_v60, 16  ;;  %v5018_v60 = vshrl.u32 %v21955_v62, 16 }
 0x256   : > { %v4947_v31 = vsel %vm825_vm4, %v4943_v28, %v4946_v45  ;;  %v4988_v28 = vrot.slane %v4986_v49, 1  ;;  %v4993_v45 = vshll.u32 %v21938_v59, 16 }
 0x25a   : > { %18226 = vmatmul.mubr.msk.bf16.gmra.mrb[20].mxu0 %vm1305_vm3, %v4912_v27  ;;  %v4957_v27 = vor.u32 %v4955_v51, %v4953_v29  ;;  %v4992_v51 = vor.u32 %v4990_v56, %v4988_v28  ;;  %v5002_v29 = vrot.slane %v5000_v50, 1 }
 0x25b   : > { %18229 = vmatprep.mubr.msk.bf16.mxu0 %vm1305_vm3, %v4919_v35  ;;  %v4965_v35 = vshll.u32 %v21918_v55, 16  ;;  %v4983_v55 = vshrl.u32 %v21928_v57, 16 }
 0x25c   : > { %v4961_v14 = vsel %vm825_vm4, %v4957_v27, %v4960_v46  ;;  %v5006_v52 = vor.u32 %v5004_v58, %v5002_v29  ;;  %v5070_v58 = vshll.u32 %v21995_v8, 16 }
 0x25d   : > { %v4967_v43 = vrot.slane %v4965_v35, 1  ;;  %v5014_v35 = vshll.u32 %v21955_v62, 16  ;;  %v5032_v62 = vshrl.u32 %v21965_v0, 16 }
 0x25f   : > { %v4971_v36 = vor.u32 %v4969_v53, %v4967_v43  ;;  %v4968_v48 = vsel %vm825_vm4, %v4964_v30, %v4967_v43  ;;  %v5016_v53 = vrot.slane %v5014_v35, 1 }
 0x262   : > { %18230 = vmatmul.mubr.msk.bf16.gmra.mrb[24].mxu0 %vm1305_vm3, %v4926_v15  ;;  %v4979_v15 = vshll.u32 %v21928_v57, 16  ;;  %v4997_v57 = vshrl.u32 %v21938_v59, 16  ;;  %v5011_v59 = vshrl.u32 %v21948_v61, 16  ;;  %v5025_v61 = vshrl.u32 %v21958_v63, 16 }
 0x263   : > { %18233 = vmatprep.mubr.msk.bf16.mxu0 %vm1305_vm3, %v4933_v32  ;;  %v4975_v32 = vsel %vm825_vm4, %v4971_v36, %v4974_v37  ;;  %v5028_v36 = vshll.u32 %v21965_v0, 16  ;;  %v5023_v37 = vrot.slane %v5021_v5, 1  ;;  %v5039_v63 = vshrl.u32 %v21968_v1, 16 }
 0x264   : > { %v4981_v33 = vrot.slane %v4979_v15, 1  ;;  %v5020_v15 = vor.u32 %v5018_v60, %v5016_v53  ;;  %v5046_v0 = vshrl.u32 %v21975_v3, 16  ;;  %v5084_v5 = vshll.u32 %v22005_v10, 16 }
 0x265   : > { %v5030_v54 = vrot.slane %v5028_v36, 1  ;;  %v5091_v36 = vshll.u32 %v22008_v11, 16 }
 0x266   : > { %v4985_v44 = vor.u32 %v4983_v55, %v4981_v33  ;;  %v4982_v25 = vsel %vm825_vm4, %v4978_v34, %v4981_v33  ;;  %v5024_v55 = vsel %vm825_vm4, %v5020_v15, %v5023_v37  ;;  %v5042_v33 = vshll.u32 %v21975_v3, 16 }
 0x267   : > { %v5060_v3 = vshrl.u32 %v21985_v6, 16 }
 0x26a   : > { %18234 = vmatmul.mubr.msk.bf16.gmra.mrb[28].mxu0 %vm1305_vm3, %v4940_v26  ;;  %v4989_v26 = vsel %vm825_vm4, %v4985_v44, %v4988_v28  ;;  %v5034_v44 = vor.u32 %v5032_v62, %v5030_v54 }
 0x26b   : > { %18237 = vmatprep.mubr.msk.bf16.mxu0 %vm1305_vm3, %v4947_v31  ;;  %v4995_v31 = vrot.slane %v4993_v45, 1  ;;  %v5044_v45 = vrot.slane %v5042_v33, 1 }
 0x26d   : > { %v4999_v24 = vor.u32 %v4997_v57, %v4995_v31  ;;  %v4996_v27 = vsel %vm825_vm4, %v4992_v51, %v4995_v31  ;;  %v5056_v57 = vshll.u32 %v21985_v6, 16  ;;  %v5048_v31 = vor.u32 %v5046_v0, %v5044_v45 }
 0x26e   : > { %v5074_v6 = vshrl.u32 %v21995_v8, 16  ;;  %v5088_v8 = vshrl.u32 %v22005_v10, 16  ;;  %v5102_v10 = vshrl.u32 %v22015_v12, 16 }
 0x26f   : > { %v5003_v46 = vsel %vm825_vm4, %v4999_v24, %v5002_v29  ;;  %v5058_v24 = vrot.slane %v5056_v57, 1  ;;  %v5063_v29 = vshll.u32 %v21988_v7, 16 }
 0x272   : > { %18238 = vmatmul.mubr.msk.bf16.gmra.mrb[32].mxu0 %vm1305_vm3, %v4954_v47  ;;  %v5009_v47 = vrot.slane %v5007_v23, 1 }
 0x273   : > { %18241 = vmatprep.mubr.msk.bf16.mxu0 %vm1305_vm3, %v4961_v14 }
 0x274   : > { %v5013_v14 = vor.u32 %v5011_v59, %v5009_v47  ;;  %v5010_v43 = vsel %vm825_vm4, %v5006_v52, %v5009_v47  ;;  %v5062_v59 = vor.u32 %v5060_v3, %v5058_v24  ;;  %v5072_v47 = vrot.slane %v5070_v58, 1 }
 0x275   : > { %v5077_v52 = vshll.u32 %v21998_v9, 16 }
 0x276   : > { %v5017_v30 = vsel %vm825_vm4, %v5013_v14, %v5016_v53  ;;  %v5076_v60 = vor.u32 %v5074_v6, %v5072_v47  ;;  %v5154_v6 = vshll.u32 %v22059_v22, 16 }
 0x27a   : > { %18242 = vmatmul.mubr.msk.bf16.gmra.mrb[36].mxu0 %vm1305_vm3, %v4968_v48  ;;  %v5027_v48 = vor.u32 %v5025_v61, %v5023_v37  ;;  %v5086_v61 = vrot.slane %v5084_v5, 1 }
 0x27b   : > { %18245 = vmatprep.mubr.msk.bf16.mxu0 %vm1305_vm3, %v4975_v32  ;;  %v5035_v32 = vshll.u32 %v21968_v1, 16  ;;  %v5053_v1 = vshrl.u32 %v21978_v4, 16 }
 0x27c   : > { %v5031_v49 = vsel %vm825_vm4, %v5027_v48, %v5030_v54  ;;  %v5098_v48 = vshll.u32 %v22015_v12, 16  ;;  %v5093_v54 = vrot.slane %v5091_v36, 1  ;;  %v5116_v12 = vshrl.u32 %v22029_v16, 16 }
 0x27d   : > { %v5037_v34 = vrot.slane %v5035_v32, 1  ;;  %v5090_v32 = vor.u32 %v5088_v8, %v5086_v61 }
 0x27e   : > { %v5100_v62 = vrot.slane %v5098_v48, 1 }
 0x27f   : > { %v5041_v28 = vor.u32 %v5039_v63, %v5037_v34  ;;  %v5038_v56 = vsel %vm825_vm4, %v5034_v44, %v5037_v34  ;;  %v5094_v63 = vsel %vm825_vm4, %v5090_v32, %v5093_v54  ;;  %v5112_v34 = vshll.u32 %v22029_v16, 16  ;;  %v25408_v32 = vld [vmem:[#allocation19_spill] sm:$0xff] }
 0x280   : > { %v5133_v16 = vshll.u32 %v22042_v19, 16 }
 0x282   : > { %18246 = vmatmul.mubr.msk.bf16.gmra.mrb[40].mxu0 %vm1305_vm3, %v4982_v25  ;;  %v5049_v25 = vshll.u32 %v21978_v4, 16  ;;  %v5067_v4 = vshrl.u32 %v21988_v7, 16  ;;  %v5081_v7 = vshrl.u32 %v21998_v9, 16  ;;  %v5095_v9 = vshrl.u32 %v22008_v11, 16 }
 0x283   : > { %18249 = vmatprep.mubr.msk.bf16.mxu0 %vm1305_vm3, %v4989_v26  ;;  %v5045_v26 = vsel %vm825_vm4, %v5041_v28, %v5044_v45  ;;  %v5109_v11 = vshrl.u32 %v22018_v13, 16  ;;  %v5104_v28 = vor.u32 %v5102_v10, %v5100_v62  ;;  %v5135_v58 = vrot.slane %v5133_v16, 1  ;;  %v25409_v10 = vld [vmem:[#allocation20_spill] sm:$0xff] }
 0x284   : > { %v5051_v50 = vrot.slane %v5049_v25, 1  ;;  %v5114_v25 = vrot.slane %v5112_v34, 1 }
 0x286   : > { %v5055_v51 = vor.u32 %v5053_v1, %v5051_v50  ;;  %v5052_v23 = vsel %vm825_vm4, %v5048_v31, %v5051_v50  ;;  %v5126_v1 = vshll.u32 %v22039_v18, 16  ;;  %v318_v50 = vld [vmem:[#allocation2 + $0xc] sm:$0x3]  ;;  %v5118_v31 = vor.u32 %v5116_v12, %v5114_v25 }
 0x28a   : > { %18250 = vmatmul.mubr.msk.bf16.gmra.mrb[44].mxu0 %vm1305_vm3, %v4996_v27  ;;  %v5059_v27 = vsel %vm825_vm4, %v5055_v51, %v5058_v24  ;;  %v22295_v51 = vand.u32 %v21646_v2, %v318_v50 }
 0x28b   : > { %18253 = vmatprep.mubr.msk.bf16.mxu0 %vm1305_vm3, %v5003_v46  ;;  %v5065_v46 = vrot.slane %v5063_v29, 1  ;;  %v5128_v29 = vrot.slane %v5126_v1, 1 }
 0x28c   : > { %18447 = vmatprep.subr.bf16.mxu0 %v22295_v51 }
 0x28d   : > { %v5069_v35 = vor.u32 %v5067_v4, %v5065_v46  ;;  %v5066_v14 = vsel %vm825_vm4, %v5062_v59, %v5065_v46  ;;  %v5140_v4 = vshll.u32 %v22049_v20, 16 }
 0x28f   : > { %v5073_v53 = vsel %vm825_vm4, %v5069_v35, %v5072_v47  ;;  %v5142_v35 = vrot.slane %v5140_v4, 1  ;;  %v5147_v47 = vshll.u32 %v22052_v21, 16  ;;  %v25413_v4 = vld [vmem:[#allocation24_spill] sm:$0xff] }
 0x292   : > { %18254 = vmatmul.mubr.msk.bf16.gmra.mrb[48].mxu0 %vm1305_vm3, %v5010_v43  ;;  %v5079_v43 = vrot.slane %v5077_v52, 1 }
 0x293   : > { %18257 = vmatprep.mubr.msk.bf16.mxu0 %vm1305_vm3, %v5017_v30 }
 0x294   : > { %v5083_v30 = vor.u32 %v5081_v7, %v5079_v43  ;;  %v5080_v37 = vsel %vm825_vm4, %v5076_v60, %v5079_v43  ;;  %v5156_v43 = vrot.slane %v5154_v6, 1  ;;  %v25406_v60 = vld [vmem:[#allocation17_spill] sm:$0xff] }
 0x296   : > { %v5087_v15 = vsel %vm825_vm4, %v5083_v30, %v5086_v61  ;;  %v5161_v30 = vshll.u32 %v25406_v60, 16 }
 0x29a   : > { %18258 = vmatmul.mubr.msk.bf16.gmra.mrb[52].mxu0 %vm1305_vm3, %v5024_v55  ;;  %v5097_v55 = vor.u32 %v5095_v9, %v5093_v54 }
 0x29b   : > { %18261 = vmatprep.mubr.msk.bf16.mxu0 %vm1305_vm3, %v5031_v49  ;;  %v5105_v49 = vshll.u32 %v22018_v13, 16  ;;  %v5123_v13 = vshrl.u32 %v22032_v17, 16 }
 0x29c   : > { %v5101_v33 = vsel %vm825_vm4, %v5097_v55, %v5100_v62  ;;  %v5175_v55 = vshll.u32 %v25408_v32, 16 }
 0x29d   : > { %v5107_v44 = vrot.slane %v5105_v49, 1 }
 0x29f   : > { %v5111_v45 = vor.u32 %v5109_v11, %v5107_v44  ;;  %v5108_v0 = vsel %vm825_vm4, %v5104_v28, %v5107_v44  ;;  %v5177_v11 = vrot.slane %v5175_v55, 1 }
 0x2a2   : > { %18262 = vmatmul.mubr.msk.bf16.gmra.mrb[56].mxu0 %vm1305_vm3, %v5038_v56  ;;  %v5119_v56 = vshll.u32 %v22032_v17, 16 }
 0x2a3   : > { %18265 = vmatprep.mubr.msk.bf16.mxu0 %vm1305_vm3, %v5045_v26  ;;  %v5115_v26 = vsel %vm825_vm4, %v5111_v45, %v5114_v25  ;;  %v25410_v45 = vld [vmem:[#allocation21_spill] sm:$0xff] }
 0x2a4   : > { %v5121_v57 = vrot.slane %v5119_v56, 1  ;;  %v5189_v25 = vshll.u32 %v25410_v45, 16 }
 0x2a6   : > { %v5125_v24 = vor.u32 %v5123_v13, %v5121_v57  ;;  %v5122_v17 = vsel %vm825_vm4, %v5118_v31, %v5121_v57  ;;  %v25411_v13 = vld [vmem:[#allocation22_spill] sm:$0xff]  ;;  %v5191_v57 = vrot.slane %v5189_v25, 1 }
 0x2a7   : > { %v5196_v1 = vshll.u32 %v25411_v13, 16 }
 0x2a8   : > { %v5129_v3 = vsel %vm825_vm4, %v5125_v24, %v5128_v29 }
 0x2a9   : > { %v5198_v24 = vrot.slane %v5196_v1, 1 }
 0x2aa   : > { %18266 = vmatmul.mubr.msk.bf16.gmra.mrb[60].mxu0 %vm1305_vm3, %v5052_v23  ;;  %v5130_v23 = vshrl.u32 %v22039_v18, 16  ;;  %v5144_v18 = vshrl.u32 %v22049_v20, 16  ;;  %v5158_v20 = vshrl.u32 %v22059_v22, 16 }
 0x2ab   : > { %18269 = vmatprep.mubr.msk.bf16.mxu0 %vm1305_vm3, %v5059_v27  ;;  %v5137_v27 = vshrl.u32 %v22042_v19, 16  ;;  %v5151_v19 = vshrl.u32 %v22052_v21, 16  ;;  %v5165_v21 = vshrl.u32 %v25406_v60, 16 }
 0x2ac   : > { %v5132_v46 = vor.u32 %v5130_v23, %v5128_v29  ;;  %v5146_v7 = vor.u32 %v5144_v18, %v5142_v35  ;;  %v5160_v9 = vor.u32 %v5158_v20, %v5156_v43  ;;  %v25412_v29 = vld [vmem:[#allocation23_spill] sm:$0xff]  ;;  %v5200_v23 = vshrl.u32 %v25411_v13, 16 }
 0x2ad   : > { %v5139_v59 = vor.u32 %v5137_v27, %v5135_v58  ;;  %v5203_v16 = vshll.u32 %v25412_v29, 16  ;;  %v5207_v27 = vshrl.u32 %v25412_v29, 16  ;;  %v6071_v13 = vrot.slane %v21835_v38, 1 }
 0x2ae   : > { %v5136_v52 = vsel %vm825_vm4, %v5132_v46, %v5135_v58  ;;  %v5210_v58 = vshll.u32 %v25413_v4, 16  ;;  %v6073_v29 = vrot.slane %v21838_v39, 1 }
 0x2af   : > { %v5205_v46 = vrot.slane %v5203_v16, 1  ;;  %v6075_v16 = vrot.slane %v21845_v40, 1 }
 0x2b0   : > { %v6074_v38 = vsel %vm2650_vm2, %v6071_v13, %v6073_v29 }
 0x2b2   : > { %18270 = vmatmul.mubr.msk.bf16.gmra.mrb[64].mxu0 %vm1305_vm3, %v5066_v14  ;;  %v5143_v14 = vsel %vm825_vm4, %v5139_v59, %v5142_v35  ;;  %v5202_v59 = vor.u32 %v5200_v23, %v5198_v24  ;;  %v5209_v35 = vor.u32 %v5207_v27, %v5205_v46  ;;  %v6076_v23 = vsel %vm2650_vm2, %v6073_v29, %v6075_v16  ;;  %v21171_v27 = vld [vmem:[%s21651_s14 + $0x8] sm:$0xff]  }
 0x2b3   : > { %18273 = vmatprep.mubr.msk.bf16.mxu0 %vm1305_vm3, %v5073_v53  ;;  %v5149_v53 = vrot.slane %v5147_v47, 1  ;;  %v5212_v47 = vrot.slane %v5210_v58, 1 }
 0x2b5   : > { %v5153_v5 = vor.u32 %v5151_v19, %v5149_v53  ;;  %v5150_v61 = vsel %vm825_vm4, %v5146_v7, %v5149_v53  ;;  %v5214_v19 = vshrl.u32 %v25413_v4, 16  ;;  %v5213_v6 = vsel %vm825_vm4, %v5209_v35, %v5212_v47  ;;  %v25415_v7 = vld [vmem:[#allocation26_spill] sm:$0xff]  ;;  %v21172_v35 = vld [vmem:[%s21651_s14 + $0x10] sm:$0xff]  }
 0x2b6   : > { %v834_v4 = vshll.u32 %v21171_v27, 16  ;;  %v842_v40 = vshll.u32 %v21172_v35, 16 }
 0x2b7   : > { %v5157_v36 = vsel %vm825_vm4, %v5153_v5, %v5156_v43  ;;  %v5224_v5 = vshll.u32 %v25415_v7, 16  ;;  %v4822_v43 = vld [vmem:[%s21651_s14 + $0x1ec] sm:$0xf] }
 0x2b8   : > { %v836_v39 = vrot.slane %v834_v4, 1 }
 0x2ba   : > { %18274 = vmatmul.mubr.msk.bf16.gmra.mrb[68].mxu0 %vm1305_vm3, %v5080_v37  ;;  %v25407_v37 = vld [vmem:[#allocation18_spill] sm:$0xff] }
 0x2bb   : > { %18277 = vmatprep.mubr.msk.bf16.mxu0 %vm1305_vm3, %v5087_v15  ;;  %v5168_v8 = vshll.u32 %v25407_v37, 16  ;;  %v5163_v15 = vrot.slane %v5161_v30, 1  ;;  %v5172_v22 = vshrl.u32 %v25407_v37, 16  ;;  %v5216_v30 = vor.u32 %v5214_v19, %v5212_v47  ;;  %v25417_v37 = vld [vmem:[#allocation27_spill] sm:$0xff] }
 0x2bc   : > { %v6077_v47 = vrot.slane %v21848_v42, 1  ;;  %v844_v19 = vrot.slane %v842_v40, 1 }
 0x2bd   : > { %v5167_v48 = vor.u32 %v5165_v21, %v5163_v15  ;;  %v5170_v54 = vrot.slane %v5168_v8, 1  ;;  %v5164_v62 = vsel %vm825_vm4, %v5160_v9, %v5163_v15  ;;  %v5226_v21 = vrot.slane %v5224_v5, 1  ;;  %v21173_v5 = vld [vmem:[%s21651_s14 + $0x18] sm:$0xff]  }
 0x2be   : > { %v5231_v8 = vshll.u32 %v25417_v37, 16  ;;  %v5228_v9 = vshrl.u32 %v25415_v7, 16  ;;  %v6078_v7 = vsel %vm2650_vm2, %v6075_v16, %v6077_v47 }
 0x2bf   : > { %v5171_v49 = vsel %vm825_vm4, %v5167_v48, %v5170_v54  ;;  %v5174_v34 = vor.u32 %v5172_v22, %v5170_v54  ;;  %v5235_v54 = vshrl.u32 %v25417_v37, 16 }
 0x2c0   : > { %v5233_v55 = vrot.slane %v5231_v8, 1 }
 0x2c1   : > { %v5178_v56 = vsel %vm825_vm4, %v5174_v34, %v5177_v11 }
 0x2c2   : > { %18278 = vmatmul.mubr.msk.bf16.gmra.mrb[72].mxu0 %vm1305_vm3, %v5094_v63  ;;  %v5179_v63 = vshrl.u32 %v25408_v32, 16  ;;  %v5237_v22 = vor.u32 %v5235_v54, %v5233_v55 }
 0x2c3   : > { %18281 = vmatprep.mubr.msk.bf16.mxu0 %vm1305_vm3, %v5101_v33  ;;  %v5182_v33 = vshll.u32 %v25409_v10, 16 }
 0x2c4   : > { %v5181_v44 = vor.u32 %v5179_v63, %v5177_v11  ;;  %v6062_v63 = vld [vmem:[%s21651_s14 + $0x10] sm:$0xe]  ;;  %v25418_v11 = vld [vmem:[#allocation14_spill] sm:$0xff] }
 0x2c5   : > { %v5184_v28 = vrot.slane %v5182_v33, 1  ;;  %v16242_v34 = vcombine.low %v6062_v63, %v25418_v11 }
 0x2c7   : > { %v5185_v12 = vsel %vm825_vm4, %v5181_v44, %v5184_v28 }
 0x2ca   : > { %18282 = vmatmul.mubr.msk.bf16.gmra.mrb[76].mxu0 %vm1305_vm3, %v5108_v0  ;;  %v5186_v0 = vshrl.u32 %v25409_v10, 16 }
 0x2cb   : > { %18285 = vmatprep.mubr.msk.bf16.mxu0 %vm1305_vm3, %v5115_v26  ;;  %v5193_v26 = vshrl.u32 %v25410_v45, 16  ;;  %v25419_v45 = vld [vmem:[#allocation15_spill] sm:$0xff] }
 0x2cc   : > { %v5188_v50 = vor.u32 %v5186_v0, %v5184_v28  ;;  %v6066_v28 = vrot.slane %v16242_v34, 1  ;;  %v6067_v25 = vrot.slane %v25419_v45, 1  ;;  %v21178_v34 = vld [vmem:[%s21651_s14 + $0x30] sm:$0xff]  }
 0x2cd   : > { %v5195_v31 = vor.u32 %v5193_v26, %v5191_v57  ;;  %v878_v16 = vshrl.u32 %v21178_v34, 16 }
 0x2ce   : > { %v6068_v0 = vsel %vm2650_vm2, %v6066_v28, %v6067_v25  ;;  %v21179_v28 = vld [vmem:[%s21651_s14 + $0x60] sm:$0xff]  }
 0x2cf   : > { %v6085_v45 = vrot.slane %v21179_v28, 1 }
 0x2d2   : > { %18286 = vmatmul.mubr.msk.bf16.gmra.mrb[80].mxu0 %vm1305_vm3, %v5122_v17  ;;  %v5192_v17 = vsel %vm825_vm4, %v5188_v50, %v5191_v57  ;;  %v404_v57 = vld [vmem:[%s21651_s14] sm:$0xf] }
 0x2d3   : > { %18289 = vmatprep.mubr.msk.bf16.mxu0 %vm1305_vm3, %v5129_v3  ;;  %v5199_v3 = vsel %vm825_vm4, %v5195_v31, %v5198_v24  ;;  %v21170_v31 = vld [vmem:[%s21651_s14 + $0x4] sm:$0xf] }
 0x2d4   : > { %v22384_v24 = vcombine.low %v404_v57, %v21170_v31  ;;  %v21181_v31 = vld [vmem:[%s21651_s14 + $0x38] sm:$0xff]  }
 0x2d5   : > { %v882_v29 = vshll.u32 %v21181_v31, 16 }
 0x2da   : > { %18290 = vmatmul.mubr.msk.bf16.gmra.mrb[84].mxu0 %vm1305_vm3, %v5136_v52  ;;  %v25414_v52 = vld [vmem:[#allocation25_spill] sm:$0xff] }
 0x2db   : > { %18293 = vmatprep.mubr.msk.bf16.mxu0 %vm1305_vm3, %v5143_v14  ;;  %v5217_v18 = vshll.u32 %v25414_v52, 16  ;;  %v5206_v14 = vsel %vm825_vm4, %v5202_v59, %v5205_v46  ;;  %v5221_v53 = vshrl.u32 %v25414_v52, 16  ;;  %v827_v46 = vshrl.u32 %v22384_v24, 16 }
 0x2dd   : > { %v5219_v60 = vrot.slane %v5217_v18, 1  ;;  %v6079_v18 = vrot.slane %v21855_v41, 1  ;;  %v850_v41 = vshll.u32 %v21173_v5, 16 }
 0x2df   : > { %v5220_v15 = vsel %vm825_vm4, %v5216_v30, %v5219_v60  ;;  %v6080_v42 = vsel %vm2650_vm2, %v6077_v47, %v6079_v18  ;;  %v854_v30 = vshrl.u32 %v21173_v5, 16  ;;  %v21187_v5 = vld [vmem:[%s21651_s14 + $0x80] sm:$0xff]  }
 0x2e2   : > { %18294 = vmatmul.mubr.msk.bf16.gmra.mrb[88].mxu0 %vm1305_vm3, %v5150_v61  ;;  %v25416_v61 = vld [vmem:[#allocation28_spill] sm:$0xff] }
 0x2e3   : > { %18297 = vmatprep.mubr.msk.bf16.mxu0 %vm1305_vm3, %v5157_v36  ;;  %v22356_v20 = vcombine.low %v25416_v61, %v4822_v43  ;;  %v5223_v36 = vor.u32 %v5221_v53, %v5219_v60  ;;  %v846_v43 = vshrl.u32 %v21172_v35, 16  ;;  %v852_v60 = vrot.slane %v850_v41, 1  ;;  %v21174_v61 = vld [vmem:[%s21651_s14 + $0x20] sm:$0xff]  }
 0x2e4   : > { %v6093_v41 = vrot.slane %v21187_v5, 1 }
 0x2e5   : > { %v5227_v48 = vsel %vm825_vm4, %v5223_v36, %v5226_v21  ;;  %v5239_v32 = vshll.u32 %v22356_v20, 16  ;;  %v5243_v44 = vshrl.u32 %v22356_v20, 16  ;;  %v858_v36 = vshll.u32 %v21174_v61, 16 }
 0x2e6   : > { %v848_v8 = vor.u32 %v846_v43, %v844_v19 }
 0x2e7   : > { %v860_v54 = vrot.slane %v858_v36, 1 }
 0x2ea   : > { %18298 = vmatmul.mubr.msk.bf16.gmra.mrb[92].mxu0 %vm1305_vm3, %v5164_v62  ;;  %v5230_v62 = vor.u32 %v5228_v9, %v5226_v21  ;;  %v21175_v21 = vld [vmem:[%s21651_s14 + $0x50] sm:$0xff]  }
 0x2eb   : > { %18301 = vmatprep.mubr.msk.bf16.mxu0 %vm1305_vm3, %v5171_v49  ;;  %v5241_v49 = vrot.slane %v5239_v32, 1  ;;  %v6081_v37 = vrot.slane %v21175_v21, 1  ;;  %v853_v32 = vsel %vm825_vm4, %v848_v8, %v852_v60 }
 0x2ec   : > { %v5234_v10 = vsel %vm825_vm4, %v5230_v62, %v5233_v55 }
 0x2ed   : > { %v5242_v33 = vsel %vm825_vm4, %v5237_v22, %v5241_v49  ;;  %v6082_v62 = vsel %vm2650_vm2, %v6079_v18, %v6081_v37  ;;  %v21185_v18 = vld [vmem:[%s21651_s14 + $0x48] sm:$0xff]  }
 0x2f2   : > { %18302 = vmatmul.mubr.msk.bf16.gmra.mrb[96].mxu0 %vm1305_vm3, %v5178_v56  ;;  %v5245_v56 = vor.u32 %v5243_v44, %v5241_v49  ;;  %v21177_v49 = vld [vmem:[%s21651_s14 + $0x28] sm:$0xff]   ;;  %v874_v44 = vshll.u32 %v21178_v34, 16 }
 0x2f3   : > { %18305 = vmatprep.mubr.msk.bf16.mxu0 %vm1305_vm3, %v5185_v12  ;;  %v25420_v12 = vld [vmem:[#allocation16_spill] sm:$0xff]  ;;  %v866_v63 = vshll.u32 %v21177_v49, 16  ;;  %v870_v11 = vshrl.u32 %v21177_v49, 16 }
 0x2f4   : > { %v6069_v26 = vrot.slane %v25420_v12, 1  ;;  %v21191_v49 = vld [vmem:[%s21651_s14 + $0x90] sm:$0xff]  }
 0x2f6   : > { %v6070_v1 = vsel %vm2650_vm2, %v6067_v25, %v6069_v26  ;;  %v6072_v50 = vsel %vm2650_vm2, %v6069_v26, %v6071_v13  ;;  %v876_v26 = vrot.slane %v874_v44, 1 }
 0x2fa   : > { %18306 = vmatmul.mubr.msk.bf16.gmra.mrb[100].mxu0 %vm1305_vm3, %v5192_v17  ;;  %v829_v17 = vshll.u32 %v22384_v24, 16 }
 0x2fb   : > { %18309 = vmatprep.mubr.msk.bf16.mxu0 %vm1305_vm3, %v5199_v3  ;;  %v308_v3 = vld [vmem:[#allocation2 + $0x2] sm:$0x3] }
 0x2fc   : > { %v1491_v58 = vand.u32 %v21646_v2, %v308_v3  ;;  %v831_v59 = vrot.slane %v829_v17, 1  ;;  %v886_v17 = vshrl.u32 %v21181_v31, 16  ;;  %v21195_v31 = vld [vmem:[%s21651_s14 + $0xa0] sm:$0xff]  }
 0x2fe   : > { %17715 = vmatprep.subr.bf16.mxu1 %v1491_v58  ;;  %v832_v52 = vor.u32 %v831_v59, %v827_v46  ;;  %v21184_v46 = vld [vmem:[%s21651_s14 + $0x78] sm:$0xff]  }
 0x2ff   : > { %17716 = vmatpush3.bf16.msra.mxu1 %v1491_v58  ;;  %v880_v58 = vor.u32 %v878_v16, %v876_v26  ;;  %v6091_v59 = vrot.slane %v21184_v46, 1 }
 0x301   : > { %v6094_v8 = vsel %vm2650_vm2, %v6091_v59, %v6093_v41 }
 0x302   : > { %18310 = vmatmul.mubr.msk.bf16.gmra.mrb[104].mxu0 %vm1305_vm3, %v5206_v14 }
 0x303   : > { %18313 = vmatprep.mubr.msk.bf16.mxu0 %vm1305_vm3, %v5213_v6  ;;  %v837_v6 = vsel %vm825_vm4, %v832_v52, %v836_v39 }
 0x304   : > { %17717 = vmatprep.mubr.msk.bf16.mxu1 %vm1305_vm3, %v837_v6 }
 0x30a   : > { %18314 = vmatmul.mubr.msk.bf16.gmra.mrb[108].mxu0 %vm1305_vm3, %v5220_v15  ;;  %v21176_v15 = vld [vmem:[%s21651_s14 + $0x58] sm:$0xff]  }
 0x30b   : > { %18317 = vmatprep.mubr.msk.bf16.mxu0 %vm1305_vm3, %v5227_v48  ;;  %v6083_v9 = vrot.slane %v21176_v15, 1  ;;  %v856_v48 = vor.u32 %v854_v30, %v852_v60  ;;  %v21188_v60 = vld [vmem:[%s21651_s14 + $0x88] sm:$0xff]  }
 0x30c   : > { %v6095_v30 = vrot.slane %v21188_v60, 1 }
 0x30d   : > { %v861_v55 = vsel %vm825_vm4, %v856_v48, %v860_v54  ;;  %v6084_v22 = vsel %vm2650_vm2, %v6081_v37, %v6083_v9  ;;  %v6086_v57 = vsel %vm2650_vm2, %v6083_v9, %v6085_v45  ;;  %v22459_v9 = vld [vmem:[%s21651_s14 + $0x58] sm:$0xff]  }
 0x30e   : > { %v6096_v15 = vsel %vm2650_vm2, %v6093_v41, %v6095_v30  ;;  %v914_v48 = vshll.u32 %v22459_v9, 16 }
 0x312   : > { %18318 = vmatmul.mubr.msk.bf16.gmra.mrb[112].mxu0 %vm1305_vm3, %v5234_v10  ;;  %v862_v10 = vshrl.u32 %v21174_v61, 16 }
 0x313   : > { %18321 = vmatprep.mubr.msk.bf16.mxu0 %vm1305_vm3, %v5242_v33  ;;  %v868_v33 = vrot.slane %v866_v63, 1  ;;  %v6097_v63 = vrot.slane %v21191_v49, 1 }
 0x314   : > { %v864_v25 = vor.u32 %v862_v10, %v860_v54 }
 0x315   : > { %v872_v12 = vor.u32 %v870_v11, %v868_v33 }
 0x316   : > { %v869_v13 = vsel %vm825_vm4, %v864_v25, %v868_v33  ;;  %v21192_v33 = vld [vmem:[%s21651_s14 + $0x98] sm:$0xff]   ;;  %v6098_v25 = vsel %vm2650_vm2, %v6095_v30, %v6097_v63 }
 0x317   : > { %v6099_v11 = vrot.slane %v21192_v33, 1 }
 0x31a   : > { %18322 = vmatmul.mubr.msk.bf16.gmra.mrb[116].mxu0 %vm1305_vm3, %v5245_v56  ;;  %v21180_v56 = vld [vmem:[%s21651_s14 + $0x68] sm:$0xff]  }
 0x31b   : > { %18327 = vmatprep.mubr.msk.bf16.mxu0 %vm1305_vm3, %v6068_v0  ;;  %v6087_v0 = vrot.slane %v21180_v56, 1  ;;  %v6100_v56 = vsel %vm2650_vm2, %v6097_v63, %v6099_v11 }
 0x322   : > { %18328 = vmatmul.mubr.msk.bf16.vlgmr.msra.gmra.mrb[0].mxu0 %vm1305_vm3, %v6070_v1  ;;  %v877_v1 = vsel %vm825_vm4, %v872_v12, %v876_v26 }
 0x323   : > { %18331 = vmatprep.mubr.msk.bf16.mxu0 %vm1305_vm3, %v6072_v50  ;;  %18448 = vmatpush3.bf16.msra.mxu0 %v22295_v51  ;;  %v838_v51 = vshrl.u32 %v21171_v27, 16  ;;  %v6088_v50 = vsel %vm2650_vm2, %v6085_v45, %v6087_v0  ;;  %v21183_v27 = vld [vmem:[%s21651_s14 + $0x70] sm:$0xff]  }
 0x324   : > { %v6089_v4 = vrot.slane %v21183_v27, 1 }
 0x325   : > { %v840_v14 = vor.u32 %v838_v51, %v836_v39 }
 0x326   : > { %v6090_v47 = vsel %vm2650_vm2, %v6087_v0, %v6089_v4  ;;  %v6092_v52 = vsel %vm2650_vm2, %v6089_v4, %v6091_v59  ;;  %v22479_v0 = vld [vmem:[%s21651_s14 + $0x68] sm:$0xff]   ;;  %v22499_v59 = vld [vmem:[%s21651_s14 + $0x78] sm:$0xff]  }
 0x327   : > { %v845_v53 = vsel %vm825_vm4, %v840_v14, %v844_v19  ;;  %v898_v14 = vshll.u32 %v21185_v18, 16  ;;  %v930_v12 = vshll.u32 %v22479_v0, 16 }
 0x328   : > { %17718 = vmatmul.mubr.msk.bf16.vlgmr.msra.gmra.mrb[0].mxu1 %vm1305_vm3, %v845_v53  ;;  %v902_v53 = vshrl.u32 %v21185_v18, 16  ;;  %v21199_v18 = vld [vmem:[%s21651_s14 + $0xb0] sm:$0xff]  }
 0x329   : > { %17721 = vmatprep.mubr.msk.bf16.mxu1 %vm1305_vm3, %v853_v32  ;;  %v900_v6 = vrot.slane %v898_v14, 1  ;;  %v916_v32 = vrot.slane %v914_v48, 1  ;;  %v6105_v14 = vrot.slane %v21199_v18, 1  ;;  %v21211_v18 = vld [vmem:[%s21651_s14 + $0xe0] sm:$0xff]  }
 0x32a   : > { %18332 = vmatmul.mubr.msk.bf16.gmra.mrb[4].mxu0 %vm1305_vm3, %v6074_v38  ;;  %v884_v38 = vrot.slane %v882_v29, 1  ;;  %v6101_v29 = vrot.slane %v21195_v31, 1 }
 0x32b   : > { %18335 = vmatprep.mubr.msk.bf16.mxu0 %vm1305_vm3, %v6076_v23  ;;  %v21182_v23 = vld [vmem:[%s21651_s14 + $0x40] sm:$0xff]   ;;  %v904_v61 = vor.u32 %v902_v53, %v900_v6 }
 0x32c   : > { %v890_v3 = vshll.u32 %v21182_v23, 16  ;;  %v888_v39 = vor.u32 %v886_v17, %v884_v38  ;;  %v885_v35 = vsel %vm825_vm4, %v880_v58, %v884_v38  ;;  %v894_v19 = vshrl.u32 %v21182_v23, 16  ;;  %v21196_v38 = vld [vmem:[%s21651_s14 + $0xa8] sm:$0xff]  }
 0x32d   : > { %v6103_v17 = vrot.slane %v21196_v38, 1  ;;  %v6102_v58 = vsel %vm2650_vm2, %v6099_v11, %v6101_v29 }
 0x32e   : > { %v892_v51 = vrot.slane %v890_v3, 1 }
 0x32f   : > { %v6104_v46 = vsel %vm2650_vm2, %v6101_v29, %v6103_v17  ;;  %v6106_v60 = vsel %vm2650_vm2, %v6103_v17, %v6105_v14  ;;  %v21208_v29 = vld [vmem:[%s21651_s14 + $0xd8] sm:$0xff]  }
 0x330   : > { %17722 = vmatmul.mubr.msk.bf16.gmra.mrb[4].mxu1 %vm1305_vm3, %v861_v55  ;;  %v893_v40 = vsel %vm825_vm4, %v888_v39, %v892_v51  ;;  %v896_v43 = vor.u32 %v894_v19, %v892_v51  ;;  %v918_v55 = vshrl.u32 %v22459_v9, 16  ;;  %v946_v39 = vshll.u32 %v22499_v59, 16 }
 0x331   : > { %17725 = vmatprep.mubr.msk.bf16.mxu1 %vm1305_vm3, %v869_v13  ;;  %v932_v13 = vrot.slane %v930_v12, 1 }
 0x332   : > { %18336 = vmatmul.mubr.msk.bf16.gmra.mrb[8].mxu0 %vm1305_vm3, %v6078_v7  ;;  %v22446_v7 = vld [vmem:[%s21651_s14 + $0x50] sm:$0xff]   ;;  %v901_v21 = vsel %vm825_vm4, %v896_v43, %v900_v6  ;;  %v920_v34 = vor.u32 %v918_v55, %v916_v32  ;;  %v21200_v6 = vld [vmem:[%s21651_s14 + $0xb8] sm:$0xff]  }
 0x333   : > { %18339 = vmatprep.mubr.msk.bf16.mxu0 %vm1305_vm3, %v6080_v42  ;;  %v906_v42 = vshll.u32 %v22446_v7, 16  ;;  %v910_v54 = vshrl.u32 %v22446_v7, 16  ;;  %v6107_v53 = vrot.slane %v21200_v6, 1  ;;  %v21212_v6 = vld [vmem:[%s21651_s14 + $0xe8] sm:$0xff]  }
 0x335   : > { %v908_v36 = vrot.slane %v906_v42, 1  ;;  %v6108_v30 = vsel %vm2650_vm2, %v6105_v14, %v6107_v53  ;;  %v6117_v14 = vrot.slane %v21211_v18, 1 }
 0x337   : > { %v909_v37 = vsel %vm825_vm4, %v904_v61, %v908_v36  ;;  %v912_v10 = vor.u32 %v910_v54, %v908_v36  ;;  %v22519_v61 = vld [vmem:[%s21651_s14 + $0x88] sm:$0xff]   ;;  %v21203_v54 = vld [vmem:[%s21651_s14 + $0xc0] sm:$0xff]  }
 0x338   : > { %17726 = vmatmul.mubr.msk.bf16.gmra.mrb[8].mxu1 %vm1305_vm3, %v877_v1  ;;  %v934_v1 = vshrl.u32 %v22479_v0, 16  ;;  %v962_v36 = vshll.u32 %v22519_v61, 16 }
 0x339   : > { %17729 = vmatprep.mubr.msk.bf16.mxu1 %vm1305_vm3, %v885_v35  ;;  %v917_v28 = vsel %vm825_vm4, %v912_v10, %v916_v32  ;;  %v948_v35 = vrot.slane %v946_v39, 1  ;;  %v6109_v32 = vrot.slane %v21203_v54, 1  ;;  %v22586_v54 = vld [vmem:[%s21651_s14 + $0xc0] sm:$0xff]  }
 0x33a   : > { %18340 = vmatmul.mubr.msk.bf16.gmra.mrb[12].mxu0 %vm1305_vm3, %v6082_v62  ;;  %v22466_v62 = vld [vmem:[%s21651_s14 + $0x60] sm:$0xff]   ;;  %v936_v23 = vor.u32 %v934_v1, %v932_v13  ;;  %v21207_v1 = vld [vmem:[%s21651_s14 + $0xd0] sm:$0xff]  }
 0x33b   : > { %18343 = vmatprep.mubr.msk.bf16.mxu0 %vm1305_vm3, %v6084_v22  ;;  %v922_v22 = vshll.u32 %v22466_v62, 16  ;;  %v926_v26 = vshrl.u32 %v22466_v62, 16 }
 0x33d   : > { %v924_v44 = vrot.slane %v922_v22, 1  ;;  %v21204_v22 = vld [vmem:[%s21651_s14 + $0xc8] sm:$0xff]  }
 0x33e   : > { %v6111_v49 = vrot.slane %v21204_v22, 1 }
 0x33f   : > { %v925_v45 = vsel %vm825_vm4, %v920_v34, %v924_v44  ;;  %v928_v16 = vor.u32 %v926_v26, %v924_v44  ;;  %v6110_v34 = vsel %vm2650_vm2, %v6107_v53, %v6109_v32  ;;  %v22546_v26 = vld [vmem:[%s21651_s14 + $0xa0] sm:$0xff]   ;;  %v6119_v53 = vrot.slane %v21212_v6, 1 }
 0x340   : > { %17730 = vmatmul.mubr.msk.bf16.gmra.mrb[12].mxu1 %vm1305_vm3, %v893_v40  ;;  %v950_v40 = vshrl.u32 %v22499_v59, 16  ;;  %v6112_v44 = vsel %vm2650_vm2, %v6109_v32, %v6111_v49  ;;  %v990_v39 = vshrl.u32 %v22546_v26, 16  ;;  %v1018_v32 = vshll.u32 %v22586_v54, 16 }
 0x341   : > { %17733 = vmatprep.mubr.msk.bf16.mxu1 %vm1305_vm3, %v901_v21  ;;  %v933_v27 = vsel %vm825_vm4, %v928_v16, %v932_v13  ;;  %v986_v13 = vshll.u32 %v22546_v26, 16  ;;  %v6115_v16 = vrot.slane %v21208_v29, 1 }
 0x342   : > { %18344 = vmatmul.mubr.msk.bf16.gmra.mrb[16].mxu0 %vm1305_vm3, %v6086_v57  ;;  %v22486_v57 = vld [vmem:[%s21651_s14 + $0x70] sm:$0xff]   ;;  %v952_v42 = vor.u32 %v950_v40, %v948_v35 }
 0x343   : > { %18347 = vmatprep.mubr.msk.bf16.mxu0 %vm1305_vm3, %v6088_v50  ;;  %v938_v50 = vshll.u32 %v22486_v57, 16  ;;  %v942_v51 = vshrl.u32 %v22486_v57, 16  ;;  %v988_v17 = vrot.slane %v986_v13, 1  ;;  %v22566_v40 = vld [vmem:[%s21651_s14 + $0xb0] sm:$0xff]   ;;  %v1022_v13 = vshrl.u32 %v22586_v54, 16 }
 0x345   : > { %v940_v3 = vrot.slane %v938_v50, 1  ;;  %v6113_v50 = vrot.slane %v21207_v1, 1 }
 0x347   : > { %v941_v4 = vsel %vm825_vm4, %v936_v23, %v940_v3  ;;  %v944_v19 = vor.u32 %v942_v51, %v940_v3 }
 0x348   : > { %17734 = vmatmul.mubr.msk.bf16.gmra.mrb[16].mxu1 %vm1305_vm3, %v909_v37  ;;  %v964_v37 = vrot.slane %v962_v36, 1  ;;  %v22579_v36 = vld [vmem:[%s21651_s14 + $0xb8] sm:$0xff]  }
 0x349   : > { %17737 = vmatprep.mubr.msk.bf16.mxu1 %vm1305_vm3, %v917_v28  ;;  %v949_v41 = vsel %vm825_vm4, %v944_v19, %v948_v35  ;;  %v22539_v28 = vld [vmem:[%s21651_s14 + $0x98] sm:$0xff]   ;;  %v992_v19 = vor.u32 %v990_v39, %v988_v17 }
 0x34a   : > { %18348 = vmatmul.mubr.msk.bf16.gmra.mrb[20].mxu0 %vm1305_vm3, %v6090_v47  ;;  %v22506_v47 = vld [vmem:[%s21651_s14 + $0x80] sm:$0xff]   ;;  %v982_v12 = vshrl.u32 %v22539_v28, 16 }
 0x34b   : > { %18351 = vmatprep.mubr.msk.bf16.mxu0 %vm1305_vm3, %v6092_v52  ;;  %v954_v52 = vshll.u32 %v22506_v47, 16  ;;  %v958_v21 = vshrl.u32 %v22506_v47, 16 }
 0x34d   : > { %v956_v5 = vrot.slane %v954_v52, 1  ;;  %v1002_v52 = vshll.u32 %v22566_v40, 16 }
 0x34f   : > { %v957_v43 = vsel %vm825_vm4, %v952_v42, %v956_v5  ;;  %v960_v55 = vor.u32 %v958_v21, %v956_v5  ;;  %v1004_v5 = vrot.slane %v1002_v52, 1  ;;  %v1010_v21 = vshll.u32 %v22579_v36, 16  ;;  %v22619_v52 = vld [vmem:[%s21651_s14 + $0xd8] sm:$0xff]  }
 0x350   : > { %17738 = vmatmul.mubr.msk.bf16.gmra.mrb[20].mxu1 %vm1305_vm3, %v925_v45  ;;  %v978_v45 = vshll.u32 %v22539_v28, 16  ;;  %v1042_v18 = vshll.u32 %v22619_v52, 16  ;;  %v1046_v6 = vshrl.u32 %v22619_v52, 16 }
 0x351   : > { %17741 = vmatprep.mubr.msk.bf16.mxu1 %vm1305_vm3, %v933_v27  ;;  %v965_v33 = vsel %vm825_vm4, %v960_v55, %v964_v37  ;;  %v6114_v27 = vsel %vm2650_vm2, %v6111_v49, %v6113_v50  ;;  %v21215_v55 = vld [vmem:[%s21651_s14 + $0xf0] sm:$0xff]  }
 0x352   : > { %18352 = vmatmul.mubr.msk.bf16.gmra.mrb[24].mxu0 %vm1305_vm3, %v6094_v8  ;;  %v966_v8 = vshrl.u32 %v22519_v61, 16  ;;  %v6121_v22 = vrot.slane %v21215_v55, 1 }
 0x353   : > { %18355 = vmatprep.mubr.msk.bf16.mxu0 %vm1305_vm3, %v6096_v15  ;;  %v22526_v15 = vld [vmem:[%s21651_s14 + $0x90] sm:$0xff]  }
 0x354   : > { %v970_v48 = vshll.u32 %v22526_v15, 16  ;;  %v968_v63 = vor.u32 %v966_v8, %v964_v37  ;;  %v1006_v37 = vshrl.u32 %v22566_v40, 16  ;;  %v1012_v8 = vrot.slane %v1010_v21, 1 }
 0x356   : > { %v972_v10 = vrot.slane %v970_v48, 1  ;;  %v1014_v48 = vshrl.u32 %v22579_v36, 16  ;;  %v1008_v49 = vor.u32 %v1006_v37, %v1004_v5 }
 0x358   : > { %17742 = vmatmul.mubr.msk.bf16.gmra.mrb[24].mxu1 %vm1305_vm3, %v941_v4  ;;  %v973_v11 = vsel %vm825_vm4, %v968_v63, %v972_v10  ;;  %v6116_v4 = vsel %vm2650_vm2, %v6113_v50, %v6115_v16  ;;  %v21216_v63 = vld [vmem:[%s21651_s14 + $0xf8] sm:$0xff]  }
 0x359   : > { %17745 = vmatprep.mubr.msk.bf16.mxu1 %vm1305_vm3, %v949_v41 }
 0x35a   : > { %18356 = vmatmul.mubr.msk.bf16.gmra.mrb[28].mxu0 %vm1305_vm3, %v6098_v25  ;;  %v974_v25 = vshrl.u32 %v22526_v15, 16 }
 0x35b   : > { %18359 = vmatprep.mubr.msk.bf16.mxu0 %vm1305_vm3, %v6100_v56  ;;  %v980_v56 = vrot.slane %v978_v45, 1  ;;  %v6122_v45 = vsel %vm2650_vm2, %v6119_v53, %v6121_v22 }
 0x35c   : > { %v976_v31 = vor.u32 %v974_v25, %v972_v10  ;;  %v6123_v10 = vrot.slane %v21216_v63, 1 }
 0x35d   : > { %v984_v38 = vor.u32 %v982_v12, %v980_v56 }
 0x35e   : > { %v981_v23 = vsel %vm825_vm4, %v976_v31, %v980_v56  ;;  %v6124_v25 = vsel %vm2650_vm2, %v6121_v22, %v6123_v10  ;;  %v22599_v56 = vld [vmem:[%s21651_s14 + $0xc8] sm:$0xff]   ;;  %v22606_v31 = vld [vmem:[%s21651_s14 + $0xd0] sm:$0xff]  }
 0x35f   : > { %v989_v3 = vsel %vm825_vm4, %v984_v38, %v988_v17  ;;  %v1026_v12 = vshll.u32 %v22599_v56, 16  ;;  %v1030_v50 = vshrl.u32 %v22599_v56, 16  ;;  %v1034_v29 = vshll.u32 %v22606_v31, 16  ;;  %v22639_v22 = vld [vmem:[%s21651_s14 + $0xe8] sm:$0xff]  }
 0x360   : > { %17746 = vmatmul.mubr.msk.bf16.gmra.mrb[28].mxu1 %vm1305_vm3, %v957_v43 }
 0x361   : > { %17749 = vmatprep.mubr.msk.bf16.mxu1 %vm1305_vm3, %v965_v33  ;;  %v1016_v33 = vor.u32 %v1014_v48, %v1012_v8  ;;  %v1028_v1 = vrot.slane %v1026_v12, 1  ;;  %v21228_v12 = vld [vmem:[%s21651_s14 + $0x128] sm:$0xff]  }
 0x362   : > { %18360 = vmatmul.mubr.msk.bf16.gmra.mrb[32].mxu0 %vm1305_vm3, %v6102_v58  ;;  %v22559_v58 = vld [vmem:[%s21651_s14 + $0xa8] sm:$0xff]  }
 0x363   : > { %18363 = vmatprep.mubr.msk.bf16.mxu0 %vm1305_vm3, %v6104_v46  ;;  %v994_v46 = vshll.u32 %v22559_v58, 16  ;;  %v998_v35 = vshrl.u32 %v22559_v58, 16 }
 0x365   : > { %v996_v51 = vrot.slane %v994_v46, 1 }
 0x367   : > { %v1000_v42 = vor.u32 %v998_v35, %v996_v51  ;;  %v997_v41 = vsel %vm825_vm4, %v992_v19, %v996_v51  ;;  %v1044_v19 = vrot.slane %v1042_v18, 1 }
 0x368   : > { %17750 = vmatmul.mubr.msk.bf16.gmra.mrb[32].mxu1 %vm1305_vm3, %v973_v11  ;;  %v1020_v11 = vrot.slane %v1018_v32, 1 }
 0x369   : > { %17753 = vmatprep.mubr.msk.bf16.mxu1 %vm1305_vm3, %v981_v23  ;;  %v1005_v43 = vsel %vm825_vm4, %v1000_v42, %v1004_v5  ;;  %v21220_v23 = vld [vmem:[%s21651_s14 + $0x108] sm:$0xff]   ;;  %v21223_v5 = vld [vmem:[%s21651_s14 + $0x110] sm:$0xff]   ;;  %v1048_v21 = vor.u32 %v1046_v6, %v1044_v19 }
 0x36a   : > { %18364 = vmatmul.mubr.msk.bf16.gmra.mrb[36].mxu0 %vm1305_vm3, %v6106_v60  ;;  %v6118_v60 = vsel %vm2650_vm2, %v6115_v16, %v6117_v14  ;;  %v21219_v16 = vld [vmem:[%s21651_s14 + $0x100] sm:$0xff]   ;;  %v1024_v17 = vor.u32 %v1022_v13, %v1020_v11  ;;  %v6135_v13 = vrot.slane %v21228_v12, 1 }
 0x36b   : > { %18367 = vmatprep.mubr.msk.bf16.mxu0 %vm1305_vm3, %v6108_v30  ;;  %v6120_v30 = vsel %vm2650_vm2, %v6117_v14, %v6119_v53  ;;  %v6125_v38 = vrot.slane %v21219_v16, 1  ;;  %v1038_v14 = vshrl.u32 %v22606_v31, 16  ;;  %v22626_v53 = vld [vmem:[%s21651_s14 + $0xe0] sm:$0xff]  }
 0x36c   : > { %v1029_v46 = vsel %vm825_vm4, %v1024_v17, %v1028_v1  ;;  %v1050_v42 = vshll.u32 %v22626_v53, 16  ;;  %v1054_v63 = vshrl.u32 %v22626_v53, 16 }
 0x36d   : > { %v6126_v51 = vsel %vm2650_vm2, %v6123_v10, %v6125_v38 }
 0x36e   : > { %v1052_v37 = vrot.slane %v1050_v42, 1 }
 0x370   : > { %17754 = vmatmul.mubr.msk.bf16.gmra.mrb[36].mxu1 %vm1305_vm3, %v989_v3  ;;  %v6127_v3 = vrot.slane %v21220_v23, 1  ;;  %v1053_v48 = vsel %vm825_vm4, %v1048_v21, %v1052_v37  ;;  %v22659_v23 = vld [vmem:[%s21651_s14 + $0xf8] sm:$0xff]   ;;  %v22679_v21 = vld [vmem:[%s21651_s14 + $0x108] sm:$0xff]  }
 0x371   : > { %17757 = vmatprep.mubr.msk.bf16.mxu1 %vm1305_vm3, %v997_v41  ;;  %v6129_v41 = vrot.slane %v21223_v5, 1 }
 0x372   : > { %18368 = vmatmul.mubr.msk.bf16.gmra.mrb[40].mxu0 %vm1305_vm3, %v6110_v34  ;;  %v1013_v34 = vsel %vm825_vm4, %v1008_v49, %v1012_v8  ;;  %v6128_v35 = vsel %vm2650_vm2, %v6125_v38, %v6127_v3  ;;  %v1058_v49 = vshll.u32 %v22639_v22, 16 }
 0x373   : > { %18371 = vmatprep.mubr.msk.bf16.mxu0 %vm1305_vm3, %v6112_v44  ;;  %v1021_v44 = vsel %vm825_vm4, %v1016_v33, %v1020_v11  ;;  %v6130_v32 = vsel %vm2650_vm2, %v6127_v3, %v6129_v41  ;;  %v1062_v33 = vshrl.u32 %v22639_v22, 16  ;;  %v22646_v11 = vld [vmem:[%s21651_s14 + $0xf0] sm:$0xff]   ;;  %v1074_v3 = vshll.u32 %v22659_v23, 16 }
 0x374   : > { %v1060_v10 = vrot.slane %v1058_v49, 1 }
 0x378   : > { %17758 = vmatmul.mubr.msk.bf16.gmra.mrb[40].mxu1 %vm1305_vm3, %v1005_v43 }
 0x379   : > { %17761 = vmatprep.mubr.msk.bf16.mxu1 %vm1305_vm3, %v1013_v34  ;;  %v1066_v34 = vshll.u32 %v22646_v11, 16 }
 0x37a   : > { %18372 = vmatmul.mubr.msk.bf16.gmra.mrb[44].mxu0 %vm1305_vm3, %v6114_v27  ;;  %v1032_v27 = vor.u32 %v1030_v50, %v1028_v1  ;;  %v1064_v1 = vor.u32 %v1062_v33, %v1060_v10 }
 0x37b   : > { %18375 = vmatprep.mubr.msk.bf16.mxu0 %vm1305_vm3, %v6116_v4  ;;  %v1036_v4 = vrot.slane %v1034_v29, 1  ;;  %v1068_v50 = vrot.slane %v1066_v34, 1  ;;  %v21236_v34 = vld [vmem:[%s21651_s14 + $0x148] sm:$0xff]  }
 0x37d   : > { %v1037_v39 = vsel %vm825_vm4, %v1032_v27, %v1036_v4  ;;  %v1040_v43 = vor.u32 %v1038_v14, %v1036_v4  ;;  %v1069_v16 = vsel %vm825_vm4, %v1064_v1, %v1068_v50  ;;  %v1070_v27 = vshrl.u32 %v22646_v11, 16 }
 0x37e   : > { %v1076_v4 = vrot.slane %v1074_v3, 1 }
 0x37f   : > { %v1045_v8 = vsel %vm825_vm4, %v1040_v43, %v1044_v19  ;;  %v1072_v14 = vor.u32 %v1070_v27, %v1068_v50  ;;  %v21232_v19 = vld [vmem:[%s21651_s14 + $0x138] sm:$0xff]   ;;  %v22706_v27 = vld [vmem:[%s21651_s14 + $0x120] sm:$0xff]  }
 0x380   : > { %17762 = vmatmul.mubr.msk.bf16.gmra.mrb[44].mxu1 %vm1305_vm3, %v1021_v44  ;;  %v21227_v44 = vld [vmem:[%s21651_s14 + $0x120] sm:$0xff]   ;;  %v6139_v6 = vrot.slane %v21232_v19, 1 }
 0x381   : > { %17765 = vmatprep.mubr.msk.bf16.mxu1 %vm1305_vm3, %v1029_v46  ;;  %v1078_v46 = vshrl.u32 %v22659_v23, 16 }
 0x382   : > { %18376 = vmatmul.mubr.msk.bf16.gmra.mrb[48].mxu0 %vm1305_vm3, %v6118_v60  ;;  %v21224_v60 = vld [vmem:[%s21651_s14 + $0x118] sm:$0xff]  }
 0x383   : > { %18379 = vmatprep.mubr.msk.bf16.mxu0 %vm1305_vm3, %v6120_v30  ;;  %v6131_v30 = vrot.slane %v21224_v60, 1  ;;  %v1080_v42 = vor.u32 %v1078_v46, %v1076_v4  ;;  %v21239_v46 = vld [vmem:[%s21651_s14 + $0x150] sm:$0xff]  }
 0x385   : > { %v6132_v55 = vsel %vm2650_vm2, %v6129_v41, %v6131_v30  ;;  %v1077_v41 = vsel %vm825_vm4, %v1072_v14, %v1076_v4  ;;  %v1114_v4 = vshll.u32 %v22706_v27, 16 }
 0x388   : > { %17766 = vmatmul.mubr.msk.bf16.gmra.mrb[48].mxu1 %vm1305_vm3, %v1037_v39  ;;  %v22666_v39 = vld [vmem:[%s21651_s14 + $0x100] sm:$0xff]  }
 0x389   : > { %17769 = vmatprep.mubr.msk.bf16.mxu1 %vm1305_vm3, %v1045_v8  ;;  %v1086_v8 = vshrl.u32 %v22666_v39, 16 }
 0x38a   : > { %18380 = vmatmul.mubr.msk.bf16.gmra.mrb[52].mxu0 %vm1305_vm3, %v6122_v45  ;;  %v6133_v45 = vrot.slane %v21227_v44, 1  ;;  %v6143_v44 = vrot.slane %v21236_v34, 1 }
 0x38b   : > { %18383 = vmatprep.mubr.msk.bf16.mxu0 %vm1305_vm3, %v6124_v25  ;;  %v1056_v25 = vor.u32 %v1054_v63, %v1052_v37  ;;  %v1090_v37 = vshll.u32 %v22679_v21, 16  ;;  %v21235_v63 = vld [vmem:[%s21651_s14 + $0x140] sm:$0xff]  }
 0x38c   : > { %v6134_v38 = vsel %vm2650_vm2, %v6131_v30, %v6133_v45  ;;  %v6136_v17 = vsel %vm2650_vm2, %v6133_v45, %v6135_v13 }
 0x38d   : > { %v1061_v29 = vsel %vm825_vm4, %v1056_v25, %v1060_v10  ;;  %v6141_v10 = vrot.slane %v21235_v63, 1 }
 0x38f   : > { %v6142_v1 = vsel %vm2650_vm2, %v6139_v6, %v6141_v10  ;;  %v6144_v50 = vsel %vm2650_vm2, %v6141_v10, %v6143_v44  ;;  %v21243_v10 = vld [vmem:[%s21651_s14 + $0x160] sm:$0xff]  }
 0x390   : > { %17770 = vmatmul.mubr.msk.bf16.gmra.mrb[52].mxu1 %vm1305_vm3, %v1053_v48  ;;  %v1092_v48 = vrot.slane %v1090_v37, 1  ;;  %v1118_v37 = vshrl.u32 %v22706_v27, 16 }
 0x391   : > { %17773 = vmatprep.mubr.msk.bf16.mxu1 %vm1305_vm3, %v1061_v29  ;;  %v22699_v29 = vld [vmem:[%s21651_s14 + $0x118] sm:$0xff]  }
 0x392   : > { %18384 = vmatmul.mubr.msk.bf16.gmra.mrb[56].mxu0 %vm1305_vm3, %v6126_v51  ;;  %v1082_v51 = vshll.u32 %v22666_v39, 16  ;;  %v1110_v3 = vshrl.u32 %v22699_v29, 16 }
 0x393   : > { %18387 = vmatprep.mubr.msk.bf16.mxu0 %vm1305_vm3, %v6128_v35  ;;  %v21231_v35 = vld [vmem:[%s21651_s14 + $0x130] sm:$0xff]  }
 0x394   : > { %v6137_v18 = vrot.slane %v21231_v35, 1  ;;  %v1084_v5 = vrot.slane %v1082_v51, 1  ;;  %v6145_v51 = vrot.slane %v21239_v46, 1 }
 0x396   : > { %v1085_v43 = vsel %vm825_vm4, %v1080_v42, %v1084_v5  ;;  %v6138_v60 = vsel %vm2650_vm2, %v6135_v13, %v6137_v18  ;;  %v6140_v30 = vsel %vm2650_vm2, %v6137_v18, %v6139_v6  ;;  %v1088_v33 = vor.u32 %v1086_v8, %v1084_v5  ;;  %v21240_v18 = vld [vmem:[%s21651_s14 + $0x158] sm:$0xff]  }
 0x397   : > { %v6147_v14 = vrot.slane %v21240_v18, 1  ;;  %v1116_v6 = vrot.slane %v1114_v4, 1 }
 0x398   : > { %17774 = vmatmul.mubr.msk.bf16.gmra.mrb[56].mxu1 %vm1305_vm3, %v1069_v16  ;;  %v1093_v12 = vsel %vm825_vm4, %v1088_v33, %v1092_v48  ;;  %v1106_v16 = vshll.u32 %v22699_v29, 16  ;;  %v6149_v33 = vrot.slane %v21243_v10, 1 }
 0x399   : > { %17777 = vmatprep.mubr.msk.bf16.mxu1 %vm1305_vm3, %v1077_v41  ;;  %v6146_v41 = vsel %vm2650_vm2, %v6143_v44, %v6145_v51  ;;  %v1120_v34 = vor.u32 %v1118_v37, %v1116_v6 }
 0x39a   : > { %18388 = vmatmul.mubr.msk.bf16.gmra.mrb[60].mxu0 %vm1305_vm3, %v6130_v32  ;;  %v1094_v32 = vshrl.u32 %v22679_v21, 16 }
 0x39b   : > { %18391 = vmatprep.mubr.msk.bf16.mxu0 %vm1305_vm3, %v6132_v55  ;;  %v22686_v55 = vld [vmem:[%s21651_s14 + $0x110] sm:$0xff]  }
 0x39c   : > { %v1098_v49 = vshll.u32 %v22686_v55, 16  ;;  %v1096_v45 = vor.u32 %v1094_v32, %v1092_v48  ;;  %v320_v48 = vld [vmem:[#allocation2 + $0xe] sm:$0x3] }
 0x39d   : > { %v22732_v44 = vand.u32 %v21646_v2, %v320_v48 }
 0x39e   : > { %v1100_v25 = vrot.slane %v1098_v49, 1  ;;  %v22726_v49 = vld [vmem:[%s21651_s14 + $0x130] sm:$0xff]  }
 0x39f   : > { %v1130_v63 = vshll.u32 %v22726_v49, 16  ;;  %18569 = vmatprep.subr.bf16.mxu0 %v22732_v44  ;;  %v1134_v4 = vshrl.u32 %v22726_v49, 16 }
 0x3a0   : > { %17778 = vmatmul.mubr.msk.bf16.gmra.mrb[60].mxu1 %vm1305_vm3, %v1085_v43  ;;  %v1101_v13 = vsel %vm825_vm4, %v1096_v45, %v1100_v25  ;;  %v6148_v43 = vsel %vm2650_vm2, %v6145_v51, %v6147_v14  ;;  %v21244_v45 = vld [vmem:[%s21651_s14 + $0x168] sm:$0xff]  }
 0x3a1   : > { %17781 = vmatprep.mubr.msk.bf16.mxu1 %vm1305_vm3, %v1093_v12 }
 0x3a2   : > { %18392 = vmatmul.mubr.msk.bf16.gmra.mrb[64].mxu0 %vm1305_vm3, %v6134_v38  ;;  %v1102_v38 = vshrl.u32 %v22686_v55, 16 }
 0x3a3   : > { %18395 = vmatprep.mubr.msk.bf16.mxu0 %vm1305_vm3, %v6136_v17  ;;  %v1108_v17 = vrot.slane %v1106_v16, 1  ;;  %v6150_v16 = vsel %vm2650_vm2, %v6147_v14, %v6149_v33  ;;  %v21247_v14 = vld [vmem:[%s21651_s14 + $0x170] sm:$0xff]  }
 0x3a4   : > { %v1104_v35 = vor.u32 %v1102_v38, %v1100_v25  ;;  %v6151_v25 = vrot.slane %v21244_v45, 1  ;;  %v22770_v45 = vld [vmem:[%s21651_s14 + $0x150] sm:$0xff]  }
 0x3a5   : > { %v1112_v19 = vor.u32 %v1110_v3, %v1108_v17 }
 0x3a6   : > { %v1109_v42 = vsel %vm825_vm4, %v1104_v35, %v1108_v17  ;;  %v6152_v38 = vsel %vm2650_vm2, %v6149_v33, %v6151_v25  ;;  %v22743_v17 = vld [vmem:[%s21651_s14 + $0x138] sm:$0xff]   ;;  %v22750_v35 = vld [vmem:[%s21651_s14 + $0x140] sm:$0xff]  }
 0x3a7   : > { %v1117_v5 = vsel %vm825_vm4, %v1112_v19, %v1116_v6  ;;  %v1138_v3 = vshll.u32 %v22743_v17, 16  ;;  %v1142_v51 = vshrl.u32 %v22743_v17, 16  ;;  %v1146_v18 = vshll.u32 %v22750_v35, 16 }
 0x3a8   : > { %17782 = vmatmul.mubr.msk.bf16.gmra.mrb[64].mxu1 %vm1305_vm3, %v1101_v13  ;;  %v1132_v13 = vrot.slane %v1130_v63, 1  ;;  %v6153_v19 = vrot.slane %v21247_v14, 1  ;;  %v1150_v10 = vshrl.u32 %v22750_v35, 16  ;;  %v22783_v14 = vld [vmem:[%s21651_s14 + $0x158] sm:$0xff]  }
 0x3a9   : > { %17785 = vmatprep.mubr.msk.bf16.mxu1 %vm1305_vm3, %v1109_v42  ;;  %v1140_v46 = vrot.slane %v1138_v3, 1  ;;  %v21248_v42 = vld [vmem:[%s21651_s14 + $0x178] sm:$0xff]  }
 0x3aa   : > { %18396 = vmatmul.mubr.msk.bf16.gmra.mrb[68].mxu0 %vm1305_vm3, %v6138_v60  ;;  %v22719_v60 = vld [vmem:[%s21651_s14 + $0x128] sm:$0xff]   ;;  %v1136_v6 = vor.u32 %v1134_v4, %v1132_v13 }
 0x3ab   : > { %18399 = vmatprep.mubr.msk.bf16.mxu0 %vm1305_vm3, %v6140_v30  ;;  %v1122_v30 = vshll.u32 %v22719_v60, 16  ;;  %v1126_v32 = vshrl.u32 %v22719_v60, 16 }
 0x3ad   : > { %v1124_v8 = vrot.slane %v1122_v30, 1  ;;  %v1141_v30 = vsel %vm825_vm4, %v1136_v6, %v1140_v46  ;;  %v1166_v6 = vshrl.u32 %v22770_v45, 16 }
 0x3af   : > { %v1128_v12 = vor.u32 %v1126_v32, %v1124_v8  ;;  %v22763_v32 = vld [vmem:[%s21651_s14 + $0x148] sm:$0xff]  }
 0x3b0   : > { %17786 = vmatmul.mubr.msk.bf16.gmra.mrb[68].mxu1 %vm1305_vm3, %v1117_v5  ;;  %v6155_v5 = vrot.slane %v21248_v42, 1  ;;  %v1154_v63 = vshll.u32 %v22763_v32, 16 }
 0x3b2   : > { %18400 = vmatmul.mubr.msk.bf16.gmra.mrb[72].mxu0 %vm1305_vm3, %v6142_v1  ;;  %v1125_v1 = vsel %vm825_vm4, %v1120_v34, %v1124_v8  ;;  %v6154_v8 = vsel %vm2650_vm2, %v6151_v25, %v6153_v19  ;;  %v6156_v48 = vsel %vm2650_vm2, %v6153_v19, %v6155_v5  ;;  %v1156_v33 = vrot.slane %v1154_v63, 1 }
 0x3b3   : > { %18403 = vmatprep.mubr.msk.bf16.mxu0 %vm1305_vm3, %v6144_v50  ;;  %17789 = vmatprep.mubr.msk.bf16.mxu1 %vm1305_vm3, %v1125_v1  ;;  %v1133_v50 = vsel %vm825_vm4, %v1128_v12, %v1132_v13  ;;  %v1158_v34 = vshrl.u32 %v22763_v32, 16  ;;  %v1162_v25 = vshll.u32 %v22770_v45, 16  ;;  %v21251_v12 = vld [vmem:[%s21651_s14 + $0x180] sm:$0xff]   ;;  %v1170_v19 = vshll.u32 %v22783_v14, 16 }
 0x3b4   : > { %v6157_v13 = vrot.slane %v21251_v12, 1 }
 0x3b5   : > { %v1164_v3 = vrot.slane %v1162_v25, 1  ;;  %v1172_v42 = vrot.slane %v1170_v19, 1 }
 0x3b8   : > { %17790 = vmatmul.mubr.msk.bf16.gmra.mrb[72].mxu1 %vm1305_vm3, %v1133_v50  ;;  %v21252_v50 = vld [vmem:[%s21651_s14 + $0x188] sm:$0xff]  }
 0x3b9   : > { %17793 = vmatprep.mubr.msk.bf16.mxu1 %vm1305_vm3, %v1141_v30  ;;  %v21255_v30 = vld [vmem:[%s21651_s14 + $0x190] sm:$0xff]  }
 0x3ba   : > { %18404 = vmatmul.mubr.msk.bf16.gmra.mrb[76].mxu0 %vm1305_vm3, %v6146_v41  ;;  %v1144_v41 = vor.u32 %v1142_v51, %v1140_v46  ;;  %v6158_v51 = vsel %vm2650_vm2, %v6155_v5, %v6157_v13 }
 0x3bb   : > { %18407 = vmatprep.mubr.msk.bf16.mxu0 %vm1305_vm3, %v6148_v43  ;;  %v1148_v43 = vrot.slane %v1146_v18, 1 }
 0x3bd   : > { %v1149_v37 = vsel %vm825_vm4, %v1144_v41, %v1148_v43  ;;  %v1152_v1 = vor.u32 %v1150_v10, %v1148_v43  ;;  %v1174_v41 = vshrl.u32 %v22783_v14, 16  ;;  %v22790_v43 = vld [vmem:[%s21651_s14 + $0x160] sm:$0xff]  }
 0x3be   : > { %v1178_v5 = vshll.u32 %v22790_v43, 16 }
 0x3bf   : > { %v1157_v4 = vsel %vm825_vm4, %v1152_v1, %v1156_v33  ;;  %v1176_v10 = vor.u32 %v1174_v41, %v1172_v42  ;;  %v22803_v1 = vld [vmem:[%s21651_s14 + $0x168] sm:$0xff]  }
 0x3c0   : > { %17794 = vmatmul.mubr.msk.bf16.gmra.mrb[76].mxu1 %vm1305_vm3, %v1149_v37  ;;  %v6161_v37 = vrot.slane %v21255_v30, 1 }
 0x3c1   : > { %17797 = vmatprep.mubr.msk.bf16.mxu1 %vm1305_vm3, %v1157_v4  ;;  %v1190_v4 = vshrl.u32 %v22803_v1, 16 }
 0x3c2   : > { %18408 = vmatmul.mubr.msk.bf16.gmra.mrb[80].mxu0 %vm1305_vm3, %v6150_v16  ;;  %v6159_v16 = vrot.slane %v21252_v50, 1  ;;  %v1186_v50 = vshll.u32 %v22803_v1, 16 }
 0x3c3   : > { %18411 = vmatprep.mubr.msk.bf16.mxu0 %vm1305_vm3, %v6152_v38  ;;  %v1160_v38 = vor.u32 %v1158_v34, %v1156_v33  ;;  %v1180_v33 = vrot.slane %v1178_v5, 1 }
 0x3c4   : > { %v6160_v18 = vsel %vm2650_vm2, %v6157_v13, %v6159_v16  ;;  %v6162_v12 = vsel %vm2650_vm2, %v6159_v16, %v6161_v37 }
 0x3c5   : > { %v1165_v46 = vsel %vm825_vm4, %v1160_v38, %v1164_v3  ;;  %v1181_v25 = vsel %vm825_vm4, %v1176_v10, %v1180_v33  ;;  %v1182_v38 = vshrl.u32 %v22790_v43, 16  ;;  %v22823_v10 = vld [vmem:[%s21651_s14 + $0x178] sm:$0xff]  }
 0x3c7   : > { %v1184_v19 = vor.u32 %v1182_v38, %v1180_v33  ;;  %v1202_v33 = vshll.u32 %v22823_v10, 16 }
 0x3c8   : > { %17798 = vmatmul.mubr.msk.bf16.gmra.mrb[80].mxu1 %vm1305_vm3, %v1165_v46  ;;  %v22810_v46 = vld [vmem:[%s21651_s14 + $0x170] sm:$0xff]  }
 0x3c9   : > { %v1194_v16 = vshll.u32 %v22810_v46, 16 }
 0x3ca   : > { %18412 = vmatmul.mubr.msk.bf16.gmra.mrb[84].mxu0 %vm1305_vm3, %v6154_v8  ;;  %v1168_v8 = vor.u32 %v1166_v6, %v1164_v3  ;;  %v1188_v3 = vrot.slane %v1186_v50, 1  ;;  %v21260_v6 = vld [vmem:[%s21651_s14 + $0x1a8] sm:$0xff]   ;;  %v21263_v50 = vld [vmem:[%s21651_s14 + $0x1b0] sm:$0xff]  }
 0x3cb   : > { %18415 = vmatprep.mubr.msk.bf16.mxu0 %vm1305_vm3, %v6156_v48  ;;  %v21256_v48 = vld [vmem:[%s21651_s14 + $0x198] sm:$0xff]   ;;  %v1196_v5 = vrot.slane %v1194_v16, 1  ;;  %v6169_v38 = vrot.slane %v21263_v50, 1  ;;  %v21266_v50 = vld [vmem:[%s21651_s14 + $0x1c8] sm:$0xff]  }
 0x3cc   : > { %v6163_v63 = vrot.slane %v21256_v48, 1  ;;  %v1173_v34 = vsel %vm825_vm4, %v1168_v8, %v1172_v42  ;;  %v6167_v42 = vrot.slane %v21260_v6, 1  ;;  %v1192_v41 = vor.u32 %v1190_v4, %v1188_v3  ;;  %v21264_v4 = vld [vmem:[%s21651_s14 + $0x1b8] sm:$0xff]  }
 0x3cd   : > { %17801 = vmatprep.mubr.msk.bf16.mxu1 %vm1305_vm3, %v1173_v34  ;;  %v1189_v30 = vsel %vm825_vm4, %v1184_v19, %v1188_v3  ;;  %v1198_v34 = vshrl.u32 %v22810_v46, 16  ;;  %v6171_v16 = vrot.slane %v21264_v4, 1 }
 0x3ce   : > { %v6164_v13 = vsel %vm2650_vm2, %v6161_v37, %v6163_v63  ;;  %v1197_v37 = vsel %vm825_vm4, %v1192_v41, %v1196_v5  ;;  %v22840_v41 = vld [vmem:[%s21651_s14 + $0x188] sm:$0xff]  }
 0x3cf   : > { %v1200_v3 = vor.u32 %v1198_v34, %v1196_v5  ;;  %v6172_v5 = vsel %vm2650_vm2, %v6169_v38, %v6171_v16  ;;  %v1222_v34 = vshrl.u32 %v22840_v41, 16 }
 0x3d0   : > { %17802 = vmatmul.mubr.msk.bf16.gmra.mrb[84].mxu1 %vm1305_vm3, %v1181_v25  ;;  %v1204_v25 = vrot.slane %v1202_v33, 1 }
 0x3d1   : > { %17805 = vmatprep.mubr.msk.bf16.mxu1 %vm1305_vm3, %v1189_v30  ;;  %v6170_v30 = vsel %vm2650_vm2, %v6167_v42, %v6169_v38  ;;  %v6175_v38 = vrot.slane %v21266_v50, 1 }
 0x3d2   : > { %18416 = vmatmul.mubr.msk.bf16.gmra.mrb[88].mxu0 %vm1305_vm3, %v6158_v51  ;;  %v21259_v51 = vld [vmem:[%s21651_s14 + $0x1a0] sm:$0xff]   ;;  %v1205_v19 = vsel %vm825_vm4, %v1200_v3, %v1204_v25 }
 0x3d3   : > { %18419 = vmatprep.mubr.msk.bf16.mxu0 %vm1305_vm3, %v6160_v18  ;;  %v6165_v18 = vrot.slane %v21259_v51, 1 }
 0x3d5   : > { %v6166_v8 = vsel %vm2650_vm2, %v6163_v63, %v6165_v18  ;;  %v6168_v48 = vsel %vm2650_vm2, %v6165_v18, %v6167_v42  ;;  %v21265_v42 = vld [vmem:[%s21651_s14 + $0x1c0] sm:$0xff]  }
 0x3d8   : > { %17806 = vmatmul.mubr.msk.bf16.gmra.mrb[88].mxu1 %vm1305_vm3, %v1197_v37  ;;  %v1218_v37 = vshll.u32 %v22840_v41, 16 }
 0x3d9   : > { %17809 = vmatprep.mubr.msk.bf16.mxu1 %vm1305_vm3, %v1205_v19 }
 0x3da   : > { %18420 = vmatmul.mubr.msk.bf16.gmra.mrb[92].mxu0 %vm1305_vm3, %v6162_v12  ;;  %v1206_v12 = vshrl.u32 %v22823_v10, 16  ;;  %v1220_v33 = vrot.slane %v1218_v37, 1  ;;  %v22867_v37 = vld [vmem:[%s21651_s14 + $0x1a0] sm:$0xff]  }
 0x3db   : > { %18423 = vmatprep.mubr.msk.bf16.mxu0 %vm1305_vm3, %v6164_v13  ;;  %v22830_v13 = vld [vmem:[%s21651_s14 + $0x180] sm:$0xff]  }
 0x3dc   : > { %v1210_v63 = vshll.u32 %v22830_v13, 16  ;;  %v1208_v51 = vor.u32 %v1206_v12, %v1204_v25  ;;  %v6173_v12 = vrot.slane %v21265_v42, 1  ;;  %v1224_v3 = vor.u32 %v1222_v34, %v1220_v33 }
 0x3de   : > { %v1212_v18 = vrot.slane %v1210_v63, 1 }
 0x3e0   : > { %v1213_v6 = vsel %vm825_vm4, %v1208_v51, %v1212_v18 }
 0x3e1   : > { %17810 = vmatmul.mubr.msk.bf16.gmra.mrb[92].mxu1 %vm1305_vm3, %v1213_v6  ;;  %v22860_v6 = vld [vmem:[%s21651_s14 + $0x198] sm:$0xff]  }
 0x3e2   : > { %18424 = vmatmul.mubr.msk.bf16.gmra.mrb[96].mxu0 %vm1305_vm3, %v6166_v8  ;;  %v22847_v8 = vld [vmem:[%s21651_s14 + $0x190] sm:$0xff]   ;;  %25421 = vst [vmem:[#allocation17_spill] sm:$0xff] %v22860_v6  ;;  %v1238_v34 = vshrl.u32 %v22860_v6, 16 }
 0x3e3   : > { %18427 = vmatprep.mubr.msk.bf16.mxu0 %vm1305_vm3, %v6168_v48  ;;  %v1214_v48 = vshrl.u32 %v22830_v13, 16  ;;  %v1226_v25 = vshll.u32 %v22847_v8, 16 }
 0x3e5   : > { %v1216_v63 = vor.u32 %v1214_v48, %v1212_v18  ;;  %v1228_v4 = vrot.slane %v1226_v25, 1  ;;  %v6176_v18 = vsel %vm2650_vm2, %v6173_v12, %v6175_v38  ;;  %v1230_v48 = vshrl.u32 %v22847_v8, 16 }
 0x3e6   : > { %v1242_v25 = vshll.u32 %v22867_v37, 16 }
 0x3e7   : > { %v1221_v51 = vsel %vm825_vm4, %v1216_v63, %v1220_v33  ;;  %v1229_v19 = vsel %vm825_vm4, %v1224_v3, %v1228_v4  ;;  %v21268_v63 = vld [vmem:[%s21651_s14 + $0x1d8] sm:$0xff]  }
 0x3e8   : > { %17813 = vmatprep.mubr.msk.bf16.mxu1 %vm1305_vm3, %v1221_v51  ;;  %v6179_v50 = vrot.slane %v21268_v63, 1  ;;  %v1244_v51 = vrot.slane %v1242_v25, 1  ;;  %v6183_v63 = vrot.slane %v22356_v20, 1 }
 0x3e9   : > { %17814 = vmatmul.mubr.msk.bf16.gmra.mrb[96].mxu1 %vm1305_vm3, %v1229_v19 }
 0x3ea   : > { %18428 = vmatmul.mubr.msk.bf16.gmra.mrb[100].mxu0 %vm1305_vm3, %v6170_v30  ;;  %v6174_v30 = vsel %vm2650_vm2, %v6171_v16, %v6173_v12  ;;  %v21267_v16 = vld [vmem:[%s21651_s14 + $0x1d0] sm:$0xff]   ;;  %v1232_v12 = vor.u32 %v1230_v48, %v1228_v4 }
 0x3eb   : > { %18431 = vmatprep.mubr.msk.bf16.mxu0 %vm1305_vm3, %v6172_v5  ;;  %v1234_v5 = vshll.u32 %v22860_v6, 16  ;;  %v6177_v42 = vrot.slane %v21267_v16, 1  ;;  %v22887_v48 = vld [vmem:[%s21651_s14 + $0x1b0] sm:$0xff]  }
 0x3ec   : > { %v1258_v16 = vshll.u32 %v22887_v48, 16 }
 0x3ed   : > { %v1236_v33 = vrot.slane %v1234_v5, 1  ;;  %v22880_v5 = vld [vmem:[%s21651_s14 + $0x1a8] sm:$0xff]   ;;  %v6178_v6 = vsel %vm2650_vm2, %v6175_v38, %v6177_v42  ;;  %v21269_v38 = vld [vmem:[%s21651_s14 + $0x1e0] sm:$0xff]  }
 0x3ee   : > { %25422 = vst [vmem:[#allocation18_spill] sm:$0xff] %v22880_v5  ;;  %v1250_v4 = vshll.u32 %v22880_v5, 16  ;;  %v1254_v25 = vshrl.u32 %v22880_v5, 16 }
 0x3ef   : > { %v1240_v3 = vor.u32 %v1238_v34, %v1236_v33  ;;  %v1237_v19 = vsel %vm825_vm4, %v1232_v12, %v1236_v33  ;;  %v1246_v34 = vshrl.u32 %v22867_v37, 16  ;;  %v6181_v12 = vrot.slane %v21269_v38, 1  ;;  %v7001_v38 = vld [vmem:[%s21651_s14 + $0x20] sm:$0xf] }
 0x3f0   : > { %17817 = vmatprep.mubr.msk.bf16.mxu1 %vm1305_vm3, %v1237_v19  ;;  %v1252_v33 = vrot.slane %v1250_v4, 1  ;;  %v1260_v19 = vrot.slane %v1258_v16, 1  ;;  %v22900_v4 = vld [vmem:[%s21651_s14 + $0x1b8] sm:$0xff]  }
 0x3f1   : > { %v6182_v5 = vsel %vm2650_vm2, %v6179_v50, %v6181_v12  ;;  %v1266_v20 = vshll.u32 %v22900_v4, 16 }
 0x3f2   : > { %18432 = vmatmul.mubr.msk.bf16.gmra.mrb[104].mxu0 %vm1305_vm3, %v6174_v30  ;;  %v1245_v30 = vsel %vm825_vm4, %v1240_v3, %v1244_v51  ;;  %v1256_v3 = vor.u32 %v1254_v25, %v1252_v33  ;;  %v1270_v25 = vshrl.u32 %v22900_v4, 16 }
 0x3f3   : > { %18435 = vmatprep.mubr.msk.bf16.mxu0 %vm1305_vm3, %v6176_v18  ;;  %17818 = vmatmul.mubr.msk.bf16.gmra.mrb[100].mxu1 %vm1305_vm3, %v1245_v30  ;;  %v6180_v18 = vsel %vm2650_vm2, %v6177_v42, %v6179_v50  ;;  %v1248_v42 = vor.u32 %v1246_v34, %v1244_v51  ;;  %v6184_v51 = vsel %vm2650_vm2, %v6181_v12, %v6183_v63  ;;  %v1262_v34 = vshrl.u32 %v22887_v48, 16  ;;  %v7002_v12 = vld [vmem:[%s21651_s14 + $0x24] sm:$0xf] }
 0x3f5   : > { %v1253_v30 = vsel %vm825_vm4, %v1248_v42, %v1252_v33  ;;  %v1268_v33 = vrot.slane %v1266_v20, 1  ;;  %v1264_v50 = vor.u32 %v1262_v34, %v1260_v19  ;;  %v22922_v20 = vcombine.low %v7001_v38, %v7002_v12 }
 0x3f6   : > { %17821 = vmatprep.mubr.msk.bf16.mxu1 %vm1305_vm3, %v1253_v30 }
 0x3f7   : > { %v1272_v42 = vor.u32 %v1270_v25, %v1268_v33  ;;  %v1269_v30 = vsel %vm825_vm4, %v1264_v50, %v1268_v33 }
 0x3fa   : > { %18436 = vmatmul.mubr.msk.bf16.gmra.mrb[108].mxu0 %vm1305_vm3, %v6178_v6  ;;  %v1261_v6 = vsel %vm825_vm4, %v1256_v3, %v1260_v19 }
 0x3fb   : > { %18439 = vmatprep.mubr.msk.bf16.mxu0 %vm1305_vm3, %v6180_v18  ;;  %17822 = vmatmul.mubr.msk.bf16.gmra.mrb[104].mxu1 %vm1305_vm3, %v1261_v6  ;;  %v22907_v18 = vld [vmem:[%s21651_s14 + $0x1c0] sm:$0xff]  }
 0x3fc   : > { %v1274_v16 = vshll.u32 %v22907_v18, 16  ;;  %17825 = vmatprep.mubr.msk.bf16.mxu1 %vm1305_vm3, %v1269_v30  ;;  %v1278_v34 = vshrl.u32 %v22907_v18, 16  ;;  %v22937_v30 = vld [vmem:[%s21651_s14 + $0x28] sm:$0xff]  }
 0x3fe   : > { %v1276_v3 = vrot.slane %v1274_v16, 1 }
 0x400   : > { %v1277_v6 = vsel %vm825_vm4, %v1272_v42, %v1276_v3  ;;  %v1280_v50 = vor.u32 %v1278_v34, %v1276_v3 }
 0x402   : > { %18440 = vmatmul.mubr.msk.bf16.gmra.mrb[112].mxu0 %vm1305_vm3, %v6182_v5  ;;  %v22920_v5 = vld [vmem:[%s21651_s14 + $0x1c8] sm:$0xff]  }
 0x403   : > { %18443 = vmatprep.mubr.msk.bf16.mxu0 %vm1305_vm3, %v6184_v51  ;;  %25423 = vst [vmem:[#allocation19_spill] sm:$0xff] %v22920_v5  ;;  %17826 = vmatmul.mubr.msk.bf16.gmra.mrb[108].mxu1 %vm1305_vm3, %v1277_v6  ;;  %v1282_v19 = vshll.u32 %v22920_v5, 16  ;;  %v22927_v51 = vld [vmem:[%s21651_s14 + $0x1d0] sm:$0xff]   ;;  %v1286_v25 = vshrl.u32 %v22920_v5, 16 }
 0x404   : > { %v1290_v16 = vshll.u32 %v22927_v51, 16  ;;  %v22946_v5 = vld [vmem:[%s21651_s14 + $0x30] sm:$0xff]   ;;  %v1294_v34 = vshrl.u32 %v22927_v51, 16 }
 0x405   : > { %v1284_v33 = vrot.slane %v1282_v19, 1  ;;  %v524_v19 = vld [vmem:[%s21651_s14 + $0x1dc] sm:$0xf] }
 0x406   : > { %v1292_v12 = vrot.slane %v1290_v16, 1 }
 0x407   : > { %v1288_v38 = vor.u32 %v1286_v25, %v1284_v33  ;;  %v1285_v42 = vsel %vm825_vm4, %v1280_v50, %v1284_v33 }
 0x408   : > { %17829 = vmatprep.mubr.msk.bf16.mxu1 %vm1305_vm3, %v1285_v42  ;;  %v1296_v16 = vor.u32 %v1294_v34, %v1292_v12  ;;  %v22978_v34 = vld [vmem:[%s21651_s14 + $0x48] sm:$0xff]  }
 0x409   : > { %v1293_v6 = vsel %vm825_vm4, %v1288_v38, %v1292_v12  ;;  %v25425_v12 = vld [vmem:[#allocation12_spill] sm:$0xff] }
 0x40a   : > { %18444 = vmatmul.mubr.msk.bf16.gmra.mrb[116].mxu0 %vm1305_vm3, %v6183_v63  ;;  %v22942_v63 = vld [vmem:[%s21651_s14 + $0x1d8] sm:$0xf] }
 0x40b   : > { %18449 = vmatprep.mubr.msk.bf16.mxu0 %vm1305_vm3, %v22922_v20  ;;  %17830 = vmatmul.mubr.msk.bf16.gmra.mrb[112].mxu1 %vm1305_vm3, %v1293_v6  ;;  %v22950_v3 = vcombine.low %v22942_v63, %v524_v19  ;;  %v22962_v6 = vld [vmem:[%s21651_s14 + $0x38] sm:$0xff]   ;;  %v22966_v19 = vld [vmem:[%s21651_s14 + $0x40] sm:$0xff]  }
 0x40d   : > { %25424 = vst [vmem:[#allocation20_spill] sm:$0xff] %v22950_v3  ;;  %v1298_v33 = vshll.u32 %v22950_v3, 16  ;;  %v1302_v25 = vshrl.u32 %v22950_v3, 16  ;;  %v306_v3 = vld [vmem:[#allocation2] sm:$0x3] }
 0x40f   : > { %v1300_v50 = vrot.slane %v1298_v33, 1  ;;  %v22981_v33 = vld [vmem:[%s21651_s14 + $0x50] sm:$0xff]  }
 0x411   : > { %v1301_v38 = vsel %vm825_vm4, %v1296_v16, %v1300_v50  ;;  %v1304_v42 = vor.u32 %v1302_v25, %v1300_v50  ;;  %v22993_v25 = vld [vmem:[%s21651_s14 + $0x58] sm:$0xff]   ;;  %v22996_v16 = vld [vmem:[%s21651_s14 + $0x60] sm:$0xff]  }
 0x412   : > { %18450 = vmatmul.mubr.msk.bf16.vlgmr.msra.gmra.mrb[0].mxu0 %vm1305_vm3, %v22937_v30  ;;  %17833 = vmatprep.mubr.msk.bf16.mxu1 %vm1305_vm3, %v1301_v38  ;;  %25426 = vst [vmem:[#allocation21_spill] sm:$0xff] %v22996_v16  ;;  %v21272_v50 = vld [vmem:[%s21651_s14 + $0x18] sm:$0xff]   ;;  %v21273_v38 = vld [vmem:[%s21651_s14 + $0x20] sm:$0xff]  }
 0x413   : > { %18453 = vmatprep.mubr.msk.bf16.mxu0 %vm1305_vm3, %v22946_v5  ;;  %18570 = vmatpush3.bf16.msra.mxu0 %v22732_v44  ;;  %v2131_v44 = vand.u32 %v21646_v2, %v306_v3  ;;  %v21271_v3 = vld [vmem:[%s21651_s14 + $0x10] sm:$0xff]  }
 0x414   : > { %17834 = vmatmul.mubr.msk.bf16.gmra.mrb[116].mxu1 %vm1305_vm3, %v1304_v42  ;;  %v23007_v42 = vld [vmem:[%s21651_s14 + $0x68] sm:$0xff]  }
 0x415   : > { %17839 = vmatprep.mubr.msk.bf16.mxu1 %vm1305_vm3, %v22384_v24  ;;  %17837 = vmatprep.subr.bf16.mxu1 %v2131_v44  ;;  %v21270_v24 = vld [vmem:[%s21651_s14 + $0x8] sm:$0xff]  }
 0x416   : > { %17838 = vmatpush3.bf16.msra.mxu1 %v2131_v44  ;;  %v23010_v44 = vld [vmem:[%s21651_s14 + $0x70] sm:$0xff]  }
 0x417   : > { %19573 = vmatprep.subr.bf16.mxu1 %v25425_v12  ;;  %25427 = vst [vmem:[#allocation22_spill] sm:$0xff] %v23010_v44 }
 0x41a   : > { %18454 = vmatmul.mubr.msk.bf16.gmra.mrb[4].mxu0 %vm1305_vm3, %v22962_v6 }
 0x41b   : > { %18457 = vmatprep.mubr.msk.bf16.mxu0 %vm1305_vm3, %v22966_v19 }
 0x41c   : > { %17840 = vmatmul.mubr.msk.bf16.vlgmr.msra.gmra.mrb[0].mxu1 %vm1305_vm3, %v21270_v24  ;;  %v21275_v24 = vld [vmem:[%s21651_s14 + $0x30] sm:$0xff]  }
 0x41d   : > { %17843 = vmatprep.mubr.msk.bf16.mxu1 %vm1305_vm3, %v21271_v3  ;;  %19574 = vmatpush3.bf16.msra.mxu1 %v25425_v12  ;;  %v21274_v12 = vld [vmem:[%s21651_s14 + $0x28] sm:$0xff]   ;;  %v23021_v3 = vld [vmem:[%s21651_s14 + $0x78] sm:$0xff]  }
 0x422   : > { %18458 = vmatmul.mubr.msk.bf16.gmra.mrb[8].mxu0 %vm1305_vm3, %v22978_v34 }
 0x423   : > { %18461 = vmatprep.mubr.msk.bf16.mxu0 %vm1305_vm3, %v22981_v33 }
 0x424   : > { %17844 = vmatmul.mubr.msk.bf16.gmra.mrb[4].mxu1 %vm1305_vm3, %v21272_v50  ;;  %v23024_v50 = vld [vmem:[%s21651_s14 + $0x80] sm:$0xff]  }
 0x425   : > { %17847 = vmatprep.mubr.msk.bf16.mxu1 %vm1305_vm3, %v21273_v38  ;;  %v21276_v38 = vld [vmem:[%s21651_s14 + $0x38] sm:$0xff]  }
 0x42a   : > { %18462 = vmatmul.mubr.msk.bf16.gmra.mrb[12].mxu0 %vm1305_vm3, %v22993_v25 }
 0x42b   : > { %18465 = vmatprep.mubr.msk.bf16.mxu0 %vm1305_vm3, %v22996_v16  ;;  %v21277_v16 = vld [vmem:[%s21651_s14 + $0x40] sm:$0xff]  }
 0x42c   : > { %17848 = vmatmul.mubr.msk.bf16.gmra.mrb[8].mxu1 %vm1305_vm3, %v21274_v12  ;;  %v23035_v12 = vld [vmem:[%s21651_s14 + $0x88] sm:$0xff]  }
 0x42d   : > { %17851 = vmatprep.mubr.msk.bf16.mxu1 %vm1305_vm3, %v21275_v24  ;;  %v23038_v24 = vld [vmem:[%s21651_s14 + $0x90] sm:$0xff]  }
 0x432   : > { %18466 = vmatmul.mubr.msk.bf16.gmra.mrb[16].mxu0 %vm1305_vm3, %v23007_v42 }
 0x433   : > { %18469 = vmatprep.mubr.msk.bf16.mxu0 %vm1305_vm3, %v23010_v44  ;;  %v21278_v44 = vld [vmem:[%s21651_s14 + $0x48] sm:$0xff]  }
 0x434   : > { %17852 = vmatmul.mubr.msk.bf16.gmra.mrb[12].mxu1 %vm1305_vm3, %v21276_v38  ;;  %v23052_v38 = vld [vmem:[%s21651_s14 + $0xa0] sm:$0xff]  }
 0x435   : > { %17855 = vmatprep.mubr.msk.bf16.mxu1 %vm1305_vm3, %v21277_v16  ;;  %v23049_v16 = vld [vmem:[%s21651_s14 + $0x98] sm:$0xff]  }
 0x43a   : > { %18470 = vmatmul.mubr.msk.bf16.gmra.mrb[20].mxu0 %vm1305_vm3, %v23021_v3 }
 0x43b   : > { %18473 = vmatprep.mubr.msk.bf16.mxu0 %vm1305_vm3, %v23024_v50 }
 0x43c   : > { %17856 = vmatmul.mubr.msk.bf16.gmra.mrb[16].mxu1 %vm1305_vm3, %v21278_v44  ;;  %v23066_v44 = vld [vmem:[%s21651_s14 + $0xb0] sm:$0xff]  }
 0x43d   : > { %17859 = vmatprep.mubr.msk.bf16.mxu1 %vm1305_vm3, %v22446_v7  ;;  %v23063_v7 = vld [vmem:[%s21651_s14 + $0xa8] sm:$0xff]  }
 0x442   : > { %18474 = vmatmul.mubr.msk.bf16.gmra.mrb[24].mxu0 %vm1305_vm3, %v23035_v12 }
 0x443   : > { %18477 = vmatprep.mubr.msk.bf16.mxu0 %vm1305_vm3, %v23038_v24 }
 0x444   : > { %17860 = vmatmul.mubr.msk.bf16.gmra.mrb[20].mxu1 %vm1305_vm3, %v22459_v9  ;;  %v23077_v9 = vld [vmem:[%s21651_s14 + $0xb8] sm:$0xff]  }
 0x445   : > { %17863 = vmatprep.mubr.msk.bf16.mxu1 %vm1305_vm3, %v22466_v62  ;;  %v23080_v62 = vld [vmem:[%s21651_s14 + $0xc0] sm:$0xff]  }
 0x44a   : > { %18478 = vmatmul.mubr.msk.bf16.gmra.mrb[28].mxu0 %vm1305_vm3, %v23049_v16 }
 0x44b   : > { %18481 = vmatprep.mubr.msk.bf16.mxu0 %vm1305_vm3, %v23052_v38 }
 0x44c   : > { %17864 = vmatmul.mubr.msk.bf16.gmra.mrb[24].mxu1 %vm1305_vm3, %v22479_v0  ;;  %v23091_v0 = vld [vmem:[%s21651_s14 + $0xc8] sm:$0xff]  }
 0x44d   : > { %17867 = vmatprep.mubr.msk.bf16.mxu1 %vm1305_vm3, %v22486_v57  ;;  %v23094_v57 = vld [vmem:[%s21651_s14 + $0xd0] sm:$0xff]  }
 0x452   : > { %18482 = vmatmul.mubr.msk.bf16.gmra.mrb[32].mxu0 %vm1305_vm3, %v23063_v7 }
 0x453   : > { %18485 = vmatprep.mubr.msk.bf16.mxu0 %vm1305_vm3, %v23066_v44 }
 0x454   : > { %17868 = vmatmul.mubr.msk.bf16.gmra.mrb[28].mxu1 %vm1305_vm3, %v22499_v59  ;;  %v23105_v59 = vld [vmem:[%s21651_s14 + $0xd8] sm:$0xff]  }
 0x455   : > { %17871 = vmatprep.mubr.msk.bf16.mxu1 %vm1305_vm3, %v22506_v47  ;;  %v23108_v47 = vld [vmem:[%s21651_s14 + $0xe0] sm:$0xff]  }
 0x45a   : > { %18486 = vmatmul.mubr.msk.bf16.gmra.mrb[36].mxu0 %vm1305_vm3, %v23077_v9 }
 0x45b   : > { %18489 = vmatprep.mubr.msk.bf16.mxu0 %vm1305_vm3, %v23080_v62 }
 0x45c   : > { %17872 = vmatmul.mubr.msk.bf16.gmra.mrb[32].mxu1 %vm1305_vm3, %v22519_v61  ;;  %v23119_v61 = vld [vmem:[%s21651_s14 + $0xe8] sm:$0xff]  }
 0x45d   : > { %17875 = vmatprep.mubr.msk.bf16.mxu1 %vm1305_vm3, %v22526_v15  ;;  %v23122_v15 = vld [vmem:[%s21651_s14 + $0xf0] sm:$0xff]  }
 0x462   : > { %18490 = vmatmul.mubr.msk.bf16.gmra.mrb[40].mxu0 %vm1305_vm3, %v23091_v0 }
 0x463   : > { %18493 = vmatprep.mubr.msk.bf16.mxu0 %vm1305_vm3, %v23094_v57 }
 0x464   : > { %17876 = vmatmul.mubr.msk.bf16.gmra.mrb[36].mxu1 %vm1305_vm3, %v22539_v28  ;;  %v23133_v28 = vld [vmem:[%s21651_s14 + $0xf8] sm:$0xff]  }
 0x465   : > { %17879 = vmatprep.mubr.msk.bf16.mxu1 %vm1305_vm3, %v22546_v26  ;;  %v23136_v26 = vld [vmem:[%s21651_s14 + $0x100] sm:$0xff]  }
 0x46a   : > { %18494 = vmatmul.mubr.msk.bf16.gmra.mrb[44].mxu0 %vm1305_vm3, %v23105_v59 }
 0x46b   : > { %18497 = vmatprep.mubr.msk.bf16.mxu0 %vm1305_vm3, %v23108_v47 }
 0x46c   : > { %17880 = vmatmul.mubr.msk.bf16.gmra.mrb[40].mxu1 %vm1305_vm3, %v22559_v58  ;;  %v23147_v58 = vld [vmem:[%s21651_s14 + $0x108] sm:$0xff]  }
 0x46d   : > { %17883 = vmatprep.mubr.msk.bf16.mxu1 %vm1305_vm3, %v22566_v40  ;;  %v23150_v40 = vld [vmem:[%s21651_s14 + $0x110] sm:$0xff]  }
 0x472   : > { %18498 = vmatmul.mubr.msk.bf16.gmra.mrb[48].mxu0 %vm1305_vm3, %v23119_v61 }
 0x473   : > { %18501 = vmatprep.mubr.msk.bf16.mxu0 %vm1305_vm3, %v23122_v15 }
 0x474   : > { %17884 = vmatmul.mubr.msk.bf16.gmra.mrb[44].mxu1 %vm1305_vm3, %v22579_v36  ;;  %v23161_v36 = vld [vmem:[%s21651_s14 + $0x118] sm:$0xff]  }
 0x475   : > { %17887 = vmatprep.mubr.msk.bf16.mxu1 %vm1305_vm3, %v22586_v54  ;;  %v23164_v54 = vld [vmem:[%s21651_s14 + $0x120] sm:$0xff]  }
 0x47a   : > { %18502 = vmatmul.mubr.msk.bf16.gmra.mrb[52].mxu0 %vm1305_vm3, %v23133_v28 }
 0x47b   : > { %18505 = vmatprep.mubr.msk.bf16.mxu0 %vm1305_vm3, %v23136_v26 }
 0x47c   : > { %17888 = vmatmul.mubr.msk.bf16.gmra.mrb[48].mxu1 %vm1305_vm3, %v22599_v56  ;;  %v23175_v56 = vld [vmem:[%s21651_s14 + $0x128] sm:$0xff]  }
 0x47d   : > { %17891 = vmatprep.mubr.msk.bf16.mxu1 %vm1305_vm3, %v22606_v31  ;;  %v23178_v31 = vld [vmem:[%s21651_s14 + $0x130] sm:$0xff]  }
 0x482   : > { %18506 = vmatmul.mubr.msk.bf16.gmra.mrb[56].mxu0 %vm1305_vm3, %v23147_v58 }
 0x483   : > { %18509 = vmatprep.mubr.msk.bf16.mxu0 %vm1305_vm3, %v23150_v40 }
 0x484   : > { %17892 = vmatmul.mubr.msk.bf16.gmra.mrb[52].mxu1 %vm1305_vm3, %v22619_v52  ;;  %v23189_v52 = vld [vmem:[%s21651_s14 + $0x138] sm:$0xff]  }
 0x485   : > { %17895 = vmatprep.mubr.msk.bf16.mxu1 %vm1305_vm3, %v22626_v53  ;;  %v23192_v53 = vld [vmem:[%s21651_s14 + $0x140] sm:$0xff]  }
 0x48a   : > { %18510 = vmatmul.mubr.msk.bf16.gmra.mrb[60].mxu0 %vm1305_vm3, %v23161_v36 }
 0x48b   : > { %18513 = vmatprep.mubr.msk.bf16.mxu0 %vm1305_vm3, %v23164_v54 }
 0x48c   : > { %17896 = vmatmul.mubr.msk.bf16.gmra.mrb[56].mxu1 %vm1305_vm3, %v22639_v22  ;;  %v23203_v22 = vld [vmem:[%s21651_s14 + $0x148] sm:$0xff]  }
 0x48d   : > { %17899 = vmatprep.mubr.msk.bf16.mxu1 %vm1305_vm3, %v22646_v11  ;;  %v23206_v11 = vld [vmem:[%s21651_s14 + $0x150] sm:$0xff]  }
 0x48e   : > { %25428 = vst [vmem:[#allocation23_spill] sm:$0xff] %v23206_v11 }
 0x492   : > { %18514 = vmatmul.mubr.msk.bf16.gmra.mrb[64].mxu0 %vm1305_vm3, %v23175_v56 }
 0x493   : > { %18517 = vmatprep.mubr.msk.bf16.mxu0 %vm1305_vm3, %v23178_v31 }
 0x494   : > { %17900 = vmatmul.mubr.msk.bf16.gmra.mrb[60].mxu1 %vm1305_vm3, %v22659_v23  ;;  %v23217_v23 = vld [vmem:[%s21651_s14 + $0x158] sm:$0xff]  }
 0x495   : > { %17903 = vmatprep.mubr.msk.bf16.mxu1 %vm1305_vm3, %v22666_v39  ;;  %v23220_v39 = vld [vmem:[%s21651_s14 + $0x160] sm:$0xff]  }
 0x49a   : > { %18518 = vmatmul.mubr.msk.bf16.gmra.mrb[68].mxu0 %vm1305_vm3, %v23189_v52 }
 0x49b   : > { %18521 = vmatprep.mubr.msk.bf16.mxu0 %vm1305_vm3, %v23192_v53 }
 0x49c   : > { %17904 = vmatmul.mubr.msk.bf16.gmra.mrb[64].mxu1 %vm1305_vm3, %v22679_v21  ;;  %v322_v21 = vld [vmem:[#allocation2 + $0x10] sm:$0x3] }
 0x49d   : > { %17907 = vmatprep.mubr.msk.bf16.mxu1 %vm1305_vm3, %v22686_v55  ;;  %v23231_v55 = vand.u32 %v21646_v2, %v322_v21  ;;  %v23249_v2 = vld [vmem:[%s21651_s14 + $0x178] sm:$0xff]  }
 0x49e   : > { %25429 = vst [vmem:[#allocation24_spill] sm:$0xff] %v23249_v2  ;;  %v25443_v21 = vld [vmem:[#allocation17_spill] sm:$0xff] }
 0x49f   : > { %18691 = vmatprep.subr.bf16.mxu0 %v23231_v55 }
 0x4a2   : > { %18522 = vmatmul.mubr.msk.bf16.gmra.mrb[72].mxu0 %vm1305_vm3, %v23203_v22 }
 0x4a3   : > { %18525 = vmatprep.mubr.msk.bf16.mxu0 %vm1305_vm3, %v23206_v11  ;;  %v23235_v11 = vld [vmem:[%s21651_s14 + $0x168] sm:$0xff]  }
 0x4a4   : > { %17908 = vmatmul.mubr.msk.bf16.gmra.mrb[68].mxu1 %vm1305_vm3, %v22699_v29  ;;  %v23238_v29 = vld [vmem:[%s21651_s14 + $0x170] sm:$0xff]  }
 0x4a5   : > { %17911 = vmatprep.mubr.msk.bf16.mxu1 %vm1305_vm3, %v22706_v27  ;;  %v23252_v27 = vld [vmem:[%s21651_s14 + $0x180] sm:$0xff]  }
 0x4a6   : > { %25430 = vst [vmem:[#allocation25_spill] sm:$0xff] %v23252_v27 }
 0x4aa   : > { %18526 = vmatmul.mubr.msk.bf16.gmra.mrb[76].mxu0 %vm1305_vm3, %v23217_v23 }
 0x4ab   : > { %18529 = vmatprep.mubr.msk.bf16.mxu0 %vm1305_vm3, %v23220_v39 }
 0x4ac   : > { %17912 = vmatmul.mubr.msk.bf16.gmra.mrb[72].mxu1 %vm1305_vm3, %v22719_v60  ;;  %v23263_v60 = vld [vmem:[%s21651_s14 + $0x188] sm:$0xff]  }
 0x4ad   : > { %17915 = vmatprep.mubr.msk.bf16.mxu1 %vm1305_vm3, %v22726_v49  ;;  %25431 = vst [vmem:[#allocation26_spill] sm:$0xff] %v23263_v60  ;;  %v23266_v49 = vld [vmem:[%s21651_s14 + $0x190] sm:$0xff]  }
 0x4ae   : > { %25432 = vst [vmem:[#allocation28_spill] sm:$0xff] %v23266_v49 }
 0x4b2   : > { %18530 = vmatmul.mubr.msk.bf16.gmra.mrb[80].mxu0 %vm1305_vm3, %v23235_v11 }
 0x4b3   : > { %18533 = vmatprep.mubr.msk.bf16.mxu0 %vm1305_vm3, %v23238_v29 }
 0x4b4   : > { %17916 = vmatmul.mubr.msk.bf16.gmra.mrb[76].mxu1 %vm1305_vm3, %v22743_v17  ;;  %v23277_v17 = vld [vmem:[%s21651_s14 + $0x198] sm:$0xff]  }
 0x4b5   : > { %17919 = vmatprep.mubr.msk.bf16.mxu1 %vm1305_vm3, %v22750_v35  ;;  %25433 = vst [vmem:[#allocation27_spill] sm:$0xff] %v23277_v17  ;;  %v23280_v35 = vld [vmem:[%s21651_s14 + $0x1a0] sm:$0xff]  }
 0x4b6   : > { %25434 = vst [vmem:[#allocation14_spill] sm:$0xff] %v23280_v35 }
 0x4ba   : > { %18534 = vmatmul.mubr.msk.bf16.gmra.mrb[84].mxu0 %vm1305_vm3, %v23249_v2 }
 0x4bb   : > { %18537 = vmatprep.mubr.msk.bf16.mxu0 %vm1305_vm3, %v23252_v27 }
 0x4bc   : > { %17920 = vmatmul.mubr.msk.bf16.gmra.mrb[80].mxu1 %vm1305_vm3, %v22763_v32  ;;  %v23291_v32 = vld [vmem:[%s21651_s14 + $0x1a8] sm:$0xff]  }
 0x4bd   : > { %17923 = vmatprep.mubr.msk.bf16.mxu1 %vm1305_vm3, %v22770_v45  ;;  %25435 = vst [vmem:[#allocation15_spill] sm:$0xff] %v23291_v32  ;;  %v23294_v45 = vld [vmem:[%s21651_s14 + $0x1b0] sm:$0xff]  }
 0x4be   : > { %25436 = vst [vmem:[#allocation16_spill] sm:$0xff] %v23294_v45 }
 0x4c2   : > { %18538 = vmatmul.mubr.msk.bf16.gmra.mrb[88].mxu0 %vm1305_vm3, %v23263_v60 }
 0x4c3   : > { %18541 = vmatprep.mubr.msk.bf16.mxu0 %vm1305_vm3, %v23266_v49 }
 0x4c4   : > { %17924 = vmatmul.mubr.msk.bf16.gmra.mrb[84].mxu1 %vm1305_vm3, %v22783_v14  ;;  %v23305_v14 = vld [vmem:[%s21651_s14 + $0x1b8] sm:$0xff]  }
 0x4c5   : > { %17927 = vmatprep.mubr.msk.bf16.mxu1 %vm1305_vm3, %v22790_v43  ;;  %25437 = vst [vmem:[#allocation12_spill] sm:$0xff] %v23305_v14  ;;  %v23308_v43 = vld [vmem:[%s21651_s14 + $0x1c0] sm:$0xff]  }
 0x4c6   : > { %25438 = vst [vmem:[#allocation29_spill] sm:$0xff] %v23308_v43 }
 0x4ca   : > { %18542 = vmatmul.mubr.msk.bf16.gmra.mrb[92].mxu0 %vm1305_vm3, %v23277_v17 }
 0x4cb   : > { %18545 = vmatprep.mubr.msk.bf16.mxu0 %vm1305_vm3, %v23280_v35  ;;  %v8247_v35 = vshll.u32 %v22937_v30, 16 }
 0x4cc   : > { %17928 = vmatmul.mubr.msk.bf16.gmra.mrb[88].mxu1 %vm1305_vm3, %v22803_v1  ;;  %v23319_v1 = vld [vmem:[%s21651_s14 + $0x1c8] sm:$0xff]  }
 0x4cd   : > { %17931 = vmatprep.mubr.msk.bf16.mxu1 %vm1305_vm3, %v22810_v46  ;;  %25439 = vst [vmem:[#allocation30_spill] sm:$0xff] %v23319_v1  ;;  %v23322_v46 = vld [vmem:[%s21651_s14 + $0x1d0] sm:$0xff]   ;;  %v8249_v49 = vrot.slane %v8247_v35, 1 }
 0x4ce   : > { %25440 = vst [vmem:[#allocation31_spill] sm:$0xff] %v23322_v46 }
 0x4d2   : > { %18546 = vmatmul.mubr.msk.bf16.gmra.mrb[96].mxu0 %vm1305_vm3, %v23291_v32 }
 0x4d3   : > { %18549 = vmatprep.mubr.msk.bf16.mxu0 %vm1305_vm3, %v23294_v45  ;;  %v8241_v45 = vshrl.u32 %v22922_v20, 16 }
 0x4d4   : > { %17932 = vmatmul.mubr.msk.bf16.gmra.mrb[92].mxu1 %vm1305_vm3, %v22823_v10  ;;  %v23333_v10 = vld [vmem:[%s21651_s14 + $0x1d8] sm:$0xff]  }
 0x4d5   : > { %17935 = vmatprep.mubr.msk.bf16.mxu1 %vm1305_vm3, %v22830_v13  ;;  %25441 = vst [vmem:[#allocation32_spill] sm:$0xff] %v23333_v10  ;;  %v23336_v13 = vld [vmem:[%s21651_s14 + $0x1e0] sm:$0xff]  }
 0x4d6   : > { %25442 = vst [vmem:[#allocation33_spill] sm:$0xff] %v23336_v13 }
 0x4da   : > { %18550 = vmatmul.mubr.msk.bf16.gmra.mrb[100].mxu0 %vm1305_vm3, %v23305_v14  ;;  %v25446_v14 = vld [vmem:[#allocation18_spill] sm:$0xff] }
 0x4db   : > { %18553 = vmatprep.mubr.msk.bf16.mxu0 %vm1305_vm3, %v23308_v43  ;;  %v23351_v43 = vld [vmem:[%s21651_s14 + $0x1f0] sm:$0xff]  }
 0x4dc   : > { %17936 = vmatmul.mubr.msk.bf16.gmra.mrb[96].mxu1 %vm1305_vm3, %v22840_v41  ;;  %25445 = vst [vmem:[#allocation34_spill] sm:$0xff] %v23351_v43 }
 0x4dd   : > { %17939 = vmatprep.mubr.msk.bf16.mxu1 %vm1305_vm3, %v22847_v8 }
 0x4e2   : > { %18554 = vmatmul.mubr.msk.bf16.gmra.mrb[104].mxu0 %vm1305_vm3, %v23319_v1  ;;  %v23348_v1 = vld [vmem:[%s21651_s14 + $0x1e8] sm:$0xff]  }
 0x4e3   : > { %18557 = vmatprep.mubr.msk.bf16.mxu0 %vm1305_vm3, %v23322_v46  ;;  %v8243_v46 = vshll.u32 %v22922_v20, 16  ;;  %25444 = vst [vmem:[#allocation17_spill] sm:$0xff] %v23348_v1  ;;  %v8254_v20 = vshll.u32 %v22946_v5, 16 }
 0x4e4   : > { %17940 = vmatmul.mubr.msk.bf16.gmra.mrb[100].mxu1 %vm1305_vm3, %v25443_v21 }
 0x4e5   : > { %17943 = vmatprep.mubr.msk.bf16.mxu1 %vm1305_vm3, %v22867_v37  ;;  %v8245_v32 = vrot.slane %v8243_v46, 1  ;;  %v8251_v46 = vshrl.u32 %v22937_v30, 16  ;;  %v8256_v35 = vrot.slane %v8254_v20, 1  ;;  %v8275_v20 = vshll.u32 %v22978_v34, 16 }
 0x4e7   : > { %v8246_v17 = vor.u32 %v8245_v32, %v8241_v45  ;;  %v8253_v32 = vor.u32 %v8251_v46, %v8249_v49  ;;  %v8277_v46 = vrot.slane %v8275_v20, 1 }
 0x4e9   : > { %v8250_v27 = vsel %vm825_vm4, %v8246_v17, %v8249_v49  ;;  %v8257_v17 = vsel %vm825_vm4, %v8253_v32, %v8256_v35  ;;  %v523_v49 = vld [vmem:[%s21651_s14 + $0x1dc] sm:$0x7]  ;;  %v8279_v32 = vshrl.u32 %v22978_v34, 16 }
 0x4ea   : > { %18558 = vmatmul.mubr.msk.bf16.gmra.mrb[108].mxu0 %vm1305_vm3, %v23333_v10  ;;  %v7120_v10 = vld [vmem:[%s21651_s14 + $0x1fc] sm:$0x7] }
 0x4eb   : > { %18561 = vmatprep.mubr.msk.bf16.mxu0 %vm1305_vm3, %v23336_v13  ;;  %v23364_v13 = vld [vmem:[%s21651_s14 + $0x1f8] sm:$0xf] }
 0x4ec   : > { %17944 = vmatmul.mubr.msk.bf16.gmra.mrb[104].mxu1 %vm1305_vm3, %v25446_v14  ;;  %25447 = vst [vmem:[#allocation18_spill] sm:$0xff] %v23364_v13  ;;  %v16362_v60 = vcombine.low %v23364_v13, %v7120_v10  ;;  %v8268_v10 = vshll.u32 %v22966_v19, 16  ;;  %v25448_v13 = vld [vmem:[#allocation19_spill] sm:$0xff] }
 0x4ed   : > { %17947 = vmatprep.mubr.msk.bf16.mxu1 %vm1305_vm3, %v22887_v48 }
 0x4f2   : > { %18562 = vmatmul.mubr.msk.bf16.gmra.mrb[112].mxu0 %vm1305_vm3, %v23348_v1  ;;  %v8258_v1 = vshrl.u32 %v22946_v5, 16  ;;  %v8265_v5 = vshrl.u32 %v22962_v6, 16 }
 0x4f3   : > { %18565 = vmatprep.mubr.msk.bf16.mxu0 %vm1305_vm3, %v23351_v43  ;;  %v8261_v43 = vshll.u32 %v22962_v6, 16  ;;  %v15939_v6 = vcombine.low %v22942_v63, %v523_v49  ;;  %v2748_v63 = vrot.slane %v22840_v41, 1  ;;  %v25451_v49 = vld [vmem:[#allocation21_spill] sm:$0xff]  ;;  %v8293_v41 = vshrl.u32 %v22993_v25, 16 }
 0x4f4   : > { %17948 = vmatmul.mubr.msk.bf16.gmra.mrb[108].mxu1 %vm1305_vm3, %v22900_v4  ;;  %v8260_v30 = vor.u32 %v8258_v1, %v8256_v35 }
 0x4f5   : > { %17951 = vmatprep.mubr.msk.bf16.mxu1 %vm1305_vm3, %v22907_v18  ;;  %v8263_v45 = vrot.slane %v8261_v43, 1 }
 0x4f7   : > { %v8264_v2 = vsel %vm825_vm4, %v8260_v30, %v8263_v45  ;;  %v8267_v43 = vor.u32 %v8265_v5, %v8263_v45  ;;  %v2750_v45 = vrot.slane %v22847_v8, 1 }
 0x4fa   : > { %18566 = vmatmul.mubr.msk.bf16.gmra.mrb[116].mxu0 %vm1305_vm3, %v16362_v60  ;;  %v8272_v60 = vshrl.u32 %v22966_v19, 16  ;;  %v8282_v19 = vshll.u32 %v22981_v33, 16 }
 0x4fb   : > { %18571 = vmatprep.mubr.msk.bf16.mxu0 %vm1305_vm3, %v8250_v27  ;;  %v8270_v27 = vrot.slane %v8268_v10, 1  ;;  %v8286_v10 = vshrl.u32 %v22981_v33, 16  ;;  %v2751_v33 = vsel %vm2650_vm2, %v2748_v63, %v2750_v45 }
 0x4fc   : > { %17952 = vmatmul.mubr.msk.bf16.gmra.mrb[112].mxu1 %vm1305_vm3, %v25448_v13 }
 0x4fd   : > { %17955 = vmatprep.mubr.msk.bf16.mxu1 %vm1305_vm3, %v22927_v51  ;;  %v8274_v1 = vor.u32 %v8272_v60, %v8270_v27  ;;  %v8271_v35 = vsel %vm825_vm4, %v8267_v43, %v8270_v27  ;;  %v25449_v60 = vld [vmem:[#allocation13_spill] sm:$0xff]  ;;  %v8296_v43 = vshll.u32 %v25451_v49, 16 }
 0x4fe   : > { %v25450_v20 = vrot.slane %v25449_v60, 1  ;;  %v8307_v60 = vshrl.u32 %v23007_v42, 16 }
 0x4ff   : > { %v8278_v30 = vsel %vm825_vm4, %v8274_v1, %v8277_v46  ;;  %v8300_v1 = vshrl.u32 %v25451_v49, 16  ;;  %v23435_v49 = vpop.f32.mrb[0].mxu1 }
 0x500   : > { %v2749_v27 = vsel %vm2650_vm2, %v25450_v20, %v2748_v63  ;;  %v25452_v63 = vld [vmem:[#allocation22_spill] sm:$0xff]  ;;  %v2756_v20 = vrot.slane %v25446_v14, 1  ;;  %v8321_v14 = vshrl.u32 %v23021_v3, 16 }
 0x502   : > { %18572 = vmatmul.mubr.msk.bf16.vlgmr.msra.gmra.mrb[0].mxu0 %vm1305_vm3, %v8257_v17  ;;  %v8281_v17 = vor.u32 %v8279_v32, %v8277_v46  ;;  %v8303_v46 = vshll.u32 %v23007_v42, 16  ;;  %v2754_v32 = vrot.slane %v22867_v37, 1 }
 0x503   : > { %18575 = vmatprep.mubr.msk.bf16.mxu0 %vm1305_vm3, %v8264_v2  ;;  %18692 = vmatpush3.bf16.msra.mxu0 %v23231_v55  ;;  %v8289_v2 = vshll.u32 %v22993_v25, 16  ;;  %v8284_v55 = vrot.slane %v8282_v19, 1  ;;  %v8298_v19 = vrot.slane %v8296_v43, 1 }
 0x504   : > { %17956 = vmatmul.mubr.msk.bf16.gmra.mrb[116].mxu1 %vm1305_vm3, %v15939_v6  ;;  %v8305_v25 = vrot.slane %v8303_v46, 1  ;;  %v8328_v46 = vshrl.u32 %v23024_v50, 16 }
 0x505   : > { %v8288_v5 = vor.u32 %v8286_v10, %v8284_v55  ;;  %v8291_v34 = vrot.slane %v8289_v2, 1  ;;  %18057 = vmatprep.mubr.msk.bf16.mxu1 %vm1305_vm3, %v2749_v27  ;;  %v8285_v6 = vsel %vm825_vm4, %v8281_v17, %v8284_v55  ;;  %v8302_v10 = vor.u32 %v8300_v1, %v8298_v19 }
 0x506   : > { %v8310_v17 = vshll.u32 %v25452_v63, 16  ;;  %v2758_v27 = vrot.slane %v22887_v48, 1 }
 0x507   : > { %v8292_v8 = vsel %vm825_vm4, %v8288_v5, %v8291_v34  ;;  %v8306_v37 = vsel %vm825_vm4, %v8302_v10, %v8305_v25  ;;  %v2762_v10 = vrot.slane %v22907_v18, 1 }
 0x50a   : > { %18576 = vmatmul.mubr.msk.bf16.gmra.mrb[4].mxu0 %vm1305_vm3, %v8271_v35  ;;  %v2752_v35 = vrot.slane %v25443_v21, 1  ;;  %v8314_v21 = vshrl.u32 %v25452_v63, 16 }
 0x50b   : > { %18579 = vmatprep.mubr.msk.bf16.mxu0 %vm1305_vm3, %v8278_v30  ;;  %v8295_v30 = vor.u32 %v8293_v41, %v8291_v34  ;;  %v8317_v34 = vshll.u32 %v23021_v3, 16  ;;  %v2759_v41 = vsel %vm2650_vm2, %v2756_v20, %v2758_v27 }
 0x50c   : > { %18058 = vmatmul.mubr.msk.bf16.vlgmr.msra.gmra.mrb[96].mxu1 %vm1305_vm3, %v2751_v33  ;;  %v2753_v2 = vsel %vm2650_vm2, %v2750_v45, %v2752_v35  ;;  %v2755_v55 = vsel %vm2650_vm2, %v2752_v35, %v2754_v32  ;;  %v8312_v45 = vrot.slane %v8310_v17, 1  ;;  %v8309_v33 = vor.u32 %v8307_v60, %v8305_v25 }
 0x50d   : > { %18061 = vmatprep.mubr.msk.bf16.mxu1 %vm1305_vm3, %v2753_v2  ;;  %v8299_v5 = vsel %vm825_vm4, %v8295_v30, %v8298_v19  ;;  %v8319_v43 = vrot.slane %v8317_v34, 1  ;;  %v8331_v19 = vshll.u32 %v23035_v12, 16  ;;  %v2760_v30 = vrot.slane %v22900_v4, 1 }
 0x50e   : > { %v8316_v42 = vor.u32 %v8314_v21, %v8312_v45  ;;  %v8313_v1 = vsel %vm825_vm4, %v8309_v33, %v8312_v45  ;;  %v8338_v4 = vshll.u32 %v23038_v24, 16  ;;  %v8335_v60 = vshrl.u32 %v23035_v12, 16 }
 0x50f   : > { %v8323_v3 = vor.u32 %v8321_v14, %v8319_v43  ;;  %v2763_v17 = vsel %vm2650_vm2, %v2760_v30, %v2762_v10  ;;  %v8342_v21 = vshrl.u32 %v23038_v24, 16  ;;  %v8345_v34 = vshll.u32 %v23049_v16, 16 }
 0x510   : > { %v8320_v48 = vsel %vm825_vm4, %v8316_v42, %v8319_v43  ;;  %v8340_v45 = vrot.slane %v8338_v4, 1  ;;  %v2766_v33 = vrot.slane %v22927_v51, 1  ;;  %v8349_v14 = vshrl.u32 %v23049_v16, 16 }
 0x512   : > { %18580 = vmatmul.mubr.msk.bf16.gmra.mrb[8].mxu0 %vm1305_vm3, %v8285_v6  ;;  %v2757_v6 = vsel %vm2650_vm2, %v2754_v32, %v2756_v20  ;;  %v23448_v32 = vpop.f32.mrb[1].mxu1  ;;  %v8344_v43 = vor.u32 %v8342_v21, %v8340_v45 }
 0x513   : > { %18583 = vmatprep.mubr.msk.bf16.mxu0 %vm1305_vm3, %v8292_v8  ;;  %v8324_v8 = vshll.u32 %v23024_v50, 16  ;;  %v23453_v25 = vpop.f32.mrb[2].mxu1  ;;  %v2761_v50 = vsel %vm2650_vm2, %v2758_v27, %v2760_v30  ;;  %v2764_v27 = vrot.slane %v25448_v13, 1  ;;  %v8352_v13 = vshll.u32 %v23052_v38, 16 }
 0x514   : > { %18062 = vmatmul.mubr.msk.bf16.gmra.mrb[100].mxu1 %vm1305_vm3, %v2755_v55  ;;  %v8333_v55 = vrot.slane %v8331_v19, 1  ;;  %v23455_v63 = vpop.f32.mrb[3].mxu1  ;;  %v8359_v19 = vshll.u32 %v23063_v7, 16 }
 0x515   : > { %18065 = vmatprep.mubr.msk.bf16.mxu1 %vm1305_vm3, %v2757_v6  ;;  %v8326_v35 = vrot.slane %v8324_v8, 1  ;;  %v8347_v6 = vrot.slane %v8345_v34, 1  ;;  %v2765_v24 = vsel %vm2650_vm2, %v2762_v10, %v2764_v27  ;;  %v2767_v8 = vsel %vm2650_vm2, %v2764_v27, %v2766_v33  ;;  %v25453_v10 = vld [vmem:[#allocation20_spill] sm:$0xff] }
 0x516   : > { %v8337_v12 = vor.u32 %v8335_v60, %v8333_v55  ;;  %v8370_v34 = vshrl.u32 %v23066_v44, 16 }
 0x517   : > { %v8330_v2 = vor.u32 %v8328_v46, %v8326_v35  ;;  %v8327_v18 = vsel %vm825_vm4, %v8323_v3, %v8326_v35  ;;  %v8356_v46 = vshrl.u32 %v23052_v38, 16  ;;  %v8354_v35 = vrot.slane %v8352_v13, 1 }
 0x518   : > { %v8341_v51 = vsel %vm825_vm4, %v8337_v12, %v8340_v45  ;;  %v2768_v3 = vrot.slane %v25453_v10, 1  ;;  %v8373_v45 = vshll.u32 %v23077_v9, 16 }
 0x519   : > { %v8358_v16 = vor.u32 %v8356_v46, %v8354_v35  ;;  %v8387_v46 = vshll.u32 %v23091_v0, 16 }
 0x51a   : > { %18584 = vmatmul.mubr.msk.bf16.gmra.mrb[12].mxu0 %vm1305_vm3, %v8299_v5  ;;  %v23460_v5 = vpop.f32.mrb[4].mxu1  ;;  %v2769_v38 = vsel %vm2650_vm2, %v2766_v33, %v2768_v3 }
 0x51b   : > { %18587 = vmatprep.mubr.msk.bf16.mxu0 %vm1305_vm3, %v8306_v37  ;;  %v8334_v37 = vsel %vm825_vm4, %v8330_v2, %v8333_v55  ;;  %v23470_v20 = vpop.f32.mrb[5].mxu1  ;;  %v8351_v2 = vor.u32 %v8349_v14, %v8347_v6 }
 0x51c   : > { %18066 = vmatmul.mubr.msk.bf16.gmra.mrb[104].mxu1 %vm1305_vm3, %v2759_v41  ;;  %v23475_v42 = vpop.f32.mrb[6].mxu1 }
 0x51d   : > { %18069 = vmatprep.mubr.msk.bf16.mxu1 %vm1305_vm3, %v2761_v50  ;;  %v23477_v41 = vpop.f32.mrb[7].mxu1  ;;  %v8361_v50 = vrot.slane %v8359_v19, 1  ;;  %v8355_v60 = vsel %vm825_vm4, %v8351_v2, %v8354_v35 }
 0x51f   : > { %v8362_v21 = vsel %vm825_vm4, %v8358_v16, %v8361_v50  ;;  %v8389_v16 = vrot.slane %v8387_v46, 1  ;;  %v8415_v46 = vshll.u32 %v23119_v61, 16 }
 0x522   : > { %18588 = vmatmul.mubr.msk.bf16.gmra.mrb[16].mxu0 %vm1305_vm3, %v8313_v1  ;;  %v23482_v1 = vpop.f32.mrb[8].mxu1 }
 0x523   : > { %18591 = vmatprep.mubr.msk.bf16.mxu0 %vm1305_vm3, %v8320_v48  ;;  %v8348_v48 = vsel %vm825_vm4, %v8344_v43, %v8347_v6  ;;  %v23492_v30 = vpop.f32.mrb[9].mxu1 }
 0x524   : > { %18070 = vmatmul.mubr.msk.bf16.gmra.mrb[108].mxu1 %vm1305_vm3, %v2763_v17  ;;  %v23496_v55 = vpop.f32.mrb[10].mxu1 }
 0x525   : > { %18073 = vmatprep.mubr.msk.bf16.mxu1 %vm1305_vm3, %v2765_v24  ;;  %v23498_v17 = vpop.f32.mrb[11].mxu1 }
 0x526   : > { %v23502_v4 = vpop.f32.mrb[12].mxu1 }
 0x527   : > { %v23512_v33 = vpop.f32.mrb[13].mxu1 }
 0x528   : > { %v23515_v43 = vpop.f32.mrb[14].mxu1 }
 0x529   : > { %v23517_v24 = vpop.f32.mrb[15].mxu1 }
 0x52a   : > { %18592 = vmatmul.mubr.msk.bf16.gmra.mrb[20].mxu0 %vm1305_vm3, %v8327_v18  ;;  %v8366_v18 = vshll.u32 %v23066_v44, 16  ;;  %v8380_v44 = vshll.u32 %v23080_v62, 16 }
 0x52b   : > { %18595 = vmatprep.mubr.msk.bf16.mxu0 %vm1305_vm3, %v8334_v37  ;;  %v8363_v37 = vshrl.u32 %v23063_v7, 16  ;;  %v8375_v7 = vrot.slane %v8373_v45, 1 }
 0x52c   : > { %18074 = vmatmul.mubr.msk.bf16.gmra.mrb[112].mxu1 %vm1305_vm3, %v2767_v8  ;;  %v8368_v27 = vrot.slane %v8366_v18, 1  ;;  %v23519_v8 = vpop.f32.mrb[16].mxu1  ;;  %v8382_v19 = vrot.slane %v8380_v44, 1  ;;  %v8391_v18 = vshrl.u32 %v23091_v0, 16 }
 0x52d   : > { %18077 = vmatprep.mubr.msk.bf16.mxu1 %vm1305_vm3, %v2769_v38  ;;  %v8365_v12 = vor.u32 %v8363_v37, %v8361_v50  ;;  %v23528_v35 = vpop.f32.mrb[17].mxu1  ;;  %v8398_v37 = vshrl.u32 %v23094_v57, 16 }
 0x52e   : > { %v8372_v6 = vor.u32 %v8370_v34, %v8368_v27 }
 0x52f   : > { %v8369_v13 = vsel %vm825_vm4, %v8365_v12, %v8368_v27  ;;  %v8393_v27 = vor.u32 %v8391_v18, %v8389_v16 }
 0x530   : > { %v8376_v14 = vsel %vm825_vm4, %v8372_v6, %v8375_v7 }
 0x532   : > { %18596 = vmatmul.mubr.msk.bf16.gmra.mrb[24].mxu0 %vm1305_vm3, %v8341_v51  ;;  %v8377_v51 = vshrl.u32 %v23077_v9, 16 }
 0x533   : > { %18599 = vmatprep.mubr.msk.bf16.mxu0 %vm1305_vm3, %v8348_v48  ;;  %v8384_v48 = vshrl.u32 %v23080_v62, 16  ;;  %v8394_v62 = vshll.u32 %v23094_v57, 16  ;;  %v8408_v57 = vshll.u32 %v23108_v47, 16 }
 0x534   : > { %18078 = vmatmul.mubr.msk.bf16.gmra.mrb[116].mxu1 %vm1305_vm3, %v2768_v3  ;;  %v8379_v10 = vor.u32 %v8377_v51, %v8375_v7  ;;  %v23531_v3 = vpop.f32.mrb[18].mxu1  ;;  %v8405_v51 = vshrl.u32 %v23105_v59, 16 }
 0x535   : > { %v8386_v2 = vor.u32 %v8384_v48, %v8382_v19  ;;  %v23533_v50 = vpop.f32.mrb[19].mxu1  ;;  %v8396_v34 = vrot.slane %v8394_v62, 1  ;;  %v8412_v48 = vshrl.u32 %v23108_v47, 16  ;;  %v8422_v47 = vshll.u32 %v23122_v15, 16 }
 0x536   : > { %v23535_v9 = vpop.f32.mrb[20].mxu1  ;;  %v8383_v38 = vsel %vm825_vm4, %v8379_v10, %v8382_v19  ;;  %v8410_v19 = vrot.slane %v8408_v57, 1 }
 0x537   : > { %v23544_v45 = vpop.f32.mrb[21].mxu1  ;;  %v8400_v6 = vor.u32 %v8398_v37, %v8396_v34  ;;  %v8419_v37 = vshrl.u32 %v23119_v61, 16 }
 0x538   : > { %v23547_v12 = vpop.f32.mrb[22].mxu1  ;;  %v8414_v62 = vor.u32 %v8412_v48, %v8410_v19 }
 0x539   : > { %v23549_v44 = vpop.f32.mrb[23].mxu1 }
 0x53a   : > { %18600 = vmatmul.mubr.msk.bf16.gmra.mrb[28].mxu0 %vm1305_vm3, %v8355_v60  ;;  %v8390_v60 = vsel %vm825_vm4, %v8386_v2, %v8389_v16  ;;  %v23551_v0 = vpop.f32.mrb[24].mxu1 }
 0x53b   : > { %18603 = vmatprep.mubr.msk.bf16.mxu0 %vm1305_vm3, %v8362_v21  ;;  %v8401_v21 = vshll.u32 %v23105_v59, 16  ;;  %v23560_v10 = vpop.f32.mrb[25].mxu1 }
 0x53c   : > { %v23563_v16 = vpop.f32.mrb[26].mxu1 }
 0x53d   : > { %v8403_v7 = vrot.slane %v8401_v21, 1  ;;  %v23565_v18 = vpop.f32.mrb[27].mxu1 }
 0x53e   : > { %v23567_v59 = vpop.f32.mrb[28].mxu1 }
 0x53f   : > { %v8407_v2 = vor.u32 %v8405_v51, %v8403_v7 }
 0x542   : > { %18604 = vmatmul.mubr.msk.bf16.gmra.mrb[32].mxu0 %vm1305_vm3, %v8369_v13  ;;  %v8397_v13 = vsel %vm825_vm4, %v8393_v27, %v8396_v34  ;;  %v8426_v34 = vshrl.u32 %v23122_v15, 16  ;;  %v8429_v27 = vshll.u32 %v23133_v28, 16  ;;  %v8436_v15 = vshll.u32 %v23136_v26, 16 }
 0x543   : > { %18607 = vmatprep.mubr.msk.bf16.mxu0 %vm1305_vm3, %v8376_v14  ;;  %v8404_v14 = vsel %vm825_vm4, %v8400_v6, %v8403_v7  ;;  %v8424_v6 = vrot.slane %v8422_v47, 1  ;;  %v23576_v7 = vpop.f32.mrb[29].mxu1 }
 0x544   : > { %v8438_v47 = vrot.slane %v8436_v15, 1 }
 0x545   : > { %v8428_v51 = vor.u32 %v8426_v34, %v8424_v6 }
 0x54a   : > { %18608 = vmatmul.mubr.msk.bf16.gmra.mrb[36].mxu0 %vm1305_vm3, %v8383_v38  ;;  %v8417_v38 = vrot.slane %v8415_v46, 1 }
 0x54b   : > { %18611 = vmatprep.mubr.msk.bf16.mxu0 %vm1305_vm3, %v8390_v60  ;;  %v8411_v60 = vsel %vm825_vm4, %v8407_v2, %v8410_v19  ;;  %v8433_v19 = vshrl.u32 %v23133_v28, 16 }
 0x54c   : > { %v8418_v21 = vsel %vm825_vm4, %v8414_v62, %v8417_v38  ;;  %v8421_v57 = vor.u32 %v8419_v37, %v8417_v38  ;;  %v8440_v62 = vshrl.u32 %v23136_v26, 16  ;;  %v8443_v38 = vshll.u32 %v23147_v58, 16 }
 0x54d   : > { %v8450_v26 = vshll.u32 %v23150_v40, 16 }
 0x54e   : > { %v8425_v46 = vsel %vm825_vm4, %v8421_v57, %v8424_v6  ;;  %v8442_v34 = vor.u32 %v8440_v62, %v8438_v47 }
 0x552   : > { %18612 = vmatmul.mubr.msk.bf16.gmra.mrb[40].mxu0 %vm1305_vm3, %v8397_v13  ;;  %v23579_v13 = vpop.f32.mrb[30].mxu1 }
 0x553   : > { %18615 = vmatprep.mubr.msk.bf16.mxu0 %vm1305_vm3, %v8404_v14  ;;  %v8431_v14 = vrot.slane %v8429_v27, 1  ;;  %v23581_v48 = vpop.f32.mrb[31].mxu1  ;;  %v8445_v27 = vrot.slane %v8443_v38, 1 }
 0x554   : > { %v23583_v61 = vpop.f32.mrb[32].mxu1 }
 0x555   : > { %v8432_v2 = vsel %vm825_vm4, %v8428_v51, %v8431_v14  ;;  %v8435_v37 = vor.u32 %v8433_v19, %v8431_v14  ;;  %v8447_v51 = vshrl.u32 %v23147_v58, 16  ;;  %v8446_v15 = vsel %vm825_vm4, %v8442_v34, %v8445_v27 }
 0x556   : > { %v8457_v14 = vshll.u32 %v23161_v36, 16  ;;  %v8452_v19 = vrot.slane %v8450_v26, 1 }
 0x557   : > { %v8439_v57 = vsel %vm825_vm4, %v8435_v37, %v8438_v47  ;;  %v8449_v62 = vor.u32 %v8447_v51, %v8445_v27  ;;  %v8471_v27 = vshll.u32 %v23175_v56, 16 }
 0x558   : > { %v8459_v47 = vrot.slane %v8457_v14, 1 }
 0x559   : > { %v8453_v34 = vsel %vm825_vm4, %v8449_v62, %v8452_v19 }
 0x55a   : > { %18616 = vmatmul.mubr.msk.bf16.gmra.mrb[44].mxu0 %vm1305_vm3, %v8411_v60  ;;  %v23592_v60 = vpop.f32.mrb[33].mxu1 }
 0x55b   : > { %18619 = vmatprep.mubr.msk.bf16.mxu0 %vm1305_vm3, %v8418_v21  ;;  %v23595_v21 = vpop.f32.mrb[34].mxu1 }
 0x55c   : > { %v23597_v6 = vpop.f32.mrb[35].mxu1 }
 0x55d   : > { %v23599_v28 = vpop.f32.mrb[36].mxu1 }
 0x55e   : > { %25454 = vst [vmem:[#allocation19_spill] sm:$0xff] %v23599_v28 }
 0x562   : > { %18620 = vmatmul.mubr.msk.bf16.gmra.mrb[48].mxu0 %vm1305_vm3, %v8425_v46  ;;  %v8454_v46 = vshrl.u32 %v23150_v40, 16  ;;  %v8464_v40 = vshll.u32 %v23164_v54, 16 }
 0x563   : > { %18623 = vmatprep.mubr.msk.bf16.mxu0 %vm1305_vm3, %v8432_v2  ;;  %v23608_v2 = vpop.f32.mrb[37].mxu1 }
 0x564   : > { %25455 = vst [vmem:[#allocation13_spill] sm:$0xff] %v23608_v2  ;;  %v23611_v38 = vpop.f32.mrb[38].mxu1  ;;  %v8456_v28 = vor.u32 %v8454_v46, %v8452_v19  ;;  %v8468_v2 = vshrl.u32 %v23164_v54, 16  ;;  %v8466_v51 = vrot.slane %v8464_v40, 1  ;;  %v8473_v19 = vrot.slane %v8471_v27, 1 }
 0x565   : > { %v23613_v37 = vpop.f32.mrb[39].mxu1  ;;  %v8478_v54 = vshll.u32 %v23178_v31, 16 }
 0x566   : > { %v23615_v58 = vpop.f32.mrb[40].mxu1  ;;  %v8460_v26 = vsel %vm825_vm4, %v8456_v28, %v8459_v47 }
 0x567   : > { %25456 = vst [vmem:[#allocation21_spill] sm:$0xff] %v23615_v58  ;;  %v8470_v58 = vor.u32 %v8468_v2, %v8466_v51  ;;  %v8480_v2 = vrot.slane %v8478_v54, 1 }
 0x569   : > { %v8474_v40 = vsel %vm825_vm4, %v8470_v58, %v8473_v19 }
 0x56a   : > { %18624 = vmatmul.mubr.msk.bf16.gmra.mrb[52].mxu0 %vm1305_vm3, %v8439_v57  ;;  %v8461_v57 = vshrl.u32 %v23161_v36, 16 }
 0x56b   : > { %18627 = vmatprep.mubr.msk.bf16.mxu0 %vm1305_vm3, %v8446_v15  ;;  %v23624_v15 = vpop.f32.mrb[41].mxu1 }
 0x56c   : > { %25457 = vst [vmem:[#allocation22_spill] sm:$0xff] %v23624_v15  ;;  %v8463_v46 = vor.u32 %v8461_v57, %v8459_v47  ;;  %v23627_v14 = vpop.f32.mrb[42].mxu1  ;;  %v8482_v15 = vshrl.u32 %v23178_v31, 16  ;;  %v8485_v47 = vshll.u32 %v23189_v52, 16  ;;  %v8492_v31 = vshll.u32 %v23192_v53, 16 }
 0x56d   : > { %v23629_v62 = vpop.f32.mrb[43].mxu1 }
 0x56e   : > { %v23631_v36 = vpop.f32.mrb[44].mxu1  ;;  %v8467_v28 = vsel %vm825_vm4, %v8463_v46, %v8466_v51  ;;  %v8487_v51 = vrot.slane %v8485_v47, 1 }
 0x56f   : > { %25458 = vst [vmem:[#allocation20_spill] sm:$0xff] %v23631_v36  ;;  %v23640_v57 = vpop.f32.mrb[45].mxu1  ;;  %v8484_v36 = vor.u32 %v8482_v15, %v8480_v2  ;;  %v8494_v15 = vrot.slane %v8492_v31, 1 }
 0x570   : > { %25459 = vst [vmem:[#allocation35_spill] sm:$0xff] %v23640_v57  ;;  %v23643_v27 = vpop.f32.mrb[46].mxu1  ;;  %v8496_v57 = vshrl.u32 %v23192_v53, 16 }
 0x571   : > { %v23645_v46 = vpop.f32.mrb[47].mxu1  ;;  %v8488_v54 = vsel %vm825_vm4, %v8484_v36, %v8487_v51  ;;  %v25465_v36 = vld [vmem:[#allocation23_spill] sm:$0xff] }
 0x572   : > { %18628 = vmatmul.mubr.msk.bf16.gmra.mrb[56].mxu0 %vm1305_vm3, %v8453_v34  ;;  %v8475_v34 = vshrl.u32 %v23175_v56, 16  ;;  %25460 = vst [vmem:[#allocation36_spill] sm:$0xff] %v23645_v46  ;;  %v23647_v56 = vpop.f32.mrb[48].mxu1  ;;  %v8506_v53 = vshll.u32 %v25465_v36, 16 }
 0x573   : > { %18631 = vmatprep.mubr.msk.bf16.mxu0 %vm1305_vm3, %v8460_v26  ;;  %25461 = vst [vmem:[#allocation37_spill] sm:$0xff] %v23647_v56  ;;  %v8498_v56 = vor.u32 %v8496_v57, %v8494_v15 }
 0x574   : > { %v8477_v26 = vor.u32 %v8475_v34, %v8473_v19  ;;  %v8499_v19 = vshll.u32 %v23203_v22, 16  ;;  %v23656_v34 = vpop.f32.mrb[49].mxu1  ;;  %v8508_v57 = vrot.slane %v8506_v53, 1 }
 0x575   : > { %25462 = vst [vmem:[#allocation38_spill] sm:$0xff] %v23656_v34  ;;  %v23659_v47 = vpop.f32.mrb[50].mxu1  ;;  %v8510_v34 = vshrl.u32 %v25465_v36, 16 }
 0x576   : > { %v8481_v58 = vsel %vm825_vm4, %v8477_v26, %v8480_v2  ;;  %v8501_v2 = vrot.slane %v8499_v19, 1  ;;  %v23661_v26 = vpop.f32.mrb[51].mxu1 }
 0x577   : > { %25463 = vst [vmem:[#allocation39_spill] sm:$0xff] %v23661_v26 }
 0x578   : > { %v8502_v31 = vsel %vm825_vm4, %v8498_v56, %v8501_v2  ;;  %v8520_v56 = vshll.u32 %v23220_v39, 16 }
 0x57a   : > { %18632 = vmatmul.mubr.msk.bf16.gmra.mrb[60].mxu0 %vm1305_vm3, %v8467_v28  ;;  %v8489_v28 = vshrl.u32 %v23189_v52, 16  ;;  %v23663_v52 = vpop.f32.mrb[52].mxu1 }
 0x57b   : > { %18635 = vmatprep.mubr.msk.bf16.mxu0 %vm1305_vm3, %v8474_v40  ;;  %25464 = vst [vmem:[#allocation40_spill] sm:$0xff] %v23663_v52  ;;  %v8512_v52 = vor.u32 %v8510_v34, %v8508_v57  ;;  %v8522_v34 = vrot.slane %v8520_v56, 1 }
 0x57c   : > { %v8491_v40 = vor.u32 %v8489_v28, %v8487_v51  ;;  %v8513_v51 = vshll.u32 %v23217_v23, 16  ;;  %v23672_v28 = vpop.f32.mrb[53].mxu1 }
 0x57d   : > { %25466 = vst [vmem:[#allocation23_spill] sm:$0xff] %v23672_v28  ;;  %v23675_v19 = vpop.f32.mrb[54].mxu1  ;;  %v8524_v28 = vshrl.u32 %v23220_v39, 16  ;;  %v8534_v39 = vshll.u32 %v23238_v29, 16 }
 0x57e   : > { %v8495_v46 = vsel %vm825_vm4, %v8491_v40, %v8494_v15  ;;  %25467 = vst [vmem:[#allocation41_spill] sm:$0xff] %v23675_v19  ;;  %v8515_v15 = vrot.slane %v8513_v51, 1  ;;  %v23677_v40 = vpop.f32.mrb[55].mxu1 }
 0x57f   : > { %25468 = vst [vmem:[#allocation42_spill] sm:$0xff] %v23677_v40  ;;  %v25522_v40 = vld [vmem:[#allocation34_spill] sm:$0xff] }
 0x580   : > { %v8516_v53 = vsel %vm825_vm4, %v8512_v52, %v8515_v15 }
 0x582   : > { %18636 = vmatmul.mubr.msk.bf16.gmra.mrb[64].mxu0 %vm1305_vm3, %v8481_v58  ;;  %v8503_v58 = vshrl.u32 %v23203_v22, 16  ;;  %v23679_v22 = vpop.f32.mrb[56].mxu1 }
 0x583   : > { %18639 = vmatprep.mubr.msk.bf16.mxu0 %vm1305_vm3, %v8488_v54  ;;  %25469 = vst [vmem:[#allocation43_spill] sm:$0xff] %v23679_v22  ;;  %v8526_v22 = vor.u32 %v8524_v28, %v8522_v34  ;;  %v8536_v28 = vrot.slane %v8534_v39, 1 }
 0x584   : > { %v8505_v54 = vor.u32 %v8503_v58, %v8501_v2  ;;  %v8527_v2 = vshll.u32 %v23235_v11, 16  ;;  %v23688_v58 = vpop.f32.mrb[57].mxu1 }
 0x585   : > { %25470 = vst [vmem:[#allocation44_spill] sm:$0xff] %v23688_v58  ;;  %v23691_v51 = vpop.f32.mrb[58].mxu1  ;;  %v8538_v58 = vshrl.u32 %v23238_v29, 16 }
 0x586   : > { %v8509_v36 = vsel %vm825_vm4, %v8505_v54, %v8508_v57  ;;  %25471 = vst [vmem:[#allocation45_spill] sm:$0xff] %v23691_v51  ;;  %v8529_v57 = vrot.slane %v8527_v2, 1  ;;  %v23693_v54 = vpop.f32.mrb[59].mxu1 }
 0x587   : > { %25472 = vst [vmem:[#allocation46_spill] sm:$0xff] %v23693_v54  ;;  %v8540_v54 = vor.u32 %v8538_v58, %v8536_v28 }
 0x588   : > { %v8530_v56 = vsel %vm825_vm4, %v8526_v22, %v8529_v57  ;;  %v25479_v22 = vld [vmem:[#allocation25_spill] sm:$0xff] }
 0x589   : > { %v8548_v29 = vshll.u32 %v25479_v22, 16 }
 0x58a   : > { %18640 = vmatmul.mubr.msk.bf16.gmra.mrb[68].mxu0 %vm1305_vm3, %v8495_v46  ;;  %v8517_v46 = vshrl.u32 %v23217_v23, 16  ;;  %v23695_v23 = vpop.f32.mrb[60].mxu1 }
 0x58b   : > { %18643 = vmatprep.mubr.msk.bf16.mxu0 %vm1305_vm3, %v8502_v31  ;;  %25473 = vst [vmem:[#allocation47_spill] sm:$0xff] %v23695_v23  ;;  %v8550_v58 = vrot.slane %v8548_v29, 1 }
 0x58c   : > { %v8519_v31 = vor.u32 %v8517_v46, %v8515_v15  ;;  %v23704_v46 = vpop.f32.mrb[61].mxu1 }
 0x58d   : > { %v23707_v23 = vpop.f32.mrb[62].mxu1 }
 0x58e   : > { %v8523_v52 = vsel %vm825_vm4, %v8519_v31, %v8522_v34  ;;  %25476 = vst [vmem:[#allocation48_spill] sm:$0xff] %v23707_v23  ;;  %v23709_v31 = vpop.f32.mrb[63].mxu1 }
 0x58f   : > { %25477 = vst [vmem:[#allocation49_spill] sm:$0xff] %v23709_v31 }
 0x592   : > { %18644 = vmatmul.mubr.msk.bf16.gmra.mrb[72].mxu0 %vm1305_vm3, %v8509_v36  ;;  %v8531_v36 = vshrl.u32 %v23235_v11, 16  ;;  %v23711_v11 = vpop.f32.mrb[64].mxu1 }
 0x593   : > { %18647 = vmatprep.mubr.msk.bf16.mxu0 %vm1305_vm3, %v8516_v53  ;;  %v25474_v53 = vld [vmem:[#allocation24_spill] sm:$0xff]  ;;  %25478 = vst [vmem:[#allocation50_spill] sm:$0xff] %v23711_v11 }
 0x594   : > { %v8541_v15 = vshll.u32 %v25474_v53, 16  ;;  %25475 = vst [vmem:[#allocation24_spill] sm:$0xff] %v23704_v46  ;;  %v8533_v2 = vor.u32 %v8531_v36, %v8529_v57  ;;  %v8552_v46 = vshrl.u32 %v25479_v22, 16  ;;  %v23720_v36 = vpop.f32.mrb[65].mxu1 }
 0x595   : > { %25481 = vst [vmem:[#allocation25_spill] sm:$0xff] %v23720_v36  ;;  %v23723_v11 = vpop.f32.mrb[66].mxu1 }
 0x596   : > { %v8543_v34 = vrot.slane %v8541_v15, 1  ;;  %v8537_v51 = vsel %vm825_vm4, %v8533_v2, %v8536_v28  ;;  %v8554_v31 = vor.u32 %v8552_v46, %v8550_v58  ;;  %v23725_v2 = vpop.f32.mrb[67].mxu1 }
 0x597   : > { %25483 = vst [vmem:[#allocation51_spill] sm:$0xff] %v23725_v2 }
 0x598   : > { %v8544_v39 = vsel %vm825_vm4, %v8540_v54, %v8543_v34  ;;  %v25485_v54 = vld [vmem:[#allocation28_spill] sm:$0xff] }
 0x599   : > { %v8562_v22 = vshll.u32 %v25485_v54, 16  ;;  %v8566_v36 = vshrl.u32 %v25485_v54, 16 }
 0x59a   : > { %18648 = vmatmul.mubr.msk.bf16.gmra.mrb[76].mxu0 %vm1305_vm3, %v8523_v52  ;;  %v8545_v52 = vshrl.u32 %v25474_v53, 16  ;;  %v23727_v53 = vpop.f32.mrb[68].mxu1 }
 0x59b   : > { %18651 = vmatprep.mubr.msk.bf16.mxu0 %vm1305_vm3, %v8530_v56  ;;  %v25480_v56 = vld [vmem:[#allocation26_spill] sm:$0xff]  ;;  %25484 = vst [vmem:[#allocation52_spill] sm:$0xff] %v23727_v53  ;;  %v8564_v46 = vrot.slane %v8562_v22, 1 }
 0x59c   : > { %v8555_v57 = vshll.u32 %v25480_v56, 16  ;;  %v8547_v15 = vor.u32 %v8545_v52, %v8543_v34  ;;  %25482 = vst [vmem:[#allocation26_spill] sm:$0xff] %v23723_v11  ;;  %v23736_v52 = vpop.f32.mrb[69].mxu1 }
 0x59d   : > { %25487 = vst [vmem:[#allocation28_spill] sm:$0xff] %v23736_v52  ;;  %v23739_v53 = vpop.f32.mrb[70].mxu1  ;;  %v8568_v2 = vor.u32 %v8566_v36, %v8564_v46 }
 0x59e   : > { %v8557_v28 = vrot.slane %v8555_v57, 1  ;;  %v8551_v23 = vsel %vm825_vm4, %v8547_v15, %v8550_v58  ;;  %v23741_v15 = vpop.f32.mrb[71].mxu1 }
 0x59f   : > { %25489 = vst [vmem:[#allocation53_spill] sm:$0xff] %v23741_v15 }
 0x5a0   : > { %v8558_v29 = vsel %vm825_vm4, %v8554_v31, %v8557_v28  ;;  %v25491_v31 = vld [vmem:[#allocation14_spill] sm:$0xff] }
 0x5a1   : > { %v8576_v54 = vshll.u32 %v25491_v31, 16  ;;  %v8580_v52 = vshrl.u32 %v25491_v31, 16 }
 0x5a2   : > { %18652 = vmatmul.mubr.msk.bf16.gmra.mrb[80].mxu0 %vm1305_vm3, %v8537_v51  ;;  %v8559_v51 = vshrl.u32 %v25480_v56, 16  ;;  %v23743_v56 = vpop.f32.mrb[72].mxu1 }
 0x5a3   : > { %18655 = vmatprep.mubr.msk.bf16.mxu0 %vm1305_vm3, %v8544_v39  ;;  %v25486_v39 = vld [vmem:[#allocation27_spill] sm:$0xff]  ;;  %25490 = vst [vmem:[#allocation54_spill] sm:$0xff] %v23743_v56  ;;  %v8578_v36 = vrot.slane %v8576_v54, 1 }
 0x5a4   : > { %v8569_v34 = vshll.u32 %v25486_v39, 16  ;;  %v8561_v57 = vor.u32 %v8559_v51, %v8557_v28  ;;  %25488 = vst [vmem:[#allocation27_spill] sm:$0xff] %v23739_v53  ;;  %v23752_v51 = vpop.f32.mrb[73].mxu1 }
 0x5a5   : > { %25493 = vst [vmem:[#allocation14_spill] sm:$0xff] %v23752_v51  ;;  %v23755_v56 = vpop.f32.mrb[74].mxu1  ;;  %v8582_v15 = vor.u32 %v8580_v52, %v8578_v36 }
 0x5a6   : > { %v8571_v58 = vrot.slane %v8569_v34, 1  ;;  %v8565_v11 = vsel %vm825_vm4, %v8561_v57, %v8564_v46  ;;  %v23757_v57 = vpop.f32.mrb[75].mxu1 }
 0x5a7   : > { %25495 = vst [vmem:[#allocation55_spill] sm:$0xff] %v23757_v57 }
 0x5a8   : > { %v8572_v22 = vsel %vm825_vm4, %v8568_v2, %v8571_v58  ;;  %v25497_v2 = vld [vmem:[#allocation16_spill] sm:$0xff] }
 0x5a9   : > { %v8590_v31 = vshll.u32 %v25497_v2, 16  ;;  %v8594_v51 = vshrl.u32 %v25497_v2, 16 }
 0x5aa   : > { %18656 = vmatmul.mubr.msk.bf16.gmra.mrb[84].mxu0 %vm1305_vm3, %v8551_v23  ;;  %v8573_v23 = vshrl.u32 %v25486_v39, 16  ;;  %v23759_v39 = vpop.f32.mrb[76].mxu1 }
 0x5ab   : > { %18659 = vmatprep.mubr.msk.bf16.mxu0 %vm1305_vm3, %v8558_v29  ;;  %v25492_v29 = vld [vmem:[#allocation15_spill] sm:$0xff]  ;;  %25496 = vst [vmem:[#allocation56_spill] sm:$0xff] %v23759_v39  ;;  %v8592_v52 = vrot.slane %v8590_v31, 1 }
 0x5ac   : > { %v8583_v28 = vshll.u32 %v25492_v29, 16  ;;  %v8575_v34 = vor.u32 %v8573_v23, %v8571_v58  ;;  %25494 = vst [vmem:[#allocation15_spill] sm:$0xff] %v23755_v56  ;;  %v23768_v23 = vpop.f32.mrb[77].mxu1 }
 0x5ad   : > { %25499 = vst [vmem:[#allocation16_spill] sm:$0xff] %v23768_v23  ;;  %v23771_v39 = vpop.f32.mrb[78].mxu1  ;;  %v8596_v57 = vor.u32 %v8594_v51, %v8592_v52 }
 0x5ae   : > { %v8585_v46 = vrot.slane %v8583_v28, 1  ;;  %v8579_v53 = vsel %vm825_vm4, %v8575_v34, %v8578_v36  ;;  %v23773_v34 = vpop.f32.mrb[79].mxu1 }
 0x5af   : > { %25501 = vst [vmem:[#allocation57_spill] sm:$0xff] %v23773_v34 }
 0x5b0   : > { %v8586_v54 = vsel %vm825_vm4, %v8582_v15, %v8585_v46  ;;  %v25503_v15 = vld [vmem:[#allocation29_spill] sm:$0xff] }
 0x5b1   : > { %v8604_v2 = vshll.u32 %v25503_v15, 16  ;;  %v8608_v23 = vshrl.u32 %v25503_v15, 16 }
 0x5b2   : > { %18660 = vmatmul.mubr.msk.bf16.gmra.mrb[88].mxu0 %vm1305_vm3, %v8565_v11  ;;  %v8587_v11 = vshrl.u32 %v25492_v29, 16  ;;  %v23775_v29 = vpop.f32.mrb[80].mxu1 }
 0x5b3   : > { %18663 = vmatprep.mubr.msk.bf16.mxu0 %vm1305_vm3, %v8572_v22  ;;  %v25498_v22 = vld [vmem:[#allocation12_spill] sm:$0xff]  ;;  %25502 = vst [vmem:[#allocation58_spill] sm:$0xff] %v23775_v29  ;;  %v8606_v51 = vrot.slane %v8604_v2, 1 }
 0x5b4   : > { %v8597_v58 = vshll.u32 %v25498_v22, 16  ;;  %v8589_v28 = vor.u32 %v8587_v11, %v8585_v46  ;;  %25500 = vst [vmem:[#allocation12_spill] sm:$0xff] %v23771_v39  ;;  %v23784_v11 = vpop.f32.mrb[81].mxu1 }
 0x5b5   : > { %25505 = vst [vmem:[#allocation29_spill] sm:$0xff] %v23784_v11  ;;  %v23787_v29 = vpop.f32.mrb[82].mxu1  ;;  %v8610_v34 = vor.u32 %v8608_v23, %v8606_v51 }
 0x5b6   : > { %v8599_v36 = vrot.slane %v8597_v58, 1  ;;  %v8593_v56 = vsel %vm825_vm4, %v8589_v28, %v8592_v52  ;;  %v23789_v28 = vpop.f32.mrb[83].mxu1 }
 0x5b7   : > { %25507 = vst [vmem:[#allocation59_spill] sm:$0xff] %v23789_v28 }
 0x5b8   : > { %v8600_v31 = vsel %vm825_vm4, %v8596_v57, %v8599_v36  ;;  %v25509_v57 = vld [vmem:[#allocation31_spill] sm:$0xff] }
 0x5b9   : > { %v8618_v15 = vshll.u32 %v25509_v57, 16  ;;  %v8622_v11 = vshrl.u32 %v25509_v57, 16  ;;  %v25515_v57 = vld [vmem:[#allocation33_spill] sm:$0xff] }
 0x5ba   : > { %18664 = vmatmul.mubr.msk.bf16.gmra.mrb[92].mxu0 %vm1305_vm3, %v8579_v53  ;;  %v8601_v53 = vshrl.u32 %v25498_v22, 16  ;;  %v23791_v22 = vpop.f32.mrb[84].mxu1  ;;  %v8632_v28 = vshll.u32 %v25515_v57, 16 }
 0x5bb   : > { %18667 = vmatprep.mubr.msk.bf16.mxu0 %vm1305_vm3, %v8586_v54  ;;  %v25504_v54 = vld [vmem:[#allocation30_spill] sm:$0xff]  ;;  %25508 = vst [vmem:[#allocation60_spill] sm:$0xff] %v23791_v22  ;;  %v8620_v23 = vrot.slane %v8618_v15, 1 }
 0x5bc   : > { %v8611_v46 = vshll.u32 %v25504_v54, 16  ;;  %v8603_v58 = vor.u32 %v8601_v53, %v8599_v36  ;;  %25506 = vst [vmem:[#allocation30_spill] sm:$0xff] %v23787_v29  ;;  %v23800_v53 = vpop.f32.mrb[85].mxu1 }
 0x5bd   : > { %25511 = vst [vmem:[#allocation31_spill] sm:$0xff] %v23800_v53  ;;  %v23803_v22 = vpop.f32.mrb[86].mxu1  ;;  %v8636_v53 = vshrl.u32 %v25515_v57, 16 }
 0x5be   : > { %v8613_v52 = vrot.slane %v8611_v46, 1  ;;  %v8607_v39 = vsel %vm825_vm4, %v8603_v58, %v8606_v51  ;;  %v8624_v51 = vor.u32 %v8622_v11, %v8620_v23  ;;  %v8634_v11 = vrot.slane %v8632_v28, 1 }
 0x5c0   : > { %v8614_v2 = vsel %vm825_vm4, %v8610_v34, %v8613_v52 }
 0x5c2   : > { %18668 = vmatmul.mubr.msk.bf16.gmra.mrb[96].mxu0 %vm1305_vm3, %v8593_v56  ;;  %v8615_v56 = vshrl.u32 %v25504_v54, 16  ;;  %v23805_v54 = vpop.f32.mrb[87].mxu1 }
 0x5c3   : > { %18671 = vmatprep.mubr.msk.bf16.mxu0 %vm1305_vm3, %v8600_v31  ;;  %v25510_v31 = vld [vmem:[#allocation32_spill] sm:$0xff]  ;;  %25513 = vst [vmem:[#allocation61_spill] sm:$0xff] %v23805_v54  ;;  %v23807_v34 = vpop.f32.mrb[88].mxu1 }
 0x5c4   : > { %v8625_v36 = vshll.u32 %v25510_v31, 16  ;;  %v8617_v46 = vor.u32 %v8615_v56, %v8613_v52  ;;  %25512 = vst [vmem:[#allocation32_spill] sm:$0xff] %v23803_v22  ;;  %25514 = vst [vmem:[#allocation62_spill] sm:$0xff] %v23807_v34  ;;  %v8237_v56 = vld [vmem:[%s21651_s14 + $0x1fc] sm:$0xf] }
 0x5c6   : > { %v8627_v58 = vrot.slane %v8625_v36, 1  ;;  %v8621_v29 = vsel %vm825_vm4, %v8617_v46, %v8620_v23  ;;  %v23817_v36 = vpop.f32.mrb[89].mxu1  ;;  %v25519_v23 = vld [vmem:[#allocation18_spill] sm:$0xff] }
 0x5c7   : > { %25517 = vst [vmem:[#allocation33_spill] sm:$0xff] %v23817_v36  ;;  %v23820_v54 = vpop.f32.mrb[90].mxu1  ;;  %v23823_v46 = vcombine.low %v25519_v23, %v8237_v56 }
 0x5c8   : > { %v8628_v15 = vsel %vm825_vm4, %v8624_v51, %v8627_v58  ;;  %v23825_v22 = vpop.f32.mrb[91].mxu1 }
 0x5c9   : > { %25520 = vst [vmem:[#allocation18_spill] sm:$0xff] %v23825_v22  ;;  %v23827_v57 = vpop.f32.mrb[92].mxu1  ;;  %v21279_v22 = vld [vmem:[%s21651_s14 + $0x24] sm:$0xf] }
 0x5ca   : > { %18672 = vmatmul.mubr.msk.bf16.gmra.mrb[100].mxu0 %vm1305_vm3, %v8607_v39  ;;  %v8629_v39 = vshrl.u32 %v25510_v31, 16  ;;  %v8638_v31 = vor.u32 %v8636_v53, %v8634_v11  ;;  %25521 = vst [vmem:[#allocation63_spill] sm:$0xff] %v23827_v57 }
 0x5cb   : > { %18675 = vmatprep.mubr.msk.bf16.mxu0 %vm1305_vm3, %v8614_v2  ;;  %v25516_v2 = vld [vmem:[#allocation17_spill] sm:$0xff] }
 0x5cc   : > { %v8639_v52 = vshll.u32 %v25516_v2, 16  ;;  %v8631_v34 = vor.u32 %v8629_v39, %v8627_v58  ;;  %25518 = vst [vmem:[#allocation17_spill] sm:$0xff] %v23820_v54  ;;  %v8643_v36 = vshrl.u32 %v25516_v2, 16  ;;  %v8650_v39 = vshrl.u32 %v25522_v40, 16 }
 0x5ce   : > { %v8641_v51 = vrot.slane %v8639_v52, 1  ;;  %v8635_v28 = vsel %vm825_vm4, %v8631_v34, %v8634_v11  ;;  %v23836_v52 = vpop.f32.mrb[93].mxu1 }
 0x5cf   : > { %25523 = vst [vmem:[#allocation34_spill] sm:$0xff] %v23836_v52  ;;  %v23839_v23 = vpop.f32.mrb[94].mxu1 }
 0x5d0   : > { %v8642_v58 = vsel %vm825_vm4, %v8638_v31, %v8641_v51  ;;  %v8645_v56 = vor.u32 %v8643_v36, %v8641_v51  ;;  %25524 = vst [vmem:[#allocation64_spill] sm:$0xff] %v23839_v23  ;;  %v23841_v11 = vpop.f32.mrb[95].mxu1  ;;  %v9477_v31 = vld [vmem:[%s21651_s14 + $0x20] sm:$0xe] }
 0x5d1   : > { %25525 = vst [vmem:[#allocation65_spill] sm:$0xff] %v23841_v11 }
 0x5d2   : > { %18676 = vmatmul.mubr.msk.bf16.gmra.mrb[104].mxu0 %vm1305_vm3, %v8621_v29  ;;  %v8646_v29 = vshll.u32 %v25522_v40, 16 }
 0x5d3   : > { %18679 = vmatprep.mubr.msk.bf16.mxu0 %vm1305_vm3, %v8628_v15  ;;  %v8654_v15 = vshll.u32 %v23823_v46, 16 }
 0x5d4   : > { %v8648_v53 = vrot.slane %v8646_v29, 1  ;;  %v8658_v29 = vshrl.u32 %v23823_v46, 16 }
 0x5d5   : > { %v8656_v2 = vrot.slane %v8654_v15, 1 }
 0x5d6   : > { %v8652_v34 = vor.u32 %v8650_v39, %v8648_v53  ;;  %v8649_v40 = vsel %vm825_vm4, %v8645_v56, %v8648_v53  ;;  %v21280_v39 = vld [vmem:[%s21651_s14 + $0x28] sm:$0xff]  }
 0x5d7   : > { %v9482_v15 = vrot.slane %v21280_v39, 1  ;;  %v21282_v39 = vld [vmem:[%s21651_s14 + $0x38] sm:$0xff]  }
 0x5d8   : > { %v8657_v57 = vsel %vm825_vm4, %v8652_v34, %v8656_v2 }
 0x5da   : > { %18680 = vmatmul.mubr.msk.bf16.gmra.mrb[108].mxu0 %vm1305_vm3, %v8635_v28  ;;  %v16484_v28 = vcombine.low %v9477_v31, %v21279_v22  ;;  %v8660_v22 = vor.u32 %v8658_v29, %v8656_v2 }
 0x5db   : > { %18683 = vmatprep.mubr.msk.bf16.mxu0 %vm1305_vm3, %v8642_v58 }
 0x5dc   : > { %v9481_v58 = vrot.slane %v16484_v28, 1 }
 0x5de   : > { %v9483_v34 = vsel %vm2650_vm2, %v9481_v58, %v9482_v15 }
 0x5df   : > { %v23849_v36 = vpop.f32.mrb[96].mxu1 }
 0x5e0   : > { %25526 = vst [vmem:[#allocation66_spill] sm:$0xff] %v23849_v36  ;;  %v23852_v51 = vpop.f32.mrb[97].mxu1 }
 0x5e1   : > { %25527 = vst [vmem:[#allocation67_spill] sm:$0xff] %v23852_v51  ;;  %v23855_v53 = vpop.f32.mrb[98].mxu1  ;;  %v9486_v51 = vrot.slane %v21282_v39, 1  ;;  %v21284_v39 = vld [vmem:[%s21651_s14 + $0x48] sm:$0xff]  }
 0x5e2   : > { %18684 = vmatmul.mubr.msk.bf16.gmra.mrb[112].mxu0 %vm1305_vm3, %v8649_v40  ;;  %25528 = vst [vmem:[#allocation68_spill] sm:$0xff] %v23855_v53  ;;  %v23857_v56 = vpop.f32.mrb[99].mxu1 }
 0x5e3   : > { %18687 = vmatprep.mubr.msk.bf16.mxu0 %vm1305_vm3, %v8657_v57  ;;  %25529 = vst [vmem:[#allocation69_spill] sm:$0xff] %v23857_v56  ;;  %v21281_v57 = vld [vmem:[%s21651_s14 + $0x30] sm:$0xff]  }
 0x5e4   : > { %v9484_v40 = vrot.slane %v21281_v57, 1 }
 0x5e6   : > { %v9485_v2 = vsel %vm2650_vm2, %v9482_v15, %v9484_v40  ;;  %v9487_v29 = vsel %vm2650_vm2, %v9484_v40, %v9486_v51 }
 0x5e7   : > { %v23861_v31 = vpop.f32.mrb[100].mxu1 }
 0x5e8   : > { %25530 = vst [vmem:[#allocation70_spill] sm:$0xff] %v23861_v31  ;;  %v23865_v28 = vpop.f32.mrb[101].mxu1 }
 0x5e9   : > { %25531 = vst [vmem:[#allocation71_spill] sm:$0xff] %v23865_v28  ;;  %v23868_v53 = vpop.f32.mrb[102].mxu1 }
 0x5ea   : > { %18688 = vmatmul.mubr.msk.bf16.gmra.mrb[116].mxu0 %vm1305_vm3, %v8660_v22  ;;  %25532 = vst [vmem:[#allocation72_spill] sm:$0xff] %v23868_v53  ;;  %v23870_v56 = vpop.f32.mrb[103].mxu1  ;;  %v21283_v22 = vld [vmem:[%s21651_s14 + $0x40] sm:$0xff]   ;;  %v9490_v53 = vrot.slane %v21284_v39, 1  ;;  %v21286_v39 = vld [vmem:[%s21651_s14 + $0x58] sm:$0xff]  }
 0x5eb   : > { %18693 = vmatprep.mubr.msk.bf16.mxu0 %vm1305_vm3, %v9483_v34  ;;  %25533 = vst [vmem:[#allocation73_spill] sm:$0xff] %v23870_v56  ;;  %v9488_v34 = vrot.slane %v21283_v22, 1 }
 0x5ed   : > { %v9489_v15 = vsel %vm2650_vm2, %v9486_v51, %v9488_v34  ;;  %v9491_v40 = vsel %vm2650_vm2, %v9488_v34, %v9490_v53 }
 0x5ef   : > { %v23875_v58 = vpop.f32.mrb[104].mxu1 }
 0x5f0   : > { %25534 = vst [vmem:[#allocation74_spill] sm:$0xff] %v23875_v58  ;;  %v23879_v57 = vpop.f32.mrb[105].mxu1 }
 0x5f1   : > { %25535 = vst [vmem:[#allocation75_spill] sm:$0xff] %v23879_v57  ;;  %v23882_v28 = vpop.f32.mrb[106].mxu1 }
 0x5f2   : > { %18694 = vmatmul.mubr.msk.bf16.vlgmr.msra.gmra.mrb[0].mxu0 %vm1305_vm3, %v9485_v2  ;;  %25536 = vst [vmem:[#allocation76_spill] sm:$0xff] %v23882_v28  ;;  %v23884_v56 = vpop.f32.mrb[107].mxu1  ;;  %v9494_v28 = vrot.slane %v21286_v39, 1  ;;  %v21288_v39 = vld [vmem:[%s21651_s14 + $0x68] sm:$0xff]  }
 0x5f3   : > { %18697 = vmatprep.mubr.msk.bf16.mxu0 %vm1305_vm3, %v9487_v29  ;;  %25537 = vst [vmem:[#allocation77_spill] sm:$0xff] %v23884_v56  ;;  %v21285_v29 = vld [vmem:[%s21651_s14 + $0x50] sm:$0xff]  }
 0x5f4   : > { %v9492_v22 = vrot.slane %v21285_v29, 1 }
 0x5f6   : > { %v9493_v51 = vsel %vm2650_vm2, %v9490_v53, %v9492_v22  ;;  %v9495_v34 = vsel %vm2650_vm2, %v9492_v22, %v9494_v28 }
 0x5f7   : > { %v23889_v2 = vpop.f32.mrb[108].mxu1 }
 0x5f8   : > { %25538 = vst [vmem:[#allocation78_spill] sm:$0xff] %v23889_v2  ;;  %v23893_v57 = vpop.f32.mrb[109].mxu1 }
 0x5f9   : > { %25539 = vst [vmem:[#allocation79_spill] sm:$0xff] %v23893_v57  ;;  %v23896_v58 = vpop.f32.mrb[110].mxu1 }
 0x5fa   : > { %18698 = vmatmul.mubr.msk.bf16.gmra.mrb[4].mxu0 %vm1305_vm3, %v9489_v15  ;;  %25540 = vst [vmem:[#allocation80_spill] sm:$0xff] %v23896_v58  ;;  %v23898_v56 = vpop.f32.mrb[111].mxu1  ;;  %v9498_v58 = vrot.slane %v21288_v39, 1  ;;  %v21290_v39 = vld [vmem:[%s21651_s14 + $0x78] sm:$0xff]  }
 0x5fb   : > { %18701 = vmatprep.mubr.msk.bf16.mxu0 %vm1305_vm3, %v9491_v40  ;;  %25541 = vst [vmem:[#allocation81_spill] sm:$0xff] %v23898_v56  ;;  %v21287_v40 = vld [vmem:[%s21651_s14 + $0x60] sm:$0xff]  }
 0x5fc   : > { %v9496_v29 = vrot.slane %v21287_v40, 1 }
 0x5fe   : > { %v9497_v53 = vsel %vm2650_vm2, %v9494_v28, %v9496_v29  ;;  %v9499_v22 = vsel %vm2650_vm2, %v9496_v29, %v9498_v58 }
 0x5ff   : > { %v23903_v15 = vpop.f32.mrb[112].mxu1 }
 0x600   : > { %25542 = vst [vmem:[#allocation82_spill] sm:$0xff] %v23903_v15  ;;  %v23907_v57 = vpop.f32.mrb[113].mxu1 }
 0x601   : > { %25543 = vst [vmem:[#allocation83_spill] sm:$0xff] %v23907_v57  ;;  %v23910_v2 = vpop.f32.mrb[114].mxu1 }
 0x602   : > { %18702 = vmatmul.mubr.msk.bf16.gmra.mrb[8].mxu0 %vm1305_vm3, %v9493_v51  ;;  %25544 = vst [vmem:[#allocation84_spill] sm:$0xff] %v23910_v2  ;;  %v23912_v56 = vpop.f32.mrb[115].mxu1  ;;  %v9502_v2 = vrot.slane %v21290_v39, 1 }
 0x603   : > { %18705 = vmatprep.mubr.msk.bf16.mxu0 %vm1305_vm3, %v9495_v34  ;;  %25545 = vst [vmem:[#allocation85_spill] sm:$0xff] %v23912_v56  ;;  %v21289_v34 = vld [vmem:[%s21651_s14 + $0x70] sm:$0xff]  }
 0x604   : > { %v9500_v40 = vrot.slane %v21289_v34, 1 }
 0x606   : > { %v9501_v29 = vsel %vm2650_vm2, %v9498_v58, %v9500_v40  ;;  %v21293_v58 = vld [vmem:[%s21651_s14 + $0x90] sm:$0xff]  }
 0x607   : > { %v23917_v51 = vpop.f32.mrb[116].mxu1 }
 0x608   : > { %25546 = vst [vmem:[#allocation86_spill] sm:$0xff] %v23917_v51  ;;  %v23921_v57 = vpop.f32.mrb[117].mxu1 }
 0x609   : > { %25547 = vst [vmem:[#allocation87_spill] sm:$0xff] %v23921_v57  ;;  %v23924_v56 = vpop.f32.mrb[118].mxu1  ;;  %v21292_v57 = vld [vmem:[%s21651_s14 + $0x88] sm:$0xff]  }
 0x60a   : > { %18706 = vmatmul.mubr.msk.bf16.gmra.mrb[12].mxu0 %vm1305_vm3, %v9497_v53  ;;  %25548 = vst [vmem:[#allocation88_spill] sm:$0xff] %v23924_v56  ;;  %v23926_v28 = vpop.f32.mrb[119].mxu1  ;;  %v9503_v53 = vsel %vm2650_vm2, %v9500_v40, %v9502_v2  ;;  %v9506_v51 = vrot.slane %v21292_v57, 1  ;;  %v9508_v40 = vrot.slane %v21293_v58, 1  ;;  %v21295_v57 = vld [vmem:[%s21651_s14 + $0xa0] sm:$0xff]  }
 0x60b   : > { %18709 = vmatprep.mubr.msk.bf16.mxu0 %vm1305_vm3, %v9499_v22  ;;  %25549 = vst [vmem:[#allocation89_spill] sm:$0xff] %v23926_v28  ;;  %v21291_v22 = vld [vmem:[%s21651_s14 + $0x80] sm:$0xff]  }
 0x60c   : > { %v9504_v34 = vrot.slane %v21291_v22, 1  ;;  %v9509_v28 = vsel %vm2650_vm2, %v9506_v51, %v9508_v40 }
 0x60e   : > { %v9505_v39 = vsel %vm2650_vm2, %v9502_v2, %v9504_v34  ;;  %v9507_v56 = vsel %vm2650_vm2, %v9504_v34, %v9506_v51  ;;  %v9512_v2 = vrot.slane %v21295_v57, 1  ;;  %v21296_v34 = vld [vmem:[%s21651_s14 + $0xa8] sm:$0xff]   ;;  %v21297_v51 = vld [vmem:[%s21651_s14 + $0xb0] sm:$0xff]  }
 0x612   : > { %18710 = vmatmul.mubr.msk.bf16.gmra.mrb[16].mxu0 %vm1305_vm3, %v9501_v29  ;;  %v21294_v29 = vld [vmem:[%s21651_s14 + $0x98] sm:$0xff]  }
 0x613   : > { %18713 = vmatprep.mubr.msk.bf16.mxu0 %vm1305_vm3, %v9503_v53  ;;  %v9510_v53 = vrot.slane %v21294_v29, 1 }
 0x615   : > { %v9511_v22 = vsel %vm2650_vm2, %v9508_v40, %v9510_v53  ;;  %v9516_v40 = vrot.slane %v21297_v51, 1 }
 0x61a   : > { %18714 = vmatmul.mubr.msk.bf16.gmra.mrb[20].mxu0 %vm1305_vm3, %v9505_v39  ;;  %v9513_v39 = vsel %vm2650_vm2, %v9510_v53, %v9512_v2  ;;  %v21299_v53 = vld [vmem:[%s21651_s14 + $0xc0] sm:$0xff]  }
 0x61b   : > { %18717 = vmatprep.mubr.msk.bf16.mxu0 %vm1305_vm3, %v9507_v56  ;;  %v9514_v56 = vrot.slane %v21296_v34, 1  ;;  %v21300_v34 = vld [vmem:[%s21651_s14 + $0xc8] sm:$0xff]  }
 0x61d   : > { %v9515_v58 = vsel %vm2650_vm2, %v9512_v2, %v9514_v56  ;;  %v9520_v2 = vrot.slane %v21299_v53, 1 }
 0x622   : > { %18718 = vmatmul.mubr.msk.bf16.gmra.mrb[24].mxu0 %vm1305_vm3, %v9509_v28  ;;  %v21298_v28 = vld [vmem:[%s21651_s14 + $0xb8] sm:$0xff]  }
 0x623   : > { %18721 = vmatprep.mubr.msk.bf16.mxu0 %vm1305_vm3, %v9511_v22  ;;  %v9518_v29 = vrot.slane %v21298_v28, 1  ;;  %v9517_v22 = vsel %vm2650_vm2, %v9514_v56, %v9516_v40  ;;  %v21301_v56 = vld [vmem:[%s21651_s14 + $0xd0] sm:$0xff]   ;;  %v21302_v28 = vld [vmem:[%s21651_s14 + $0xd8] sm:$0xff]  }
 0x625   : > { %v9519_v57 = vsel %vm2650_vm2, %v9516_v40, %v9518_v29  ;;  %v9524_v40 = vrot.slane %v21301_v56, 1 }
 0x62a   : > { %18722 = vmatmul.mubr.msk.bf16.gmra.mrb[28].mxu0 %vm1305_vm3, %v9513_v39  ;;  %v9522_v39 = vrot.slane %v21300_v34, 1  ;;  %v21304_v34 = vld [vmem:[%s21651_s14 + $0xe8] sm:$0xff]  }
 0x62b   : > { %18725 = vmatprep.mubr.msk.bf16.mxu0 %vm1305_vm3, %v9515_v58  ;;  %v9521_v58 = vsel %vm2650_vm2, %v9518_v29, %v9520_v2  ;;  %v21303_v29 = vld [vmem:[%s21651_s14 + $0xe0] sm:$0xff]  }
 0x62c   : > { %v9523_v51 = vsel %vm2650_vm2, %v9520_v2, %v9522_v39  ;;  %v9528_v2 = vrot.slane %v21303_v29, 1 }
 0x632   : > { %18726 = vmatmul.mubr.msk.bf16.gmra.mrb[32].mxu0 %vm1305_vm3, %v9517_v22  ;;  %v9526_v22 = vrot.slane %v21302_v28, 1  ;;  %v21306_v28 = vld [vmem:[%s21651_s14 + $0xf8] sm:$0xff]  }
 0x633   : > { %18729 = vmatprep.mubr.msk.bf16.mxu0 %vm1305_vm3, %v9519_v57  ;;  %v9525_v57 = vsel %vm2650_vm2, %v9522_v39, %v9524_v40  ;;  %v21305_v39 = vld [vmem:[%s21651_s14 + $0xf0] sm:$0xff]  }
 0x634   : > { %v9527_v53 = vsel %vm2650_vm2, %v9524_v40, %v9526_v22  ;;  %v9532_v40 = vrot.slane %v21305_v39, 1 }
 0x63a   : > { %18730 = vmatmul.mubr.msk.bf16.gmra.mrb[36].mxu0 %vm1305_vm3, %v9521_v58  ;;  %v9530_v58 = vrot.slane %v21304_v34, 1  ;;  %v21308_v34 = vld [vmem:[%s21651_s14 + $0x108] sm:$0xff]  }
 0x63b   : > { %18733 = vmatprep.mubr.msk.bf16.mxu0 %vm1305_vm3, %v9523_v51  ;;  %v9529_v51 = vsel %vm2650_vm2, %v9526_v22, %v9528_v2  ;;  %v21307_v22 = vld [vmem:[%s21651_s14 + $0x100] sm:$0xff]  }
 0x63c   : > { %v9531_v56 = vsel %vm2650_vm2, %v9528_v2, %v9530_v58  ;;  %v9536_v2 = vrot.slane %v21307_v22, 1 }
 0x642   : > { %18734 = vmatmul.mubr.msk.bf16.gmra.mrb[40].mxu0 %vm1305_vm3, %v9525_v57  ;;  %v9534_v57 = vrot.slane %v21306_v28, 1 }
 0x643   : > { %18737 = vmatprep.mubr.msk.bf16.mxu0 %vm1305_vm3, %v9527_v53  ;;  %v9533_v53 = vsel %vm2650_vm2, %v9530_v58, %v9532_v40  ;;  %v25377_v58 = vmov 0.0  }
 0x644   : > { %v9535_v29 = vsel %vm2650_vm2, %v9532_v40, %v9534_v57  ;;  %18813 = vmatprep.subr.bf16.mxu1 %v25377_v58  ;;  %v21309_v40 = vld [vmem:[%s21651_s14 + $0x110] sm:$0xff]   ;;  %18817 = vmatprep.mubr.msk.bf16.mxu1 %vm21481_vm5, %v25377_v58 }
 0x645   : > { %v9540_v28 = vrot.slane %v21309_v40, 1 }
 0x64a   : > { %18738 = vmatmul.mubr.msk.bf16.gmra.mrb[44].mxu0 %vm1305_vm3, %v9529_v51  ;;  %v9538_v51 = vrot.slane %v21308_v34, 1 }
 0x64b   : > { %18741 = vmatprep.mubr.msk.bf16.mxu0 %vm1305_vm3, %v9531_v56  ;;  %v9537_v56 = vsel %vm2650_vm2, %v9534_v57, %v9536_v2 }
 0x64c   : > { %v9539_v39 = vsel %vm2650_vm2, %v9536_v2, %v9538_v51  ;;  %v9541_v22 = vsel %vm2650_vm2, %v9538_v51, %v9540_v28  ;;  %v21311_v2 = vld [vmem:[%s21651_s14 + $0x120] sm:$0xff]  }
 0x64d   : > { %v9544_v34 = vrot.slane %v21311_v2, 1 }
 0x652   : > { %18742 = vmatmul.mubr.msk.bf16.gmra.mrb[48].mxu0 %vm1305_vm3, %v9533_v53  ;;  %v21310_v53 = vld [vmem:[%s21651_s14 + $0x118] sm:$0xff]  }
 0x653   : > { %18745 = vmatprep.mubr.msk.bf16.mxu0 %vm1305_vm3, %v9535_v29  ;;  %v9542_v29 = vrot.slane %v21310_v53, 1 }
 0x655   : > { %v9543_v57 = vsel %vm2650_vm2, %v9540_v28, %v9542_v29  ;;  %v9545_v40 = vsel %vm2650_vm2, %v9542_v29, %v9544_v34  ;;  %v21313_v28 = vld [vmem:[%s21651_s14 + $0x130] sm:$0xff]   ;;  %v21315_v29 = vld [vmem:[%s21651_s14 + $0x140] sm:$0xff]  }
 0x656   : > { %v9548_v53 = vrot.slane %v21313_v28, 1 }
 0x65a   : > { %18746 = vmatmul.mubr.msk.bf16.gmra.mrb[52].mxu0 %vm1305_vm3, %v9537_v56  ;;  %v21312_v56 = vld [vmem:[%s21651_s14 + $0x128] sm:$0xff]  }
 0x65b   : > { %18749 = vmatprep.mubr.msk.bf16.mxu0 %vm1305_vm3, %v9539_v39  ;;  %v9546_v39 = vrot.slane %v21312_v56, 1  ;;  %v21316_v56 = vld [vmem:[%s21651_s14 + $0x148] sm:$0xff]  }
 0x65d   : > { %v9547_v51 = vsel %vm2650_vm2, %v9544_v34, %v9546_v39  ;;  %v9549_v58 = vsel %vm2650_vm2, %v9546_v39, %v9548_v53  ;;  %v9552_v34 = vrot.slane %v21315_v29, 1  ;;  %v21317_v39 = vld [vmem:[%s21651_s14 + $0x150] sm:$0xff]  }
 0x662   : > { %18750 = vmatmul.mubr.msk.bf16.gmra.mrb[56].mxu0 %vm1305_vm3, %v9541_v22  ;;  %v21314_v22 = vld [vmem:[%s21651_s14 + $0x138] sm:$0xff]  }
 0x663   : > { %18753 = vmatprep.mubr.msk.bf16.mxu0 %vm1305_vm3, %v9543_v57  ;;  %v9550_v57 = vrot.slane %v21314_v22, 1 }
 0x665   : > { %v9551_v2 = vsel %vm2650_vm2, %v9548_v53, %v9550_v57  ;;  %v9556_v53 = vrot.slane %v21317_v39, 1 }
 0x66a   : > { %18754 = vmatmul.mubr.msk.bf16.gmra.mrb[60].mxu0 %vm1305_vm3, %v9545_v40  ;;  %v9554_v40 = vrot.slane %v21316_v56, 1  ;;  %v21320_v56 = vld [vmem:[%s21651_s14 + $0x168] sm:$0xff]  }
 0x66b   : > { %18757 = vmatprep.mubr.msk.bf16.mxu0 %vm1305_vm3, %v9547_v51  ;;  %v9553_v51 = vsel %vm2650_vm2, %v9550_v57, %v9552_v34  ;;  %v21319_v57 = vld [vmem:[%s21651_s14 + $0x160] sm:$0xff]  }
 0x66c   : > { %v9555_v28 = vsel %vm2650_vm2, %v9552_v34, %v9554_v40  ;;  %v9560_v34 = vrot.slane %v21319_v57, 1 }
 0x672   : > { %18758 = vmatmul.mubr.msk.bf16.gmra.mrb[64].mxu0 %vm1305_vm3, %v9549_v58  ;;  %v21318_v58 = vld [vmem:[%s21651_s14 + $0x158] sm:$0xff]  }
 0x673   : > { %18761 = vmatprep.mubr.msk.bf16.mxu0 %vm1305_vm3, %v9551_v2  ;;  %v9558_v22 = vrot.slane %v21318_v58, 1  ;;  %v9557_v2 = vsel %vm2650_vm2, %v9554_v40, %v9556_v53  ;;  %v21321_v40 = vld [vmem:[%s21651_s14 + $0x170] sm:$0xff]   ;;  %v21322_v58 = vld [vmem:[%s21651_s14 + $0x178] sm:$0xff]  }
 0x675   : > { %v9559_v29 = vsel %vm2650_vm2, %v9556_v53, %v9558_v22  ;;  %v9564_v53 = vrot.slane %v21321_v40, 1 }
 0x67a   : > { %18762 = vmatmul.mubr.msk.bf16.gmra.mrb[68].mxu0 %vm1305_vm3, %v9553_v51  ;;  %v9562_v51 = vrot.slane %v21320_v56, 1  ;;  %v21324_v56 = vld [vmem:[%s21651_s14 + $0x188] sm:$0xff]  }
 0x67b   : > { %18765 = vmatprep.mubr.msk.bf16.mxu0 %vm1305_vm3, %v9555_v28  ;;  %v9561_v28 = vsel %vm2650_vm2, %v9558_v22, %v9560_v34  ;;  %v21323_v22 = vld [vmem:[%s21651_s14 + $0x180] sm:$0xff]  }
 0x67c   : > { %v9563_v39 = vsel %vm2650_vm2, %v9560_v34, %v9562_v51  ;;  %v9568_v34 = vrot.slane %v21323_v22, 1 }
 0x682   : > { %18766 = vmatmul.mubr.msk.bf16.gmra.mrb[72].mxu0 %vm1305_vm3, %v9557_v2  ;;  %v9566_v2 = vrot.slane %v21322_v58, 1  ;;  %v21326_v58 = vld [vmem:[%s21651_s14 + $0x198] sm:$0xff]  }
 0x683   : > { %18769 = vmatprep.mubr.msk.bf16.mxu0 %vm1305_vm3, %v9559_v29  ;;  %v9565_v29 = vsel %vm2650_vm2, %v9562_v51, %v9564_v53  ;;  %v21325_v51 = vld [vmem:[%s21651_s14 + $0x190] sm:$0xff]  }
 0x684   : > { %v9567_v57 = vsel %vm2650_vm2, %v9564_v53, %v9566_v2  ;;  %v9572_v53 = vrot.slane %v21325_v51, 1 }
 0x68a   : > { %18770 = vmatmul.mubr.msk.bf16.gmra.mrb[76].mxu0 %vm1305_vm3, %v9561_v28  ;;  %v9570_v28 = vrot.slane %v21324_v56, 1  ;;  %v21328_v56 = vld [vmem:[%s21651_s14 + $0x1a8] sm:$0xff]  }
 0x68b   : > { %18773 = vmatprep.mubr.msk.bf16.mxu0 %vm1305_vm3, %v9563_v39  ;;  %v9569_v39 = vsel %vm2650_vm2, %v9566_v2, %v9568_v34  ;;  %v21327_v2 = vld [vmem:[%s21651_s14 + $0x1a0] sm:$0xff]  }
 0x68c   : > { %v9571_v40 = vsel %vm2650_vm2, %v9568_v34, %v9570_v28  ;;  %v9576_v34 = vrot.slane %v21327_v2, 1 }
 0x692   : > { %18774 = vmatmul.mubr.msk.bf16.gmra.mrb[80].mxu0 %vm1305_vm3, %v9565_v29  ;;  %v9574_v29 = vrot.slane %v21326_v58, 1  ;;  %v21330_v58 = vld [vmem:[%s21651_s14 + $0x1b8] sm:$0xff]  }
 0x693   : > { %18777 = vmatprep.mubr.msk.bf16.mxu0 %vm1305_vm3, %v9567_v57  ;;  %v9573_v57 = vsel %vm2650_vm2, %v9570_v28, %v9572_v53  ;;  %v21329_v28 = vld [vmem:[%s21651_s14 + $0x1b0] sm:$0xff]  }
 0x694   : > { %v9575_v22 = vsel %vm2650_vm2, %v9572_v53, %v9574_v29  ;;  %v9580_v53 = vrot.slane %v21329_v28, 1 }
 0x69a   : > { %18778 = vmatmul.mubr.msk.bf16.gmra.mrb[84].mxu0 %vm1305_vm3, %v9569_v39  ;;  %v9578_v39 = vrot.slane %v21328_v56, 1  ;;  %v21332_v56 = vld [vmem:[%s21651_s14 + $0x1c8] sm:$0xff]  }
 0x69b   : > { %18781 = vmatprep.mubr.msk.bf16.mxu0 %vm1305_vm3, %v9571_v40  ;;  %v9577_v40 = vsel %vm2650_vm2, %v9574_v29, %v9576_v34  ;;  %v21331_v29 = vld [vmem:[%s21651_s14 + $0x1c0] sm:$0xff]  }
 0x69c   : > { %v9579_v51 = vsel %vm2650_vm2, %v9576_v34, %v9578_v39  ;;  %v9584_v34 = vrot.slane %v21331_v29, 1  ;;  %v21335_v29 = vld [vmem:[%s21651_s14 + $0x1e0] sm:$0xff]  }
 0x6a2   : > { %18782 = vmatmul.mubr.msk.bf16.gmra.mrb[88].mxu0 %vm1305_vm3, %v9573_v57  ;;  %v9582_v57 = vrot.slane %v21330_v58, 1  ;;  %v21334_v58 = vld [vmem:[%s21651_s14 + $0x1d8] sm:$0xff]  }
 0x6a3   : > { %18785 = vmatprep.mubr.msk.bf16.mxu0 %vm1305_vm3, %v9575_v22  ;;  %v9581_v22 = vsel %vm2650_vm2, %v9578_v39, %v9580_v53  ;;  %v21333_v39 = vld [vmem:[%s21651_s14 + $0x1d0] sm:$0xff]  }
 0x6a4   : > { %v9583_v2 = vsel %vm2650_vm2, %v9580_v53, %v9582_v57  ;;  %v9588_v53 = vrot.slane %v21333_v39, 1 }
 0x6aa   : > { %18786 = vmatmul.mubr.msk.bf16.gmra.mrb[92].mxu0 %vm1305_vm3, %v9577_v40  ;;  %v9586_v40 = vrot.slane %v21332_v56, 1  ;;  %v21336_v56 = vld [vmem:[%s21651_s14 + $0x1e8] sm:$0xff]  }
 0x6ab   : > { %18789 = vmatprep.mubr.msk.bf16.mxu0 %vm1305_vm3, %v9579_v51  ;;  %v9585_v51 = vsel %vm2650_vm2, %v9582_v57, %v9584_v34  ;;  %v9592_v57 = vrot.slane %v21335_v29, 1 }
 0x6ac   : > { %v9587_v28 = vsel %vm2650_vm2, %v9584_v34, %v9586_v40  ;;  %v9594_v34 = vrot.slane %v21336_v56, 1  ;;  %v24076_v56 = vld [vmem:[#allocation4] ss:$0 sm:$0xff] }
 0x6b2   : > { %18790 = vmatmul.mubr.msk.bf16.gmra.mrb[96].mxu0 %vm1305_vm3, %v9581_v22  ;;  %v9590_v22 = vrot.slane %v21334_v58, 1 }
 0x6b3   : > { %18793 = vmatprep.mubr.msk.bf16.mxu0 %vm1305_vm3, %v9583_v2  ;;  %v9589_v2 = vsel %vm2650_vm2, %v9586_v40, %v9588_v53 }
 0x6b4   : > { %v9591_v15 = vsel %vm2650_vm2, %v9588_v53, %v9590_v22  ;;  %v9593_v40 = vsel %vm2650_vm2, %v9590_v22, %v9592_v57 }
 0x6ba   : > { %18794 = vmatmul.mubr.msk.bf16.gmra.mrb[100].mxu0 %vm1305_vm3, %v9585_v51 }
 0x6bb   : > { %18797 = vmatprep.mubr.msk.bf16.mxu0 %vm1305_vm3, %v9587_v28 }
 0x6c2   : > { %18798 = vmatmul.mubr.msk.bf16.gmra.mrb[104].mxu0 %vm1305_vm3, %v9589_v2  ;;  %v9595_v2 = vsel %vm2650_vm2, %v9592_v57, %v9594_v34 }
 0x6c3   : > { %18801 = vmatprep.mubr.msk.bf16.mxu0 %vm1305_vm3, %v9591_v15  ;;  %v281_v15 = vlaneseq }
 0x6c5   : > { %v18695_v51 = vpop.f32.mrb[0].mxu0 }
 0x6c6   : > { %v19575_v28 = vadd.f32 %v18695_v51, %v23435_v49  ;;  %v9817_v31 = vpop.f32.mrb[1].mxu0  ;;  %v21337_v49 = vld [vmem:[%s21651_s14 + $0x1f0] sm:$0xff]  }
 0x6c7   : > { %v19576_v39 = vadd.f32 %v9817_v31, %v23448_v32  ;;  %v18696_v58 = vpop.f32.mrb[2].mxu0  ;;  %v9596_v51 = vrot.slane %v21337_v49, 1  ;;  %v9598_v32 = vrot.slane %v23823_v46, 1  ;;  %v282_v31 = vshrl.u32 %v281_v15, 7 }
 0x6c8   : > { %v19577_v53 = vadd.f32 %v18696_v58, %v23453_v25  ;;  %v9820_v36 = vpop.f32.mrb[3].mxu0  ;;  %v10424_v25 = vadd.f32 %v19575_v28, %v24076_v56 }
 0x6c9   : > { %v19578_v29 = vadd.f32 %v9820_v36, %v23455_v63  ;;  %v10422_v11 = vadd.f32 %v19576_v39, %v24076_v56  ;;  %v283_v28 = vadd.s32 8, %v282_v31 }
 0x6ca   : > { %18802 = vmatmul.mubr.msk.bf16.gmra.mrb[108].mxu0 %vm1305_vm3, %v9593_v40  ;;  %v9597_v40 = vsel %vm2650_vm2, %v9594_v34, %v9596_v51  ;;  %v10425_v49 = vadd.f32 %v19577_v53, %v24076_v56 }
 0x6cb   : > { %18805 = vmatprep.mubr.msk.bf16.mxu0 %vm1305_vm3, %v9595_v2  ;;  %v9599_v2 = vsel %vm2650_vm2, %v9596_v51, %v9598_v32  ;;  %v24095_v51 = vand.u32 127, %v281_v15  ;;  %v10542_v53 = vmax.f32 %v10422_v11, 0.0  ;;  %v287_v19 = vmul.u32 2, %v283_v28 }
 0x6cd   : > { %v18699_v22 = vpop.f32.mrb[4].mxu0  ;;  %vm289_vm7 = vcmp.eq.s32.totalorder %v24095_v51, %v287_v19 }
 0x6ce   : > { %v19579_v58 = vadd.f32 %v18699_v22, %v23460_v5  ;;  %v9833_v57 = vpop.f32.mrb[5].mxu0  ;;  %v10423_v5 = vadd.f32 %v19578_v29, %v24076_v56  ;;  %v10545_v29 = vmax.f32 %v10425_v49, 0.0 }
 0x6cf   : > { %v19580_v63 = vadd.f32 %v9833_v57, %v23470_v20  ;;  %v18700_v36 = vpop.f32.mrb[6].mxu0  ;;  %v10544_v20 = vmax.f32 %v10424_v25, 0.0 }
 0x6d0   : > { %v10428_v46 = vadd.f32 %v19579_v58, %v24076_v56  ;;  %v19581_v23 = vadd.f32 %v18700_v36, %v23475_v42  ;;  %v9836_v52 = vpop.f32.mrb[7].mxu0  ;;  %v286_v36 = vmul.u32 2, %v282_v31 }
 0x6d1   : > { %v10426_v22 = vadd.f32 %v19580_v63, %v24076_v56  ;;  %v19582_v39 = vadd.f32 %v9836_v52, %v23477_v41  ;;  %v10543_v41 = vmax.f32 %v10423_v5, 0.0 }
 0x6d2   : > { %v10548_v57 = vmax.f32 %v10428_v46, 0.0  ;;  %v10429_v34 = vadd.f32 %v19581_v23, %v24076_v56  ;;  %18806 = vmatmul.mubr.msk.bf16.gmra.mrb[112].mxu0 %vm1305_vm3, %v9597_v40  ;;  %vm288_vm6 = vcmp.eq.s32.totalorder %v24095_v51, %v286_v36 }
 0x6d3   : > { %v10546_v58 = vmax.f32 %v10426_v22, 0.0  ;;  %v10427_v42 = vadd.f32 %v19582_v39, %v24076_v56  ;;  %18809 = vmatprep.mubr.msk.bf16.mxu0 %vm1305_vm3, %v9599_v2 }
 0x6d4   : > { %v10664_v54 = vmax.f32 %v10544_v20, %v10548_v57  ;;  %v10549_v63 = vmax.f32 %v10429_v34, 0.0  ;;  %v295_v20 = vadd.s32 1, %v286_v36 }
 0x6d5   : > { %v10662_v52 = vmax.f32 %v10542_v53, %v10546_v58  ;;  %v10547_v25 = vmax.f32 %v10427_v42, 0.0  ;;  %v18703_v46 = vpop.f32.mrb[8].mxu0 }
 0x6d6   : > { %v10665_v23 = vmax.f32 %v10545_v29, %v10549_v63  ;;  %v19583_v40 = vadd.f32 %v18703_v46, %v23482_v1  ;;  %v9849_v15 = vpop.f32.mrb[9].mxu0  ;;  %v25550_v1 = vmov 0.0   ;;  %vm297_vm9 = vcmp.eq.s32.totalorder %v24095_v51, %v295_v20 }
 0x6d7   : > { %v10663_v26 = vmax.f32 %v10543_v41, %v10547_v25  ;;  %v19584_v11 = vadd.f32 %v9849_v15, %v23492_v30  ;;  %v18704_v22 = vpop.f32.mrb[10].mxu0  ;;  %v24107_v5 = vsel %vm288_vm6, 1.0, %v25550_v1  ;;  %v15816_v30 = vsel %vm289_vm7, 1.0, %v25550_v1 }
 0x6d8   : > { %v19585_v39 = vadd.f32 %v18704_v22, %v23496_v55  ;;  %v9852_v2 = vpop.f32.mrb[11].mxu0  ;;  %v10723_v31 = vpack.c.bf16 %v10665_v23, %v10664_v54  ;;  %v296_v55 = vadd.s32 1, %v287_v19  ;;  %v10432_v57 = vadd.f32 %v19583_v40, %v24076_v56 }
 0x6d9   : > { %v10722_v49 = vpack.c.bf16 %v10663_v26, %v10662_v52  ;;  %v19586_v28 = vadd.f32 %v9852_v2, %v23498_v17  ;;  %v10430_v53 = vadd.f32 %v19584_v11, %v24076_v56 }
 0x6da   : > { %18810 = vmatmul.mubr.msk.bf16.gmra.mrb[116].mxu0 %vm1305_vm3, %v9598_v32  ;;  %v10730_v17 = vsel %vm2650_vm2, %v10723_v31, 0  ;;  %v24115_v32 = vpack.c.bf16 %v15816_v30, %v24107_v5  ;;  %v10433_v19 = vadd.f32 %v19585_v39, %v24076_v56  ;;  %vm298_vm10 = vcmp.eq.s32.totalorder %v24095_v51, %v296_v55 }
 0x6db   : > { %18814 = vmatpush3.bf16.msra.mxu1 %v10722_v49  ;;  %v10431_v63 = vadd.f32 %v19586_v28, %v24076_v56  ;;  %v10552_v52 = vmax.f32 %v10432_v57, 0.0  ;;  %v10550_v23 = vmax.f32 %v10430_v53, 0.0 }
 0x6dc   : > { %18815 = vmatprep.subr.bf16.mxu1 %v25550_v1  ;;  %v10553_v15 = vmax.f32 %v10433_v19, 0.0 }
 0x6dd   : > { %v18707_v54 = vpop.f32.mrb[12].mxu0  ;;  %v10551_v39 = vmax.f32 %v10431_v63, 0.0 }
 0x6de   : > { %v19587_v34 = vadd.f32 %v18707_v54, %v23502_v4  ;;  %v9865_v26 = vpop.f32.mrb[13].mxu0 }
 0x6df   : > { %v19588_v58 = vadd.f32 %v9865_v26, %v23512_v33  ;;  %v18708_v42 = vpop.f32.mrb[14].mxu0  ;;  %18816 = vmatpush3.bf16.msra.mxu1 %v10730_v17 }
 0x6e0   : > { %v10436_v36 = vadd.f32 %v19587_v34, %v24076_v56  ;;  %v19589_v4 = vadd.f32 %v18708_v42, %v23515_v43  ;;  %v9868_v29 = vpop.f32.mrb[15].mxu0  ;;  %18821 = vmatprep.subr.bf16.mxu1 %v25550_v1  ;;  %v24132_v43 = vsel %vm297_vm9, 1.0, %v25550_v1 }
 0x6e1   : > { %v10434_v33 = vadd.f32 %v19588_v58, %v24076_v56  ;;  %v19590_v41 = vadd.f32 %v9868_v29, %v23517_v24  ;;  %v15818_v24 = vsel %vm298_vm10, 1.0, %v25550_v1 }
 0x6e2   : > { %v10556_v25 = vmax.f32 %v10436_v36, 0.0  ;;  %v10437_v46 = vadd.f32 %v19589_v4, %v24076_v56  ;;  %18818 = vmatmul.mubr.msk.bf16.vlgmr.msra.gmra.mrb[120].mxu1 %vm10724_vm8, %v24115_v32 }
 0x6e3   : > { %v10554_v40 = vmax.f32 %v10434_v33, 0.0  ;;  %v10435_v51 = vadd.f32 %v19590_v41, %v24076_v56  ;;  %18822 = vmatpush3.bf16.msra.mxu1 %v10722_v49  ;;  %18825 = vmatprep.mubr.msk.bf16.mxu1 %vm21481_vm5, %v25550_v1  ;;  %v24141_v49 = vpack.c.bf16 %v15818_v24, %v24132_v43 }
 0x6e4   : > { %v10668_v11 = vmax.f32 %v10552_v52, %v10556_v25  ;;  %v10557_v22 = vmax.f32 %v10437_v46, 0.0  ;;  %18823 = vmatprep.subr.bf16.mxu1 %v25550_v1 }
 0x6e5   : > { %v10666_v2 = vmax.f32 %v10550_v23, %v10554_v40  ;;  %v10555_v31 = vmax.f32 %v10435_v51, 0.0  ;;  %v18711_v28 = vpop.f32.mrb[16].mxu0 }
 0x6e6   : > { %v10669_v30 = vmax.f32 %v10553_v15, %v10557_v22  ;;  %v19591_v20 = vadd.f32 %v18711_v28, %v23519_v8  ;;  %v9881_v55 = vpop.f32.mrb[17].mxu0 }
 0x6e7   : > { %v10667_v54 = vmax.f32 %v10551_v39, %v10555_v31  ;;  %v19592_v57 = vadd.f32 %v9881_v55, %v23528_v35  ;;  %v18712_v34 = vpop.f32.mrb[18].mxu0  ;;  %18824 = vmatpush3.bf16.msra.mxu1 %v10730_v17 }
 0x6e8   : > { %v19593_v26 = vadd.f32 %v18712_v34, %v23531_v3  ;;  %v9884_v53 = vpop.f32.mrb[19].mxu0  ;;  %18829 = vmatprep.subr.bf16.mxu1 %v25550_v1  ;;  %v10821_v58 = vpack.c.bf16 %v10669_v30, %v10668_v11  ;;  %v10440_v35 = vadd.f32 %v19591_v20, %v24076_v56 }
 0x6e9   : > { %v10820_v42 = vpack.c.bf16 %v10667_v54, %v10666_v2  ;;  %v19594_v19 = vadd.f32 %v9884_v53, %v23533_v50  ;;  %v10438_v4 = vadd.f32 %v19592_v57, %v24076_v56 }
 0x6ea   : > { %18826 = vmatmul.mubr.msk.bf16.vlgmr.msra.gmra.mrb[124].mxu1 %vm10724_vm8, %v24141_v49  ;;  %v10823_v36 = vsel %vm2650_vm2, %v10821_v58, 0  ;;  %v10441_v63 = vadd.f32 %v19593_v26, %v24076_v56  ;;  %v10560_v23 = vmax.f32 %v10440_v35, 0.0 }
 0x6eb   : > { %18830 = vmatpush3.bf16.msra.mxu1 %v10820_v42  ;;  %18833 = vmatprep.mubr.msk.bf16.mxu1 %vm21481_vm5, %v25550_v1  ;;  %v10558_v51 = vmax.f32 %v10438_v4, 0.0 }
 0x6ec   : > { %18831 = vmatprep.subr.bf16.mxu1 %v25550_v1  ;;  %v10561_v15 = vmax.f32 %v10441_v63, 0.0 }
 0x6ed   : > { %v18715_v8 = vpop.f32.mrb[20].mxu0 }
 0x6ee   : > { %v19595_v3 = vadd.f32 %v18715_v8, %v23535_v9  ;;  %v9897_v17 = vpop.f32.mrb[21].mxu0  ;;  %v10439_v9 = vadd.f32 %v19594_v19, %v24076_v56 }
 0x6ef   : > { %v19596_v50 = vadd.f32 %v9897_v17, %v23544_v45  ;;  %v18716_v29 = vpop.f32.mrb[22].mxu0  ;;  %18832 = vmatpush3.bf16.msra.mxu1 %v10823_v36 }
 0x6f0   : > { %v10444_v33 = vadd.f32 %v19595_v3, %v24076_v56  ;;  %v19597_v41 = vadd.f32 %v18716_v29, %v23547_v12  ;;  %v9900_v52 = vpop.f32.mrb[23].mxu0  ;;  %18837 = vmatprep.subr.bf16.mxu1 %v25550_v1 }
 0x6f1   : > { %v10442_v25 = vadd.f32 %v19596_v50, %v24076_v56  ;;  %v19598_v46 = vadd.f32 %v9900_v52, %v23549_v44  ;;  %v10559_v44 = vmax.f32 %v10439_v9, 0.0 }
 0x6f2   : > { %v10564_v40 = vmax.f32 %v10444_v33, 0.0  ;;  %v10445_v45 = vadd.f32 %v19597_v41, %v24076_v56  ;;  %18834 = vmatmul.mubr.msk.bf16.vlgmr.msra.gmra.mrb[128].mxu1 %vm10724_vm8, %v24115_v32 }
 0x6f3   : > { %v10562_v24 = vmax.f32 %v10442_v25, 0.0  ;;  %v10443_v12 = vadd.f32 %v19598_v46, %v24076_v56  ;;  %18838 = vmatpush3.bf16.msra.mxu1 %v10820_v42  ;;  %18841 = vmatprep.mubr.msk.bf16.mxu1 %vm21481_vm5, %v25550_v1 }
 0x6f4   : > { %v10672_v11 = vmax.f32 %v10560_v23, %v10564_v40  ;;  %v10565_v22 = vmax.f32 %v10445_v45, 0.0  ;;  %18839 = vmatprep.subr.bf16.mxu1 %v25550_v1 }
 0x6f5   : > { %v10670_v39 = vmax.f32 %v10558_v51, %v10562_v24  ;;  %v10563_v2 = vmax.f32 %v10443_v12, 0.0  ;;  %v18719_v31 = vpop.f32.mrb[24].mxu0 }
 0x6f6   : > { %v10673_v28 = vmax.f32 %v10561_v15, %v10565_v22  ;;  %v19599_v30 = vadd.f32 %v18719_v31, %v23551_v0  ;;  %v9913_v20 = vpop.f32.mrb[25].mxu0 }
 0x6f7   : > { %v10671_v55 = vmax.f32 %v10559_v44, %v10563_v2  ;;  %v19600_v54 = vadd.f32 %v9913_v20, %v23560_v10  ;;  %v18720_v57 = vpop.f32.mrb[26].mxu0  ;;  %18840 = vmatpush3.bf16.msra.mxu1 %v10823_v36 }
 0x6f8   : > { %v19601_v34 = vadd.f32 %v18720_v57, %v23563_v16  ;;  %v9916_v26 = vpop.f32.mrb[27].mxu0  ;;  %18845 = vmatprep.subr.bf16.mxu1 %v25550_v1  ;;  %v10911_v53 = vpack.c.bf16 %v10673_v28, %v10672_v11  ;;  %v10448_v10 = vadd.f32 %v19599_v30, %v24076_v56 }
 0x6f9   : > { %v10910_v58 = vpack.c.bf16 %v10671_v55, %v10670_v39  ;;  %v19602_v42 = vadd.f32 %v9916_v26, %v23565_v18  ;;  %v10446_v35 = vadd.f32 %v19600_v54, %v24076_v56 }
 0x6fa   : > { %18842 = vmatmul.mubr.msk.bf16.vlgmr.msra.gmra.mrb[132].mxu1 %vm10724_vm8, %v24141_v49  ;;  %v10913_v8 = vsel %vm2650_vm2, %v10911_v53, 0  ;;  %v10449_v17 = vadd.f32 %v19601_v34, %v24076_v56  ;;  %v10568_v33 = vmax.f32 %v10448_v10, 0.0 }
 0x6fb   : > { %18846 = vmatpush3.bf16.msra.mxu1 %v10910_v58  ;;  %18849 = vmatprep.mubr.msk.bf16.mxu1 %vm21481_vm5, %v25550_v1  ;;  %v10566_v52 = vmax.f32 %v10446_v35, 0.0 }
 0x6fc   : > { %18847 = vmatprep.subr.bf16.mxu1 %v25550_v1  ;;  %v10569_v25 = vmax.f32 %v10449_v17, 0.0 }
 0x6fd   : > { %v18723_v0 = vpop.f32.mrb[28].mxu0 }
 0x6fe   : > { %v19603_v16 = vadd.f32 %v18723_v0, %v23567_v59  ;;  %v9929_v19 = vpop.f32.mrb[29].mxu0  ;;  %v10447_v59 = vadd.f32 %v19602_v42, %v24076_v56 }
 0x6ff   : > { %v19604_v18 = vadd.f32 %v9929_v19, %v23576_v7  ;;  %v18724_v3 = vpop.f32.mrb[30].mxu0  ;;  %18848 = vmatpush3.bf16.msra.mxu1 %v10913_v8 }
 0x700   : > { %v10452_v36 = vadd.f32 %v19603_v16, %v24076_v56  ;;  %v19605_v4 = vadd.f32 %v18724_v3, %v23579_v13  ;;  %v9932_v50 = vpop.f32.mrb[31].mxu0  ;;  %18853 = vmatprep.subr.bf16.mxu1 %v25550_v1 }
 0x701   : > { %v10450_v29 = vadd.f32 %v19604_v18, %v24076_v56  ;;  %v19606_v63 = vadd.f32 %v9932_v50, %v23581_v48  ;;  %v10567_v48 = vmax.f32 %v10447_v59, 0.0 }
 0x702   : > { %v10572_v41 = vmax.f32 %v10452_v36, 0.0  ;;  %v10453_v7 = vadd.f32 %v19605_v4, %v24076_v56  ;;  %18850 = vmatmul.mubr.msk.bf16.vlgmr.msra.gmra.mrb[136].mxu1 %vm10724_vm8, %v24115_v32 }
 0x703   : > { %v10570_v9 = vmax.f32 %v10450_v29, 0.0  ;;  %v10451_v13 = vadd.f32 %v19606_v63, %v24076_v56  ;;  %18854 = vmatpush3.bf16.msra.mxu1 %v10910_v58  ;;  %18857 = vmatprep.mubr.msk.bf16.mxu1 %vm21481_vm5, %v25550_v1 }
 0x704   : > { %v10676_v46 = vmax.f32 %v10568_v33, %v10572_v41  ;;  %v10573_v23 = vmax.f32 %v10453_v7, 0.0  ;;  %18855 = vmatprep.subr.bf16.mxu1 %v25550_v1  ;;  %v25553_v41 = vld [vmem:[#allocation21_spill] sm:$0xff] }
 0x705   : > { %v10674_v40 = vmax.f32 %v10566_v52, %v10570_v9  ;;  %v10571_v45 = vmax.f32 %v10451_v13, 0.0  ;;  %v18727_v51 = vpop.f32.mrb[32].mxu0  ;;  %v25554_v13 = vld [vmem:[#allocation22_spill] sm:$0xff] }
 0x706   : > { %v10677_v24 = vmax.f32 %v10569_v25, %v10573_v23  ;;  %v19607_v12 = vadd.f32 %v18727_v51, %v23583_v61  ;;  %v9945_v15 = vpop.f32.mrb[33].mxu0 }
 0x707   : > { %v10675_v11 = vmax.f32 %v10567_v48, %v10571_v45  ;;  %v19608_v22 = vadd.f32 %v9945_v15, %v23592_v60  ;;  %v18728_v44 = vpop.f32.mrb[34].mxu0  ;;  %18856 = vmatpush3.bf16.msra.mxu1 %v10913_v8 }
 0x708   : > { %v19609_v39 = vadd.f32 %v18728_v44, %v23595_v21  ;;  %v9948_v2 = vpop.f32.mrb[35].mxu0  ;;  %18861 = vmatprep.subr.bf16.mxu1 %v25550_v1  ;;  %v11001_v31 = vpack.c.bf16 %v10677_v24, %v10676_v46  ;;  %v10456_v60 = vadd.f32 %v19607_v12, %v24076_v56  ;;  %v25551_v21 = vld [vmem:[#allocation19_spill] sm:$0xff] }
 0x709   : > { %v11000_v28 = vpack.c.bf16 %v10675_v11, %v10674_v40  ;;  %v19610_v30 = vadd.f32 %v9948_v2, %v23597_v6  ;;  %v10454_v57 = vadd.f32 %v19608_v22, %v24076_v56  ;;  %v25552_v6 = vld [vmem:[#allocation13_spill] sm:$0xff] }
 0x70a   : > { %18858 = vmatmul.mubr.msk.bf16.vlgmr.msra.gmra.mrb[140].mxu1 %vm10724_vm8, %v24141_v49  ;;  %v11003_v54 = vsel %vm2650_vm2, %v11001_v31, 0  ;;  %v10457_v53 = vadd.f32 %v19609_v39, %v24076_v56  ;;  %v10576_v8 = vmax.f32 %v10456_v60, 0.0 }
 0x70b   : > { %18862 = vmatpush3.bf16.msra.mxu1 %v11000_v28  ;;  %18865 = vmatprep.mubr.msk.bf16.mxu1 %vm21481_vm5, %v25550_v1  ;;  %v10455_v10 = vadd.f32 %v19610_v30, %v24076_v56  ;;  %v10574_v3 = vmax.f32 %v10454_v57, 0.0 }
 0x70c   : > { %18863 = vmatprep.subr.bf16.mxu1 %v25550_v1  ;;  %v10577_v36 = vmax.f32 %v10457_v53, 0.0 }
 0x70d   : > { %v18731_v61 = vpop.f32.mrb[36].mxu0 }
 0x70e   : > { %v19611_v20 = vadd.f32 %v18731_v61, %v25551_v21  ;;  %v9961_v55 = vpop.f32.mrb[37].mxu0 }
 0x70f   : > { %v19612_v34 = vadd.f32 %v9961_v55, %v25552_v6  ;;  %v18732_v26 = vpop.f32.mrb[38].mxu0  ;;  %18864 = vmatpush3.bf16.msra.mxu1 %v11003_v54 }
 0x710   : > { %v10460_v58 = vadd.f32 %v19611_v20, %v24076_v56  ;;  %v19613_v42 = vadd.f32 %v18732_v26, %v23611_v38  ;;  %v9964_v0 = vpop.f32.mrb[39].mxu0  ;;  %18869 = vmatprep.subr.bf16.mxu1 %v25550_v1  ;;  %v25557_v20 = vld [vmem:[#allocation36_spill] sm:$0xff] }
 0x711   : > { %v10458_v16 = vadd.f32 %v19612_v34, %v24076_v56  ;;  %v19614_v19 = vadd.f32 %v9964_v0, %v23613_v37  ;;  %v10575_v37 = vmax.f32 %v10455_v10, 0.0 }
 0x712   : > { %v10580_v35 = vmax.f32 %v10460_v58, 0.0  ;;  %v10461_v18 = vadd.f32 %v19613_v42, %v24076_v56  ;;  %18866 = vmatmul.mubr.msk.bf16.vlgmr.msra.gmra.mrb[144].mxu1 %vm10724_vm8, %v24115_v32 }
 0x713   : > { %v10578_v17 = vmax.f32 %v10458_v16, 0.0  ;;  %v10459_v38 = vadd.f32 %v19614_v19, %v24076_v56  ;;  %18870 = vmatpush3.bf16.msra.mxu1 %v11000_v28  ;;  %18873 = vmatprep.mubr.msk.bf16.mxu1 %vm21481_vm5, %v25550_v1 }
 0x714   : > { %v10680_v4 = vmax.f32 %v10576_v8, %v10580_v35  ;;  %v10581_v50 = vmax.f32 %v10461_v18, 0.0  ;;  %18871 = vmatprep.subr.bf16.mxu1 %v25550_v1  ;;  %v25558_v35 = vld [vmem:[#allocation37_spill] sm:$0xff] }
 0x715   : > { %v10678_v59 = vmax.f32 %v10574_v3, %v10578_v17  ;;  %v10579_v29 = vmax.f32 %v10459_v38, 0.0  ;;  %v18735_v63 = vpop.f32.mrb[40].mxu0  ;;  %v25559_v38 = vld [vmem:[#allocation38_spill] sm:$0xff] }
 0x716   : > { %v10681_v33 = vmax.f32 %v10577_v36, %v10581_v50  ;;  %v19615_v7 = vadd.f32 %v18735_v63, %v25553_v41  ;;  %v9977_v52 = vpop.f32.mrb[41].mxu0  ;;  %v25560_v63 = vld [vmem:[#allocation39_spill] sm:$0xff] }
 0x717   : > { %v10679_v9 = vmax.f32 %v10575_v37, %v10579_v29  ;;  %v19616_v25 = vadd.f32 %v9977_v52, %v25554_v13  ;;  %v18736_v46 = vpop.f32.mrb[42].mxu0  ;;  %18872 = vmatpush3.bf16.msra.mxu1 %v11003_v54 }
 0x718   : > { %v19617_v23 = vadd.f32 %v18736_v46, %v23627_v14  ;;  %v9980_v48 = vpop.f32.mrb[43].mxu0  ;;  %18877 = vmatprep.subr.bf16.mxu1 %v25550_v1  ;;  %v11091_v40 = vpack.c.bf16 %v10681_v33, %v10680_v4  ;;  %v10464_v12 = vadd.f32 %v19615_v7, %v24076_v56  ;;  %v25555_v14 = vld [vmem:[#allocation20_spill] sm:$0xff]  ;;  %v25562_v46 = vld [vmem:[#allocation23_spill] sm:$0xff] }
 0x719   : > { %v11090_v45 = vpack.c.bf16 %v10679_v9, %v10678_v59  ;;  %v19618_v51 = vadd.f32 %v9980_v48, %v23629_v62  ;;  %v10462_v44 = vadd.f32 %v19616_v25, %v24076_v56  ;;  %v25556_v62 = vld [vmem:[#allocation35_spill] sm:$0xff] }
 0x71a   : > { %18874 = vmatmul.mubr.msk.bf16.vlgmr.msra.gmra.mrb[148].mxu1 %vm10724_vm8, %v24141_v49  ;;  %v11093_v22 = vsel %vm2650_vm2, %v11091_v40, 0  ;;  %v10465_v31 = vadd.f32 %v19617_v23, %v24076_v56  ;;  %v10584_v54 = vmax.f32 %v10464_v12, 0.0 }
 0x71b   : > { %18878 = vmatpush3.bf16.msra.mxu1 %v11090_v45  ;;  %18881 = vmatprep.mubr.msk.bf16.mxu1 %vm21481_vm5, %v25550_v1  ;;  %v10463_v60 = vadd.f32 %v19618_v51, %v24076_v56  ;;  %v10582_v34 = vmax.f32 %v10462_v44, 0.0  ;;  %v25563_v51 = vld [vmem:[#allocation41_spill] sm:$0xff] }
 0x71c   : > { %18879 = vmatprep.subr.bf16.mxu1 %v25550_v1  ;;  %v10585_v53 = vmax.f32 %v10465_v31, 0.0 }
 0x71d   : > { %v18739_v24 = vpop.f32.mrb[44].mxu0  ;;  %v10583_v0 = vmax.f32 %v10463_v60, 0.0 }
 0x71e   : > { %v19619_v15 = vadd.f32 %v18739_v24, %v25555_v14  ;;  %v9993_v11 = vpop.f32.mrb[45].mxu0 }
 0x71f   : > { %v19620_v39 = vadd.f32 %v9993_v11, %v25556_v62  ;;  %v18740_v2 = vpop.f32.mrb[46].mxu0  ;;  %18880 = vmatpush3.bf16.msra.mxu1 %v11093_v22  ;;  %v25564_v11 = vld [vmem:[#allocation42_spill] sm:$0xff] }
 0x720   : > { %v10468_v28 = vadd.f32 %v19619_v15, %v24076_v56  ;;  %v19621_v30 = vadd.f32 %v18740_v2, %v23643_v27  ;;  %v9996_v61 = vpop.f32.mrb[47].mxu0  ;;  %18885 = vmatprep.subr.bf16.mxu1 %v25550_v1 }
 0x721   : > { %v10466_v21 = vadd.f32 %v19620_v39, %v24076_v56  ;;  %v19622_v55 = vadd.f32 %v9996_v61, %v25557_v20 }
 0x722   : > { %v10588_v57 = vmax.f32 %v10468_v28, 0.0  ;;  %v10469_v6 = vadd.f32 %v19621_v30, %v24076_v56  ;;  %18882 = vmatmul.mubr.msk.bf16.vlgmr.msra.gmra.mrb[152].mxu1 %vm10724_vm8, %v24115_v32 }
 0x723   : > { %v10586_v26 = vmax.f32 %v10466_v21, 0.0  ;;  %v10467_v27 = vadd.f32 %v19622_v55, %v24076_v56  ;;  %18886 = vmatpush3.bf16.msra.mxu1 %v11090_v45  ;;  %18889 = vmatprep.mubr.msk.bf16.mxu1 %vm21481_vm5, %v25550_v1 }
 0x724   : > { %v10684_v58 = vmax.f32 %v10584_v54, %v10588_v57  ;;  %v10589_v42 = vmax.f32 %v10469_v6, 0.0  ;;  %18887 = vmatprep.subr.bf16.mxu1 %v25550_v1  ;;  %v25565_v6 = vld [vmem:[#allocation43_spill] sm:$0xff] }
 0x725   : > { %v10682_v10 = vmax.f32 %v10582_v34, %v10586_v26  ;;  %v10587_v16 = vmax.f32 %v10467_v27, 0.0  ;;  %v18743_v19 = vpop.f32.mrb[48].mxu0 }
 0x726   : > { %v10685_v8 = vmax.f32 %v10585_v53, %v10589_v42  ;;  %v19623_v18 = vadd.f32 %v18743_v19, %v25558_v35  ;;  %v10009_v3 = vpop.f32.mrb[49].mxu0  ;;  %v25566_v53 = vld [vmem:[#allocation44_spill] sm:$0xff]  ;;  %v25568_v35 = vld [vmem:[#allocation46_spill] sm:$0xff] }
 0x727   : > { %v10683_v17 = vmax.f32 %v10583_v0, %v10587_v16  ;;  %v19624_v36 = vadd.f32 %v10009_v3, %v25559_v38  ;;  %v18744_v4 = vpop.f32.mrb[50].mxu0  ;;  %18888 = vmatpush3.bf16.msra.mxu1 %v11093_v22  ;;  %v25567_v0 = vld [vmem:[#allocation45_spill] sm:$0xff]  ;;  %v25569_v38 = vld [vmem:[#allocation47_spill] sm:$0xff] }
 0x728   : > { %v19625_v50 = vadd.f32 %v18744_v4, %v23659_v47  ;;  %v10012_v37 = vpop.f32.mrb[51].mxu0  ;;  %18893 = vmatprep.subr.bf16.mxu1 %v25550_v1  ;;  %v11181_v59 = vpack.c.bf16 %v10685_v8, %v10684_v58  ;;  %v10472_v7 = vadd.f32 %v19623_v18, %v24076_v56  ;;  %v25561_v47 = vld [vmem:[#allocation40_spill] sm:$0xff] }
 0x729   : > { %v11180_v29 = vpack.c.bf16 %v10683_v17, %v10682_v10  ;;  %v19626_v33 = vadd.f32 %v10012_v37, %v25560_v63  ;;  %v10470_v25 = vadd.f32 %v19624_v36, %v24076_v56 }
 0x72a   : > { %18890 = vmatmul.mubr.msk.bf16.vlgmr.msra.gmra.mrb[156].mxu1 %vm10724_vm8, %v24141_v49  ;;  %v11183_v13 = vsel %vm2650_vm2, %v11181_v59, 0  ;;  %v10473_v40 = vadd.f32 %v19625_v50, %v24076_v56  ;;  %v10592_v44 = vmax.f32 %v10472_v7, 0.0  ;;  %v25570_v59 = vld [vmem:[#allocation24_spill] sm:$0xff] }
 0x72b   : > { %18894 = vmatpush3.bf16.msra.mxu1 %v11180_v29  ;;  %18897 = vmatprep.mubr.msk.bf16.mxu1 %vm21481_vm5, %v25550_v1  ;;  %v10471_v14 = vadd.f32 %v19626_v33, %v24076_v56  ;;  %v10590_v2 = vmax.f32 %v10470_v25, 0.0  ;;  %v25571_v7 = vld [vmem:[#allocation48_spill] sm:$0xff]  ;;  %v25572_v25 = vld [vmem:[#allocation49_spill] sm:$0xff] }
 0x72c   : > { %18895 = vmatprep.subr.bf16.mxu1 %v25550_v1  ;;  %v10593_v30 = vmax.f32 %v10473_v40, 0.0 }
 0x72d   : > { %v18747_v41 = vpop.f32.mrb[52].mxu0  ;;  %v10591_v21 = vmax.f32 %v10471_v14, 0.0 }
 0x72e   : > { %v19627_v52 = vadd.f32 %v18747_v41, %v25561_v47  ;;  %v10025_v9 = vpop.f32.mrb[53].mxu0 }
 0x72f   : > { %v19628_v23 = vadd.f32 %v10025_v9, %v25562_v46  ;;  %v18748_v48 = vpop.f32.mrb[54].mxu0  ;;  %18896 = vmatpush3.bf16.msra.mxu1 %v11183_v13 }
 0x730   : > { %v10476_v45 = vadd.f32 %v19627_v52, %v24076_v56  ;;  %v19629_v24 = vadd.f32 %v18748_v48, %v25563_v51  ;;  %v10028_v12 = vpop.f32.mrb[55].mxu0  ;;  %18901 = vmatprep.subr.bf16.mxu1 %v25550_v1 }
 0x731   : > { %v10474_v15 = vadd.f32 %v19628_v23, %v24076_v56  ;;  %v19630_v22 = vadd.f32 %v10028_v12, %v25564_v11 }
 0x732   : > { %v10596_v62 = vmax.f32 %v10476_v45, 0.0  ;;  %v10477_v39 = vadd.f32 %v19629_v24, %v24076_v56  ;;  %18898 = vmatmul.mubr.msk.bf16.vlgmr.msra.gmra.mrb[160].mxu1 %vm10724_vm8, %v24115_v32 }
 0x733   : > { %v10594_v31 = vmax.f32 %v10474_v15, 0.0  ;;  %v10475_v28 = vadd.f32 %v19630_v22, %v24076_v56  ;;  %18902 = vmatpush3.bf16.msra.mxu1 %v11180_v29  ;;  %18905 = vmatprep.mubr.msk.bf16.mxu1 %vm21481_vm5, %v25550_v1 }
 0x734   : > { %v10688_v61 = vmax.f32 %v10592_v44, %v10596_v62  ;;  %v10597_v60 = vmax.f32 %v10477_v39, 0.0  ;;  %18903 = vmatprep.subr.bf16.mxu1 %v25550_v1 }
 0x735   : > { %v10686_v20 = vmax.f32 %v10590_v2, %v10594_v31  ;;  %v10595_v55 = vmax.f32 %v10475_v28, 0.0  ;;  %v18751_v54 = vpop.f32.mrb[56].mxu0  ;;  %v25573_v2 = vld [vmem:[#allocation50_spill] sm:$0xff] }
 0x736   : > { %v10689_v57 = vmax.f32 %v10593_v30, %v10597_v60  ;;  %v19631_v34 = vadd.f32 %v18751_v54, %v25565_v6  ;;  %v10041_v26 = vpop.f32.mrb[57].mxu0 }
 0x737   : > { %v10687_v27 = vmax.f32 %v10591_v21, %v10595_v55  ;;  %v19632_v58 = vadd.f32 %v10041_v26, %v25566_v53  ;;  %v18752_v42 = vpop.f32.mrb[58].mxu0  ;;  %18904 = vmatpush3.bf16.msra.mxu1 %v11183_v13 }
 0x738   : > { %v19633_v10 = vadd.f32 %v18752_v42, %v25567_v0  ;;  %v10044_v16 = vpop.f32.mrb[59].mxu0  ;;  %18909 = vmatprep.subr.bf16.mxu1 %v25550_v1  ;;  %v11271_v19 = vpack.c.bf16 %v10689_v57, %v10688_v61  ;;  %v10480_v17 = vadd.f32 %v19631_v34, %v24076_v56  ;;  %v25574_v61 = vld [vmem:[#allocation25_spill] sm:$0xff]  ;;  %v25576_v34 = vld [vmem:[#allocation51_spill] sm:$0xff] }
 0x739   : > { %v11270_v8 = vpack.c.bf16 %v10687_v27, %v10686_v20  ;;  %v19634_v18 = vadd.f32 %v10044_v16, %v25568_v35  ;;  %v10478_v37 = vadd.f32 %v19632_v58, %v24076_v56  ;;  %v25575_v20 = vld [vmem:[#allocation26_spill] sm:$0xff]  ;;  %v25577_v58 = vld [vmem:[#allocation52_spill] sm:$0xff] }
 0x73a   : > { %18906 = vmatmul.mubr.msk.bf16.vlgmr.msra.gmra.mrb[164].mxu1 %vm10724_vm8, %v24141_v49  ;;  %v11273_v50 = vsel %vm2650_vm2, %v11271_v19, 0  ;;  %v10481_v33 = vadd.f32 %v19633_v10, %v24076_v56  ;;  %v10600_v23 = vmax.f32 %v10480_v17, 0.0  ;;  %v25578_v19 = vld [vmem:[#allocation28_spill] sm:$0xff]  ;;  %v25579_v17 = vld [vmem:[#allocation27_spill] sm:$0xff] }
 0x73b   : > { %18910 = vmatpush3.bf16.msra.mxu1 %v11270_v8  ;;  %18913 = vmatprep.mubr.msk.bf16.mxu1 %vm21481_vm5, %v25550_v1  ;;  %v10479_v9 = vadd.f32 %v19634_v18, %v24076_v56  ;;  %v10598_v45 = vmax.f32 %v10478_v37, 0.0  ;;  %v25580_v37 = vld [vmem:[#allocation53_spill] sm:$0xff] }
 0x73c   : > { %18911 = vmatprep.subr.bf16.mxu1 %v25550_v1  ;;  %v10601_v12 = vmax.f32 %v10481_v33, 0.0 }
 0x73d   : > { %v18755_v3 = vpop.f32.mrb[60].mxu0  ;;  %v10599_v11 = vmax.f32 %v10479_v9, 0.0 }
 0x73e   : > { %v19635_v36 = vadd.f32 %v18755_v3, %v25569_v38  ;;  %v10057_v4 = vpop.f32.mrb[61].mxu0 }
 0x73f   : > { %v19636_v29 = vadd.f32 %v10057_v4, %v25570_v59  ;;  %v18756_v63 = vpop.f32.mrb[62].mxu0  ;;  %18912 = vmatpush3.bf16.msra.mxu1 %v11273_v50 }
 0x740   : > { %v10484_v41 = vadd.f32 %v19635_v36, %v24076_v56  ;;  %v19637_v47 = vadd.f32 %v18756_v63, %v25571_v7  ;;  %v10060_v52 = vpop.f32.mrb[63].mxu0  ;;  %18917 = vmatprep.subr.bf16.mxu1 %v25550_v1 }
 0x741   : > { %v10482_v13 = vadd.f32 %v19636_v29, %v24076_v56  ;;  %v19638_v46 = vadd.f32 %v10060_v52, %v25572_v25 }
 0x742   : > { %v10604_v48 = vmax.f32 %v10484_v41, 0.0  ;;  %v10485_v40 = vadd.f32 %v19637_v47, %v24076_v56  ;;  %18914 = vmatmul.mubr.msk.bf16.vlgmr.msra.gmra.mrb[168].mxu1 %vm10724_vm8, %v24115_v32 }
 0x743   : > { %v10602_v51 = vmax.f32 %v10482_v13, 0.0  ;;  %v10483_v24 = vadd.f32 %v19638_v46, %v24076_v56  ;;  %18918 = vmatpush3.bf16.msra.mxu1 %v11270_v8  ;;  %18921 = vmatprep.mubr.msk.bf16.mxu1 %vm21481_vm5, %v25550_v1 }
 0x744   : > { %v10692_v14 = vmax.f32 %v10600_v23, %v10604_v48  ;;  %v10605_v15 = vmax.f32 %v10485_v40, 0.0  ;;  %18919 = vmatprep.subr.bf16.mxu1 %v25550_v1 }
 0x745   : > { %v10690_v22 = vmax.f32 %v10598_v45, %v10602_v51  ;;  %v10603_v44 = vmax.f32 %v10483_v24, 0.0  ;;  %v18759_v62 = vpop.f32.mrb[64].mxu0  ;;  %v25581_v45 = vld [vmem:[#allocation54_spill] sm:$0xff] }
 0x746   : > { %v10693_v39 = vmax.f32 %v10601_v12, %v10605_v15  ;;  %v19639_v31 = vadd.f32 %v18759_v62, %v25573_v2  ;;  %v10073_v28 = vpop.f32.mrb[65].mxu0 }
 0x747   : > { %v10691_v30 = vmax.f32 %v10599_v11, %v10603_v44  ;;  %v19640_v60 = vadd.f32 %v10073_v28, %v25574_v61  ;;  %v18760_v21 = vpop.f32.mrb[66].mxu0  ;;  %18920 = vmatpush3.bf16.msra.mxu1 %v11273_v50 }
 0x748   : > { %v19641_v55 = vadd.f32 %v18760_v21, %v25575_v20  ;;  %v10076_v54 = vpop.f32.mrb[67].mxu0  ;;  %18925 = vmatprep.subr.bf16.mxu1 %v25550_v1  ;;  %v11361_v57 = vpack.c.bf16 %v10693_v39, %v10692_v14  ;;  %v10488_v53 = vadd.f32 %v19639_v31, %v24076_v56  ;;  %v25582_v14 = vld [vmem:[#allocation14_spill] sm:$0xff]  ;;  %v25584_v31 = vld [vmem:[#allocation55_spill] sm:$0xff] }
 0x749   : > { %v11360_v6 = vpack.c.bf16 %v10691_v30, %v10690_v22  ;;  %v19642_v26 = vadd.f32 %v10076_v54, %v25576_v34  ;;  %v10486_v16 = vadd.f32 %v19640_v60, %v24076_v56  ;;  %v25583_v22 = vld [vmem:[#allocation15_spill] sm:$0xff]  ;;  %v25585_v60 = vld [vmem:[#allocation56_spill] sm:$0xff] }
 0x74a   : > { %18922 = vmatmul.mubr.msk.bf16.vlgmr.msra.gmra.mrb[172].mxu1 %vm10724_vm8, %v24141_v49  ;;  %v11363_v10 = vsel %vm2650_vm2, %v11361_v57, 0  ;;  %v10489_v18 = vadd.f32 %v19641_v55, %v24076_v56  ;;  %v10608_v29 = vmax.f32 %v10488_v53, 0.0  ;;  %v25586_v57 = vld [vmem:[#allocation16_spill] sm:$0xff] }
 0x74b   : > { %18926 = vmatpush3.bf16.msra.mxu1 %v11360_v6  ;;  %18929 = vmatprep.mubr.msk.bf16.mxu1 %vm21481_vm5, %v25550_v1  ;;  %v10487_v4 = vadd.f32 %v19642_v26, %v24076_v56  ;;  %v10606_v41 = vmax.f32 %v10486_v16, 0.0  ;;  %v25587_v53 = vld [vmem:[#allocation12_spill] sm:$0xff]  ;;  %v25588_v16 = vld [vmem:[#allocation57_spill] sm:$0xff] }
 0x74c   : > { %18927 = vmatprep.subr.bf16.mxu1 %v25550_v1  ;;  %v10609_v52 = vmax.f32 %v10489_v18, 0.0 }
 0x74d   : > { %v18763_v27 = vpop.f32.mrb[68].mxu0  ;;  %v10607_v25 = vmax.f32 %v10487_v4, 0.0 }
 0x74e   : > { %v19643_v42 = vadd.f32 %v18763_v27, %v25577_v58  ;;  %v10089_v0 = vpop.f32.mrb[69].mxu0 }
 0x74f   : > { %v19644_v8 = vadd.f32 %v10089_v0, %v25578_v19  ;;  %v18764_v35 = vpop.f32.mrb[70].mxu0  ;;  %18928 = vmatpush3.bf16.msra.mxu1 %v11363_v10 }
 0x750   : > { %v10492_v3 = vadd.f32 %v19643_v42, %v24076_v56  ;;  %v19645_v38 = vadd.f32 %v18764_v35, %v25579_v17  ;;  %v10092_v36 = vpop.f32.mrb[71].mxu0  ;;  %18933 = vmatprep.subr.bf16.mxu1 %v25550_v1 }
 0x751   : > { %v10490_v50 = vadd.f32 %v19644_v8, %v24076_v56  ;;  %v19646_v59 = vadd.f32 %v10092_v36, %v25580_v37 }
 0x752   : > { %v10612_v63 = vmax.f32 %v10492_v3, 0.0  ;;  %v10493_v33 = vadd.f32 %v19645_v38, %v24076_v56  ;;  %18930 = vmatmul.mubr.msk.bf16.vlgmr.msra.gmra.mrb[176].mxu1 %vm10724_vm8, %v24115_v32 }
 0x753   : > { %v10610_v7 = vmax.f32 %v10490_v50, 0.0  ;;  %v10491_v47 = vadd.f32 %v19646_v59, %v24076_v56  ;;  %18934 = vmatpush3.bf16.msra.mxu1 %v11360_v6  ;;  %18937 = vmatprep.mubr.msk.bf16.mxu1 %vm21481_vm5, %v25550_v1 }
 0x754   : > { %v10696_v9 = vmax.f32 %v10608_v29, %v10612_v63  ;;  %v10613_v13 = vmax.f32 %v10493_v33, 0.0  ;;  %18935 = vmatprep.subr.bf16.mxu1 %v25550_v1 }
 0x755   : > { %v10694_v46 = vmax.f32 %v10606_v41, %v10610_v7  ;;  %v10611_v23 = vmax.f32 %v10491_v47, 0.0  ;;  %v18767_v48 = vpop.f32.mrb[72].mxu0  ;;  %v25589_v41 = vld [vmem:[#allocation58_spill] sm:$0xff] }
 0x756   : > { %v10697_v40 = vmax.f32 %v10609_v52, %v10613_v13  ;;  %v19647_v51 = vadd.f32 %v18767_v48, %v25581_v45  ;;  %v10105_v24 = vpop.f32.mrb[73].mxu0  ;;  %v25592_v45 = vld [vmem:[#allocation59_spill] sm:$0xff] }
 0x757   : > { %v10695_v12 = vmax.f32 %v10607_v25, %v10611_v23  ;;  %v19648_v15 = vadd.f32 %v10105_v24, %v25582_v14  ;;  %v18768_v11 = vpop.f32.mrb[74].mxu0  ;;  %18936 = vmatpush3.bf16.msra.mxu1 %v11363_v10  ;;  %v25591_v25 = vld [vmem:[#allocation30_spill] sm:$0xff] }
 0x758   : > { %v19649_v44 = vadd.f32 %v18768_v11, %v25583_v22  ;;  %v10108_v62 = vpop.f32.mrb[75].mxu0  ;;  %18941 = vmatprep.subr.bf16.mxu1 %v25550_v1  ;;  %v11451_v39 = vpack.c.bf16 %v10697_v40, %v10696_v9  ;;  %v10496_v61 = vadd.f32 %v19647_v51, %v24076_v56  ;;  %v25590_v9 = vld [vmem:[#allocation29_spill] sm:$0xff] }
 0x759   : > { %v11450_v2 = vpack.c.bf16 %v10695_v12, %v10694_v46  ;;  %v19650_v28 = vadd.f32 %v10108_v62, %v25584_v31  ;;  %v10494_v54 = vadd.f32 %v19648_v15, %v24076_v56  ;;  %v24384_v12 = vld [vmem:[#allocation4] ss:$0 sm:$0xff]  ;;  %v25593_v15 = vld [vmem:[#allocation60_spill] sm:$0xff] }
 0x75a   : > { %18938 = vmatmul.mubr.msk.bf16.vlgmr.msra.gmra.mrb[180].mxu1 %vm10724_vm8, %v24141_v49  ;;  %v11453_v55 = vsel %vm2650_vm2, %v11451_v39, 0  ;;  %v10497_v26 = vadd.f32 %v19649_v44, %v24076_v56  ;;  %v10616_v8 = vmax.f32 %v10496_v61, 0.0  ;;  %v25594_v39 = vld [vmem:[#allocation31_spill] sm:$0xff]  ;;  %v25595_v61 = vld [vmem:[#allocation32_spill] sm:$0xff] }
 0x75b   : > { %18942 = vmatpush3.bf16.msra.mxu1 %v11450_v2  ;;  %18945 = vmatprep.mubr.msk.bf16.mxu1 %vm21481_vm5, %v25550_v1  ;;  %v10495_v0 = vadd.f32 %v19650_v28, %v24076_v56  ;;  %v10614_v3 = vmax.f32 %v10494_v54, 0.0  ;;  %v25596_v54 = vld [vmem:[#allocation61_spill] sm:$0xff] }
 0x75c   : > { %18943 = vmatprep.subr.bf16.mxu1 %v25550_v1  ;;  %v10617_v36 = vmax.f32 %v10497_v26, 0.0 }
 0x75d   : > { %v18771_v30 = vpop.f32.mrb[76].mxu0  ;;  %v10615_v37 = vmax.f32 %v10495_v0, 0.0 }
 0x75e   : > { %v19651_v21 = vadd.f32 %v18771_v30, %v25585_v60  ;;  %v10121_v20 = vpop.f32.mrb[77].mxu0 }
 0x75f   : > { %v19652_v6 = vadd.f32 %v10121_v20, %v25586_v57  ;;  %v18772_v34 = vpop.f32.mrb[78].mxu0  ;;  %18944 = vmatpush3.bf16.msra.mxu1 %v11453_v55 }
 0x760   : > { %v10500_v27 = vadd.f32 %v19651_v21, %v24076_v56  ;;  %v19653_v58 = vadd.f32 %v18772_v34, %v25587_v53  ;;  %v10124_v42 = vpop.f32.mrb[79].mxu0  ;;  %18949 = vmatprep.subr.bf16.mxu1 %v25550_v1 }
 0x761   : > { %v10498_v10 = vadd.f32 %v19652_v6, %v24076_v56  ;;  %v19654_v19 = vadd.f32 %v10124_v42, %v25588_v16 }
 0x762   : > { %v10620_v35 = vmax.f32 %v10500_v27, 0.0  ;;  %v10501_v18 = vadd.f32 %v19653_v58, %v24076_v56  ;;  %18946 = vmatmul.mubr.msk.bf16.vlgmr.msra.gmra.mrb[184].mxu1 %vm10724_vm8, %v24115_v32 }
 0x763   : > { %v10618_v17 = vmax.f32 %v10498_v10, 0.0  ;;  %v10499_v38 = vadd.f32 %v19654_v19, %v24076_v56  ;;  %18950 = vmatpush3.bf16.msra.mxu1 %v11450_v2  ;;  %18953 = vmatprep.mubr.msk.bf16.mxu1 %vm21481_vm5, %v25550_v1 }
 0x764   : > { %v10700_v4 = vmax.f32 %v10616_v8, %v10620_v35  ;;  %v10621_v50 = vmax.f32 %v10501_v18, 0.0  ;;  %18951 = vmatprep.subr.bf16.mxu1 %v25550_v1 }
 0x765   : > { %v10698_v59 = vmax.f32 %v10614_v3, %v10618_v17  ;;  %v10619_v29 = vmax.f32 %v10499_v38, 0.0  ;;  %v18775_v63 = vpop.f32.mrb[80].mxu0  ;;  %v25597_v3 = vld [vmem:[#allocation62_spill] sm:$0xff] }
 0x766   : > { %v10701_v33 = vmax.f32 %v10617_v36, %v10621_v50  ;;  %v19655_v7 = vadd.f32 %v18775_v63, %v25589_v41  ;;  %v10137_v47 = vpop.f32.mrb[81].mxu0 }
 0x767   : > { %v10699_v52 = vmax.f32 %v10615_v37, %v10619_v29  ;;  %v19656_v56 = vadd.f32 %v10137_v47, %v25590_v9  ;;  %v18776_v13 = vpop.f32.mrb[82].mxu0  ;;  %18952 = vmatpush3.bf16.msra.mxu1 %v11453_v55 }
 0x768   : > { %v19657_v46 = vadd.f32 %v18776_v13, %v25591_v25  ;;  %v10140_v23 = vpop.f32.mrb[83].mxu0  ;;  %18957 = vmatprep.subr.bf16.mxu1 %v25550_v1  ;;  %v11541_v48 = vpack.c.bf16 %v10701_v33, %v10700_v4  ;;  %v10504_v14 = vadd.f32 %v24384_v12, %v19655_v7  ;;  %v25598_v4 = vld [vmem:[#allocation33_spill] sm:$0xff]  ;;  %v25600_v7 = vld [vmem:[#allocation18_spill] sm:$0xff] }
 0x769   : > { %v11540_v40 = vpack.c.bf16 %v10699_v52, %v10698_v59  ;;  %v19658_v51 = vadd.f32 %v10140_v23, %v25592_v45  ;;  %v10502_v62 = vadd.f32 %v24384_v12, %v19656_v56  ;;  %v25599_v59 = vld [vmem:[#allocation17_spill] sm:$0xff]  ;;  %v25601_v56 = vld [vmem:[#allocation63_spill] sm:$0xff] }
 0x76a   : > { %18954 = vmatmul.mubr.msk.bf16.vlgmr.msra.gmra.mrb[188].mxu1 %vm10724_vm8, %v24141_v49  ;;  %v11543_v44 = vsel %vm2650_vm2, %v11541_v48, 0  ;;  %v10505_v28 = vadd.f32 %v24384_v12, %v19657_v46  ;;  %v10624_v6 = vmax.f32 %v10504_v14, 0.0  ;;  %v25602_v48 = vld [vmem:[#allocation34_spill] sm:$0xff]  ;;  %v25603_v14 = vld [vmem:[#allocation64_spill] sm:$0xff] }
 0x76b   : > { %18958 = vmatpush3.bf16.msra.mxu1 %v11540_v40  ;;  %18961 = vmatprep.mubr.msk.bf16.mxu1 %vm21481_vm5, %v25550_v1  ;;  %v10503_v20 = vadd.f32 %v24384_v12, %v19658_v51  ;;  %v10622_v27 = vmax.f32 %v10502_v62, 0.0  ;;  %v25604_v62 = vld [vmem:[#allocation65_spill] sm:$0xff] }
 0x76c   : > { %18959 = vmatprep.subr.bf16.mxu1 %v25550_v1  ;;  %v10625_v42 = vmax.f32 %v10505_v28, 0.0 }
 0x76d   : > { %v18779_v24 = vpop.f32.mrb[84].mxu0  ;;  %v10623_v16 = vmax.f32 %v10503_v20, 0.0 }
 0x76e   : > { %v19659_v11 = vadd.f32 %v18779_v24, %v25593_v15  ;;  %v10153_v22 = vpop.f32.mrb[85].mxu0 }
 0x76f   : > { %v19660_v2 = vadd.f32 %v10153_v22, %v25594_v39  ;;  %v18780_v31 = vpop.f32.mrb[86].mxu0  ;;  %18960 = vmatpush3.bf16.msra.mxu1 %v11543_v44 }
 0x770   : > { %v10508_v30 = vadd.f32 %v24384_v12, %v19659_v11  ;;  %v19661_v60 = vadd.f32 %v18780_v31, %v25595_v61  ;;  %v10156_v21 = vpop.f32.mrb[87].mxu0  ;;  %18965 = vmatprep.subr.bf16.mxu1 %v25550_v1 }
 0x771   : > { %v10506_v55 = vadd.f32 %v24384_v12, %v19660_v2  ;;  %v19662_v57 = vadd.f32 %v10156_v21, %v25596_v54 }
 0x772   : > { %v10628_v34 = vmax.f32 %v10508_v30, 0.0  ;;  %v10509_v26 = vadd.f32 %v24384_v12, %v19661_v60  ;;  %18962 = vmatmul.mubr.msk.bf16.vlgmr.msra.gmra.mrb[192].mxu1 %vm10724_vm8, %v24115_v32 }
 0x773   : > { %v10626_v53 = vmax.f32 %v10506_v55, 0.0  ;;  %v10507_v58 = vadd.f32 %v24384_v12, %v19662_v57  ;;  %18966 = vmatpush3.bf16.msra.mxu1 %v11540_v40  ;;  %18969 = vmatprep.mubr.msk.bf16.mxu1 %vm21481_vm5, %v25550_v1 }
 0x774   : > { %v10704_v0 = vmax.f32 %v10624_v6, %v10628_v34  ;;  %v10629_v10 = vmax.f32 %v10509_v26, 0.0  ;;  %18967 = vmatprep.subr.bf16.mxu1 %v25550_v1 }
 0x775   : > { %v10702_v19 = vmax.f32 %v10622_v27, %v10626_v53  ;;  %v10627_v8 = vmax.f32 %v10507_v58, 0.0  ;;  %v18783_v35 = vpop.f32.mrb[88].mxu0  ;;  %v25605_v27 = vld [vmem:[#allocation66_spill] sm:$0xff] }
 0x776   : > { %v10705_v18 = vmax.f32 %v10625_v42, %v10629_v10  ;;  %v19663_v17 = vadd.f32 %v18783_v35, %v25597_v3  ;;  %v10169_v38 = vpop.f32.mrb[89].mxu0 }
 0x777   : > { %v10703_v36 = vmax.f32 %v10623_v16, %v10627_v8  ;;  %v19664_v50 = vadd.f32 %v10169_v38, %v25598_v4  ;;  %v18784_v37 = vpop.f32.mrb[90].mxu0  ;;  %18968 = vmatpush3.bf16.msra.mxu1 %v11543_v44 }
 0x778   : > { %v19665_v29 = vadd.f32 %v18784_v37, %v25599_v59  ;;  %v10172_v63 = vpop.f32.mrb[91].mxu0  ;;  %18973 = vmatprep.subr.bf16.mxu1 %v25550_v1  ;;  %v11631_v33 = vpack.c.bf16 %v10705_v18, %v10704_v0  ;;  %v10512_v9 = vadd.f32 %v24384_v12, %v19663_v17  ;;  %v25606_v0 = vld [vmem:[#allocation67_spill] sm:$0xff]  ;;  %v25608_v17 = vld [vmem:[#allocation69_spill] sm:$0xff] }
 0x779   : > { %v11630_v41 = vpack.c.bf16 %v10703_v36, %v10702_v19  ;;  %v19666_v47 = vadd.f32 %v10172_v63, %v25600_v7  ;;  %v10510_v23 = vadd.f32 %v24384_v12, %v19664_v50  ;;  %v25607_v19 = vld [vmem:[#allocation68_spill] sm:$0xff]  ;;  %v25609_v50 = vld [vmem:[#allocation70_spill] sm:$0xff] }
 0x77a   : > { %18970 = vmatmul.mubr.msk.bf16.vlgmr.msra.gmra.mrb[196].mxu1 %vm10724_vm8, %v24141_v49  ;;  %v11633_v46 = vsel %vm2650_vm2, %v11631_v33, 0  ;;  %v10513_v51 = vadd.f32 %v24384_v12, %v19665_v29  ;;  %v10632_v2 = vmax.f32 %v10512_v9, 0.0  ;;  %v25610_v33 = vld [vmem:[#allocation71_spill] sm:$0xff]  ;;  %v25611_v9 = vld [vmem:[#allocation72_spill] sm:$0xff] }
 0x77b   : > { %18974 = vmatpush3.bf16.msra.mxu1 %v11630_v41  ;;  %18977 = vmatprep.mubr.msk.bf16.mxu1 %vm21481_vm5, %v25550_v1  ;;  %v10511_v22 = vadd.f32 %v24384_v12, %v19666_v47  ;;  %v10630_v30 = vmax.f32 %v10510_v23, 0.0  ;;  %v25612_v23 = vld [vmem:[#allocation73_spill] sm:$0xff] }
 0x77c   : > { %18975 = vmatprep.subr.bf16.mxu1 %v25550_v1  ;;  %v10633_v21 = vmax.f32 %v10513_v51, 0.0 }
 0x77d   : > { %v18787_v52 = vpop.f32.mrb[92].mxu0  ;;  %v10631_v54 = vmax.f32 %v10511_v22, 0.0 }
 0x77e   : > { %v19667_v13 = vadd.f32 %v18787_v52, %v25601_v56  ;;  %v10185_v25 = vpop.f32.mrb[93].mxu0 }
 0x77f   : > { %v19668_v40 = vadd.f32 %v10185_v25, %v25602_v48  ;;  %v18788_v45 = vpop.f32.mrb[94].mxu0  ;;  %18976 = vmatpush3.bf16.msra.mxu1 %v11633_v46 }
 0x780   : > { %v10516_v24 = vadd.f32 %v24384_v12, %v19667_v13  ;;  %v19669_v15 = vadd.f32 %v18788_v45, %v25603_v14  ;;  %v10188_v11 = vpop.f32.mrb[95].mxu0  ;;  %18981 = vmatprep.subr.bf16.mxu1 %v25550_v1 }
 0x781   : > { %v10514_v44 = vadd.f32 %v24384_v12, %v19668_v40  ;;  %v19670_v39 = vadd.f32 %v10188_v11, %v25604_v62 }
 0x782   : > { %v10636_v31 = vmax.f32 %v10516_v24, 0.0  ;;  %v10517_v28 = vadd.f32 %v24384_v12, %v19669_v15  ;;  %18978 = vmatmul.mubr.msk.bf16.vlgmr.msra.gmra.mrb[200].mxu1 %vm10724_vm8, %v24115_v32 }
 0x783   : > { %v10634_v61 = vmax.f32 %v10514_v44, 0.0  ;;  %v10515_v60 = vadd.f32 %v24384_v12, %v19670_v39  ;;  %18982 = vmatpush3.bf16.msra.mxu1 %v11630_v41  ;;  %18985 = vmatprep.mubr.msk.bf16.mxu1 %vm21481_vm5, %v25550_v1 }
 0x784   : > { %v10708_v20 = vmax.f32 %v10632_v2, %v10636_v31  ;;  %v10637_v55 = vmax.f32 %v10517_v28, 0.0  ;;  %18983 = vmatprep.subr.bf16.mxu1 %v25550_v1 }
 0x785   : > { %v10706_v57 = vmax.f32 %v10630_v30, %v10634_v61  ;;  %v10635_v6 = vmax.f32 %v10515_v60, 0.0  ;;  %v18791_v34 = vpop.f32.mrb[96].mxu0  ;;  %v25613_v30 = vld [vmem:[#allocation74_spill] sm:$0xff] }
 0x786   : > { %v10709_v26 = vmax.f32 %v10633_v21, %v10637_v55  ;;  %v19671_v53 = vadd.f32 %v18791_v34, %v25605_v27  ;;  %v10201_v58 = vpop.f32.mrb[97].mxu0 }
 0x787   : > { %v10707_v42 = vmax.f32 %v10631_v54, %v10635_v6  ;;  %v19672_v10 = vadd.f32 %v10201_v58, %v25606_v0  ;;  %v18792_v16 = vpop.f32.mrb[98].mxu0  ;;  %18984 = vmatpush3.bf16.msra.mxu1 %v11633_v46 }
 0x788   : > { %v19673_v8 = vadd.f32 %v18792_v16, %v25607_v19  ;;  %v10204_v35 = vpop.f32.mrb[99].mxu0  ;;  %18989 = vmatprep.subr.bf16.mxu1 %v25550_v1  ;;  %v11721_v18 = vpack.c.bf16 %v10709_v26, %v10708_v20  ;;  %v10520_v4 = vadd.f32 %v24384_v12, %v19671_v53  ;;  %v25614_v20 = vld [vmem:[#allocation75_spill] sm:$0xff]  ;;  %v25616_v53 = vld [vmem:[#allocation77_spill] sm:$0xff] }
 0x789   : > { %v11720_v3 = vpack.c.bf16 %v10707_v42, %v10706_v57  ;;  %v19674_v38 = vadd.f32 %v10204_v35, %v25608_v17  ;;  %v10518_v63 = vadd.f32 %v24384_v12, %v19672_v10  ;;  %v25615_v57 = vld [vmem:[#allocation76_spill] sm:$0xff]  ;;  %v25617_v10 = vld [vmem:[#allocation78_spill] sm:$0xff] }
 0x78a   : > { %18986 = vmatmul.mubr.msk.bf16.vlgmr.msra.gmra.mrb[204].mxu1 %vm10724_vm8, %v24141_v49  ;;  %v11723_v29 = vsel %vm2650_vm2, %v11721_v18, 0  ;;  %v10521_v47 = vadd.f32 %v24384_v12, %v19673_v8  ;;  %v10640_v40 = vmax.f32 %v10520_v4, 0.0  ;;  %v25618_v18 = vld [vmem:[#allocation79_spill] sm:$0xff]  ;;  %v25619_v4 = vld [vmem:[#allocation80_spill] sm:$0xff] }
 0x78b   : > { %18990 = vmatpush3.bf16.msra.mxu1 %v11720_v3  ;;  %18993 = vmatprep.mubr.msk.bf16.mxu1 %vm21481_vm5, %v25550_v1  ;;  %v10519_v25 = vadd.f32 %v24384_v12, %v19674_v38  ;;  %v10638_v24 = vmax.f32 %v10518_v63, 0.0  ;;  %v25620_v63 = vld [vmem:[#allocation81_spill] sm:$0xff] }
 0x78c   : > { %18991 = vmatprep.subr.bf16.mxu1 %v25550_v1  ;;  %v10641_v11 = vmax.f32 %v10521_v47, 0.0 }
 0x78d   : > { %v18795_v36 = vpop.f32.mrb[100].mxu0  ;;  %v10639_v62 = vmax.f32 %v10519_v25, 0.0 }
 0x78e   : > { %v19675_v37 = vadd.f32 %v18795_v36, %v25609_v50  ;;  %v10217_v59 = vpop.f32.mrb[101].mxu0 }
 0x78f   : > { %v19676_v41 = vadd.f32 %v10217_v59, %v25610_v33  ;;  %v18796_v7 = vpop.f32.mrb[102].mxu0  ;;  %18992 = vmatpush3.bf16.msra.mxu1 %v11723_v29 }
 0x790   : > { %v10524_v52 = vadd.f32 %v24384_v12, %v19675_v37  ;;  %v19677_v56 = vadd.f32 %v18796_v7, %v25611_v9  ;;  %v10220_v13 = vpop.f32.mrb[103].mxu0  ;;  %18997 = vmatprep.subr.bf16.mxu1 %v25550_v1 }
 0x791   : > { %v10522_v46 = vadd.f32 %v24384_v12, %v19676_v41  ;;  %v19678_v48 = vadd.f32 %v10220_v13, %v25612_v23 }
 0x792   : > { %v10644_v45 = vmax.f32 %v10524_v52, 0.0  ;;  %v10525_v51 = vadd.f32 %v24384_v12, %v19677_v56  ;;  %18994 = vmatmul.mubr.msk.bf16.vlgmr.msra.gmra.mrb[208].mxu1 %vm10724_vm8, %v24115_v32 }
 0x793   : > { %v10642_v14 = vmax.f32 %v10522_v46, 0.0  ;;  %v10523_v15 = vadd.f32 %v24384_v12, %v19678_v48  ;;  %18998 = vmatpush3.bf16.msra.mxu1 %v11720_v3  ;;  %19001 = vmatprep.mubr.msk.bf16.mxu1 %vm21481_vm5, %v25550_v1 }
 0x794   : > { %v10712_v22 = vmax.f32 %v10640_v40, %v10644_v45  ;;  %v10645_v44 = vmax.f32 %v10525_v51, 0.0  ;;  %18999 = vmatprep.subr.bf16.mxu1 %v25550_v1 }
 0x795   : > { %v10710_v39 = vmax.f32 %v10638_v24, %v10642_v14  ;;  %v10643_v2 = vmax.f32 %v10523_v15, 0.0  ;;  %v18799_v31 = vpop.f32.mrb[104].mxu0  ;;  %v25621_v24 = vld [vmem:[#allocation82_spill] sm:$0xff] }
 0x796   : > { %v10713_v28 = vmax.f32 %v10641_v11, %v10645_v44  ;;  %v19679_v61 = vadd.f32 %v18799_v31, %v25613_v30  ;;  %v10233_v60 = vpop.f32.mrb[105].mxu0 }
 0x797   : > { %v10711_v21 = vmax.f32 %v10639_v62, %v10643_v2  ;;  %v19680_v55 = vadd.f32 %v10233_v60, %v25614_v20  ;;  %v18800_v54 = vpop.f32.mrb[106].mxu0  ;;  %19000 = vmatpush3.bf16.msra.mxu1 %v11723_v29 }
 0x798   : > { %v19681_v6 = vadd.f32 %v18800_v54, %v25615_v57  ;;  %v10236_v34 = vpop.f32.mrb[107].mxu0  ;;  %19005 = vmatprep.subr.bf16.mxu1 %v25550_v1  ;;  %v11811_v26 = vpack.c.bf16 %v10713_v28, %v10712_v22  ;;  %v10528_v0 = vadd.f32 %v24384_v12, %v19679_v61  ;;  %v25622_v22 = vld [vmem:[#allocation83_spill] sm:$0xff]  ;;  %v25624_v61 = vld [vmem:[#allocation85_spill] sm:$0xff] }
 0x799   : > { %v11810_v27 = vpack.c.bf16 %v10711_v21, %v10710_v39  ;;  %v19682_v58 = vadd.f32 %v10236_v34, %v25616_v53  ;;  %v10526_v35 = vadd.f32 %v24384_v12, %v19680_v55  ;;  %v25623_v39 = vld [vmem:[#allocation84_spill] sm:$0xff]  ;;  %v25625_v55 = vld [vmem:[#allocation86_spill] sm:$0xff] }
 0x79a   : > { %19002 = vmatmul.mubr.msk.bf16.vlgmr.msra.gmra.mrb[212].mxu1 %vm10724_vm8, %v24141_v49  ;;  %v11813_v8 = vsel %vm2650_vm2, %v11811_v26, 0  ;;  %v10529_v38 = vadd.f32 %v24384_v12, %v19681_v6  ;;  %v10648_v41 = vmax.f32 %v10528_v0, 0.0  ;;  %v25626_v26 = vld [vmem:[#allocation87_spill] sm:$0xff]  ;;  %v25627_v0 = vld [vmem:[#allocation88_spill] sm:$0xff] }
 0x79b   : > { %19006 = vmatpush3.bf16.msra.mxu1 %v11810_v27  ;;  %19009 = vmatprep.mubr.msk.bf16.mxu1 %vm21481_vm5, %v25550_v1  ;;  %v10527_v59 = vadd.f32 %v24384_v12, %v19682_v58  ;;  %v10646_v52 = vmax.f32 %v10526_v35, 0.0  ;;  %v25628_v35 = vld [vmem:[#allocation89_spill] sm:$0xff] }
 0x79c   : > { %19007 = vmatprep.subr.bf16.mxu1 %v25550_v1  ;;  %v10649_v13 = vmax.f32 %v10529_v38, 0.0 }
 0x79d   : > { %v18803_v42 = vpop.f32.mrb[108].mxu0  ;;  %v10647_v23 = vmax.f32 %v10527_v59, 0.0 }
 0x79e   : > { %v19683_v16 = vadd.f32 %v18803_v42, %v25617_v10  ;;  %v10249_v19 = vpop.f32.mrb[109].mxu0 }
 0x79f   : > { %v19684_v3 = vadd.f32 %v10249_v19, %v25618_v18  ;;  %v18804_v17 = vpop.f32.mrb[110].mxu0  ;;  %19008 = vmatpush3.bf16.msra.mxu1 %v11813_v8 }
 0x7a0   : > { %v10532_v36 = vadd.f32 %v24384_v12, %v19683_v16  ;;  %v19685_v50 = vadd.f32 %v18804_v17, %v25619_v4  ;;  %v10252_v37 = vpop.f32.mrb[111].mxu0  ;;  %19013 = vmatprep.subr.bf16.mxu1 %v25550_v1 }
 0x7a1   : > { %v10530_v29 = vadd.f32 %v24384_v12, %v19684_v3  ;;  %v19686_v33 = vadd.f32 %v10252_v37, %v25620_v63 }
 0x7a2   : > { %v10652_v7 = vmax.f32 %v10532_v36, 0.0  ;;  %v10533_v47 = vadd.f32 %v24384_v12, %v19685_v50  ;;  %19010 = vmatmul.mubr.msk.bf16.vlgmr.msra.gmra.mrb[216].mxu1 %vm10724_vm8, %v24115_v32 }
 0x7a3   : > { %v10650_v9 = vmax.f32 %v10530_v29, 0.0  ;;  %v10531_v56 = vadd.f32 %v24384_v12, %v19686_v33  ;;  %19014 = vmatpush3.bf16.msra.mxu1 %v11810_v27  ;;  %19017 = vmatprep.mubr.msk.bf16.mxu1 %vm21481_vm5, %v25550_v1 }
 0x7a4   : > { %v10716_v25 = vmax.f32 %v10648_v41, %v10652_v7  ;;  %v10653_v46 = vmax.f32 %v10533_v47, 0.0  ;;  %19015 = vmatprep.subr.bf16.mxu1 %v25550_v1 }
 0x7a5   : > { %v10714_v48 = vmax.f32 %v10646_v52, %v10650_v9  ;;  %v10651_v40 = vmax.f32 %v10531_v56, 0.0  ;;  %v18807_v45 = vpop.f32.mrb[112].mxu0 }
 0x7a6   : > { %v10717_v51 = vmax.f32 %v10649_v13, %v10653_v46  ;;  %v19687_v14 = vadd.f32 %v18807_v45, %v25621_v24  ;;  %v10265_v15 = vpop.f32.mrb[113].mxu0 }
 0x7a7   : > { %v10715_v11 = vmax.f32 %v10647_v23, %v10651_v40  ;;  %v19688_v44 = vadd.f32 %v10265_v15, %v25622_v22  ;;  %v18808_v62 = vpop.f32.mrb[114].mxu0  ;;  %19016 = vmatpush3.bf16.msra.mxu1 %v11813_v8  ;;  %v21138_v22 = vld [vmem:[#allocation6 + $0x10] sm:$0xff]  }
 0x7a8   : > { %v19689_v2 = vadd.f32 %v18808_v62, %v25623_v39  ;;  %v10268_v31 = vpop.f32.mrb[115].mxu0  ;;  %19021 = vmatprep.subr.bf16.mxu1 %v25550_v1  ;;  %v11901_v28 = vpack.c.bf16 %v10717_v51, %v10716_v25  ;;  %v10536_v20 = vadd.f32 %v24384_v12, %v19687_v14 }
 0x7a9   : > { %v11900_v30 = vpack.c.bf16 %v10715_v11, %v10714_v48  ;;  %v19690_v60 = vadd.f32 %v10268_v31, %v25624_v61  ;;  %v10534_v34 = vadd.f32 %v24384_v12, %v19688_v44 }
 0x7aa   : > { %19018 = vmatmul.mubr.msk.bf16.vlgmr.msra.gmra.mrb[220].mxu1 %vm10724_vm8, %v24141_v49  ;;  %v11903_v6 = vsel %vm2650_vm2, %v11901_v28, 0  ;;  %v10537_v58 = vadd.f32 %v24384_v12, %v19689_v2  ;;  %v10656_v3 = vmax.f32 %v10536_v20, 0.0 }
 0x7ab   : > { %19022 = vmatpush3.bf16.msra.mxu1 %v11900_v30  ;;  %19025 = vmatprep.mubr.msk.bf16.mxu1 %vm21481_vm5, %v25550_v1  ;;  %v10535_v19 = vadd.f32 %v24384_v12, %v19690_v60  ;;  %v10654_v36 = vmax.f32 %v10534_v34, 0.0 }
 0x7ac   : > { %19023 = vmatprep.subr.bf16.mxu1 %v25550_v1  ;;  %v10657_v37 = vmax.f32 %v10537_v58, 0.0 }
 0x7ad   : > { %v18811_v21 = vpop.f32.mrb[116].mxu0  ;;  %v10655_v63 = vmax.f32 %v10535_v19, 0.0 }
 0x7ae   : > { %v19691_v54 = vadd.f32 %v18811_v21, %v25625_v55  ;;  %v10281_v57 = vpop.f32.mrb[117].mxu0 }
 0x7af   : > { %v19692_v27 = vadd.f32 %v10281_v57, %v25626_v26  ;;  %v18812_v53 = vpop.f32.mrb[118].mxu0  ;;  %19024 = vmatpush3.bf16.msra.mxu1 %v11903_v6 }
 0x7b0   : > { %v10540_v42 = vadd.f32 %v24384_v12, %v19691_v54  ;;  %v19693_v10 = vadd.f32 %v18812_v53, %v25627_v0  ;;  %v10284_v16 = vpop.f32.mrb[119].mxu0  ;;  %19029 = vmatprep.subr.bf16.mxu1 %v25550_v1 }
 0x7b1   : > { %v10538_v8 = vadd.f32 %v24384_v12, %v19692_v27  ;;  %v19694_v18 = vadd.f32 %v10284_v16, %v25628_v35 }
 0x7b2   : > { %v10660_v17 = vmax.f32 %v10540_v42, 0.0  ;;  %v10541_v38 = vadd.f32 %v24384_v12, %v19693_v10  ;;  %19026 = vmatmul.mubr.msk.bf16.vlgmr.msra.gmra.mrb[224].mxu1 %vm10724_vm8, %v24115_v32 }
 0x7b3   : > { %v10658_v4 = vmax.f32 %v10538_v8, 0.0  ;;  %v10539_v50 = vadd.f32 %v24384_v12, %v19694_v18  ;;  %19030 = vmatpush3.bf16.msra.mxu1 %v11900_v30  ;;  %19033 = vmatprep.mubr.msk.bf16.mxu1 %vm21481_vm5, %v25550_v1 }
 0x7b4   : > { %v10720_v59 = vmax.f32 %v10656_v3, %v10660_v17  ;;  %v10661_v29 = vmax.f32 %v10541_v38, 0.0  ;;  %19031 = vmatprep.subr.bf16.mxu1 %v25550_v1 }
 0x7b5   : > { %v10718_v33 = vmax.f32 %v10654_v36, %v10658_v4  ;;  %v10659_v41 = vmax.f32 %v10539_v50, 0.0  ;;  %v10766_v7 = vpop.f32.mrb[120].mxu1 }
 0x7b6   : > { %v10721_v47 = vmax.f32 %v10657_v37, %v10661_v29  ;;  %v18819_v52 = vpop.f32.mrb[121].mxu1 }
 0x7b7   : > { %v10719_v9 = vmax.f32 %v10655_v63, %v10659_v41  ;;  %v10769_v56 = vpop.f32.mrb[122].mxu1  ;;  %19032 = vmatpush3.bf16.msra.mxu1 %v11903_v6 }
 0x7b8   : > { %v18820_v13 = vpop.f32.mrb[123].mxu1  ;;  %19037 = vmatprep.subr.bf16.mxu1 %v25550_v1  ;;  %v11991_v12 = vpack.c.bf16 %v10721_v47, %v10720_v59 }
 0x7b9   : > { %v11990_v25 = vpack.c.bf16 %v10719_v9, %v10718_v33 }
 0x7ba   : > { %19034 = vmatmul.mubr.msk.bf16.vlgmr.msra.gmra.mrb[228].mxu1 %vm10724_vm8, %v24141_v49  ;;  %v11993_v40 = vsel %vm2650_vm2, %v11991_v12, 0 }
 0x7bb   : > { %19038 = vmatpush3.bf16.msra.mxu1 %v11990_v25  ;;  %19041 = vmatprep.mubr.msk.bf16.mxu1 %vm21481_vm5, %v25550_v1 }
 0x7bc   : > { %19039 = vmatprep.subr.bf16.mxu1 %v25550_v1 }
 0x7bd   : > { %v10810_v46 = vpop.f32.mrb[124].mxu1 }
 0x7be   : > { %v10817_v23 = vmax.f32 %v10766_v7, %v10810_v46  ;;  %v18827_v48 = vpop.f32.mrb[125].mxu1 }
 0x7bf   : > { %v10813_v45 = vpop.f32.mrb[126].mxu1  ;;  %19040 = vmatpush3.bf16.msra.mxu1 %v11993_v40 }
 0x7c0   : > { %v10818_v51 = vmax.f32 %v10769_v56, %v10813_v45  ;;  %v18828_v24 = vpop.f32.mrb[127].mxu1  ;;  %19045 = vmatprep.subr.bf16.mxu1 %v25550_v1 }
 0x7c2   : > { %v24529_v14 = vpack.c.bf16 %v10818_v51, %v10817_v23  ;;  %19042 = vmatmul.mubr.msk.bf16.vlgmr.msra.gmra.mrb[232].mxu1 %vm10724_vm8, %v24115_v32  ;;  %v21139_v32 = vld [vmem:[#allocation6 + $0x18] sm:$0xff]  }
 0x7c3   : > { %19046 = vmatpush3.bf16.msra.mxu1 %v11990_v25  ;;  %19049 = vmatprep.mubr.msk.bf16.mxu1 %vm21481_vm5, %v25550_v1 }
 0x7c4   : > { %v12083_v15 = vshll.u32 %v24529_v14, 16  ;;  %19047 = vmatprep.subr.bf16.mxu1 %v25550_v1  ;;  %v12081_v11 = vshrl.u32 %v24529_v14, 16 }
 0x7c5   : > { %v10859_v44 = vpop.f32.mrb[128].mxu1 }
 0x7c6   : > { %v18835_v62 = vpop.f32.mrb[129].mxu1  ;;  %v12755_v39 = vrot.slane %v12081_v11, 1  ;;  %v12756_v2 = vrot.slane %v12083_v15, 2  ;;  %v12085_v6 = vrot.slane %v12083_v15, 1 }
 0x7c7   : > { %v10862_v31 = vpop.f32.mrb[130].mxu1  ;;  %19048 = vmatpush3.bf16.msra.mxu1 %v11993_v40 }
 0x7c8   : > { %v18836_v28 = vpop.f32.mrb[131].mxu1  ;;  %19053 = vmatprep.subr.bf16.mxu1 %v21138_v22  ;;  %v12757_v30 = vor.u32 %v12756_v2, %v12755_v39 }
 0x7ca   : > { %19050 = vmatmul.mubr.msk.bf16.vlgmr.msra.gmra.mrb[236].mxu1 %vm10724_vm8, %v24141_v49  ;;  %v12086_v49 = vor.u32 %v12085_v6, %v12081_v11 }
 0x7cb   : > { %19054 = vmatpush3.bf16.msra.mxu1 %v21138_v22 }
 0x7cc   : > { %19055 = vmatprep.subr.bf16.mxu1 %v21139_v32 }
 0x7cd   : > { %v10900_v61 = vpop.f32.mrb[132].mxu1 }
 0x7ce   : > { %v10907_v60 = vmax.f32 %v10859_v44, %v10900_v61  ;;  %v18843_v21 = vpop.f32.mrb[133].mxu1 }
 0x7cf   : > { %v10903_v20 = vpop.f32.mrb[134].mxu1  ;;  %19056 = vmatpush3.bf16.msra.mxu1 %v21139_v32  ;;  %v21141_v21 = vld [vmem:[#allocation6 + $0x8] sm:$0xff]  }
 0x7d0   : > { %v10908_v55 = vmax.f32 %v10862_v31, %v10903_v20  ;;  %v18844_v54 = vpop.f32.mrb[135].mxu1 }
 0x7d2   : > { %v24540_v57 = vpack.c.bf16 %v10908_v55, %v10907_v60 }
 0x7d4   : > { %v12088_v34 = vshll.u32 %v24540_v57, 16  ;;  %v12092_v26 = vshrl.u32 %v24540_v57, 16 }
 0x7d5   : > { %v10949_v27 = vpop.f32.mrb[136].mxu1 }
 0x7d6   : > { %v18851_v53 = vpop.f32.mrb[137].mxu1  ;;  %v12090_v58 = vrot.slane %v12088_v34, 1  ;;  %v12758_v42 = vrot.slane %v12092_v26, 1  ;;  %v12759_v0 = vrot.slane %v12088_v34, 2 }
 0x7d7   : > { %v10952_v10 = vpop.f32.mrb[138].mxu1 }
 0x7d8   : > { %v18852_v16 = vpop.f32.mrb[139].mxu1  ;;  %v12091_v19 = vsel %vm825_vm4, %v12086_v49, %v12090_v58  ;;  %v12760_v8 = vor.u32 %v12759_v0, %v12758_v42  ;;  %v12094_v63 = vor.u32 %v12092_v26, %v12090_v58 }
 0x7d9   : > { %19057 = vmatprep.mubr.msk.bf16.mxu1 %vm12187_vm11, %v12091_v19 }
 0x7da   : > { %v24547_v35 = vsel %vm12754_vm12, %v12757_v30, %v12760_v8  ;;  %v21140_v30 = vld [vmem:[#allocation6] sm:$0xff]  }
 0x7db   : > { %19081 = vmatprep.subr.bf16.mxu1 %v21140_v30 }
 0x7dd   : > { %v10990_v18 = vpop.f32.mrb[140].mxu1 }
 0x7de   : > { %v10997_v3 = vmax.f32 %v10949_v27, %v10990_v18  ;;  %v18859_v17 = vpop.f32.mrb[141].mxu1 }
 0x7df   : > { %v10993_v38 = vpop.f32.mrb[142].mxu1 }
 0x7e0   : > { %v10998_v36 = vmax.f32 %v10952_v10, %v10993_v38  ;;  %v18860_v4 = vpop.f32.mrb[143].mxu1 }
 0x7e2   : > { %v24549_v50 = vpack.c.bf16 %v10998_v36, %v10997_v3 }
 0x7e4   : > { %v12096_v37 = vshll.u32 %v24549_v50, 16  ;;  %v12100_v59 = vshrl.u32 %v24549_v50, 16 }
 0x7e5   : > { %v11039_v29 = vpop.f32.mrb[144].mxu1 }
 0x7e6   : > { %v18867_v33 = vpop.f32.mrb[145].mxu1  ;;  %v12098_v41 = vrot.slane %v12096_v37, 1  ;;  %v12763_v7 = vrot.slane %v12096_v37, 2  ;;  %v12762_v47 = vrot.slane %v12100_v59, 1 }
 0x7e7   : > { %v11042_v52 = vpop.f32.mrb[146].mxu1 }
 0x7e8   : > { %v18868_v9 = vpop.f32.mrb[147].mxu1  ;;  %v24554_v56 = vsel %vm825_vm4, %v12094_v63, %v12098_v41  ;;  %v12764_v13 = vor.u32 %v12763_v7, %v12762_v47  ;;  %v12102_v44 = vor.u32 %v12100_v59, %v12098_v41 }
 0x7e9   : > { %19058 = vmatmul.mubr.msk.bf16.vlgmr.msra.gmra.mrb[240].mxu1 %vm12187_vm11, %v24554_v56 }
 0x7ea   : > { %v24559_v12 = vsel %vm12754_vm12, %v12760_v8, %v12764_v13  ;;  %19082 = vmatpush3.bf16.msra.mxu1 %v21140_v30 }
 0x7eb   : > { %19083 = vmatprep.subr.bf16.mxu1 %v21141_v21 }
 0x7ed   : > { %v11080_v25 = vpop.f32.mrb[148].mxu1 }
 0x7ee   : > { %v11087_v46 = vmax.f32 %v11039_v29, %v11080_v25  ;;  %v18875_v23 = vpop.f32.mrb[149].mxu1  ;;  %19084 = vmatpush3.bf16.msra.mxu1 %v21141_v21 }
 0x7ef   : > { %v11083_v48 = vpop.f32.mrb[150].mxu1 }
 0x7f0   : > { %v11088_v40 = vmax.f32 %v11042_v52, %v11083_v48  ;;  %v18876_v45 = vpop.f32.mrb[151].mxu1 }
 0x7f2   : > { %v24561_v51 = vpack.c.bf16 %v11088_v40, %v11087_v46 }
 0x7f4   : > { %v12104_v24 = vshll.u32 %v24561_v51, 16  ;;  %v12108_v15 = vshrl.u32 %v24561_v51, 16 }
 0x7f5   : > { %v11129_v11 = vpop.f32.mrb[152].mxu1 }
 0x7f6   : > { %v18883_v22 = vpop.f32.mrb[153].mxu1  ;;  %v12106_v62 = vrot.slane %v12104_v24, 1  ;;  %v12766_v39 = vrot.slane %v12108_v15, 1  ;;  %v12767_v2 = vrot.slane %v12104_v24, 2 }
 0x7f7   : > { %v11132_v31 = vpop.f32.mrb[154].mxu1 }
 0x7f8   : > { %v18884_v28 = vpop.f32.mrb[155].mxu1  ;;  %v24566_v32 = vsel %vm825_vm4, %v12102_v44, %v12106_v62  ;;  %v12768_v61 = vor.u32 %v12767_v2, %v12766_v39  ;;  %v12110_v0 = vor.u32 %v12108_v15, %v12106_v62 }
 0x7f9   : > { %19061 = vmatprep.mubr.msk.bf16.mxu1 %vm12187_vm11, %v24566_v32 }
 0x7fa   : > { %v24571_v60 = vsel %vm12754_vm12, %v12764_v13, %v12768_v61 }
 0x7fd   : > { %v11170_v20 = vpop.f32.mrb[156].mxu1 }
 0x7fe   : > { %v11177_v55 = vmax.f32 %v11129_v11, %v11170_v20  ;;  %v18891_v54 = vpop.f32.mrb[157].mxu1 }
 0x7ff   : > { %v11173_v6 = vpop.f32.mrb[158].mxu1 }
 0x800   : > { %v11178_v34 = vmax.f32 %v11132_v31, %v11173_v6  ;;  %v18892_v26 = vpop.f32.mrb[159].mxu1 }
 0x802   : > { %v24573_v27 = vpack.c.bf16 %v11178_v34, %v11177_v55 }
 0x804   : > { %v12112_v53 = vshll.u32 %v24573_v27, 16  ;;  %v12116_v49 = vshrl.u32 %v24573_v27, 16 }
 0x805   : > { %v11219_v58 = vpop.f32.mrb[160].mxu1 }
 0x806   : > { %v18899_v42 = vpop.f32.mrb[161].mxu1  ;;  %v12114_v10 = vrot.slane %v12112_v53, 1  ;;  %v12770_v16 = vrot.slane %v12116_v49, 1  ;;  %v12771_v19 = vrot.slane %v12112_v53, 2  ;;  %v24604_v53 = vld [vmem:[#allocation6 + $0x20] sm:$0xff]  }
 0x807   : > { %v11222_v8 = vpop.f32.mrb[162].mxu1  ;;  %19109 = vmatprep.subr.bf16.mxu1 %v24604_v53 }
 0x808   : > { %v18900_v18 = vpop.f32.mrb[163].mxu1  ;;  %v24578_v3 = vsel %vm825_vm4, %v12110_v0, %v12114_v10  ;;  %v12772_v17 = vor.u32 %v12771_v19, %v12770_v16  ;;  %v12118_v9 = vor.u32 %v12116_v49, %v12114_v10 }
 0x809   : > { %19062 = vmatmul.mubr.msk.bf16.gmra.mrb[244].mxu1 %vm12187_vm11, %v24578_v3 }
 0x80a   : > { %v24583_v38 = vsel %vm12754_vm12, %v12768_v61, %v12772_v17 }
 0x80d   : > { %v11260_v36 = vpop.f32.mrb[164].mxu1 }
 0x80e   : > { %v11267_v4 = vmax.f32 %v11219_v58, %v11260_v36  ;;  %v18907_v37 = vpop.f32.mrb[165].mxu1 }
 0x80f   : > { %v11263_v59 = vpop.f32.mrb[166].mxu1 }
 0x810   : > { %v11268_v29 = vmax.f32 %v11222_v8, %v11263_v59  ;;  %v18908_v63 = vpop.f32.mrb[167].mxu1 }
 0x812   : > { %v24585_v33 = vpack.c.bf16 %v11268_v29, %v11267_v4 }
 0x814   : > { %v12120_v41 = vshll.u32 %v24585_v33, 16  ;;  %v12124_v7 = vshrl.u32 %v24585_v33, 16 }
 0x815   : > { %v11309_v47 = vpop.f32.mrb[168].mxu1 }
 0x816   : > { %v18915_v52 = vpop.f32.mrb[169].mxu1  ;;  %v12122_v13 = vrot.slane %v12120_v41, 1  ;;  %v12774_v25 = vrot.slane %v12124_v7, 1  ;;  %v12775_v46 = vrot.slane %v12120_v41, 2 }
 0x817   : > { %v11312_v23 = vpop.f32.mrb[170].mxu1 }
 0x818   : > { %v18916_v48 = vpop.f32.mrb[171].mxu1  ;;  %v24590_v40 = vsel %vm825_vm4, %v12118_v9, %v12122_v13  ;;  %v12776_v45 = vor.u32 %v12775_v46, %v12774_v25  ;;  %v12126_v21 = vor.u32 %v12124_v7, %v12122_v13 }
 0x819   : > { %19065 = vmatprep.mubr.msk.bf16.mxu1 %vm12187_vm11, %v24590_v40 }
 0x81a   : > { %v24595_v24 = vsel %vm12754_vm12, %v12772_v17, %v12776_v45 }
 0x81d   : > { %v11350_v15 = vpop.f32.mrb[172].mxu1 }
 0x81e   : > { %v11357_v11 = vmax.f32 %v11309_v47, %v11350_v15  ;;  %v18923_v22 = vpop.f32.mrb[173].mxu1 }
 0x81f   : > { %v11353_v44 = vpop.f32.mrb[174].mxu1 }
 0x820   : > { %v11358_v62 = vmax.f32 %v11312_v23, %v11353_v44  ;;  %v18924_v39 = vpop.f32.mrb[175].mxu1 }
 0x822   : > { %v24597_v2 = vpack.c.bf16 %v11358_v62, %v11357_v11 }
 0x824   : > { %v12128_v31 = vshll.u32 %v24597_v2, 16  ;;  %v12132_v28 = vshrl.u32 %v24597_v2, 16 }
 0x825   : > { %v11399_v30 = vpop.f32.mrb[176].mxu1 }
 0x826   : > { %v18931_v61 = vpop.f32.mrb[177].mxu1  ;;  %v12130_v20 = vrot.slane %v12128_v31, 1  ;;  %v12778_v55 = vrot.slane %v12132_v28, 1  ;;  %v12779_v54 = vrot.slane %v12128_v31, 2 }
 0x827   : > { %v11402_v6 = vpop.f32.mrb[178].mxu1 }
 0x828   : > { %v18932_v34 = vpop.f32.mrb[179].mxu1  ;;  %v24602_v26 = vsel %vm825_vm4, %v12126_v21, %v12130_v20  ;;  %v12780_v49 = vor.u32 %v12779_v54, %v12778_v55  ;;  %v12134_v59 = vor.u32 %v12132_v28, %v12130_v20 }
 0x829   : > { %19066 = vmatmul.mubr.msk.bf16.gmra.mrb[248].mxu1 %vm12187_vm11, %v24602_v26 }
 0x82a   : > { %v24610_v58 = vsel %vm12754_vm12, %v12776_v45, %v12780_v49 }
 0x82d   : > { %v11440_v42 = vpop.f32.mrb[180].mxu1 }
 0x82e   : > { %v11447_v0 = vmax.f32 %v11399_v30, %v11440_v42  ;;  %v18939_v10 = vpop.f32.mrb[181].mxu1 }
 0x82f   : > { %v11443_v16 = vpop.f32.mrb[182].mxu1 }
 0x830   : > { %v11448_v19 = vmax.f32 %v11402_v6, %v11443_v16  ;;  %v18940_v8 = vpop.f32.mrb[183].mxu1 }
 0x832   : > { %v24612_v18 = vpack.c.bf16 %v11448_v19, %v11447_v0 }
 0x834   : > { %v12136_v17 = vshll.u32 %v24612_v18, 16  ;;  %v12140_v36 = vshrl.u32 %v24612_v18, 16 }
 0x835   : > { %v11489_v4 = vpop.f32.mrb[184].mxu1 }
 0x836   : > { %v18947_v37 = vpop.f32.mrb[185].mxu1  ;;  %v12138_v29 = vrot.slane %v12136_v17, 1  ;;  %v12782_v63 = vrot.slane %v12140_v36, 1  ;;  %v12783_v41 = vrot.slane %v12136_v17, 2 }
 0x837   : > { %v11492_v7 = vpop.f32.mrb[186].mxu1 }
 0x838   : > { %v18948_v47 = vpop.f32.mrb[187].mxu1  ;;  %v24617_v52 = vsel %vm825_vm4, %v12134_v59, %v12138_v29  ;;  %v12784_v9 = vor.u32 %v12783_v41, %v12782_v63  ;;  %v12142_v31 = vor.u32 %v12140_v36, %v12138_v29 }
 0x839   : > { %19069 = vmatprep.mubr.msk.bf16.mxu1 %vm12187_vm11, %v24617_v52 }
 0x83a   : > { %v24622_v13 = vsel %vm12754_vm12, %v12780_v49, %v12784_v9 }
 0x83d   : > { %v11530_v25 = vpop.f32.mrb[188].mxu1 }
 0x83e   : > { %v11537_v46 = vmax.f32 %v11489_v4, %v11530_v25  ;;  %v18955_v23 = vpop.f32.mrb[189].mxu1 }
 0x83f   : > { %v11533_v48 = vpop.f32.mrb[190].mxu1 }
 0x840   : > { %v11538_v45 = vmax.f32 %v11492_v7, %v11533_v48  ;;  %v18956_v15 = vpop.f32.mrb[191].mxu1 }
 0x842   : > { %v24624_v11 = vpack.c.bf16 %v11538_v45, %v11537_v46 }
 0x844   : > { %v12144_v22 = vshll.u32 %v24624_v11, 16  ;;  %v12148_v44 = vshrl.u32 %v24624_v11, 16 }
 0x845   : > { %v11579_v62 = vpop.f32.mrb[192].mxu1 }
 0x846   : > { %v18963_v39 = vpop.f32.mrb[193].mxu1  ;;  %v12146_v28 = vrot.slane %v12144_v22, 1  ;;  %v12786_v30 = vrot.slane %v12148_v44, 1  ;;  %v12787_v61 = vrot.slane %v12144_v22, 2 }
 0x847   : > { %v11582_v21 = vpop.f32.mrb[194].mxu1 }
 0x848   : > { %v18964_v20 = vpop.f32.mrb[195].mxu1  ;;  %v24629_v55 = vsel %vm825_vm4, %v12142_v31, %v12146_v28  ;;  %v12788_v54 = vor.u32 %v12787_v61, %v12786_v30  ;;  %v12150_v37 = vor.u32 %v12148_v44, %v12146_v28 }
 0x849   : > { %19070 = vmatmul.mubr.msk.bf16.gmra.mrb[252].mxu1 %vm12187_vm11, %v24629_v55 }
 0x84a   : > { %v24634_v6 = vsel %vm12754_vm12, %v12784_v9, %v12788_v54 }
 0x84d   : > { %v11620_v34 = vpop.f32.mrb[196].mxu1 }
 0x84e   : > { %v11627_v49 = vmax.f32 %v11579_v62, %v11620_v34  ;;  %v18971_v42 = vpop.f32.mrb[197].mxu1 }
 0x84f   : > { %v11623_v0 = vpop.f32.mrb[198].mxu1 }
 0x850   : > { %v11628_v10 = vmax.f32 %v11582_v21, %v11623_v0  ;;  %v18972_v16 = vpop.f32.mrb[199].mxu1 }
 0x852   : > { %v24636_v19 = vpack.c.bf16 %v11628_v10, %v11627_v49 }
 0x854   : > { %v12152_v8 = vshll.u32 %v24636_v19, 16  ;;  %v12156_v17 = vshrl.u32 %v24636_v19, 16 }
 0x855   : > { %v11669_v36 = vpop.f32.mrb[200].mxu1 }
 0x856   : > { %v18979_v4 = vpop.f32.mrb[201].mxu1  ;;  %v12154_v59 = vrot.slane %v12152_v8, 1  ;;  %v12790_v29 = vrot.slane %v12156_v17, 1  ;;  %v12791_v63 = vrot.slane %v12152_v8, 2 }
 0x857   : > { %v11672_v41 = vpop.f32.mrb[202].mxu1 }
 0x858   : > { %v18980_v7 = vpop.f32.mrb[203].mxu1  ;;  %v24641_v47 = vsel %vm825_vm4, %v12150_v37, %v12154_v59  ;;  %v12792_v9 = vor.u32 %v12791_v63, %v12790_v29  ;;  %v12158_v28 = vor.u32 %v12156_v17, %v12154_v59 }
 0x859   : > { %19073 = vmatprep.mubr.msk.bf16.mxu1 %vm12187_vm11, %v24641_v47 }
 0x85a   : > { %v24646_v25 = vsel %vm12754_vm12, %v12788_v54, %v12792_v9 }
 0x85d   : > { %v11710_v46 = vpop.f32.mrb[204].mxu1 }
 0x85e   : > { %v11717_v23 = vmax.f32 %v11669_v36, %v11710_v46  ;;  %v18987_v48 = vpop.f32.mrb[205].mxu1 }
 0x85f   : > { %v11713_v45 = vpop.f32.mrb[206].mxu1 }
 0x860   : > { %v11718_v15 = vmax.f32 %v11672_v41, %v11713_v45  ;;  %v18988_v22 = vpop.f32.mrb[207].mxu1 }
 0x862   : > { %v24648_v44 = vpack.c.bf16 %v11718_v15, %v11717_v23 }
 0x864   : > { %v12160_v62 = vshll.u32 %v24648_v44, 16  ;;  %v12164_v39 = vshrl.u32 %v24648_v44, 16 }
 0x865   : > { %v11759_v31 = vpop.f32.mrb[208].mxu1 }
 0x866   : > { %v18995_v30 = vpop.f32.mrb[209].mxu1  ;;  %v12162_v61 = vrot.slane %v12160_v62, 1  ;;  %v12794_v21 = vrot.slane %v12164_v39, 1  ;;  %v12795_v20 = vrot.slane %v12160_v62, 2 }
 0x867   : > { %v11762_v54 = vpop.f32.mrb[210].mxu1 }
 0x868   : > { %v18996_v34 = vpop.f32.mrb[211].mxu1  ;;  %v24653_v49 = vsel %vm825_vm4, %v12158_v28, %v12162_v61  ;;  %v24655_v42 = vor.u32 %v12795_v20, %v12794_v21  ;;  %v12166_v41 = vor.u32 %v12164_v39, %v12162_v61  ;;  %v21143_v21 = vld [vmem:[#allocation6 + $0x28] sm:$0xff]  }
 0x869   : > { %19074 = vmatmul.mubr.msk.bf16.gmra.mrb[0].mxu1 %vm12187_vm11, %v24653_v49  ;;  %v21144_v34 = vld [vmem:[#allocation6 + $0x30] sm:$0xff]  }
 0x86a   : > { %v24661_v0 = vsel %vm12754_vm12, %v12792_v9, %v24655_v42 }
 0x86d   : > { %v11800_v10 = vpop.f32.mrb[212].mxu1 }
 0x86e   : > { %v11807_v16 = vmax.f32 %v11759_v31, %v11800_v10  ;;  %v19003_v8 = vpop.f32.mrb[213].mxu1 }
 0x86f   : > { %v11803_v17 = vpop.f32.mrb[214].mxu1 }
 0x870   : > { %v11808_v36 = vmax.f32 %v11762_v54, %v11803_v17  ;;  %v19004_v4 = vpop.f32.mrb[215].mxu1 }
 0x872   : > { %v24663_v37 = vpack.c.bf16 %v11808_v36, %v11807_v16 }
 0x874   : > { %v12168_v59 = vshll.u32 %v24663_v37, 16  ;;  %v12172_v29 = vshrl.u32 %v24663_v37, 16 }
 0x875   : > { %v11849_v63 = vpop.f32.mrb[216].mxu1 }
 0x876   : > { %v12170_v7 = vrot.slane %v12168_v59, 1  ;;  %v19011_v46 = vpop.f32.mrb[217].mxu1  ;;  %v12798_v23 = vrot.slane %v12172_v29, 1  ;;  %v12799_v48 = vrot.slane %v12168_v59, 2 }
 0x877   : > { %v11852_v9 = vpop.f32.mrb[218].mxu1 }
 0x878   : > { %v24668_v45 = vsel %vm825_vm4, %v12166_v41, %v12170_v7  ;;  %v24670_v15 = vor.u32 %v12172_v29, %v12170_v7  ;;  %v19012_v22 = vpop.f32.mrb[219].mxu1  ;;  %v24672_v62 = vor.u32 %v12799_v48, %v12798_v23 }
 0x879   : > { %19077 = vmatprep.mubr.msk.bf16.mxu1 %vm12187_vm11, %v24668_v45 }
 0x87a   : > { %19078 = vmatmul.mubr.msk.bf16.gmra.mrb[4].mxu1 %vm12187_vm11, %v24670_v15 }
 0x87b   : > { %19085 = vmatprep.mubr.msk.bf16.mxu1 %vm12187_vm11, %v24529_v14 }
 0x87d   : > { %v11890_v39 = vpop.f32.mrb[220].mxu1 }
 0x87e   : > { %v11897_v31 = vmax.f32 %v11849_v63, %v11890_v39  ;;  %v19019_v28 = vpop.f32.mrb[221].mxu1 }
 0x87f   : > { %v11893_v30 = vpop.f32.mrb[222].mxu1 }
 0x880   : > { %v11898_v61 = vmax.f32 %v11852_v9, %v11893_v30  ;;  %v19020_v20 = vpop.f32.mrb[223].mxu1 }
 0x882   : > { %v24680_v54 = vpack.c.bf16 %v11898_v61, %v11897_v31  ;;  %19086 = vmatmul.mubr.msk.bf16.vlgmr.msra.gmra.mrb[240].mxu1 %vm12187_vm11, %v24540_v57 }
 0x883   : > { %19089 = vmatprep.mubr.msk.bf16.mxu1 %vm12187_vm11, %v24549_v50  ;;  %19110 = vmatpush3.bf16.msra.mxu1 %v24604_v53 }
 0x884   : > { %19111 = vmatprep.subr.bf16.mxu1 %v21143_v21  ;;  %v13171_v10 = vshll.u32 %v24680_v54, 16  ;;  %v13175_v16 = vshrl.u32 %v24680_v54, 16 }
 0x885   : > { %v11939_v8 = vpop.f32.mrb[224].mxu1 }
 0x886   : > { %v19027_v17 = vpop.f32.mrb[225].mxu1  ;;  %v13523_v36 = vrot.slane %v13175_v16, 1  ;;  %v13524_v4 = vrot.slane %v13171_v10, 2 }
 0x887   : > { %19112 = vmatpush3.bf16.msra.mxu1 %v21143_v21  ;;  %v11942_v59 = vpop.f32.mrb[226].mxu1 }
 0x888   : > { %19137 = vmatprep.subr.bf16.mxu1 %v21144_v34  ;;  %v19028_v29 = vpop.f32.mrb[227].mxu1  ;;  %v24693_v63 = vor.u32 %v13524_v4, %v13523_v36 }
 0x88a   : > { %19090 = vmatmul.mubr.msk.bf16.gmra.mrb[244].mxu1 %vm12187_vm11, %v24561_v51 }
 0x88b   : > { %19093 = vmatprep.mubr.msk.bf16.mxu1 %vm12187_vm11, %v24573_v27 }
 0x88d   : > { %v11980_v53 = vpop.f32.mrb[228].mxu1 }
 0x88e   : > { %v11987_v41 = vmax.f32 %v11939_v8, %v11980_v53  ;;  %v19035_v7 = vpop.f32.mrb[229].mxu1 }
 0x88f   : > { %v11983_v46 = vpop.f32.mrb[230].mxu1 }
 0x890   : > { %v11988_v23 = vmax.f32 %v11942_v59, %v11983_v46  ;;  %v19036_v48 = vpop.f32.mrb[231].mxu1 }
 0x892   : > { %19094 = vmatmul.mubr.msk.bf16.gmra.mrb[248].mxu1 %vm12187_vm11, %v24585_v33  ;;  %v24701_v9 = vpack.c.bf16 %v11988_v23, %v11987_v41  ;;  %v12531_v23 = vrot.slane %v24540_v57, 1 }
 0x893   : > { %19097 = vmatprep.mubr.msk.bf16.mxu1 %vm12187_vm11, %v24597_v2 }
 0x894   : > { %v13866_v22 = vshll.u32 %v24701_v9, 16  ;;  %v13870_v39 = vshrl.u32 %v24701_v9, 16 }
 0x895   : > { %v12029_v31 = vpop.f32.mrb[232].mxu1 }
 0x896   : > { %v19043_v28 = vpop.f32.mrb[233].mxu1  ;;  %v14218_v30 = vrot.slane %v13870_v39, 1  ;;  %v14219_v61 = vrot.slane %v13866_v22, 2 }
 0x897   : > { %v12032_v21 = vpop.f32.mrb[234].mxu1  ;;  %v12530_v28 = vrot.slane %v24529_v14, 1 }
 0x898   : > { %v19044_v20 = vpop.f32.mrb[235].mxu1  ;;  %v24711_v8 = vor.u32 %v14219_v61, %v14218_v30 }
 0x899   : > { %v12532_v61 = vsel %vm2650_vm2, %v12530_v28, %v12531_v23  ;;  %v12535_v20 = vrot.slane %v24561_v51, 1 }
 0x89a   : > { %19098 = vmatmul.mubr.msk.bf16.gmra.mrb[252].mxu1 %vm12187_vm11, %v24612_v18 }
 0x89b   : > { %19101 = vmatprep.mubr.msk.bf16.mxu1 %vm12187_vm11, %v24624_v11 }
 0x89d   : > { %v12070_v17 = vpop.f32.mrb[236].mxu1 }
 0x89e   : > { %v12077_v36 = vmax.f32 %v12029_v31, %v12070_v17  ;;  %v19051_v4 = vpop.f32.mrb[237].mxu1  ;;  %v21145_v17 = vld [vmem:[#allocation6 + $0x38] sm:$0xff]  }
 0x89f   : > { %v12073_v59 = vpop.f32.mrb[238].mxu1  ;;  %v21146_v4 = vld [vmem:[#allocation6 + $0x40] sm:$0xff]  }
 0x8a0   : > { %v12078_v29 = vmax.f32 %v12032_v21, %v12073_v59  ;;  %v19052_v53 = vpop.f32.mrb[239].mxu1  ;;  %v12533_v21 = vrot.slane %v24549_v50, 1  ;;  %v12537_v59 = vrot.slane %v24573_v27, 1 }
 0x8a2   : > { %19102 = vmatmul.mubr.msk.bf16.gmra.mrb[0].mxu1 %vm12187_vm11, %v24636_v19  ;;  %v24719_v41 = vpack.c.bf16 %v12078_v29, %v12077_v36  ;;  %v24740_v36 = vsel %vm2650_vm2, %v12531_v23, %v12533_v21  ;;  %v24745_v14 = vsel %vm2650_vm2, %v12533_v21, %v12535_v20  ;;  %v12539_v29 = vrot.slane %v24585_v33, 1 }
 0x8a3   : > { %19105 = vmatprep.mubr.msk.bf16.mxu1 %vm12187_vm11, %v24648_v44  ;;  %v24752_v53 = vsel %vm2650_vm2, %v12535_v20, %v12537_v59  ;;  %v12547_v21 = vrot.slane %v24636_v19, 1 }
 0x8a4   : > { %v14565_v7 = vshrl.u32 %v24719_v41, 16  ;;  %v14561_v46 = vshll.u32 %v24719_v41, 16  ;;  %v24757_v23 = vsel %vm2650_vm2, %v12537_v59, %v12539_v29  ;;  %v12549_v59 = vrot.slane %v24648_v44, 1 }
 0x8a6   : > { %v14913_v48 = vrot.slane %v14565_v7, 1  ;;  %v14914_v31 = vrot.slane %v14561_v46, 2 }
 0x8a8   : > { %v24731_v30 = vor.u32 %v14914_v31, %v14913_v48  ;;  %v12543_v48 = vrot.slane %v24612_v18, 1 }
 0x8aa   : > { %19106 = vmatmul.mubr.msk.bf16.gmra.mrb[4].mxu1 %vm12187_vm11, %v24663_v37 }
 0x8ab   : > { %19113 = vmatprep.mubr.msk.bf16.mxu1 %vm12187_vm11, %v12532_v61  ;;  %v12545_v61 = vrot.slane %v24624_v11, 1 }
 0x8ad   : > { %v24776_v20 = vsel %vm2650_vm2, %v12543_v48, %v12545_v61 }
 0x8b2   : > { %19114 = vmatmul.mubr.msk.bf16.vlgmr.msra.gmra.mrb[240].mxu1 %vm12187_vm11, %v24740_v36 }
 0x8b3   : > { %19117 = vmatprep.mubr.msk.bf16.mxu1 %vm12187_vm11, %v24745_v14  ;;  %19138 = vmatpush3.bf16.msra.mxu1 %v21144_v34  ;;  %v12541_v34 = vrot.slane %v24597_v2, 1 }
 0x8b4   : > { %19139 = vmatprep.subr.bf16.mxu1 %v21145_v17 }
 0x8b5   : > { %v24764_v31 = vsel %vm2650_vm2, %v12539_v29, %v12541_v34  ;;  %v24769_v28 = vsel %vm2650_vm2, %v12541_v34, %v12543_v48  ;;  %v24787_v29 = vrot.slane %v24663_v37, 1  ;;  %v24790_v34 = vsel %vm2650_vm2, %v12547_v21, %v12549_v59 }
 0x8b7   : > { %19140 = vmatpush3.bf16.msra.mxu1 %v21145_v17  ;;  %v24781_v17 = vsel %vm2650_vm2, %v12545_v61, %v12547_v21  ;;  %v24796_v48 = vsel %vm2650_vm2, %v12549_v59, %v24787_v29  ;;  %v21147_v61 = vld [vmem:[#allocation6 + $0x48] sm:$0xff]   ;;  %v21148_v21 = vld [vmem:[#allocation6 + $0x50] sm:$0xff]  }
 0x8b8   : > { %19165 = vmatprep.subr.bf16.mxu1 %v21146_v4  ;;  %v21152_v59 = vld [vmem:[#allocation6 + $0x70] sm:$0xff]  }
 0x8ba   : > { %19118 = vmatmul.mubr.msk.bf16.gmra.mrb[244].mxu1 %vm12187_vm11, %v24752_v53 }
 0x8bb   : > { %19121 = vmatprep.mubr.msk.bf16.mxu1 %vm12187_vm11, %v24757_v23 }
 0x8c2   : > { %19122 = vmatmul.mubr.msk.bf16.gmra.mrb[248].mxu1 %vm12187_vm11, %v24764_v31 }
 0x8c3   : > { %19125 = vmatprep.mubr.msk.bf16.mxu1 %vm12187_vm11, %v24769_v28 }
 0x8ca   : > { %19126 = vmatmul.mubr.msk.bf16.gmra.mrb[252].mxu1 %vm12187_vm11, %v24776_v20 }
 0x8cb   : > { %19129 = vmatprep.mubr.msk.bf16.mxu1 %vm12187_vm11, %v24781_v17 }
 0x8d2   : > { %19130 = vmatmul.mubr.msk.bf16.gmra.mrb[0].mxu1 %vm12187_vm11, %v24790_v34 }
 0x8d3   : > { %19133 = vmatprep.mubr.msk.bf16.mxu1 %vm12187_vm11, %v24796_v48 }
 0x8da   : > { %19134 = vmatmul.mubr.msk.bf16.gmra.mrb[4].mxu1 %vm12187_vm11, %v24787_v29 }
 0x8db   : > { %19141 = vmatprep.mubr.msk.bf16.mxu1 %vm12187_vm11, %v24547_v35  ;;  %v24825_v35 = vsel %vm12754_vm12, %v24655_v42, %v24672_v62  ;;  %v21150_v42 = vld [vmem:[#allocation6 + $0x60] sm:$0xff]  }
 0x8e2   : > { %19142 = vmatmul.mubr.msk.bf16.vlgmr.msra.gmra.mrb[240].mxu1 %vm12187_vm11, %v24559_v12 }
 0x8e3   : > { %19145 = vmatprep.mubr.msk.bf16.mxu1 %vm12187_vm11, %v24571_v60  ;;  %19166 = vmatpush3.bf16.msra.mxu1 %v21146_v4  ;;  %v21149_v4 = vld [vmem:[#allocation6 + $0x58] sm:$0xff]  }
 0x8e4   : > { %19167 = vmatprep.subr.bf16.mxu1 %v21147_v61 }
 0x8e7   : > { %19168 = vmatpush3.bf16.msra.mxu1 %v21147_v61 }
 0x8e8   : > { %19193 = vmatprep.subr.bf16.mxu1 %v21148_v21 }
 0x8ea   : > { %19146 = vmatmul.mubr.msk.bf16.gmra.mrb[244].mxu1 %vm12187_vm11, %v24583_v38 }
 0x8eb   : > { %19149 = vmatprep.mubr.msk.bf16.mxu1 %vm12187_vm11, %v24595_v24 }
 0x8f2   : > { %19150 = vmatmul.mubr.msk.bf16.gmra.mrb[248].mxu1 %vm12187_vm11, %v24610_v58 }
 0x8f3   : > { %19153 = vmatprep.mubr.msk.bf16.mxu1 %vm12187_vm11, %v24622_v13 }
 0x8fa   : > { %19154 = vmatmul.mubr.msk.bf16.gmra.mrb[252].mxu1 %vm12187_vm11, %v24634_v6 }
 0x8fb   : > { %19157 = vmatprep.mubr.msk.bf16.mxu1 %vm12187_vm11, %v24646_v25 }
 0x902   : > { %19158 = vmatmul.mubr.msk.bf16.gmra.mrb[0].mxu1 %vm12187_vm11, %v24661_v0 }
 0x903   : > { %19161 = vmatprep.mubr.msk.bf16.mxu1 %vm12187_vm11, %v24825_v35 }
 0x90a   : > { %19162 = vmatmul.mubr.msk.bf16.gmra.mrb[4].mxu1 %vm12187_vm11, %v24672_v62 }
 0x90b   : > { %19169 = vmatprep.mubr.msk.bf16.mxu1 %vm12187_vm11, %v24540_v57  ;;  %v21151_v57 = vld [vmem:[#allocation6 + $0x68] sm:$0xff]  }
 0x912   : > { %19170 = vmatmul.mubr.msk.bf16.vlgmr.msra.gmra.mrb[240].mxu1 %vm12187_vm11, %v24549_v50 }
 0x913   : > { %19173 = vmatprep.mubr.msk.bf16.mxu1 %vm12187_vm11, %v24561_v51  ;;  %19194 = vmatpush3.bf16.msra.mxu1 %v21148_v21 }
 0x914   : > { %19195 = vmatprep.subr.bf16.mxu1 %v21149_v4 }
 0x917   : > { %19196 = vmatpush3.bf16.msra.mxu1 %v21149_v4  ;;  %v21155_v4 = vld [vmem:[#allocation6 + $0x88] sm:$0xff]  }
 0x918   : > { %19221 = vmatprep.subr.bf16.mxu1 %v21150_v42 }
 0x91a   : > { %19174 = vmatmul.mubr.msk.bf16.gmra.mrb[244].mxu1 %vm12187_vm11, %v24573_v27 }
 0x91b   : > { %19177 = vmatprep.mubr.msk.bf16.mxu1 %vm12187_vm11, %v24585_v33 }
 0x922   : > { %19178 = vmatmul.mubr.msk.bf16.gmra.mrb[248].mxu1 %vm12187_vm11, %v24597_v2 }
 0x923   : > { %19181 = vmatprep.mubr.msk.bf16.mxu1 %vm12187_vm11, %v24612_v18 }
 0x92a   : > { %19182 = vmatmul.mubr.msk.bf16.gmra.mrb[252].mxu1 %vm12187_vm11, %v24624_v11 }
 0x92b   : > { %19185 = vmatprep.mubr.msk.bf16.mxu1 %vm12187_vm11, %v24636_v19 }
 0x932   : > { %19186 = vmatmul.mubr.msk.bf16.gmra.mrb[0].mxu1 %vm12187_vm11, %v24648_v44 }
 0x933   : > { %19189 = vmatprep.mubr.msk.bf16.mxu1 %vm12187_vm11, %v24663_v37 }
 0x93a   : > { %19190 = vmatmul.mubr.msk.bf16.gmra.mrb[4].mxu1 %vm12187_vm11, %v24680_v54 }
 0x93b   : > { %19197 = vmatprep.mubr.msk.bf16.mxu1 %vm12187_vm11, %v24554_v56  ;;  %v13173_v56 = vrot.slane %v13171_v10, 1  ;;  %v21153_v10 = vld [vmem:[#allocation6 + $0x78] sm:$0xff]  }
 0x93d   : > { %v24879_v61 = vsel %vm825_vm4, %v24670_v15, %v13173_v56  ;;  %v24885_v21 = vor.u32 %v13175_v16, %v13173_v56  ;;  %v21154_v15 = vld [vmem:[#allocation6 + $0x80] sm:$0xff]   ;;  %v24908_v16 = vrot.slane %v24680_v54, 1 }
 0x942   : > { %19198 = vmatmul.mubr.msk.bf16.vlgmr.msra.gmra.mrb[240].mxu1 %vm12187_vm11, %v24566_v32 }
 0x943   : > { %19201 = vmatprep.mubr.msk.bf16.mxu1 %vm12187_vm11, %v24578_v3  ;;  %19222 = vmatpush3.bf16.msra.mxu1 %v21150_v42  ;;  %v21157_v42 = vld [vmem:[#allocation6 + $0x98] sm:$0xff]  }
 0x944   : > { %19223 = vmatprep.subr.bf16.mxu1 %v21151_v57 }
 0x947   : > { %19224 = vmatpush3.bf16.msra.mxu1 %v21151_v57  ;;  %v21160_v57 = vld [vmem:[#allocation6 + $0xb0] sm:$0xff]  }
 0x948   : > { %19249 = vmatprep.subr.bf16.mxu1 %v21152_v59 }
 0x94a   : > { %19202 = vmatmul.mubr.msk.bf16.gmra.mrb[244].mxu1 %vm12187_vm11, %v24590_v40 }
 0x94b   : > { %19205 = vmatprep.mubr.msk.bf16.mxu1 %vm12187_vm11, %v24602_v26 }
 0x952   : > { %19206 = vmatmul.mubr.msk.bf16.gmra.mrb[248].mxu1 %vm12187_vm11, %v24617_v52 }
 0x953   : > { %19209 = vmatprep.mubr.msk.bf16.mxu1 %vm12187_vm11, %v24629_v55 }
 0x95a   : > { %19210 = vmatmul.mubr.msk.bf16.gmra.mrb[252].mxu1 %vm12187_vm11, %v24641_v47 }
 0x95b   : > { %19213 = vmatprep.mubr.msk.bf16.mxu1 %vm12187_vm11, %v24653_v49 }
 0x962   : > { %19214 = vmatmul.mubr.msk.bf16.gmra.mrb[0].mxu1 %vm12187_vm11, %v24668_v45 }
 0x963   : > { %19217 = vmatprep.mubr.msk.bf16.mxu1 %vm12187_vm11, %v24879_v61 }
 0x96a   : > { %19218 = vmatmul.mubr.msk.bf16.gmra.mrb[4].mxu1 %vm12187_vm11, %v24885_v21 }
 0x96b   : > { %19225 = vmatprep.mubr.msk.bf16.mxu1 %vm12187_vm11, %v24740_v36  ;;  %v24915_v36 = vsel %vm2650_vm2, %v24787_v29, %v24908_v16  ;;  %v21156_v29 = vld [vmem:[#allocation6 + $0x90] sm:$0xff]  }
 0x972   : > { %19226 = vmatmul.mubr.msk.bf16.vlgmr.msra.gmra.mrb[240].mxu1 %vm12187_vm11, %v24745_v14 }
 0x973   : > { %19229 = vmatprep.mubr.msk.bf16.mxu1 %vm12187_vm11, %v24752_v53  ;;  %19250 = vmatpush3.bf16.msra.mxu1 %v21152_v59 }
 0x974   : > { %19251 = vmatprep.subr.bf16.mxu1 %v21153_v10 }
 0x977   : > { %19252 = vmatpush3.bf16.msra.mxu1 %v21153_v10  ;;  %v21163_v10 = vld [vmem:[#allocation6 + $0xc8] sm:$0xff]  }
 0x978   : > { %19277 = vmatprep.subr.bf16.mxu1 %v21154_v15 }
 0x97a   : > { %19230 = vmatmul.mubr.msk.bf16.gmra.mrb[244].mxu1 %vm12187_vm11, %v24757_v23 }
 0x97b   : > { %19233 = vmatprep.mubr.msk.bf16.mxu1 %vm12187_vm11, %v24764_v31 }
 0x982   : > { %19234 = vmatmul.mubr.msk.bf16.gmra.mrb[248].mxu1 %vm12187_vm11, %v24769_v28 }
 0x983   : > { %19237 = vmatprep.mubr.msk.bf16.mxu1 %vm12187_vm11, %v24776_v20 }
 0x98a   : > { %19238 = vmatmul.mubr.msk.bf16.gmra.mrb[252].mxu1 %vm12187_vm11, %v24781_v17 }
 0x98b   : > { %19241 = vmatprep.mubr.msk.bf16.mxu1 %vm12187_vm11, %v24790_v34 }
 0x992   : > { %19242 = vmatmul.mubr.msk.bf16.gmra.mrb[0].mxu1 %vm12187_vm11, %v24796_v48 }
 0x993   : > { %19245 = vmatprep.mubr.msk.bf16.mxu1 %vm12187_vm11, %v24915_v36 }
 0x99a   : > { %19246 = vmatmul.mubr.msk.bf16.gmra.mrb[4].mxu1 %vm12187_vm11, %v24908_v16 }
 0x99b   : > { %19253 = vmatprep.mubr.msk.bf16.mxu1 %vm12187_vm11, %v24559_v12  ;;  %v24944_v12 = vsel %vm12754_vm12, %v24672_v62, %v24693_v63  ;;  %v21158_v62 = vld [vmem:[#allocation6 + $0xa0] sm:$0xff]  }
 0x9a2   : > { %19254 = vmatmul.mubr.msk.bf16.vlgmr.msra.gmra.mrb[240].mxu1 %vm12187_vm11, %v24571_v60 }
 0x9a3   : > { %19257 = vmatprep.mubr.msk.bf16.mxu1 %vm12187_vm11, %v24583_v38  ;;  %19278 = vmatpush3.bf16.msra.mxu1 %v21154_v15  ;;  %v21164_v15 = vld [vmem:[#allocation6 + $0xd0] sm:$0xff]  }
 0x9a4   : > { %19279 = vmatprep.subr.bf16.mxu1 %v21155_v4 }
 0x9a7   : > { %19280 = vmatpush3.bf16.msra.mxu1 %v21155_v4 }
 0x9a8   : > { %19305 = vmatprep.subr.bf16.mxu1 %v21156_v29 }
 0x9aa   : > { %19258 = vmatmul.mubr.msk.bf16.gmra.mrb[244].mxu1 %vm12187_vm11, %v24595_v24 }
 0x9ab   : > { %19261 = vmatprep.mubr.msk.bf16.mxu1 %vm12187_vm11, %v24610_v58 }
 0x9b2   : > { %19262 = vmatmul.mubr.msk.bf16.gmra.mrb[248].mxu1 %vm12187_vm11, %v24622_v13 }
 0x9b3   : > { %19265 = vmatprep.mubr.msk.bf16.mxu1 %vm12187_vm11, %v24634_v6 }
 0x9ba   : > { %19266 = vmatmul.mubr.msk.bf16.gmra.mrb[252].mxu1 %vm12187_vm11, %v24646_v25 }
 0x9bb   : > { %19269 = vmatprep.mubr.msk.bf16.mxu1 %vm12187_vm11, %v24661_v0 }
 0x9c2   : > { %19270 = vmatmul.mubr.msk.bf16.gmra.mrb[0].mxu1 %vm12187_vm11, %v24825_v35 }
 0x9c3   : > { %19273 = vmatprep.mubr.msk.bf16.mxu1 %vm12187_vm11, %v24944_v12 }
 0x9ca   : > { %19274 = vmatmul.mubr.msk.bf16.gmra.mrb[4].mxu1 %vm12187_vm11, %v24693_v63 }
 0x9cb   : > { %19281 = vmatprep.mubr.msk.bf16.mxu1 %vm12187_vm11, %v24549_v50  ;;  %v21159_v50 = vld [vmem:[#allocation6 + $0xa8] sm:$0xff]  }
 0x9d2   : > { %19282 = vmatmul.mubr.msk.bf16.vlgmr.msra.gmra.mrb[240].mxu1 %vm12187_vm11, %v24561_v51 }
 0x9d3   : > { %19285 = vmatprep.mubr.msk.bf16.mxu1 %vm12187_vm11, %v24573_v27  ;;  %19306 = vmatpush3.bf16.msra.mxu1 %v21156_v29 }
 0x9d4   : > { %19307 = vmatprep.subr.bf16.mxu1 %v21157_v42 }
 0x9d7   : > { %19308 = vmatpush3.bf16.msra.mxu1 %v21157_v42 }
 0x9d8   : > { %19333 = vmatprep.subr.bf16.mxu1 %v21158_v62 }
 0x9da   : > { %19286 = vmatmul.mubr.msk.bf16.gmra.mrb[244].mxu1 %vm12187_vm11, %v24585_v33 }
 0x9db   : > { %19289 = vmatprep.mubr.msk.bf16.mxu1 %vm12187_vm11, %v24597_v2 }
 0x9e2   : > { %19290 = vmatmul.mubr.msk.bf16.gmra.mrb[248].mxu1 %vm12187_vm11, %v24612_v18 }
 0x9e3   : > { %19293 = vmatprep.mubr.msk.bf16.mxu1 %vm12187_vm11, %v24624_v11 }
 0x9ea   : > { %19294 = vmatmul.mubr.msk.bf16.gmra.mrb[252].mxu1 %vm12187_vm11, %v24636_v19 }
 0x9eb   : > { %19297 = vmatprep.mubr.msk.bf16.mxu1 %vm12187_vm11, %v24648_v44 }
 0x9f2   : > { %19298 = vmatmul.mubr.msk.bf16.gmra.mrb[0].mxu1 %vm12187_vm11, %v24663_v37 }
 0x9f3   : > { %19301 = vmatprep.mubr.msk.bf16.mxu1 %vm12187_vm11, %v24680_v54 }
 0x9fa   : > { %19302 = vmatmul.mubr.msk.bf16.gmra.mrb[4].mxu1 %vm12187_vm11, %v24701_v9 }
 0x9fb   : > { %19309 = vmatprep.mubr.msk.bf16.mxu1 %vm12187_vm11, %v24566_v32  ;;  %v13868_v32 = vrot.slane %v13866_v22, 1  ;;  %v21161_v22 = vld [vmem:[#allocation6 + $0xb8] sm:$0xff]  }
 0x9fd   : > { %v24998_v59 = vsel %vm825_vm4, %v24885_v21, %v13868_v32  ;;  %v25004_v56 = vor.u32 %v13870_v39, %v13868_v32  ;;  %v21162_v21 = vld [vmem:[#allocation6 + $0xc0] sm:$0xff]   ;;  %v25027_v39 = vrot.slane %v24701_v9, 1 }
 0xa02   : > { %19310 = vmatmul.mubr.msk.bf16.vlgmr.msra.gmra.mrb[240].mxu1 %vm12187_vm11, %v24578_v3 }
 0xa03   : > { %19313 = vmatprep.mubr.msk.bf16.mxu1 %vm12187_vm11, %v24590_v40  ;;  %19334 = vmatpush3.bf16.msra.mxu1 %v21158_v62 }
 0xa04   : > { %19335 = vmatprep.subr.bf16.mxu1 %v21159_v50 }
 0xa07   : > { %19336 = vmatpush3.bf16.msra.mxu1 %v21159_v50 }
 0xa08   : > { %19361 = vmatprep.subr.bf16.mxu1 %v21160_v57 }
 0xa0a   : > { %19314 = vmatmul.mubr.msk.bf16.gmra.mrb[244].mxu1 %vm12187_vm11, %v24602_v26 }
 0xa0b   : > { %19317 = vmatprep.mubr.msk.bf16.mxu1 %vm12187_vm11, %v24617_v52 }
 0xa12   : > { %19318 = vmatmul.mubr.msk.bf16.gmra.mrb[248].mxu1 %vm12187_vm11, %v24629_v55 }
 0xa13   : > { %19321 = vmatprep.mubr.msk.bf16.mxu1 %vm12187_vm11, %v24641_v47 }
 0xa1a   : > { %19322 = vmatmul.mubr.msk.bf16.gmra.mrb[252].mxu1 %vm12187_vm11, %v24653_v49 }
 0xa1b   : > { %19325 = vmatprep.mubr.msk.bf16.mxu1 %vm12187_vm11, %v24668_v45 }
 0xa22   : > { %19326 = vmatmul.mubr.msk.bf16.gmra.mrb[0].mxu1 %vm12187_vm11, %v24879_v61 }
 0xa23   : > { %19329 = vmatprep.mubr.msk.bf16.mxu1 %vm12187_vm11, %v24998_v59 }
 0xa2a   : > { %19330 = vmatmul.mubr.msk.bf16.gmra.mrb[4].mxu1 %vm12187_vm11, %v25004_v56 }
 0xa2b   : > { %19337 = vmatprep.mubr.msk.bf16.mxu1 %vm12187_vm11, %v24745_v14  ;;  %v25034_v14 = vsel %vm2650_vm2, %v24908_v16, %v25027_v39  ;;  %v21165_v16 = vld [vmem:[#allocation6 + $0xd8] sm:$0xff]  }
 0xa32   : > { %19338 = vmatmul.mubr.msk.bf16.vlgmr.msra.gmra.mrb[240].mxu1 %vm12187_vm11, %v24752_v53 }
 0xa33   : > { %19341 = vmatprep.mubr.msk.bf16.mxu1 %vm12187_vm11, %v24757_v23  ;;  %19362 = vmatpush3.bf16.msra.mxu1 %v21160_v57 }
 0xa34   : > { %19363 = vmatprep.subr.bf16.mxu1 %v21161_v22 }
 0xa37   : > { %19364 = vmatpush3.bf16.msra.mxu1 %v21161_v22 }
 0xa38   : > { %19389 = vmatprep.subr.bf16.mxu1 %v21162_v21 }
 0xa3a   : > { %19342 = vmatmul.mubr.msk.bf16.gmra.mrb[244].mxu1 %vm12187_vm11, %v24764_v31 }
 0xa3b   : > { %19345 = vmatprep.mubr.msk.bf16.mxu1 %vm12187_vm11, %v24769_v28 }
 0xa42   : > { %19346 = vmatmul.mubr.msk.bf16.gmra.mrb[248].mxu1 %vm12187_vm11, %v24776_v20 }
 0xa43   : > { %19349 = vmatprep.mubr.msk.bf16.mxu1 %vm12187_vm11, %v24781_v17 }
 0xa4a   : > { %19350 = vmatmul.mubr.msk.bf16.gmra.mrb[252].mxu1 %vm12187_vm11, %v24790_v34 }
 0xa4b   : > { %19353 = vmatprep.mubr.msk.bf16.mxu1 %vm12187_vm11, %v24796_v48 }
 0xa52   : > { %19354 = vmatmul.mubr.msk.bf16.gmra.mrb[0].mxu1 %vm12187_vm11, %v24915_v36 }
 0xa53   : > { %19357 = vmatprep.mubr.msk.bf16.mxu1 %vm12187_vm11, %v25034_v14 }
 0xa5a   : > { %19358 = vmatmul.mubr.msk.bf16.gmra.mrb[4].mxu1 %vm12187_vm11, %v25027_v39 }
 0xa5b   : > { %19365 = vmatprep.mubr.msk.bf16.mxu1 %vm12187_vm11, %v24571_v60  ;;  %v25063_v60 = vsel %vm12754_vm12, %v24693_v63, %v24711_v8  ;;  %v21166_v63 = vld [vmem:[#allocation6 + $0xe0] sm:$0xff]  }
 0xa62   : > { %19366 = vmatmul.mubr.msk.bf16.vlgmr.msra.gmra.mrb[240].mxu1 %vm12187_vm11, %v24583_v38 }
 0xa63   : > { %19369 = vmatprep.mubr.msk.bf16.mxu1 %vm12187_vm11, %v24595_v24  ;;  %19390 = vmatpush3.bf16.msra.mxu1 %v21162_v21 }
 0xa64   : > { %19391 = vmatprep.subr.bf16.mxu1 %v21163_v10 }
 0xa67   : > { %19392 = vmatpush3.bf16.msra.mxu1 %v21163_v10 }
 0xa68   : > { %19417 = vmatprep.subr.bf16.mxu1 %v21164_v15 }
 0xa6a   : > { %19370 = vmatmul.mubr.msk.bf16.gmra.mrb[244].mxu1 %vm12187_vm11, %v24610_v58 }
 0xa6b   : > { %19373 = vmatprep.mubr.msk.bf16.mxu1 %vm12187_vm11, %v24622_v13 }
 0xa72   : > { %19374 = vmatmul.mubr.msk.bf16.gmra.mrb[248].mxu1 %vm12187_vm11, %v24634_v6 }
 0xa73   : > { %19377 = vmatprep.mubr.msk.bf16.mxu1 %vm12187_vm11, %v24646_v25 }
 0xa7a   : > { %19378 = vmatmul.mubr.msk.bf16.gmra.mrb[252].mxu1 %vm12187_vm11, %v24661_v0 }
 0xa7b   : > { %19381 = vmatprep.mubr.msk.bf16.mxu1 %vm12187_vm11, %v24825_v35 }
 0xa82   : > { %19382 = vmatmul.mubr.msk.bf16.gmra.mrb[0].mxu1 %vm12187_vm11, %v24944_v12 }
 0xa83   : > { %19385 = vmatprep.mubr.msk.bf16.mxu1 %vm12187_vm11, %v25063_v60 }
 0xa8a   : > { %19386 = vmatmul.mubr.msk.bf16.gmra.mrb[4].mxu1 %vm12187_vm11, %v24711_v8 }
 0xa8b   : > { %19393 = vmatprep.mubr.msk.bf16.mxu1 %vm12187_vm11, %v24561_v51  ;;  %v21167_v51 = vld [vmem:[#allocation6 + $0xe8] sm:$0xff]  }
 0xa92   : > { %19394 = vmatmul.mubr.msk.bf16.vlgmr.msra.gmra.mrb[240].mxu1 %vm12187_vm11, %v24573_v27  ;;  %v21168_v27 = vld [vmem:[#allocation6 + $0xf0] sm:$0xff]  }
 0xa93   : > { %19397 = vmatprep.mubr.msk.bf16.mxu1 %vm12187_vm11, %v24585_v33  ;;  %19418 = vmatpush3.bf16.msra.mxu1 %v21164_v15 }
 0xa94   : > { %19419 = vmatprep.subr.bf16.mxu1 %v21165_v16 }
 0xa97   : > { %19420 = vmatpush3.bf16.msra.mxu1 %v21165_v16 }
 0xa98   : > { %19445 = vmatprep.subr.bf16.mxu1 %v21166_v63 }
 0xa9a   : > { %19398 = vmatmul.mubr.msk.bf16.gmra.mrb[244].mxu1 %vm12187_vm11, %v24597_v2  ;;  %v21169_v2 = vld [vmem:[#allocation6 + $0xf8] sm:$0xff]  }
 0xa9b   : > { %19401 = vmatprep.mubr.msk.bf16.mxu1 %vm12187_vm11, %v24612_v18 }
 0xaa2   : > { %19402 = vmatmul.mubr.msk.bf16.gmra.mrb[248].mxu1 %vm12187_vm11, %v24624_v11 }
 0xaa3   : > { %19405 = vmatprep.mubr.msk.bf16.mxu1 %vm12187_vm11, %v24636_v19 }
 0xaaa   : > { %19406 = vmatmul.mubr.msk.bf16.gmra.mrb[252].mxu1 %vm12187_vm11, %v24648_v44 }
 0xaab   : > { %19409 = vmatprep.mubr.msk.bf16.mxu1 %vm12187_vm11, %v24663_v37 }
 0xab2   : > { %19410 = vmatmul.mubr.msk.bf16.gmra.mrb[0].mxu1 %vm12187_vm11, %v24680_v54 }
 0xab3   : > { %19413 = vmatprep.mubr.msk.bf16.mxu1 %vm12187_vm11, %v24701_v9 }
 0xaba   : > { %19414 = vmatmul.mubr.msk.bf16.gmra.mrb[4].mxu1 %vm12187_vm11, %v24719_v41 }
 0xabb   : > { %19421 = vmatprep.mubr.msk.bf16.mxu1 %vm12187_vm11, %v24578_v3  ;;  %v14563_v3 = vrot.slane %v14561_v46, 1 }
 0xabd   : > { %v14564_v33 = vsel %vm825_vm4, %v25004_v56, %v14563_v3  ;;  %v25202_v56 = vpack.c.bf16 %v24132_v43, %v24132_v43 }
 0xac2   : > { %19422 = vmatmul.mubr.msk.bf16.vlgmr.msra.gmra.mrb[240].mxu1 %vm12187_vm11, %v24590_v40  ;;  %v14567_v40 = vor.u32 %v14565_v7, %v14563_v3 }
 0xac3   : > { %19425 = vmatprep.mubr.msk.bf16.mxu1 %vm12187_vm11, %v24602_v26  ;;  %19446 = vmatpush3.bf16.msra.mxu1 %v21166_v63  ;;  %v14740_v26 = vrot.slane %v24719_v41, 1 }
 0xac4   : > { %19447 = vmatprep.subr.bf16.mxu1 %v21167_v51 }
 0xac5   : > { %v14741_v18 = vsel %vm2650_vm2, %v25027_v39, %v14740_v26 }
 0xac7   : > { %19448 = vmatpush3.bf16.msra.mxu1 %v21167_v51 }
 0xac8   : > { %19473 = vmatprep.subr.bf16.mxu1 %v21168_v27 }
 0xaca   : > { %19426 = vmatmul.mubr.msk.bf16.gmra.mrb[244].mxu1 %vm12187_vm11, %v24617_v52 }
 0xacb   : > { %19429 = vmatprep.mubr.msk.bf16.mxu1 %vm12187_vm11, %v24629_v55 }
 0xad2   : > { %19430 = vmatmul.mubr.msk.bf16.gmra.mrb[248].mxu1 %vm12187_vm11, %v24641_v47 }
 0xad3   : > { %19433 = vmatprep.mubr.msk.bf16.mxu1 %vm12187_vm11, %v24653_v49 }
 0xada   : > { %19434 = vmatmul.mubr.msk.bf16.gmra.mrb[252].mxu1 %vm12187_vm11, %v24668_v45 }
 0xadb   : > { %19437 = vmatprep.mubr.msk.bf16.mxu1 %vm12187_vm11, %v24879_v61 }
 0xae2   : > { %19438 = vmatmul.mubr.msk.bf16.gmra.mrb[0].mxu1 %vm12187_vm11, %v24998_v59 }
 0xae3   : > { %19441 = vmatprep.mubr.msk.bf16.mxu1 %vm12187_vm11, %v14564_v33 }
 0xaea   : > { %19442 = vmatmul.mubr.msk.bf16.gmra.mrb[4].mxu1 %vm12187_vm11, %v14567_v40 }
 0xaeb   : > { %19449 = vmatprep.mubr.msk.bf16.mxu1 %vm12187_vm11, %v24752_v53 }
 0xaf2   : > { %19450 = vmatmul.mubr.msk.bf16.vlgmr.msra.gmra.mrb[240].mxu1 %vm12187_vm11, %v24757_v23 }
 0xaf3   : > { %19453 = vmatprep.mubr.msk.bf16.mxu1 %vm12187_vm11, %v24764_v31  ;;  %19474 = vmatpush3.bf16.msra.mxu1 %v21168_v27 }
 0xaf4   : > { %19475 = vmatprep.subr.bf16.mxu1 %v21169_v2 }
 0xaf7   : > { %19476 = vmatpush3.bf16.msra.mxu1 %v21169_v2 }
 0xaf8   : > { %19501 = vmatprep.subr.bf16.mxu1 %v25550_v1 }
 0xafa   : > { %19454 = vmatmul.mubr.msk.bf16.gmra.mrb[244].mxu1 %vm12187_vm11, %v24769_v28 }
 0xafb   : > { %19457 = vmatprep.mubr.msk.bf16.mxu1 %vm12187_vm11, %v24776_v20 }
 0xb02   : > { %19458 = vmatmul.mubr.msk.bf16.gmra.mrb[248].mxu1 %vm12187_vm11, %v24781_v17  ;;  %v25188_v17 = vpack.c.bf16 %v24107_v5, %v24107_v5 }
 0xb03   : > { %19461 = vmatprep.mubr.msk.bf16.mxu1 %vm12187_vm11, %v24790_v34 }
 0xb0a   : > { %19462 = vmatmul.mubr.msk.bf16.gmra.mrb[252].mxu1 %vm12187_vm11, %v24796_v48 }
 0xb0b   : > { %19465 = vmatprep.mubr.msk.bf16.mxu1 %vm12187_vm11, %v24915_v36 }
 0xb12   : > { %19466 = vmatmul.mubr.msk.bf16.gmra.mrb[0].mxu1 %vm12187_vm11, %v25034_v14 }
 0xb13   : > { %19469 = vmatprep.mubr.msk.bf16.mxu1 %vm12187_vm11, %v14741_v18 }
 0xb1a   : > { %19470 = vmatmul.mubr.msk.bf16.gmra.mrb[4].mxu1 %vm12187_vm11, %v14740_v26 }
 0xb1b   : > { %19477 = vmatprep.mubr.msk.bf16.mxu1 %vm12187_vm11, %v24583_v38  ;;  %v14916_v38 = vsel %vm12754_vm12, %v24711_v8, %v24731_v30 }
 0xb22   : > { %19478 = vmatmul.mubr.msk.bf16.vlgmr.msra.gmra.mrb[240].mxu1 %vm12187_vm11, %v24595_v24  ;;  %v25175_v24 = vld [vmem:[#allocation7] ss:$0 sm:$0xff] }
 0xb23   : > { %19481 = vmatprep.mubr.msk.bf16.mxu1 %vm12187_vm11, %v24610_v58 }
 0xb2a   : > { %19482 = vmatmul.mubr.msk.bf16.gmra.mrb[244].mxu1 %vm12187_vm11, %v24622_v13 }
 0xb2b   : > { %19485 = vmatprep.mubr.msk.bf16.mxu1 %vm12187_vm11, %v24634_v6 }
 0xb32   : > { %19486 = vmatmul.mubr.msk.bf16.gmra.mrb[248].mxu1 %vm12187_vm11, %v24646_v25 }
 0xb33   : > { %19489 = vmatprep.mubr.msk.bf16.mxu1 %vm12187_vm11, %v24661_v0 }
 0xb3a   : > { %19490 = vmatmul.mubr.msk.bf16.gmra.mrb[252].mxu1 %vm12187_vm11, %v24825_v35 }
 0xb3b   : > { %19493 = vmatprep.mubr.msk.bf16.mxu1 %vm12187_vm11, %v24944_v12 }
 0xb42   : > { %19494 = vmatmul.mubr.msk.bf16.gmra.mrb[0].mxu1 %vm12187_vm11, %v25063_v60 }
 0xb43   : > { %19497 = vmatprep.mubr.msk.bf16.mxu1 %vm12187_vm11, %v14916_v38 }
 0xb4a   : > { %19498 = vmatmul.mubr.msk.bf16.gmra.mrb[4].mxu1 %vm12187_vm11, %v24731_v30 }
 0xb4b   : > { %19503 = vmatprep.mubr.msk.bf16.mxu1 %vm21481_vm5, %v25550_v1 }
 0xbf5   : > { %v19479_v58 = vpop.f32.mrb[240].mxu1 }
 0xbf6   : > { %v15096_v52 = vadd.f32 %v19479_v58, %v25175_v24  ;;  %v14969_v13 = vpop.f32.mrb[241].mxu1 }
 0xbf7   : > { %v15094_v11 = vadd.f32 %v25175_v24, %v14969_v13  ;;  %v19480_v55 = vpop.f32.mrb[242].mxu1 }
 0xbf8   : > { %v15120_v6 = vmax.f32 %v15096_v52, 0.0  ;;  %v15097_v19 = vadd.f32 %v19480_v55, %v25175_v24  ;;  %v14972_v47 = vpop.f32.mrb[243].mxu1 }
 0xbf9   : > { %v15118_v25 = vmax.f32 %v15094_v11, 0.0  ;;  %v15095_v44 = vadd.f32 %v25175_v24, %v14972_v47 }
 0xbfa   : > { %v15121_v49 = vmax.f32 %v15097_v19, 0.0 }
 0xbfb   : > { %v15142_v0 = vmax.f32 %v15118_v25, %v15120_v6  ;;  %v15119_v37 = vmax.f32 %v15095_v44, 0.0 }
 0xbfd   : > { %v15143_v45 = vmax.f32 %v15119_v37, %v15121_v49  ;;  %v19483_v54 = vpop.f32.mrb[244].mxu1 }
 0xbfe   : > { %v15100_v9 = vadd.f32 %v19483_v54, %v25175_v24  ;;  %v14985_v8 = vpop.f32.mrb[245].mxu1 }
 0xbff   : > { %v15154_v41 = vpack.c.bf16 %v15143_v45, %v15142_v0  ;;  %v15098_v7 = vadd.f32 %v25175_v24, %v14985_v8  ;;  %v19484_v46 = vpop.f32.mrb[246].mxu1 }
 0xc00   : > { %v15124_v30 = vmax.f32 %v15100_v9, 0.0  ;;  %v15101_v53 = vadd.f32 %v19484_v46, %v25175_v24  ;;  %v14988_v23 = vpop.f32.mrb[247].mxu1 }
 0xc01   : > { %v15122_v31 = vmax.f32 %v15098_v7, 0.0  ;;  %v15099_v28 = vadd.f32 %v25175_v24, %v14988_v23  ;;  %v15161_v20 = vsel %vm15159_vm13, %v15154_v41, 0 }
 0xc02   : > { %v15125_v34 = vmax.f32 %v15101_v53, 0.0  ;;  %19502 = vmatpush3.bf16.msra.mxu1 %v15161_v20 }
 0xc03   : > { %v15144_v48 = vmax.f32 %v15122_v31, %v15124_v30  ;;  %v15123_v35 = vmax.f32 %v15099_v28, 0.0  ;;  %19507 = vmatprep.subr.bf16.mxu1 %v25550_v1 }
 0xc05   : > { %v15145_v61 = vmax.f32 %v15123_v35, %v15125_v34  ;;  %v19487_v36 = vpop.f32.mrb[248].mxu1  ;;  %19504 = vmatmul.mubr.msk.bf16.vlgmr.msra.gmra.mrb[8].mxu1 %vm15155_vm14, %v25188_v17 }
 0xc06   : > { %v15104_v4 = vadd.f32 %v19487_v36, %v25175_v24  ;;  %v15001_v29 = vpop.f32.mrb[249].mxu1  ;;  %19508 = vmatpush3.bf16.msra.mxu1 %v15161_v20  ;;  %19509 = vmatprep.mubr.msk.bf16.mxu1 %vm21481_vm5, %v25550_v1 }
 0xc07   : > { %v15247_v5 = vpack.c.bf16 %v15145_v61, %v15144_v48  ;;  %v15102_v12 = vadd.f32 %v25175_v24, %v15001_v29  ;;  %v19488_v42 = vpop.f32.mrb[250].mxu1  ;;  %19513 = vmatprep.subr.bf16.mxu1 %v25550_v1 }
 0xc08   : > { %v15128_v62 = vmax.f32 %v15104_v4, 0.0  ;;  %v15105_v50 = vadd.f32 %v19488_v42, %v25175_v24  ;;  %v15004_v57 = vpop.f32.mrb[251].mxu1 }
 0xc09   : > { %v15126_v32 = vmax.f32 %v15102_v12, 0.0  ;;  %v15103_v59 = vadd.f32 %v25175_v24, %v15004_v57  ;;  %v15249_v15 = vsel %vm15159_vm13, %v15247_v5, 0 }
 0xc0a   : > { %v15129_v22 = vmax.f32 %v15105_v50, 0.0 }
 0xc0b   : > { %v15146_v21 = vmax.f32 %v15126_v32, %v15128_v62  ;;  %v15127_v39 = vmax.f32 %v15103_v59, 0.0 }
 0xc0d   : > { %v15147_v14 = vmax.f32 %v15127_v39, %v15129_v22  ;;  %v19491_v10 = vpop.f32.mrb[252].mxu1  ;;  %19510 = vmatmul.mubr.msk.bf16.vlgmr.msra.gmra.mrb[12].mxu1 %vm15155_vm14, %v25202_v56 }
 0xc0e   : > { %v15108_v60 = vadd.f32 %v19491_v10, %v25175_v24  ;;  %19514 = vmatpush3.bf16.msra.mxu1 %v15249_v15  ;;  %v15017_v16 = vpop.f32.mrb[253].mxu1  ;;  %19515 = vmatprep.mubr.msk.bf16.mxu1 %vm21481_vm5, %v25550_v1 }
 0xc0f   : > { %v15332_v63 = vpack.c.bf16 %v15147_v14, %v15146_v21  ;;  %v15106_v43 = vadd.f32 %v25175_v24, %v15017_v16  ;;  %v19492_v51 = vpop.f32.mrb[254].mxu1  ;;  %19519 = vmatprep.subr.bf16.mxu1 %v25550_v1 }
 0xc10   : > { %v15132_v27 = vmax.f32 %v15108_v60, 0.0  ;;  %v15109_v3 = vadd.f32 %v19492_v51, %v25175_v24  ;;  %v15020_v33 = vpop.f32.mrb[255].mxu1 }
 0xc11   : > { %v15130_v40 = vmax.f32 %v15106_v43, 0.0  ;;  %v15107_v2 = vadd.f32 %v25175_v24, %v15020_v33  ;;  %v15334_v41 = vsel %vm15159_vm13, %v15332_v63, 0 }
 0xc12   : > { %v15133_v26 = vmax.f32 %v15109_v3, 0.0 }
 0xc13   : > { %v15148_v18 = vmax.f32 %v15130_v40, %v15132_v27  ;;  %v15131_v38 = vmax.f32 %v15107_v2, 0.0 }
 0xc15   : > { %v15149_v58 = vmax.f32 %v15131_v38, %v15133_v26  ;;  %v19495_v52 = vpop.f32.mrb[0].mxu1  ;;  %19516 = vmatmul.mubr.msk.bf16.vlgmr.msra.gmra.mrb[16].mxu1 %vm15155_vm14, %v25188_v17 }
 0xc16   : > { %v15112_v13 = vadd.f32 %v19495_v52, %v25175_v24  ;;  %19520 = vmatpush3.bf16.msra.mxu1 %v15249_v15  ;;  %v15033_v11 = vpop.f32.mrb[1].mxu1  ;;  %19521 = vmatprep.mubr.msk.bf16.mxu1 %vm21481_vm5, %v25550_v1 }
 0xc17   : > { %v15417_v55 = vpack.c.bf16 %v15149_v58, %v15148_v18  ;;  %v15110_v6 = vadd.f32 %v25175_v24, %v15033_v11  ;;  %v19496_v19 = vpop.f32.mrb[2].mxu1  ;;  %19525 = vmatprep.subr.bf16.mxu1 %v25550_v1 }
 0xc18   : > { %v15136_v47 = vmax.f32 %v15112_v13, 0.0  ;;  %v15113_v25 = vadd.f32 %v19496_v19, %v25175_v24  ;;  %v15036_v44 = vpop.f32.mrb[3].mxu1 }
 0xc19   : > { %v15134_v49 = vmax.f32 %v15110_v6, 0.0  ;;  %v15111_v0 = vadd.f32 %v25175_v24, %v15036_v44 }
 0xc1a   : > { %v15137_v37 = vmax.f32 %v15113_v25, 0.0 }
 0xc1b   : > { %v15150_v45 = vmax.f32 %v15134_v49, %v15136_v47  ;;  %v15135_v54 = vmax.f32 %v15111_v0, 0.0 }
 0xc1d   : > { %v15151_v9 = vmax.f32 %v15135_v54, %v15137_v37  ;;  %v19499_v8 = vpop.f32.mrb[4].mxu1  ;;  %19522 = vmatmul.mubr.msk.bf16.vlgmr.msra.gmra.mrb[20].mxu1 %vm15155_vm14, %v25202_v56 }
 0xc1e   : > { %v15116_v7 = vadd.f32 %v19499_v8, %v25175_v24  ;;  %19526 = vmatpush3.bf16.msra.mxu1 %v15334_v41  ;;  %v15049_v46 = vpop.f32.mrb[5].mxu1  ;;  %19527 = vmatprep.mubr.msk.bf16.mxu1 %vm21481_vm5, %v25550_v1 }
 0xc1f   : > { %v15502_v30 = vpack.c.bf16 %v15151_v9, %v15150_v45  ;;  %v15114_v53 = vadd.f32 %v25175_v24, %v15049_v46  ;;  %v19500_v23 = vpop.f32.mrb[6].mxu1  ;;  %19531 = vmatprep.subr.bf16.mxu1 %v25550_v1 }
 0xc20   : > { %v15140_v31 = vmax.f32 %v15116_v7, 0.0  ;;  %v15117_v28 = vadd.f32 %v19500_v23, %v25175_v24  ;;  %v15052_v20 = vpop.f32.mrb[7].mxu1 }
 0xc21   : > { %v15138_v34 = vmax.f32 %v15114_v53, 0.0  ;;  %v15115_v48 = vadd.f32 %v25175_v24, %v15052_v20  ;;  %v15419_v24 = vsel %vm15159_vm13, %v15417_v55, 0  ;;  %v15504_v12 = vsel %vm15159_vm13, %v15502_v30, 0 }
 0xc22   : > { %v15141_v35 = vmax.f32 %v15117_v28, 0.0 }
 0xc23   : > { %v15152_v61 = vmax.f32 %v15138_v34, %v15140_v31  ;;  %v15139_v36 = vmax.f32 %v15115_v48, 0.0 }
 0xc25   : > { %v15153_v4 = vmax.f32 %v15139_v36, %v15141_v35  ;;  %19528 = vmatmul.mubr.msk.bf16.vlgmr.msra.gmra.mrb[24].mxu1 %vm15155_vm14, %v25188_v17 }
 0xc26   : > { %19532 = vmatpush3.bf16.msra.mxu1 %v15334_v41  ;;  %19533 = vmatprep.mubr.msk.bf16.mxu1 %vm21481_vm5, %v25550_v1 }
 0xc27   : > { %v15587_v29 = vpack.c.bf16 %v15153_v4, %v15152_v61  ;;  %19537 = vmatprep.subr.bf16.mxu1 %v25550_v1 }
 0xc29   : > { %v15589_v5 = vsel %vm15159_vm13, %v15587_v29, 0 }
 0xc2d   : > { %19534 = vmatmul.mubr.msk.bf16.vlgmr.msra.gmra.mrb[28].mxu1 %vm15155_vm14, %v25202_v56 }
 0xc2e   : > { %19538 = vmatpush3.bf16.msra.mxu1 %v15419_v24  ;;  %19539 = vmatprep.mubr.msk.bf16.mxu1 %vm21481_vm5, %v25550_v1 }
 0xc2f   : > { %19543 = vmatprep.subr.bf16.mxu1 %v25550_v1 }
 0xc35   : > { %19540 = vmatmul.mubr.msk.bf16.vlgmr.msra.gmra.mrb[32].mxu1 %vm15155_vm14, %v25188_v17 }
 0xc36   : > { %19544 = vmatpush3.bf16.msra.mxu1 %v15419_v24  ;;  %19545 = vmatprep.mubr.msk.bf16.mxu1 %vm21481_vm5, %v25550_v1 }
 0xc37   : > { %19549 = vmatprep.subr.bf16.mxu1 %v25550_v1 }
 0xc3d   : > { %19546 = vmatmul.mubr.msk.bf16.vlgmr.msra.gmra.mrb[36].mxu1 %vm15155_vm14, %v25202_v56 }
 0xc3e   : > { %19550 = vmatpush3.bf16.msra.mxu1 %v15504_v12  ;;  %19551 = vmatprep.mubr.msk.bf16.mxu1 %vm21481_vm5, %v25550_v1 }
 0xc3f   : > { %19555 = vmatprep.subr.bf16.mxu1 %v25550_v1 }
 0xc45   : > { %19552 = vmatmul.mubr.msk.bf16.vlgmr.msra.gmra.mrb[40].mxu1 %vm15155_vm14, %v25188_v17 }
 0xc46   : > { %19556 = vmatpush3.bf16.msra.mxu1 %v15504_v12  ;;  %19557 = vmatprep.mubr.msk.bf16.mxu1 %vm21481_vm5, %v25550_v1 }
 0xc47   : > { %19561 = vmatprep.subr.bf16.mxu1 %v25550_v1 }
 0xc4d   : > { %19558 = vmatmul.mubr.msk.bf16.vlgmr.msra.gmra.mrb[44].mxu1 %vm15155_vm14, %v25202_v56 }
 0xc4e   : > { %19562 = vmatpush3.bf16.msra.mxu1 %v15589_v5  ;;  %19563 = vmatprep.mubr.msk.bf16.mxu1 %vm21481_vm5, %v25550_v1 }
 0xc4f   : > { %19567 = vmatprep.subr.bf16.mxu1 %v25550_v1 }
 0xc55   : > { %19564 = vmatmul.mubr.msk.bf16.vlgmr.msra.gmra.mrb[48].mxu1 %vm15155_vm14, %v25188_v17 }
 0xc56   : > { %19568 = vmatpush3.bf16.msra.mxu1 %v15589_v5  ;;  %19569 = vmatprep.mubr.msk.bf16.mxu1 %vm21481_vm5, %v25550_v1 }
 0xc5d   : > { %19570 = vmatmul.mubr.msk.bf16.vlgmr.msra.gmra.mrb[52].mxu1 %vm15155_vm14, %v25202_v56 }
 0xcd8   : > { %v15197_v42 = vpop.f32.mrb[8].mxu1 }
 0xcd9   : > { %v19505_v62 = vpop.f32.mrb[9].mxu1 }
 0xcda   : > { %v15200_v50 = vpop.f32.mrb[10].mxu1 }
 0xcdb   : > { %v19506_v57 = vpop.f32.mrb[11].mxu1 }
 0xce0   : > { %v15240_v32 = vpop.f32.mrb[12].mxu1 }
 0xce1   : > { %v15246_v59 = vmax.f32 %v15197_v42, %v15240_v32  ;;  %v19511_v22 = vpop.f32.mrb[13].mxu1 }
 0xce2   : > { %v15243_v1 = vpop.f32.mrb[14].mxu1 }
 0xce3   : > { %v16822_v17 = vpack.c.bf16 %v15246_v59, %v15246_v59  ;;  %v19512_v21 = vpop.f32.mrb[15].mxu1 }
 0xce5   : > { %15697 = vst.msk [vmem:[%s25276_s17] sm:$0xf] %vm15696_vm15, %v16822_v17 }
 0xce8   : > { %v15285_v56 = vpop.f32.mrb[16].mxu1 }
 0xce9   : > { %v19517_v39 = vpop.f32.mrb[17].mxu1 }
 0xcea   : > { %v15288_v14 = vpop.f32.mrb[18].mxu1 }
 0xceb   : > { %v19518_v10 = vpop.f32.mrb[19].mxu1 }
 0xcf0   : > { %v15325_v15 = vpop.f32.mrb[20].mxu1 }
 0xcf1   : > { %v15331_v60 = vmax.f32 %v15285_v56, %v15325_v15  ;;  %v19523_v16 = vpop.f32.mrb[21].mxu1 }
 0xcf2   : > { %v15328_v63 = vpop.f32.mrb[22].mxu1 }
 0xcf3   : > { %v16823_v43 = vpack.c.bf16 %v15331_v60, %v15331_v60  ;;  %v19524_v51 = vpop.f32.mrb[23].mxu1 }
 0xcf5   : > { %15698 = vst.msk [vmem:[%s25276_s17 + $0x4] sm:$0xf] %vm15696_vm15, %v16823_v43 }
 0xcf8   : > { %v15370_v27 = vpop.f32.mrb[24].mxu1 }
 0xcf9   : > { %v19529_v3 = vpop.f32.mrb[25].mxu1 }
 0xcfa   : > { %v15373_v33 = vpop.f32.mrb[26].mxu1 }
 0xcfb   : > { %v19530_v40 = vpop.f32.mrb[27].mxu1 }
 0xd00   : > { %v15410_v2 = vpop.f32.mrb[28].mxu1 }
 0xd01   : > { %v15416_v26 = vmax.f32 %v15370_v27, %v15410_v2  ;;  %v19535_v18 = vpop.f32.mrb[29].mxu1 }
 0xd02   : > { %v15413_v38 = vpop.f32.mrb[30].mxu1 }
 0xd03   : > { %v16824_v58 = vpack.c.bf16 %v15416_v26, %v15416_v26  ;;  %v19536_v52 = vpop.f32.mrb[31].mxu1 }
 0xd05   : > { %15699 = vst.msk [vmem:[%s25276_s17 + $0x8] sm:$0xf] %vm15696_vm15, %v16824_v58 }
 0xd08   : > { %v15455_v13 = vpop.f32.mrb[32].mxu1 }
 0xd09   : > { %v19541_v11 = vpop.f32.mrb[33].mxu1 }
 0xd0a   : > { %v15458_v55 = vpop.f32.mrb[34].mxu1 }
 0xd0b   : > { %v19542_v6 = vpop.f32.mrb[35].mxu1 }
 0xd10   : > { %v15495_v19 = vpop.f32.mrb[36].mxu1 }
 0xd11   : > { %v15501_v47 = vmax.f32 %v15455_v13, %v15495_v19  ;;  %v19547_v25 = vpop.f32.mrb[37].mxu1 }
 0xd12   : > { %v15498_v44 = vpop.f32.mrb[38].mxu1 }
 0xd13   : > { %v16825_v49 = vpack.c.bf16 %v15501_v47, %v15501_v47  ;;  %v19548_v0 = vpop.f32.mrb[39].mxu1 }
 0xd15   : > { %15700 = vst.msk [vmem:[%s25276_s17 + $0xc] sm:$0xf] %vm15696_vm15, %v16825_v49 }
 0xd18   : > { %v15540_v37 = vpop.f32.mrb[40].mxu1 }
 0xd19   : > { %v19553_v45 = vpop.f32.mrb[41].mxu1 }
 0xd1a   : > { %v15543_v54 = vpop.f32.mrb[42].mxu1 }
 0xd1b   : > { %v19554_v9 = vpop.f32.mrb[43].mxu1 }
 0xd20   : > { %v15580_v8 = vpop.f32.mrb[44].mxu1 }
 0xd21   : > { %v15586_v41 = vmax.f32 %v15540_v37, %v15580_v8  ;;  %v19559_v7 = vpop.f32.mrb[45].mxu1 }
 0xd22   : > { %v15583_v46 = vpop.f32.mrb[46].mxu1 }
 0xd23   : > { %v16826_v30 = vpack.c.bf16 %v15586_v41, %v15586_v41  ;;  %v19560_v53 = vpop.f32.mrb[47].mxu1 }
 0xd25   : > { %15701 = vst.msk [vmem:[%s25276_s17 + $0x10] sm:$0xf] %vm15696_vm15, %v16826_v30 }
 0xd28   : > { %v15625_v23 = vpop.f32.mrb[48].mxu1 }
 0xd29   : > { %v19565_v31 = vpop.f32.mrb[49].mxu1 }
 0xd2a   : > { %v15628_v28 = vpop.f32.mrb[50].mxu1 }
 0xd2b   : > { %v19566_v20 = vpop.f32.mrb[51].mxu1 }
 0xd30   : > { %v15665_v34 = vpop.f32.mrb[52].mxu1 }
 0xd31   : > { %v15671_v48 = vmax.f32 %v15625_v23, %v15665_v34  ;;  %v19571_v35 = vpop.f32.mrb[53].mxu1 }
 0xd32   : > { %v15668_v61 = vpop.f32.mrb[54].mxu1 }
 0xd33   : > { %v16827_v36 = vpack.c.bf16 %v15671_v48, %v15671_v48  ;;  %v19572_v4 = vpop.f32.mrb[55].mxu1 }
 0xd35   : > { %15702 = vst.msk [vmem:[%s25276_s17 + $0x14] sm:$0xf] %vm15696_vm15, %v16827_v36 }
 0xd36 PF: > { %s18_s18 = sadd.s32 1, %s21469_s18  }
 0xd37   : > { %p15_p11 = scmp.ge.s32.totalorder %s18_s18, 4  }
 0xd39   :  { %17 = sbr.rel (!%p15_p11) target bundleno = 3 (0x3), region = 110 }
 0xd40   :  { %15724 = vsyncpa [#allocation3], 1 }
 0xd41   :  { %15726 = vsyncpa [#allocation3 + $0x1], 1 }
 0xd42   :  { %15727 = vsyncpa [#allocation5], 1 }
 0xd43   :  { %15728 = vsyncpa [#allocation8], 1 }

</bundles_post_ra>
